<compile_context>
chip_gen: v5e
topology: v5e:2x2
jax: 0.10.0
libtpu: 0.0.40
codegen_flags: <defaults>
</compile_context>

<pallas_src>
import functools
import math

import jax
import jax.numpy as jnp
from jax.experimental import pallas as pl
from jax.experimental.pallas import tpu as pltpu

# bf16 matmul operands / f32 accumulation.  Set to jnp.float32 for strict f32
# parity with the PyTorch reference (costs MXU throughput + HBM bytes).
MXU_DTYPE = jnp.bfloat16
_LN_EPS = 1e-5                       # PyTorch nn.LayerNorm default
_INV_SQRT2 = 1.0 / math.sqrt(2.0)


# ------------------------------ in-kernel helpers ------------------------------

def _mm(a, b):
    """2-D matmul on the MXU with f32 accumulation."""
    return jnp.dot(a.astype(MXU_DTYPE), b.astype(MXU_DTYPE),
                   preferred_element_type=jnp.float32)


def _bmm(a3, w2):
    """(bt, S, Kc) x (Kc, N) -> (bt, S, N): batched dot with the weight broadcast
    over the leading batch dim (avoids any in-kernel reshapes)."""
    bt = a3.shape[0]
    wb = jnp.broadcast_to(w2.astype(MXU_DTYPE)[None], (bt,) + w2.shape)
    return jax.lax.dot_general(a3.astype(MXU_DTYPE), wb,
                               (((2,), (1,)), ((0,), (0,))),
                               preferred_element_type=jnp.float32)


def _layernorm(x, g, b):
    mu = jnp.mean(x, axis=-1, keepdims=True)
    xc = x - mu
    var = jnp.mean(xc * xc, axis=-1, keepdims=True)
    return xc * jax.lax.rsqrt(var + _LN_EPS) * g + b


def _sigmoid(x):
    # Numerically stable sigmoid via EUP tanh: sigmoid(x) = 0.5*(1 + tanh(x/2)).
    return 0.5 * (1.0 + jnp.tanh(0.5 * x))


def _gelu(x):
    # TODO(synk): tanh-approx GELU (EUP tanh); PyTorch TransformerEncoderLayer
    # uses exact-erf GELU -> ~1e-3 level difference.
    c = math.sqrt(2.0 / math.pi)
    return 0.5 * x * (1.0 + jnp.tanh(c * (x + 0.044715 * x * x * x)))


def _full_spec(shape):
    """Whole-array (weight) BlockSpec, re-presented at every grid step."""
    zeros = (0,) * len(shape)
    return pl.BlockSpec(tuple(shape), lambda i: zeros)


# ----------------------- fused transformer encoder layer -----------------------

def _encoder_layer_kernel(x_ref, wqkv_ref, bqkv_ref, wo_ref, bo_ref,
                          ln1g_ref, ln1b_ref,
                          wff1_ref, bff1_ref, wff2_ref, bff2_ref,
                          ln2g_ref, ln2b_ref, o_ref, *, nheads, scale):
    bt, S, C = x_ref.shape
    x = x_ref[...]                                         # (bt, S, C) f32

    # ---- multi-head self attention (per-head weights pre-split) ----
    attn = jnp.zeros((bt, S, C), jnp.float32)
    for h in range(nheads):
        q = _bmm(x, wqkv_ref[0, h]) + bqkv_ref[0, h][None]          # (bt, S, Dh)
        k = _bmm(x, wqkv_ref[1, h]) + bqkv_ref[1, h][None]
        v = _bmm(x, wqkv_ref[2, h]) + bqkv_ref[2, h][None]
        s = jax.lax.dot_general(q.astype(MXU_DTYPE), k.astype(MXU_DTYPE),
                                (((2,), (2,)), ((0,), (0,))),
                                preferred_element_type=jnp.float32) * scale
        m = jnp.max(s, axis=-1, keepdims=True)
        e = jnp.exp(s - m)
        p = e * pl.reciprocal(jnp.sum(e, axis=-1, keepdims=True), approx=True)
        o_h = jax.lax.dot_general(p.astype(MXU_DTYPE), v.astype(MXU_DTYPE),
                                  (((2,), (1,)), ((0,), (0,))),
                                  preferred_element_type=jnp.float32)  # (bt,S,Dh)
        attn = attn + _bmm(o_h, wo_ref[h])
    attn = attn + bo_ref[...][None]

    h1 = _layernorm(x + attn, ln1g_ref[...][None], ln1b_ref[...][None])

    # ---- feed-forward (GELU fused in-kernel) ----
    f = _bmm(h1, wff1_ref[...]) + bff1_ref[...][None]
    f = _gelu(f)
    f = _bmm(f, wff2_ref[...]) + bff2_ref[...][None]
    h2 = _layernorm(h1 + f, ln2g_ref[...][None], ln2b_ref[...][None])

    o_ref[...] = h2


def transformer_encoder_layer(x3, p, nheads):
    """Post-norm PyTorch TransformerEncoderLayer (eval mode).  x3: (Bt, S, C)."""
    Bt, S, C = x3.shape
    Dh = C // nheads
    grid = 2 if Bt % 2 == 0 else 1                 # 2 programs -> v7x megacore split
    blk = Bt // grid
    act_spec = pl.BlockSpec((blk, S, C), lambda i: (i, 0, 0))

    w_names = ("wqkv", "bqkv", "wo", "bo", "ln1_g", "ln1_b",
               "wff1", "bff1", "wff2", "bff2", "ln2_g", "ln2_b")
    weights = [p[n] for n in w_names]

    M = Bt * S
    F = p["wff1"].shape[1]
    flops = 8 * M * C * C + 4 * Bt * S * S * C + 4 * M * C * F
    trans = Bt * nheads * S * S + M * F + 4 * M
    nbytes = 4 * (2 * M * C + sum(int(w.size) for w in weights))

    return pl.pallas_call(
        functools.partial(_encoder_layer_kernel, nheads=nheads,
                          scale=1.0 / math.sqrt(Dh)),
        grid=(grid,),
        in_specs=[act_spec] + [_full_spec(w.shape) for w in weights],
        out_specs=act_spec,
        out_shape=jax.ShapeDtypeStruct((Bt, S, C), jnp.float32),
        compiler_params=pltpu.CompilerParams(dimension_semantics=("parallel",)),
        cost_estimate=pl.CostEstimate(flops=int(flops), transcendentals=int(trans),
                                      bytes_accessed=int(nbytes)),
    )(x3, *weights)


# ------------------- fused residual-block conv / gate / out --------------------

def _residual_gate_kernel(y_ref, c_ref, x_ref,
                          wmg_ref, wmf_ref, bmg_ref, bmf_ref,
                          wcg_ref, wcf_ref, bcg_ref, bcf_ref,
                          wor_ref, wos_ref, bor_ref, bos_ref,
                          res_ref, skip_ref):
    y = y_ref[...]
    c = c_ref[...]
    gate = _mm(y, wmg_ref[...]) + _mm(c, wcg_ref[...]) + bmg_ref[...] + bcg_ref[...]
    filt = _mm(y, wmf_ref[...]) + _mm(c, wcf_ref[...]) + bmf_ref[...] + bcf_ref[...]
    z = _sigmoid(gate) * jnp.tanh(filt)
    res_ref[...] = (x_ref[...] + _mm(z, wor_ref[...]) + bor_ref[...]) * _INV_SQRT2
    skip_ref[...] = _mm(z, wos_ref[...]) + bos_ref[...]


def residual_gate_conv(y2d, cond2d, x2d, p):
    """mid+cond 1x1 convs, gated activation, out 1x1 conv, residual & skip."""
    M, C = y2d.shape
    Dside = cond2d.shape[1]
    grid = 2 if (M % 2 == 0 and (M // 2) % 8 == 0) else 1
    rb = M // grid
    spec_c = pl.BlockSpec((rb, C), lambda i: (i, 0))
    spec_s = pl.BlockSpec((rb, Dside), lambda i: (i, 0))

    w_names = ("w_mid_g", "w_mid_f", "b_mid_g", "b_mid_f",
               "w_cond_g", "w_cond_f", "b_cond_g", "b_cond_f",
               "w_out_r", "w_out_s", "b_out_r", "b_out_s")
    weights = [p[n] for n in w_names]

    flops = 8 * M * C * C + 4 * M * Dside * C
    trans = 2 * M * C
    nbytes = 4 * (M * (3 * C + Dside) + 2 * M * C + sum(int(w.size) for w in weights))

    return pl.pallas_call(
        _residual_gate_kernel,
        grid=(grid,),
        in_specs=[spec_c, spec_s, spec_c] + [_full_spec(w.shape) for w in weights],
        out_specs=(spec_c, spec_c),
        out_shape=(jax.ShapeDtypeStruct((M, C), jnp.float32),
                   jax.ShapeDtypeStruct((M, C), jnp.float32)),
        compiler_params=pltpu.CompilerParams(dimension_semantics=("parallel",)),
        cost_estimate=pl.CostEstimate(flops=int(flops), transcendentals=int(trans),
                                      bytes_accessed=int(nbytes)),
    )(y2d, cond2d, x2d, *weights)


# ----------------------------- input / output heads ----------------------------

def _input_proj_kernel(x_ref, w_ref, b_ref, o_ref):
    # input_dim == 1: the 1x1 conv degenerates to a broadcast multiply (VPU) + ReLU.
    o_ref[...] = jnp.maximum(x_ref[...] * w_ref[...] + b_ref[...], 0.0)


def input_projection(x_col, w, b):
    M = x_col.shape[0]
    C = w.shape[1]
    grid = 2 if (M % 2 == 0 and (M // 2) % 8 == 0) else 1
    rb = M // grid
    return pl.pallas_call(
        _input_proj_kernel,
        grid=(grid,),
        in_specs=[pl.BlockSpec((rb, 1), lambda i: (i, 0)),
                  _full_spec(w.shape), _full_spec(b.shape)],
        out_specs=pl.BlockSpec((rb, C), lambda i: (i, 0)),
        out_shape=jax.ShapeDtypeStruct((M, C), jnp.float32),
        compiler_params=pltpu.CompilerParams(dimension_semantics=("parallel",)),
    )(x_col, w, b)


def _output_proj_kernel(s_ref, w1_ref, b1_ref, w2_ref, b2_ref, o_ref, *, scale):
    h = jnp.maximum(_mm(s_ref[...] * scale, w1_ref[...]) + b1_ref[...], 0.0)
    o_ref[...] = _mm(h, w2_ref[...]) + b2_ref[...]


def output_projection(skip2d, w1, b1, w2, b2, scale):
    M, C = skip2d.shape
    grid = 2 if (M % 2 == 0 and (M // 2) % 8 == 0) else 1
    rb = M // grid
    return pl.pallas_call(
        functools.partial(_output_proj_kernel, scale=scale),
        grid=(grid,),
        in_specs=[pl.BlockSpec((rb, C), lambda i: (i, 0)),
                  _full_spec(w1.shape), _full_spec(b1.shape),
                  _full_spec(w2.shape), _full_spec(b2.shape)],
        out_specs=pl.BlockSpec((rb, 1), lambda i: (i, 0)),
        out_shape=jax.ShapeDtypeStruct((M, 1), jnp.float32),
        compiler_params=pltpu.CompilerParams(dimension_semantics=("parallel",)),
    )(skip2d, w1, b1, w2, b2)


# ------------------------------- model structure -------------------------------

def residual_block(x4, cond2d, p, nheads):
    """x4: (B, K, L, C) channels-last; cond2d: (B*K*L, side_dim)."""
    B, K, L, C = x4.shape
    y = x4
    if L != 1:                                    # forward_time: seq=L, batch=B*K
        yt = transformer_encoder_layer(y.reshape(B * K, L, C), p["time"], nheads)
        y = yt.reshape(B, K, L, C)
    if K != 1:                                    # forward_feature: seq=K, batch=B*L
        yf = jnp.transpose(y, (0, 2, 1, 3)).reshape(B * L, K, C)
        yf = transformer_encoder_layer(yf, p["feat"], nheads)
        y = jnp.transpose(yf.reshape(B, L, K, C), (0, 2, 1, 3))
    M = B * K * L
    res2d, skip2d = residual_gate_conv(y.reshape(M, C), cond2d, x4.reshape(M, C), p)
    return res2d.reshape(B, K, L, C), skip2d


def skip_transformer(X, cond2d, p, nheads):
    B, K, L = X.shape
    M = B * K * L
    h0 = input_projection(X.reshape(M, 1), p["in_w"], p["in_b"])   # ReLU fused
    C = h0.shape[1]
    x4 = h0.reshape(B, K, L, C)

    skip_sum = None
    for lp in p["layers"]:
        x4, skip2d = residual_block(x4, cond2d, lp, nheads)
        skip_sum = skip2d if skip_sum is None else skip_sum + skip2d

    out = output_projection(skip_sum, p["op1_w"], p["op1_b"], p["op2_w"], p["op2_b"],
                            1.0 / math.sqrt(len(p["layers"])))
    return out.reshape(B, K, L)


# -------------------------- side info (plain JAX setup) -------------------------

def time_embedding(pos, d_model):
    position = pos[:, :, None]
    div_term = 1.0 / jnp.power(
        10000.0, jnp.arange(0, d_model, 2, dtype=jnp.float32) / d_model)
    pe = jnp.zeros((pos.shape[0], pos.shape[1], d_model), jnp.float32)
    pe = pe.at[:, :, 0::2].set(jnp.sin(position * div_term))
    pe = pe.at[:, :, 1::2].set(jnp.cos(position * div_term))
    return pe


def station_position_embedding(pos, d_model):
    pes = []
    for coord in range(2):
        position = pos[:, :, coord][:, :, None]
        div_term = 1.0 / jnp.power(
            10000.0,
            jnp.arange(0, d_model // 2, 2, dtype=jnp.float32) / (d_model // 2))
        pe = jnp.zeros((pos.shape[0], pos.shape[1], d_model // 2), jnp.float32)
        pe = pe.at[:, :, 0::2].set(jnp.sin(position * div_term))
        pe = pe.at[:, :, 1::2].set(jnp.cos(position * div_term))
        pes.append(pe)
    return jnp.concatenate(pes, axis=-1)


def get_side_info(B, K, L, timepoints, station_positions, emb_time_dim, emb_pos_dim):
    """Channels-last side info flattened to (B*K*L, side_dim) rows (row order
    matches the PyTorch (B, side_dim, K, L) conv layout)."""
    tp = jnp.tile(timepoints[None, :], (B, 1))                      # (B, L)
    te = time_embedding(tp, emb_time_dim)                           # (B, L, et)
    sp = jnp.tile(station_positions[None, :, :], (B, 1, 1))         # (B, K, 2)
    pe = station_position_embedding(sp, emb_pos_dim)                # (B, K, ep)
    te4 = jnp.broadcast_to(te[:, None, :, :], (B, K, L, emb_time_dim))
    pe4 = jnp.broadcast_to(pe[:, :, None, :], (B, K, L, emb_pos_dim))
    side = jnp.concatenate([te4, pe4], axis=-1)                     # (B, K, L, side)
    return side.reshape(B * K * L, emb_time_dim + emb_pos_dim)


def conditional_transformer_forward(X, params, config, timepoints, station_positions):
    B, K, L = X.shape
    cond2d = get_side_info(B, K, L, timepoints, station_positions,
                           config["timeemb"], config["posemb"])
    return skip_transformer(X, cond2d, params["diffmodel"], config["nheads"])


# --------------------------------- params init ---------------------------------

def init_params(key, config, input_dim=1):
    C = config["channels"]
    H = config["nheads"]
    Dh = C // H
    side_dim = config["timeemb"] + config["posemb"]
    FF = 64                                   # TransformerEncoderLayer dim_feedforward
    keys = iter(jax.random.split(key, 512))

    def w(shape, scale=0.05):
        return scale * jax.random.normal(next(keys), shape, dtype=jnp.float32)

    def trans_params():
        # Per-head pre-split layout of the PyTorch MultiheadAttention weights:
        #   wqkv[i, h] == in_proj_weight[i*C + h*Dh : i*C + (h+1)*Dh, :].T   (C, Dh)
        #   wo[h]      == out_proj.weight[:, h*Dh:(h+1)*Dh].T                (Dh, C)
        return dict(
            wqkv=w((3, H, C, Dh)), bqkv=w((3, H, 1, Dh)),
            wo=w((H, Dh, C)), bo=w((1, C)),
            ln1_g=jnp.ones((1, C), jnp.float32), ln1_b=jnp.zeros((1, C), jnp.float32),
            wff1=w((C, FF)), bff1=w((1, FF)),
            wff2=w((FF, C)), bff2=w((1, C)),
            ln2_g=jnp.ones((1, C), jnp.float32), ln2_b=jnp.zeros((1, C), jnp.float32),
        )

    layers = []
    for _ in range(config["layers"]):
        # 1x1-conv weights stored transposed and pre-split into the two C-wide
        # halves of the 2C outputs: gate/filter (mid & cond projections) and
        # residual/skip (output projection).
        layers.append(dict(
            w_mid_g=w((C, C)), w_mid_f=w((C, C)),
            b_mid_g=w((1, C)), b_mid_f=w((1, C)),
            w_cond_g=w((side_dim, C)), w_cond_f=w((side_dim, C)),
            b_cond_g=w((1, C)), b_cond_f=w((1, C)),
            w_out_r=w((C, C)), w_out_s=w((C, C)),
            b_out_r=w((1, C)), b_out_s=w((1, C)),
            time=trans_params(), feat=trans_params(),
        ))

    # NOTE: PyTorch zero-inits output_projection2.weight; small nonzero values are
    # used here so the full kernel path is numerically exercised.
    diff = dict(
        in_w=w((input_dim, C)), in_b=w((1, C)),
        op1_w=w((C, C)), op1_b=w((1, C)),
        op2_w=w((C, 1)), op2_b=w((1, 1)),
        layers=layers,
    )
    return dict(diffmodel=diff)


# ------------------------------------- main -------------------------------------

if __name__ == "__main__":
    B, K, L = 2, 4, 8              # batch, stations (K), sequence length (L)
    config = dict(channels=32, nheads=4, layers=2, timeemb=16, posemb=16)

    key = jax.random.PRNGKey(0)
    k1, k2, k3 = jax.random.split(key, 3)
    X = jax.random.normal(k1, (B, K, L), dtype=jnp.float32)
    station_positions = jax.random.normal(k2, (K, 2), dtype=jnp.float32)
    timepoints = jnp.arange(L, dtype=jnp.float32)
    params = init_params(k3, config)

    @jax.jit
    def run(X, params, timepoints, station_positions):
        return conditional_transformer_forward(X, params, config,
                                               timepoints, station_positions)

    out = run(X, params, timepoints, station_positions)
    jax.block_until_ready(out)
    assert out.shape == (B, K, L), out.shape
    assert jnp.all(jnp.isfinite(out))
    print("KERNEL_OK")
</pallas_src>

<mosaic_0001>
module attributes {stable_mosaic.version = 11 : i64} {
  func.func @_input_proj_kernel(%arg0: i32, %arg1: memref<32x1xf32, #tpu.memory_space<vmem>>, %arg2: memref<1x32xf32, #tpu.memory_space<vmem>>, %arg3: memref<1x32xf32, #tpu.memory_space<vmem>>, %arg4: memref<32x32xf32, #tpu.memory_space<vmem>>) attributes {dimension_semantics = [#tpu.dimension_semantics<parallel>], iteration_bounds = array<i64: 2>, scalar_prefetch = 0 : i64, scratch_operands = 0 : i64, tpu.core_type = #tpu.core_type<tc>, window_params = [{transform_indices = @transform_0, window_bounds = array<i64: 32, 1>}, {pipeline_mode = #tpu.pipeline_mode<synchronous>, transform_indices = @transform_1, window_bounds = array<i64: 1, 32>}, {pipeline_mode = #tpu.pipeline_mode<synchronous>, transform_indices = @transform_2, window_bounds = array<i64: 1, 32>}, {transform_indices = @transform_3, window_bounds = array<i64: 32, 32>}]} {
    %c0 = arith.constant 0 : index
    %c0_0 = arith.constant 0 : index
    %0 = vector.load %arg1[%c0, %c0_0] : memref<32x1xf32, #tpu.memory_space<vmem>>, vector<32x1xf32>
    %c0_1 = arith.constant 0 : index
    %c0_2 = arith.constant 0 : index
    %1 = vector.load %arg2[%c0_1, %c0_2] : memref<1x32xf32, #tpu.memory_space<vmem>>, vector<1x32xf32>
    %2 = vector.broadcast %0 : vector<32x1xf32> to vector<32x32xf32>
    %3 = vector.broadcast %1 : vector<1x32xf32> to vector<32x32xf32>
    %4 = arith.mulf %2, %3 : vector<32x32xf32>
    %c0_3 = arith.constant 0 : index
    %c0_4 = arith.constant 0 : index
    %5 = vector.load %arg3[%c0_3, %c0_4] : memref<1x32xf32, #tpu.memory_space<vmem>>, vector<1x32xf32>
    %6 = vector.broadcast %5 : vector<1x32xf32> to vector<32x32xf32>
    %7 = arith.addf %4, %6 : vector<32x32xf32>
    %cst = arith.constant 0.000000e+00 : f32
    %8 = vector.broadcast %cst : f32 to vector<32x32xf32>
    %9 = arith.maximumf %7, %8 : vector<32x32xf32>
    %c0_5 = arith.constant 0 : index
    %c0_6 = arith.constant 0 : index
    %10 = vector.load %arg4[%c0_5, %c0_6] : memref<32x32xf32, #tpu.memory_space<vmem>>, vector<32x32xf32>
    tpu.vector_store %arg4[%c0_5, %c0_6], %9 {strides = array<i32>} : memref<32x32xf32, #tpu.memory_space<vmem>>, vector<32x32xf32>,
    return
  }
  func.func @transform_0(%arg0: i32) -> (i32, i32) {
    %c0_i32 = arith.constant 0 : i32
    %c0_i32_0 = arith.constant 0 : i32
    return %arg0, %c0_i32 : i32, i32
  }
  func.func @transform_1(%arg0: i32) -> (i32, i32) {
    %c0_i32 = arith.constant 0 : i32
    %c0_i32_0 = arith.constant 0 : i32
    %c0_i32_1 = arith.constant 0 : i32
    return %c0_i32, %c0_i32_0 : i32, i32
  }
  func.func @transform_2(%arg0: i32) -> (i32, i32) {
    %c0_i32 = arith.constant 0 : i32
    %c0_i32_0 = arith.constant 0 : i32
    %c0_i32_1 = arith.constant 0 : i32
    return %c0_i32, %c0_i32_0 : i32, i32
  }
  func.func @transform_3(%arg0: i32) -> (i32, i32) {
    %c0_i32 = arith.constant 0 : i32
    %c0_i32_0 = arith.constant 0 : i32
    return %arg0, %c0_i32 : i32, i32
  }
}

module attributes {stable_mosaic.version = 11 : i64} {
  func.func @_encoder_layer_kernel(%arg0: i32, %arg1: memref<4x8x32xf32, #tpu.memory_space<vmem>>, %arg2: memref<3x4x32x8xf32, #tpu.memory_space<vmem>>, %arg3: memref<3x4x1x8xf32, #tpu.memory_space<vmem>>, %arg4: memref<4x8x32xf32, #tpu.memory_space<vmem>>, %arg5: memref<1x32xf32, #tpu.memory_space<vmem>>, %arg6: memref<1x32xf32, #tpu.memory_space<vmem>>, %arg7: memref<1x32xf32, #tpu.memory_space<vmem>>, %arg8: memref<32x64xf32, #tpu.memory_space<vmem>>, %arg9: memref<1x64xf32, #tpu.memory_space<vmem>>, %arg10: memref<64x32xf32, #tpu.memory_space<vmem>>, %arg11: memref<1x32xf32, #tpu.memory_space<vmem>>, %arg12: memref<1x32xf32, #tpu.memory_space<vmem>>, %arg13: memref<1x32xf32, #tpu.memory_space<vmem>>, %arg14: memref<4x8x32xf32, #tpu.memory_space<vmem>>) attributes {dimension_semantics = [#tpu.dimension_semantics<parallel>], iteration_bounds = array<i64: 2>, scalar_prefetch = 0 : i64, scratch_operands = 0 : i64, tpu.core_type = #tpu.core_type<tc>, window_params = [{transform_indices = @transform_0, window_bounds = array<i64: 4, 8, 32>}, {pipeline_mode = #tpu.pipeline_mode<synchronous>, transform_indices = @transform_1, window_bounds = array<i64: 3, 4, 32, 8>}, {pipeline_mode = #tpu.pipeline_mode<synchronous>, transform_indices = @transform_2, window_bounds = array<i64: 3, 4, 1, 8>}, {pipeline_mode = #tpu.pipeline_mode<synchronous>, transform_indices = @transform_3, window_bounds = array<i64: 4, 8, 32>}, {pipeline_mode = #tpu.pipeline_mode<synchronous>, transform_indices = @transform_4, window_bounds = array<i64: 1, 32>}, {pipeline_mode = #tpu.pipeline_mode<synchronous>, transform_indices = @transform_5, window_bounds = array<i64: 1, 32>}, {pipeline_mode = #tpu.pipeline_mode<synchronous>, transform_indices = @transform_6, window_bounds = array<i64: 1, 32>}, {pipeline_mode = #tpu.pipeline_mode<synchronous>, transform_indices = @transform_7, window_bounds = array<i64: 32, 64>}, {pipeline_mode = #tpu.pipeline_mode<synchronous>, transform_indices = @transform_8, window_bounds = array<i64: 1, 64>}, {pipeline_mode = #tpu.pipeline_mode<synchronous>, transform_indices = @transform_9, window_bounds = array<i64: 64, 32>}, {pipeline_mode = #tpu.pipeline_mode<synchronous>, transform_indices = @transform_10, window_bounds = array<i64: 1, 32>}, {pipeline_mode = #tpu.pipeline_mode<synchronous>, transform_indices = @transform_11, window_bounds = array<i64: 1, 32>}, {pipeline_mode = #tpu.pipeline_mode<synchronous>, transform_indices = @transform_12, window_bounds = array<i64: 1, 32>}, {transform_indices = @transform_13, window_bounds = array<i64: 4, 8, 32>}]} {
    %c0 = arith.constant 0 : index
    %c0_0 = arith.constant 0 : index
    %c0_1 = arith.constant 0 : index
    %0 = vector.load %arg1[%c0, %c0_0, %c0_1] : memref<4x8x32xf32, #tpu.memory_space<vmem>>, vector<4x8x32xf32>
    %cst = arith.constant 0.000000e+00 : f32
    %1 = vector.broadcast %cst : f32 to vector<4x8x32xf32>
    %c0_2 = arith.constant 0 : index
    %c0_3 = arith.constant 0 : index
    %c0_4 = arith.constant 0 : index
    %c0_5 = arith.constant 0 : index
    %2 = vector.load %arg2[%c0_2, %c0_3, %c0_4, %c0_5] : memref<3x4x32x8xf32, #tpu.memory_space<vmem>>, vector<1x1x32x8xf32>
    %3 = vector.shape_cast %2 : vector<1x1x32x8xf32> to vector<32x8xf32>
    %4 = arith.truncf %3 : vector<32x8xf32> to vector<32x8xbf16>
    %5 = vector.shape_cast %4 : vector<32x8xbf16> to vector<1x32x8xbf16>
    %6 = vector.shape_cast %5 : vector<1x32x8xbf16> to vector<1x32x8xbf16>
    %7 = vector.broadcast %6 : vector<1x32x8xbf16> to vector<4x32x8xbf16>
    %8 = arith.truncf %0 : vector<4x8x32xf32> to vector<4x8x32xbf16>
    %cst_6 = arith.constant dense<0.000000e+00> : vector<4x8x8xf32>
    %9 = tpu.matmul %8, %7, %cst_6 {dimension_numbers = #tpu.dot_dimension_numbers<[2], [1], [1], [2], [0, 0, 0, 1, 1, 2], [0], [0]>} : vector<4x8x32xbf16>, vector<4x32x8xbf16>, vector<4x8x8xf32> -> vector<4x8x8xf32>
    %c0_7 = arith.constant 0 : index
    %c0_8 = arith.constant 0 : index
    %c0_9 = arith.constant 0 : index
    %c0_10 = arith.constant 0 : index
    %10 = vector.load %arg3[%c0_7, %c0_8, %c0_9, %c0_10] : memref<3x4x1x8xf32, #tpu.memory_space<vmem>>, vector<1x1x1x8xf32>
    %11 = vector.shape_cast %10 : vector<1x1x1x8xf32> to vector<1x8xf32>
    %12 = vector.shape_cast %11 : vector<1x8xf32> to vector<1x1x8xf32>
    %13 = vector.broadcast %12 : vector<1x1x8xf32> to vector<4x8x8xf32>
    %14 = arith.addf %9, %13 : vector<4x8x8xf32>
    %c1 = arith.constant 1 : index
    %c0_11 = arith.constant 0 : index
    %c0_12 = arith.constant 0 : index
    %c0_13 = arith.constant 0 : index
    %15 = vector.load %arg2[%c1, %c0_11, %c0_12, %c0_13] : memref<3x4x32x8xf32, #tpu.memory_space<vmem>>, vector<1x1x32x8xf32>
    %16 = vector.shape_cast %15 : vector<1x1x32x8xf32> to vector<32x8xf32>
    %17 = arith.truncf %16 : vector<32x8xf32> to vector<32x8xbf16>
    %18 = vector.shape_cast %17 : vector<32x8xbf16> to vector<1x32x8xbf16>
    %19 = vector.shape_cast %18 : vector<1x32x8xbf16> to vector<1x32x8xbf16>
    %20 = vector.broadcast %19 : vector<1x32x8xbf16> to vector<4x32x8xbf16>
    %21 = arith.truncf %0 : vector<4x8x32xf32> to vector<4x8x32xbf16>
    %cst_14 = arith.constant dense<0.000000e+00> : vector<4x8x8xf32>
    %22 = tpu.matmul %21, %20, %cst_14 {dimension_numbers = #tpu.dot_dimension_numbers<[2], [1], [1], [2], [0, 0, 0, 1, 1, 2], [0], [0]>} : vector<4x8x32xbf16>, vector<4x32x8xbf16>, vector<4x8x8xf32> -> vector<4x8x8xf32>
    %c1_15 = arith.constant 1 : index
    %c0_16 = arith.constant 0 : index
    %c0_17 = arith.constant 0 : index
    %c0_18 = arith.constant 0 : index
    %23 = vector.load %arg3[%c1_15, %c0_16, %c0_17, %c0_18] : memref<3x4x1x8xf32, #tpu.memory_space<vmem>>, vector<1x1x1x8xf32>
    %24 = vector.shape_cast %23 : vector<1x1x1x8xf32> to vector<1x8xf32>
    %25 = vector.shape_cast %24 : vector<1x8xf32> to vector<1x1x8xf32>
    %26 = vector.broadcast %25 : vector<1x1x8xf32> to vector<4x8x8xf32>
    %27 = arith.addf %22, %26 : vector<4x8x8xf32>
    %c2 = arith.constant 2 : index
    %c0_19 = arith.constant 0 : index
    %c0_20 = arith.constant 0 : index
    %c0_21 = arith.constant 0 : index
    %28 = vector.load %arg2[%c2, %c0_19, %c0_20, %c0_21] : memref<3x4x32x8xf32, #tpu.memory_space<vmem>>, vector<1x1x32x8xf32>
    %29 = vector.shape_cast %28 : vector<1x1x32x8xf32> to vector<32x8xf32>
    %30 = arith.truncf %29 : vector<32x8xf32> to vector<32x8xbf16>
    %31 = vector.shape_cast %30 : vector<32x8xbf16> to vector<1x32x8xbf16>
    %32 = vector.shape_cast %31 : vector<1x32x8xbf16> to vector<1x32x8xbf16>
    %33 = vector.broadcast %32 : vector<1x32x8xbf16> to vector<4x32x8xbf16>
    %34 = arith.truncf %0 : vector<4x8x32xf32> to vector<4x8x32xbf16>
    %cst_22 = arith.constant dense<0.000000e+00> : vector<4x8x8xf32>
    %35 = tpu.matmul %34, %33, %cst_22 {dimension_numbers = #tpu.dot_dimension_numbers<[2], [1], [1], [2], [0, 0, 0, 1, 1, 2], [0], [0]>} : vector<4x8x32xbf16>, vector<4x32x8xbf16>, vector<4x8x8xf32> -> vector<4x8x8xf32>
    %c2_23 = arith.constant 2 : index
    %c0_24 = arith.constant 0 : index
    %c0_25 = arith.constant 0 : index
    %c0_26 = arith.constant 0 : index
    %36 = vector.load %arg3[%c2_23, %c0_24, %c0_25, %c0_26] : memref<3x4x1x8xf32, #tpu.memory_space<vmem>>, vector<1x1x1x8xf32>
    %37 = vector.shape_cast %36 : vector<1x1x1x8xf32> to vector<1x8xf32>
    %38 = vector.shape_cast %37 : vector<1x8xf32> to vector<1x1x8xf32>
    %39 = vector.broadcast %38 : vector<1x1x8xf32> to vector<4x8x8xf32>
    %40 = arith.addf %35, %39 : vector<4x8x8xf32>
    %41 = arith.truncf %14 : vector<4x8x8xf32> to vector<4x8x8xbf16>
    %42 = arith.truncf %27 : vector<4x8x8xf32> to vector<4x8x8xbf16>
    %cst_27 = arith.constant dense<0.000000e+00> : vector<4x8x8xf32>
    %43 = tpu.matmul %41, %42, %cst_27 {dimension_numbers = #tpu.dot_dimension_numbers<[2], [2], [1], [1], [0, 0, 0, 1, 1, 1], [0], [0]>} : vector<4x8x8xbf16>, vector<4x8x8xbf16>, vector<4x8x8xf32> -> vector<4x8x8xf32>
    %cst_28 = arith.constant 0.353553385 : f32
    %44 = vector.broadcast %cst_28 : f32 to vector<4x8x8xf32>
    %45 = arith.mulf %43, %44 : vector<4x8x8xf32>
    %cst_29 = arith.constant dense<0xFF800000> : vector<4x8xf32>
    %46 = vector.multi_reduction <maximumf>, %45, %cst_29 [2] : vector<4x8x8xf32> to vector<4x8xf32>
    %47 = vector.shape_cast %46 : vector<4x8xf32> to vector<4x8x1xf32>
    %48 = vector.broadcast %47 : vector<4x8x1xf32> to vector<4x8x8xf32>
    %49 = arith.subf %45, %48 : vector<4x8x8xf32>
    %50 = math.exp %49 : vector<4x8x8xf32>
    %cst_30 = arith.constant dense<0.000000e+00> : vector<4x8xf32>
    %51 = vector.multi_reduction <add>, %50, %cst_30 [2] : vector<4x8x8xf32> to vector<4x8xf32>
    %52 = vector.shape_cast %51 : vector<4x8xf32> to vector<4x8x1xf32>
    %53 = tpu.reciprocal %52 {approx = true} : vector<4x8x1xf32> -> vector<4x8x1xf32>
    %54 = vector.broadcast %53 : vector<4x8x1xf32> to vector<4x8x8xf32>
    %55 = arith.mulf %50, %54 : vector<4x8x8xf32>
    %56 = arith.truncf %55 : vector<4x8x8xf32> to vector<4x8x8xbf16>
    %57 = arith.truncf %40 : vector<4x8x8xf32> to vector<4x8x8xbf16>
    %cst_31 = arith.constant dense<0.000000e+00> : vector<4x8x8xf32>
    %58 = tpu.matmul %56, %57, %cst_31 {dimension_numbers = #tpu.dot_dimension_numbers<[2], [1], [1], [2], [0, 0, 0, 1, 1, 2], [0], [0]>} : vector<4x8x8xbf16>, vector<4x8x8xbf16>, vector<4x8x8xf32> -> vector<4x8x8xf32>
    %c0_32 = arith.constant 0 : index
    %c0_33 = arith.constant 0 : index
    %c0_34 = arith.constant 0 : index
    %59 = vector.load %arg4[%c0_32, %c0_33, %c0_34] : memref<4x8x32xf32, #tpu.memory_space<vmem>>, vector<1x8x32xf32>
    %60 = vector.shape_cast %59 : vector<1x8x32xf32> to vector<8x32xf32>
    %61 = arith.truncf %60 : vector<8x32xf32> to vector<8x32xbf16>
    %62 = vector.shape_cast %61 : vector<8x32xbf16> to vector<1x8x32xbf16>
    %63 = vector.shape_cast %62 : vector<1x8x32xbf16> to vector<1x8x32xbf16>
    %64 = vector.broadcast %63 : vector<1x8x32xbf16> to vector<4x8x32xbf16>
    %65 = arith.truncf %58 : vector<4x8x8xf32> to vector<4x8x8xbf16>
    %cst_35 = arith.constant dense<0.000000e+00> : vector<4x8x32xf32>
    %66 = tpu.matmul %65, %64, %cst_35 {dimension_numbers = #tpu.dot_dimension_numbers<[2], [1], [1], [2], [0, 0, 0, 1, 1, 2], [0], [0]>} : vector<4x8x8xbf16>, vector<4x8x32xbf16>, vector<4x8x32xf32> -> vector<4x8x32xf32>
    %67 = arith.addf %1, %66 : vector<4x8x32xf32>
    %c0_36 = arith.constant 0 : index
    %c1_37 = arith.constant 1 : index
    %c0_38 = arith.constant 0 : index
    %c0_39 = arith.constant 0 : index
    %68 = vector.load %arg2[%c0_36, %c1_37, %c0_38, %c0_39] : memref<3x4x32x8xf32, #tpu.memory_space<vmem>>, vector<1x1x32x8xf32>
    %69 = vector.shape_cast %68 : vector<1x1x32x8xf32> to vector<32x8xf32>
    %70 = arith.truncf %69 : vector<32x8xf32> to vector<32x8xbf16>
    %71 = vector.shape_cast %70 : vector<32x8xbf16> to vector<1x32x8xbf16>
    %72 = vector.shape_cast %71 : vector<1x32x8xbf16> to vector<1x32x8xbf16>
    %73 = vector.broadcast %72 : vector<1x32x8xbf16> to vector<4x32x8xbf16>
    %74 = arith.truncf %0 : vector<4x8x32xf32> to vector<4x8x32xbf16>
    %cst_40 = arith.constant dense<0.000000e+00> : vector<4x8x8xf32>
    %75 = tpu.matmul %74, %73, %cst_40 {dimension_numbers = #tpu.dot_dimension_numbers<[2], [1], [1], [2], [0, 0, 0, 1, 1, 2], [0], [0]>} : vector<4x8x32xbf16>, vector<4x32x8xbf16>, vector<4x8x8xf32> -> vector<4x8x8xf32>
    %c0_41 = arith.constant 0 : index
    %c1_42 = arith.constant 1 : index
    %c0_43 = arith.constant 0 : index
    %c0_44 = arith.constant 0 : index
    %76 = vector.load %arg3[%c0_41, %c1_42, %c0_43, %c0_44] : memref<3x4x1x8xf32, #tpu.memory_space<vmem>>, vector<1x1x1x8xf32>
    %77 = vector.shape_cast %76 : vector<1x1x1x8xf32> to vector<1x8xf32>
    %78 = vector.shape_cast %77 : vector<1x8xf32> to vector<1x1x8xf32>
    %79 = vector.broadcast %78 : vector<1x1x8xf32> to vector<4x8x8xf32>
    %80 = arith.addf %75, %79 : vector<4x8x8xf32>
    %c1_45 = arith.constant 1 : index
    %c1_46 = arith.constant 1 : index
    %c0_47 = arith.constant 0 : index
    %c0_48 = arith.constant 0 : index
    %81 = vector.load %arg2[%c1_45, %c1_46, %c0_47, %c0_48] : memref<3x4x32x8xf32, #tpu.memory_space<vmem>>, vector<1x1x32x8xf32>
    %82 = vector.shape_cast %81 : vector<1x1x32x8xf32> to vector<32x8xf32>
    %83 = arith.truncf %82 : vector<32x8xf32> to vector<32x8xbf16>
    %84 = vector.shape_cast %83 : vector<32x8xbf16> to vector<1x32x8xbf16>
    %85 = vector.shape_cast %84 : vector<1x32x8xbf16> to vector<1x32x8xbf16>
    %86 = vector.broadcast %85 : vector<1x32x8xbf16> to vector<4x32x8xbf16>
    %87 = arith.truncf %0 : vector<4x8x32xf32> to vector<4x8x32xbf16>
    %cst_49 = arith.constant dense<0.000000e+00> : vector<4x8x8xf32>
    %88 = tpu.matmul %87, %86, %cst_49 {dimension_numbers = #tpu.dot_dimension_numbers<[2], [1], [1], [2], [0, 0, 0, 1, 1, 2], [0], [0]>} : vector<4x8x32xbf16>, vector<4x32x8xbf16>, vector<4x8x8xf32> -> vector<4x8x8xf32>
    %c1_50 = arith.constant 1 : index
    %c1_51 = arith.constant 1 : index
    %c0_52 = arith.constant 0 : index
    %c0_53 = arith.constant 0 : index
    %89 = vector.load %arg3[%c1_50, %c1_51, %c0_52, %c0_53] : memref<3x4x1x8xf32, #tpu.memory_space<vmem>>, vector<1x1x1x8xf32>
    %90 = vector.shape_cast %89 : vector<1x1x1x8xf32> to vector<1x8xf32>
    %91 = vector.shape_cast %90 : vector<1x8xf32> to vector<1x1x8xf32>
    %92 = vector.broadcast %91 : vector<1x1x8xf32> to vector<4x8x8xf32>
    %93 = arith.addf %88, %92 : vector<4x8x8xf32>
    %c2_54 = arith.constant 2 : index
    %c1_55 = arith.constant 1 : index
    %c0_56 = arith.constant 0 : index
    %c0_57 = arith.constant 0 : index
    %94 = vector.load %arg2[%c2_54, %c1_55, %c0_56, %c0_57] : memref<3x4x32x8xf32, #tpu.memory_space<vmem>>, vector<1x1x32x8xf32>
    %95 = vector.shape_cast %94 : vector<1x1x32x8xf32> to vector<32x8xf32>
    %96 = arith.truncf %95 : vector<32x8xf32> to vector<32x8xbf16>
    %97 = vector.shape_cast %96 : vector<32x8xbf16> to vector<1x32x8xbf16>
    %98 = vector.shape_cast %97 : vector<1x32x8xbf16> to vector<1x32x8xbf16>
    %99 = vector.broadcast %98 : vector<1x32x8xbf16> to vector<4x32x8xbf16>
    %100 = arith.truncf %0 : vector<4x8x32xf32> to vector<4x8x32xbf16>
    %cst_58 = arith.constant dense<0.000000e+00> : vector<4x8x8xf32>
    %101 = tpu.matmul %100, %99, %cst_58 {dimension_numbers = #tpu.dot_dimension_numbers<[2], [1], [1], [2], [0, 0, 0, 1, 1, 2], [0], [0]>} : vector<4x8x32xbf16>, vector<4x32x8xbf16>, vector<4x8x8xf32> -> vector<4x8x8xf32>
    %c2_59 = arith.constant 2 : index
    %c1_60 = arith.constant 1 : index
    %c0_61 = arith.constant 0 : index
    %c0_62 = arith.constant 0 : index
    %102 = vector.load %arg3[%c2_59, %c1_60, %c0_61, %c0_62] : memref<3x4x1x8xf32, #tpu.memory_space<vmem>>, vector<1x1x1x8xf32>
    %103 = vector.shape_cast %102 : vector<1x1x1x8xf32> to vector<1x8xf32>
    %104 = vector.shape_cast %103 : vector<1x8xf32> to vector<1x1x8xf32>
    %105 = vector.broadcast %104 : vector<1x1x8xf32> to vector<4x8x8xf32>
    %106 = arith.addf %101, %105 : vector<4x8x8xf32>
    %107 = arith.truncf %80 : vector<4x8x8xf32> to vector<4x8x8xbf16>
    %108 = arith.truncf %93 : vector<4x8x8xf32> to vector<4x8x8xbf16>
    %cst_63 = arith.constant dense<0.000000e+00> : vector<4x8x8xf32>
    %109 = tpu.matmul %107, %108, %cst_63 {dimension_numbers = #tpu.dot_dimension_numbers<[2], [2], [1], [1], [0, 0, 0, 1, 1, 1], [0], [0]>} : vector<4x8x8xbf16>, vector<4x8x8xbf16>, vector<4x8x8xf32> -> vector<4x8x8xf32>
    %cst_64 = arith.constant 0.353553385 : f32
    %110 = vector.broadcast %cst_64 : f32 to vector<4x8x8xf32>
    %111 = arith.mulf %109, %110 : vector<4x8x8xf32>
    %cst_65 = arith.constant dense<0xFF800000> : vector<4x8xf32>
    %112 = vector.multi_reduction <maximumf>, %111, %cst_65 [2] : vector<4x8x8xf32> to vector<4x8xf32>
    %113 = vector.shape_cast %112 : vector<4x8xf32> to vector<4x8x1xf32>
    %114 = vector.broadcast %113 : vector<4x8x1xf32> to vector<4x8x8xf32>
    %115 = arith.subf %111, %114 : vector<4x8x8xf32>
    %116 = math.exp %115 : vector<4x8x8xf32>
    %cst_66 = arith.constant dense<0.000000e+00> : vector<4x8xf32>
    %117 = vector.multi_reduction <add>, %116, %cst_66 [2] : vector<4x8x8xf32> to vector<4x8xf32>
    %118 = vector.shape_cast %117 : vector<4x8xf32> to vector<4x8x1xf32>
    %119 = tpu.reciprocal %118 {approx = true} : vector<4x8x1xf32> -> vector<4x8x1xf32>
    %120 = vector.broadcast %119 : vector<4x8x1xf32> to vector<4x8x8xf32>
    %121 = arith.mulf %116, %120 : vector<4x8x8xf32>
    %122 = arith.truncf %121 : vector<4x8x8xf32> to vector<4x8x8xbf16>
    %123 = arith.truncf %106 : vector<4x8x8xf32> to vector<4x8x8xbf16>
    %cst_67 = arith.constant dense<0.000000e+00> : vector<4x8x8xf32>
    %124 = tpu.matmul %122, %123, %cst_67 {dimension_numbers = #tpu.dot_dimension_numbers<[2], [1], [1], [2], [0, 0, 0, 1, 1, 2], [0], [0]>} : vector<4x8x8xbf16>, vector<4x8x8xbf16>, vector<4x8x8xf32> -> vector<4x8x8xf32>
    %c1_68 = arith.constant 1 : index
    %c0_69 = arith.constant 0 : index
    %c0_70 = arith.constant 0 : index
    %125 = vector.load %arg4[%c1_68, %c0_69, %c0_70] : memref<4x8x32xf32, #tpu.memory_space<vmem>>, vector<1x8x32xf32>
    %126 = vector.shape_cast %125 : vector<1x8x32xf32> to vector<8x32xf32>
    %127 = arith.truncf %126 : vector<8x32xf32> to vector<8x32xbf16>
    %128 = vector.shape_cast %127 : vector<8x32xbf16> to vector<1x8x32xbf16>
    %129 = vector.shape_cast %128 : vector<1x8x32xbf16> to vector<1x8x32xbf16>
    %130 = vector.broadcast %129 : vector<1x8x32xbf16> to vector<4x8x32xbf16>
    %131 = arith.truncf %124 : vector<4x8x8xf32> to vector<4x8x8xbf16>
    %cst_71 = arith.constant dense<0.000000e+00> : vector<4x8x32xf32>
    %132 = tpu.matmul %131, %130, %cst_71 {dimension_numbers = #tpu.dot_dimension_numbers<[2], [1], [1], [2], [0, 0, 0, 1, 1, 2], [0], [0]>} : vector<4x8x8xbf16>, vector<4x8x32xbf16>, vector<4x8x32xf32> -> vector<4x8x32xf32>
    %133 = arith.addf %67, %132 : vector<4x8x32xf32>
    %c0_72 = arith.constant 0 : index
    %c2_73 = arith.constant 2 : index
    %c0_74 = arith.constant 0 : index
    %c0_75 = arith.constant 0 : index
    %134 = vector.load %arg2[%c0_72, %c2_73, %c0_74, %c0_75] : memref<3x4x32x8xf32, #tpu.memory_space<vmem>>, vector<1x1x32x8xf32>
    %135 = vector.shape_cast %134 : vector<1x1x32x8xf32> to vector<32x8xf32>
    %136 = arith.truncf %135 : vector<32x8xf32> to vector<32x8xbf16>
    %137 = vector.shape_cast %136 : vector<32x8xbf16> to vector<1x32x8xbf16>
    %138 = vector.shape_cast %137 : vector<1x32x8xbf16> to vector<1x32x8xbf16>
    %139 = vector.broadcast %138 : vector<1x32x8xbf16> to vector<4x32x8xbf16>
    %140 = arith.truncf %0 : vector<4x8x32xf32> to vector<4x8x32xbf16>
    %cst_76 = arith.constant dense<0.000000e+00> : vector<4x8x8xf32>
    %141 = tpu.matmul %140, %139, %cst_76 {dimension_numbers = #tpu.dot_dimension_numbers<[2], [1], [1], [2], [0, 0, 0, 1, 1, 2], [0], [0]>} : vector<4x8x32xbf16>, vector<4x32x8xbf16>, vector<4x8x8xf32> -> vector<4x8x8xf32>
    %c0_77 = arith.constant 0 : index
    %c2_78 = arith.constant 2 : index
    %c0_79 = arith.constant 0 : index
    %c0_80 = arith.constant 0 : index
    %142 = vector.load %arg3[%c0_77, %c2_78, %c0_79, %c0_80] : memref<3x4x1x8xf32, #tpu.memory_space<vmem>>, vector<1x1x1x8xf32>
    %143 = vector.shape_cast %142 : vector<1x1x1x8xf32> to vector<1x8xf32>
    %144 = vector.shape_cast %143 : vector<1x8xf32> to vector<1x1x8xf32>
    %145 = vector.broadcast %144 : vector<1x1x8xf32> to vector<4x8x8xf32>
    %146 = arith.addf %141, %145 : vector<4x8x8xf32>
    %c1_81 = arith.constant 1 : index
    %c2_82 = arith.constant 2 : index
    %c0_83 = arith.constant 0 : index
    %c0_84 = arith.constant 0 : index
    %147 = vector.load %arg2[%c1_81, %c2_82, %c0_83, %c0_84] : memref<3x4x32x8xf32, #tpu.memory_space<vmem>>, vector<1x1x32x8xf32>
    %148 = vector.shape_cast %147 : vector<1x1x32x8xf32> to vector<32x8xf32>
    %149 = arith.truncf %148 : vector<32x8xf32> to vector<32x8xbf16>
    %150 = vector.shape_cast %149 : vector<32x8xbf16> to vector<1x32x8xbf16>
    %151 = vector.shape_cast %150 : vector<1x32x8xbf16> to vector<1x32x8xbf16>
    %152 = vector.broadcast %151 : vector<1x32x8xbf16> to vector<4x32x8xbf16>
    %153 = arith.truncf %0 : vector<4x8x32xf32> to vector<4x8x32xbf16>
    %cst_85 = arith.constant dense<0.000000e+00> : vector<4x8x8xf32>
    %154 = tpu.matmul %153, %152, %cst_85 {dimension_numbers = #tpu.dot_dimension_numbers<[2], [1], [1], [2], [0, 0, 0, 1, 1, 2], [0], [0]>} : vector<4x8x32xbf16>, vector<4x32x8xbf16>, vector<4x8x8xf32> -> vector<4x8x8xf32>
    %c1_86 = arith.constant 1 : index
    %c2_87 = arith.constant 2 : index
    %c0_88 = arith.constant 0 : index
    %c0_89 = arith.constant 0 : index
    %155 = vector.load %arg3[%c1_86, %c2_87, %c0_88, %c0_89] : memref<3x4x1x8xf32, #tpu.memory_space<vmem>>, vector<1x1x1x8xf32>
    %156 = vector.shape_cast %155 : vector<1x1x1x8xf32> to vector<1x8xf32>
    %157 = vector.shape_cast %156 : vector<1x8xf32> to vector<1x1x8xf32>
    %158 = vector.broadcast %157 : vector<1x1x8xf32> to vector<4x8x8xf32>
    %159 = arith.addf %154, %158 : vector<4x8x8xf32>
    %c2_90 = arith.constant 2 : index
    %c2_91 = arith.constant 2 : index
    %c0_92 = arith.constant 0 : index
    %c0_93 = arith.constant 0 : index
    %160 = vector.load %arg2[%c2_90, %c2_91, %c0_92, %c0_93] : memref<3x4x32x8xf32, #tpu.memory_space<vmem>>, vector<1x1x32x8xf32>
    %161 = vector.shape_cast %160 : vector<1x1x32x8xf32> to vector<32x8xf32>
    %162 = arith.truncf %161 : vector<32x8xf32> to vector<32x8xbf16>
    %163 = vector.shape_cast %162 : vector<32x8xbf16> to vector<1x32x8xbf16>
    %164 = vector.shape_cast %163 : vector<1x32x8xbf16> to vector<1x32x8xbf16>
    %165 = vector.broadcast %164 : vector<1x32x8xbf16> to vector<4x32x8xbf16>
    %166 = arith.truncf %0 : vector<4x8x32xf32> to vector<4x8x32xbf16>
    %cst_94 = arith.constant dense<0.000000e+00> : vector<4x8x8xf32>
    %167 = tpu.matmul %166, %165, %cst_94 {dimension_numbers = #tpu.dot_dimension_numbers<[2], [1], [1], [2], [0, 0, 0, 1, 1, 2], [0], [0]>} : vector<4x8x32xbf16>, vector<4x32x8xbf16>, vector<4x8x8xf32> -> vector<4x8x8xf32>
    %c2_95 = arith.constant 2 : index
    %c2_96 = arith.constant 2 : index
    %c0_97 = arith.constant 0 : index
    %c0_98 = arith.constant 0 : index
    %168 = vector.load %arg3[%c2_95, %c2_96, %c0_97, %c0_98] : memref<3x4x1x8xf32, #tpu.memory_space<vmem>>, vector<1x1x1x8xf32>
    %169 = vector.shape_cast %168 : vector<1x1x1x8xf32> to vector<1x8xf32>
    %170 = vector.shape_cast %169 : vector<1x8xf32> to vector<1x1x8xf32>
    %171 = vector.broadcast %170 : vector<1x1x8xf32> to vector<4x8x8xf32>
    %172 = arith.addf %167, %171 : vector<4x8x8xf32>
    %173 = arith.truncf %146 : vector<4x8x8xf32> to vector<4x8x8xbf16>
    %174 = arith.truncf %159 : vector<4x8x8xf32> to vector<4x8x8xbf16>
    %cst_99 = arith.constant dense<0.000000e+00> : vector<4x8x8xf32>
    %175 = tpu.matmul %173, %174, %cst_99 {dimension_numbers = #tpu.dot_dimension_numbers<[2], [2], [1], [1], [0, 0, 0, 1, 1, 1], [0], [0]>} : vector<4x8x8xbf16>, vector<4x8x8xbf16>, vector<4x8x8xf32> -> vector<4x8x8xf32>
    %cst_100 = arith.constant 0.353553385 : f32
    %176 = vector.broadcast %cst_100 : f32 to vector<4x8x8xf32>
    %177 = arith.mulf %175, %176 : vector<4x8x8xf32>
    %cst_101 = arith.constant dense<0xFF800000> : vector<4x8xf32>
    %178 = vector.multi_reduction <maximumf>, %177, %cst_101 [2] : vector<4x8x8xf32> to vector<4x8xf32>
    %179 = vector.shape_cast %178 : vector<4x8xf32> to vector<4x8x1xf32>
    %180 = vector.broadcast %179 : vector<4x8x1xf32> to vector<4x8x8xf32>
    %181 = arith.subf %177, %180 : vector<4x8x8xf32>
    %182 = math.exp %181 : vector<4x8x8xf32>
    %cst_102 = arith.constant dense<0.000000e+00> : vector<4x8xf32>
    %183 = vector.multi_reduction <add>, %182, %cst_102 [2] : vector<4x8x8xf32> to vector<4x8xf32>
    %184 = vector.shape_cast %183 : vector<4x8xf32> to vector<4x8x1xf32>
    %185 = tpu.reciprocal %184 {approx = true} : vector<4x8x1xf32> -> vector<4x8x1xf32>
    %186 = vector.broadcast %185 : vector<4x8x1xf32> to vector<4x8x8xf32>
    %187 = arith.mulf %182, %186 : vector<4x8x8xf32>
    %188 = arith.truncf %187 : vector<4x8x8xf32> to vector<4x8x8xbf16>
    %189 = arith.truncf %172 : vector<4x8x8xf32> to vector<4x8x8xbf16>
    %cst_103 = arith.constant dense<0.000000e+00> : vector<4x8x8xf32>
    %190 = tpu.matmul %188, %189, %cst_103 {dimension_numbers = #tpu.dot_dimension_numbers<[2], [1], [1], [2], [0, 0, 0, 1, 1, 2], [0], [0]>} : vector<4x8x8xbf16>, vector<4x8x8xbf16>, vector<4x8x8xf32> -> vector<4x8x8xf32>
    %c2_104 = arith.constant 2 : index
    %c0_105 = arith.constant 0 : index
    %c0_106 = arith.constant 0 : index
    %191 = vector.load %arg4[%c2_104, %c0_105, %c0_106] : memref<4x8x32xf32, #tpu.memory_space<vmem>>, vector<1x8x32xf32>
    %192 = vector.shape_cast %191 : vector<1x8x32xf32> to vector<8x32xf32>
    %193 = arith.truncf %192 : vector<8x32xf32> to vector<8x32xbf16>
    %194 = vector.shape_cast %193 : vector<8x32xbf16> to vector<1x8x32xbf16>
    %195 = vector.shape_cast %194 : vector<1x8x32xbf16> to vector<1x8x32xbf16>
    %196 = vector.broadcast %195 : vector<1x8x32xbf16> to vector<4x8x32xbf16>
    %197 = arith.truncf %190 : vector<4x8x8xf32> to vector<4x8x8xbf16>
    %cst_107 = arith.constant dense<0.000000e+00> : vector<4x8x32xf32>
    %198 = tpu.matmul %197, %196, %cst_107 {dimension_numbers = #tpu.dot_dimension_numbers<[2], [1], [1], [2], [0, 0, 0, 1, 1, 2], [0], [0]>} : vector<4x8x8xbf16>, vector<4x8x32xbf16>, vector<4x8x32xf32> -> vector<4x8x32xf32>
    %199 = arith.addf %133, %198 : vector<4x8x32xf32>
    %c0_108 = arith.constant 0 : index
    %c3 = arith.constant 3 : index
    %c0_109 = arith.constant 0 : index
    %c0_110 = arith.constant 0 : index
    %200 = vector.load %arg2[%c0_108, %c3, %c0_109, %c0_110] : memref<3x4x32x8xf32, #tpu.memory_space<vmem>>, vector<1x1x32x8xf32>
    %201 = vector.shape_cast %200 : vector<1x1x32x8xf32> to vector<32x8xf32>
    %202 = arith.truncf %201 : vector<32x8xf32> to vector<32x8xbf16>
    %203 = vector.shape_cast %202 : vector<32x8xbf16> to vector<1x32x8xbf16>
    %204 = vector.shape_cast %203 : vector<1x32x8xbf16> to vector<1x32x8xbf16>
    %205 = vector.broadcast %204 : vector<1x32x8xbf16> to vector<4x32x8xbf16>
    %206 = arith.truncf %0 : vector<4x8x32xf32> to vector<4x8x32xbf16>
    %cst_111 = arith.constant dense<0.000000e+00> : vector<4x8x8xf32>
    %207 = tpu.matmul %206, %205, %cst_111 {dimension_numbers = #tpu.dot_dimension_numbers<[2], [1], [1], [2], [0, 0, 0, 1, 1, 2], [0], [0]>} : vector<4x8x32xbf16>, vector<4x32x8xbf16>, vector<4x8x8xf32> -> vector<4x8x8xf32>
    %c0_112 = arith.constant 0 : index
    %c3_113 = arith.constant 3 : index
    %c0_114 = arith.constant 0 : index
    %c0_115 = arith.constant 0 : index
    %208 = vector.load %arg3[%c0_112, %c3_113, %c0_114, %c0_115] : memref<3x4x1x8xf32, #tpu.memory_space<vmem>>, vector<1x1x1x8xf32>
    %209 = vector.shape_cast %208 : vector<1x1x1x8xf32> to vector<1x8xf32>
    %210 = vector.shape_cast %209 : vector<1x8xf32> to vector<1x1x8xf32>
    %211 = vector.broadcast %210 : vector<1x1x8xf32> to vector<4x8x8xf32>
    %212 = arith.addf %207, %211 : vector<4x8x8xf32>
    %c1_116 = arith.constant 1 : index
    %c3_117 = arith.constant 3 : index
    %c0_118 = arith.constant 0 : index
    %c0_119 = arith.constant 0 : index
    %213 = vector.load %arg2[%c1_116, %c3_117, %c0_118, %c0_119] : memref<3x4x32x8xf32, #tpu.memory_space<vmem>>, vector<1x1x32x8xf32>
    %214 = vector.shape_cast %213 : vector<1x1x32x8xf32> to vector<32x8xf32>
    %215 = arith.truncf %214 : vector<32x8xf32> to vector<32x8xbf16>
    %216 = vector.shape_cast %215 : vector<32x8xbf16> to vector<1x32x8xbf16>
    %217 = vector.shape_cast %216 : vector<1x32x8xbf16> to vector<1x32x8xbf16>
    %218 = vector.broadcast %217 : vector<1x32x8xbf16> to vector<4x32x8xbf16>
    %219 = arith.truncf %0 : vector<4x8x32xf32> to vector<4x8x32xbf16>
    %cst_120 = arith.constant dense<0.000000e+00> : vector<4x8x8xf32>
    %220 = tpu.matmul %219, %218, %cst_120 {dimension_numbers = #tpu.dot_dimension_numbers<[2], [1], [1], [2], [0, 0, 0, 1, 1, 2], [0], [0]>} : vector<4x8x32xbf16>, vector<4x32x8xbf16>, vector<4x8x8xf32> -> vector<4x8x8xf32>
    %c1_121 = arith.constant 1 : index
    %c3_122 = arith.constant 3 : index
    %c0_123 = arith.constant 0 : index
    %c0_124 = arith.constant 0 : index
    %221 = vector.load %arg3[%c1_121, %c3_122, %c0_123, %c0_124] : memref<3x4x1x8xf32, #tpu.memory_space<vmem>>, vector<1x1x1x8xf32>
    %222 = vector.shape_cast %221 : vector<1x1x1x8xf32> to vector<1x8xf32>
    %223 = vector.shape_cast %222 : vector<1x8xf32> to vector<1x1x8xf32>
    %224 = vector.broadcast %223 : vector<1x1x8xf32> to vector<4x8x8xf32>
    %225 = arith.addf %220, %224 : vector<4x8x8xf32>
    %c2_125 = arith.constant 2 : index
    %c3_126 = arith.constant 3 : index
    %c0_127 = arith.constant 0 : index
    %c0_128 = arith.constant 0 : index
    %226 = vector.load %arg2[%c2_125, %c3_126, %c0_127, %c0_128] : memref<3x4x32x8xf32, #tpu.memory_space<vmem>>, vector<1x1x32x8xf32>
    %227 = vector.shape_cast %226 : vector<1x1x32x8xf32> to vector<32x8xf32>
    %228 = arith.truncf %227 : vector<32x8xf32> to vector<32x8xbf16>
    %229 = vector.shape_cast %228 : vector<32x8xbf16> to vector<1x32x8xbf16>
    %230 = vector.shape_cast %229 : vector<1x32x8xbf16> to vector<1x32x8xbf16>
    %231 = vector.broadcast %230 : vector<1x32x8xbf16> to vector<4x32x8xbf16>
    %232 = arith.truncf %0 : vector<4x8x32xf32> to vector<4x8x32xbf16>
    %cst_129 = arith.constant dense<0.000000e+00> : vector<4x8x8xf32>
    %233 = tpu.matmul %232, %231, %cst_129 {dimension_numbers = #tpu.dot_dimension_numbers<[2], [1], [1], [2], [0, 0, 0, 1, 1, 2], [0], [0]>} : vector<4x8x32xbf16>, vector<4x32x8xbf16>, vector<4x8x8xf32> -> vector<4x8x8xf32>
    %c2_130 = arith.constant 2 : index
    %c3_131 = arith.constant 3 : index
    %c0_132 = arith.constant 0 : index
    %c0_133 = arith.constant 0 : index
    %234 = vector.load %arg3[%c2_130, %c3_131, %c0_132, %c0_133] : memref<3x4x1x8xf32, #tpu.memory_space<vmem>>, vector<1x1x1x8xf32>
    %235 = vector.shape_cast %234 : vector<1x1x1x8xf32> to vector<1x8xf32>
    %236 = vector.shape_cast %235 : vector<1x8xf32> to vector<1x1x8xf32>
    %237 = vector.broadcast %236 : vector<1x1x8xf32> to vector<4x8x8xf32>
    %238 = arith.addf %233, %237 : vector<4x8x8xf32>
    %239 = arith.truncf %212 : vector<4x8x8xf32> to vector<4x8x8xbf16>
    %240 = arith.truncf %225 : vector<4x8x8xf32> to vector<4x8x8xbf16>
    %cst_134 = arith.constant dense<0.000000e+00> : vector<4x8x8xf32>
    %241 = tpu.matmul %239, %240, %cst_134 {dimension_numbers = #tpu.dot_dimension_numbers<[2], [2], [1], [1], [0, 0, 0, 1, 1, 1], [0], [0]>} : vector<4x8x8xbf16>, vector<4x8x8xbf16>, vector<4x8x8xf32> -> vector<4x8x8xf32>
    %cst_135 = arith.constant 0.353553385 : f32
    %242 = vector.broadcast %cst_135 : f32 to vector<4x8x8xf32>
    %243 = arith.mulf %241, %242 : vector<4x8x8xf32>
    %cst_136 = arith.constant dense<0xFF800000> : vector<4x8xf32>
    %244 = vector.multi_reduction <maximumf>, %243, %cst_136 [2] : vector<4x8x8xf32> to vector<4x8xf32>
    %245 = vector.shape_cast %244 : vector<4x8xf32> to vector<4x8x1xf32>
    %246 = vector.broadcast %245 : vector<4x8x1xf32> to vector<4x8x8xf32>
    %247 = arith.subf %243, %246 : vector<4x8x8xf32>
    %248 = math.exp %247 : vector<4x8x8xf32>
    %cst_137 = arith.constant dense<0.000000e+00> : vector<4x8xf32>
    %249 = vector.multi_reduction <add>, %248, %cst_137 [2] : vector<4x8x8xf32> to vector<4x8xf32>
    %250 = vector.shape_cast %249 : vector<4x8xf32> to vector<4x8x1xf32>
    %251 = tpu.reciprocal %250 {approx = true} : vector<4x8x1xf32> -> vector<4x8x1xf32>
    %252 = vector.broadcast %251 : vector<4x8x1xf32> to vector<4x8x8xf32>
    %253 = arith.mulf %248, %252 : vector<4x8x8xf32>
    %254 = arith.truncf %253 : vector<4x8x8xf32> to vector<4x8x8xbf16>
    %255 = arith.truncf %238 : vector<4x8x8xf32> to vector<4x8x8xbf16>
    %cst_138 = arith.constant dense<0.000000e+00> : vector<4x8x8xf32>
    %256 = tpu.matmul %254, %255, %cst_138 {dimension_numbers = #tpu.dot_dimension_numbers<[2], [1], [1], [2], [0, 0, 0, 1, 1, 2], [0], [0]>} : vector<4x8x8xbf16>, vector<4x8x8xbf16>, vector<4x8x8xf32> -> vector<4x8x8xf32>
    %c3_139 = arith.constant 3 : index
    %c0_140 = arith.constant 0 : index
    %c0_141 = arith.constant 0 : index
    %257 = vector.load %arg4[%c3_139, %c0_140, %c0_141] : memref<4x8x32xf32, #tpu.memory_space<vmem>>, vector<1x8x32xf32>
    %258 = vector.shape_cast %257 : vector<1x8x32xf32> to vector<8x32xf32>
    %259 = arith.truncf %258 : vector<8x32xf32> to vector<8x32xbf16>
    %260 = vector.shape_cast %259 : vector<8x32xbf16> to vector<1x8x32xbf16>
    %261 = vector.shape_cast %260 : vector<1x8x32xbf16> to vector<1x8x32xbf16>
    %262 = vector.broadcast %261 : vector<1x8x32xbf16> to vector<4x8x32xbf16>
    %263 = arith.truncf %256 : vector<4x8x8xf32> to vector<4x8x8xbf16>
    %cst_142 = arith.constant dense<0.000000e+00> : vector<4x8x32xf32>
    %264 = tpu.matmul %263, %262, %cst_142 {dimension_numbers = #tpu.dot_dimension_numbers<[2], [1], [1], [2], [0, 0, 0, 1, 1, 2], [0], [0]>} : vector<4x8x8xbf16>, vector<4x8x32xbf16>, vector<4x8x32xf32> -> vector<4x8x32xf32>
    %265 = arith.addf %199, %264 : vector<4x8x32xf32>
    %c0_143 = arith.constant 0 : index
    %c0_144 = arith.constant 0 : index
    %266 = vector.load %arg5[%c0_143, %c0_144] : memref<1x32xf32, #tpu.memory_space<vmem>>, vector<1x32xf32>
    %267 = vector.shape_cast %266 : vector<1x32xf32> to vector<1x1x32xf32>
    %268 = vector.broadcast %267 : vector<1x1x32xf32> to vector<4x8x32xf32>
    %269 = arith.addf %265, %268 : vector<4x8x32xf32>
    %270 = arith.addf %0, %269 : vector<4x8x32xf32>
    %c0_145 = arith.constant 0 : index
    %c0_146 = arith.constant 0 : index
    %271 = vector.load %arg6[%c0_145, %c0_146] : memref<1x32xf32, #tpu.memory_space<vmem>>, vector<1x32xf32>
    %272 = vector.shape_cast %271 : vector<1x32xf32> to vector<1x1x32xf32>
    %c0_147 = arith.constant 0 : index
    %c0_148 = arith.constant 0 : index
    %273 = vector.load %arg7[%c0_147, %c0_148] : memref<1x32xf32, #tpu.memory_space<vmem>>, vector<1x32xf32>
    %274 = vector.shape_cast %273 : vector<1x32xf32> to vector<1x1x32xf32>
    %cst_149 = arith.constant dense<0.000000e+00> : vector<4x8xf32>
    %275 = vector.multi_reduction <add>, %270, %cst_149 [2] : vector<4x8x32xf32> to vector<4x8xf32>
    %276 = vector.shape_cast %275 : vector<4x8xf32> to vector<4x8x1xf32>
    %cst_150 = arith.constant 3.200000e+01 : f32
    %277 = vector.broadcast %cst_150 : f32 to vector<4x8x1xf32>
    %278 = arith.divf %276, %277 : vector<4x8x1xf32>
    %279 = vector.broadcast %278 : vector<4x8x1xf32> to vector<4x8x32xf32>
    %280 = arith.subf %270, %279 : vector<4x8x32xf32>
    %281 = arith.mulf %280, %280 : vector<4x8x32xf32>
    %cst_151 = arith.constant dense<0.000000e+00> : vector<4x8xf32>
    %282 = vector.multi_reduction <add>, %281, %cst_151 [2] : vector<4x8x32xf32> to vector<4x8xf32>
    %283 = vector.shape_cast %282 : vector<4x8xf32> to vector<4x8x1xf32>
    %cst_152 = arith.constant 3.200000e+01 : f32
    %284 = vector.broadcast %cst_152 : f32 to vector<4x8x1xf32>
    %285 = arith.divf %283, %284 : vector<4x8x1xf32>
    %cst_153 = arith.constant 9.99999974E-6 : f32
    %286 = vector.broadcast %cst_153 : f32 to vector<4x8x1xf32>
    %287 = arith.addf %285, %286 : vector<4x8x1xf32>
    %288 = math.rsqrt %287 : vector<4x8x1xf32>
    %289 = vector.broadcast %288 : vector<4x8x1xf32> to vector<4x8x32xf32>
    %290 = arith.mulf %280, %289 : vector<4x8x32xf32>
    %291 = vector.broadcast %272 : vector<1x1x32xf32> to vector<4x8x32xf32>
    %292 = arith.mulf %290, %291 : vector<4x8x32xf32>
    %293 = vector.broadcast %274 : vector<1x1x32xf32> to vector<4x8x32xf32>
    %294 = arith.addf %292, %293 : vector<4x8x32xf32>
    %c0_154 = arith.constant 0 : index
    %c0_155 = arith.constant 0 : index
    %295 = vector.load %arg8[%c0_154, %c0_155] : memref<32x64xf32, #tpu.memory_space<vmem>>, vector<32x64xf32>
    %296 = arith.truncf %295 : vector<32x64xf32> to vector<32x64xbf16>
    %297 = vector.shape_cast %296 : vector<32x64xbf16> to vector<1x32x64xbf16>
    %298 = vector.shape_cast %297 : vector<1x32x64xbf16> to vector<1x32x64xbf16>
    %299 = vector.broadcast %298 : vector<1x32x64xbf16> to vector<4x32x64xbf16>
    %300 = arith.truncf %294 : vector<4x8x32xf32> to vector<4x8x32xbf16>
    %cst_156 = arith.constant dense<0.000000e+00> : vector<4x8x64xf32>
    %301 = tpu.matmul %300, %299, %cst_156 {dimension_numbers = #tpu.dot_dimension_numbers<[2], [1], [1], [2], [0, 0, 0, 1, 1, 2], [0], [0]>} : vector<4x8x32xbf16>, vector<4x32x64xbf16>, vector<4x8x64xf32> -> vector<4x8x64xf32>
    %c0_157 = arith.constant 0 : index
    %c0_158 = arith.constant 0 : index
    %302 = vector.load %arg9[%c0_157, %c0_158] : memref<1x64xf32, #tpu.memory_space<vmem>>, vector<1x64xf32>
    %303 = vector.shape_cast %302 : vector<1x64xf32> to vector<1x1x64xf32>
    %304 = vector.broadcast %303 : vector<1x1x64xf32> to vector<4x8x64xf32>
    %305 = arith.addf %301, %304 : vector<4x8x64xf32>
    %cst_159 = arith.constant 5.000000e-01 : f32
    %306 = vector.broadcast %cst_159 : f32 to vector<4x8x64xf32>
    %307 = arith.mulf %306, %305 : vector<4x8x64xf32>
    %cst_160 = arith.constant 4.471500e-02 : f32
    %308 = vector.broadcast %cst_160 : f32 to vector<4x8x64xf32>
    %309 = arith.mulf %308, %305 : vector<4x8x64xf32>
    %310 = arith.mulf %309, %305 : vector<4x8x64xf32>
    %311 = arith.mulf %310, %305 : vector<4x8x64xf32>
    %312 = arith.addf %305, %311 : vector<4x8x64xf32>
    %cst_161 = arith.constant 0.797884583 : f32
    %313 = vector.broadcast %cst_161 : f32 to vector<4x8x64xf32>
    %314 = arith.mulf %313, %312 : vector<4x8x64xf32>
    %315 = math.tanh %314 : vector<4x8x64xf32>
    %cst_162 = arith.constant 1.000000e+00 : f32
    %316 = vector.broadcast %cst_162 : f32 to vector<4x8x64xf32>
    %317 = arith.addf %316, %315 : vector<4x8x64xf32>
    %318 = arith.mulf %307, %317 : vector<4x8x64xf32>
    %c0_163 = arith.constant 0 : index
    %c0_164 = arith.constant 0 : index
    %319 = vector.load %arg10[%c0_163, %c0_164] : memref<64x32xf32, #tpu.memory_space<vmem>>, vector<64x32xf32>
    %320 = arith.truncf %319 : vector<64x32xf32> to vector<64x32xbf16>
    %321 = vector.shape_cast %320 : vector<64x32xbf16> to vector<1x64x32xbf16>
    %322 = vector.shape_cast %321 : vector<1x64x32xbf16> to vector<1x64x32xbf16>
    %323 = vector.broadcast %322 : vector<1x64x32xbf16> to vector<4x64x32xbf16>
    %324 = arith.truncf %318 : vector<4x8x64xf32> to vector<4x8x64xbf16>
    %cst_165 = arith.constant dense<0.000000e+00> : vector<4x8x32xf32>
    %325 = tpu.matmul %324, %323, %cst_165 {dimension_numbers = #tpu.dot_dimension_numbers<[2], [1], [1], [2], [0, 0, 0, 1, 1, 2], [0], [0]>} : vector<4x8x64xbf16>, vector<4x64x32xbf16>, vector<4x8x32xf32> -> vector<4x8x32xf32>
    %c0_166 = arith.constant 0 : index
    %c0_167 = arith.constant 0 : index
    %326 = vector.load %arg11[%c0_166, %c0_167] : memref<1x32xf32, #tpu.memory_space<vmem>>, vector<1x32xf32>
    %327 = vector.shape_cast %326 : vector<1x32xf32> to vector<1x1x32xf32>
    %328 = vector.broadcast %327 : vector<1x1x32xf32> to vector<4x8x32xf32>
    %329 = arith.addf %325, %328 : vector<4x8x32xf32>
    %330 = arith.addf %294, %329 : vector<4x8x32xf32>
    %c0_168 = arith.constant 0 : index
    %c0_169 = arith.constant 0 : index
    %331 = vector.load %arg12[%c0_168, %c0_169] : memref<1x32xf32, #tpu.memory_space<vmem>>, vector<1x32xf32>
    %332 = vector.shape_cast %331 : vector<1x32xf32> to vector<1x1x32xf32>
    %c0_170 = arith.constant 0 : index
    %c0_171 = arith.constant 0 : index
    %333 = vector.load %arg13[%c0_170, %c0_171] : memref<1x32xf32, #tpu.memory_space<vmem>>, vector<1x32xf32>
    %334 = vector.shape_cast %333 : vector<1x32xf32> to vector<1x1x32xf32>
    %cst_172 = arith.constant dense<0.000000e+00> : vector<4x8xf32>
    %335 = vector.multi_reduction <add>, %330, %cst_172 [2] : vector<4x8x32xf32> to vector<4x8xf32>
    %336 = vector.shape_cast %335 : vector<4x8xf32> to vector<4x8x1xf32>
    %cst_173 = arith.constant 3.200000e+01 : f32
    %337 = vector.broadcast %cst_173 : f32 to vector<4x8x1xf32>
    %338 = arith.divf %336, %337 : vector<4x8x1xf32>
    %339 = vector.broadcast %338 : vector<4x8x1xf32> to vector<4x8x32xf32>
    %340 = arith.subf %330, %339 : vector<4x8x32xf32>
    %341 = arith.mulf %340, %340 : vector<4x8x32xf32>
    %cst_174 = arith.constant dense<0.000000e+00> : vector<4x8xf32>
    %342 = vector.multi_reduction <add>, %341, %cst_174 [2] : vector<4x8x32xf32> to vector<4x8xf32>
    %343 = vector.shape_cast %342 : vector<4x8xf32> to vector<4x8x1xf32>
    %cst_175 = arith.constant 3.200000e+01 : f32
    %344 = vector.broadcast %cst_175 : f32 to vector<4x8x1xf32>
    %345 = arith.divf %343, %344 : vector<4x8x1xf32>
    %cst_176 = arith.constant 9.99999974E-6 : f32
    %346 = vector.broadcast %cst_176 : f32 to vector<4x8x1xf32>
    %347 = arith.addf %345, %346 : vector<4x8x1xf32>
    %348 = math.rsqrt %347 : vector<4x8x1xf32>
    %349 = vector.broadcast %348 : vector<4x8x1xf32> to vector<4x8x32xf32>
    %350 = arith.mulf %340, %349 : vector<4x8x32xf32>
    %351 = vector.broadcast %332 : vector<1x1x32xf32> to vector<4x8x32xf32>
    %352 = arith.mulf %350, %351 : vector<4x8x32xf32>
    %353 = vector.broadcast %334 : vector<1x1x32xf32> to vector<4x8x32xf32>
    %354 = arith.addf %352, %353 : vector<4x8x32xf32>
    %c0_177 = arith.constant 0 : index
    %c0_178 = arith.constant 0 : index
    %c0_179 = arith.constant 0 : index
    %355 = vector.load %arg14[%c0_177, %c0_178, %c0_179] : memref<4x8x32xf32, #tpu.memory_space<vmem>>, vector<4x8x32xf32>
    tpu.vector_store %arg14[%c0_177, %c0_178, %c0_179], %354 {strides = array<i32>} : memref<4x8x32xf32, #tpu.memory_space<vmem>>, vector<4x8x32xf32>,
    return
  }
  func.func @transform_0(%arg0: i32) -> (i32, i32, i32) {
    %c0_i32 = arith.constant 0 : i32
    %c0_i32_0 = arith.constant 0 : i32
    %c0_i32_1 = arith.constant 0 : i32
    return %arg0, %c0_i32, %c0_i32_0 : i32, i32, i32
  }
  func.func @transform_1(%arg0: i32) -> (i32, i32, i32, i32) {
    %c0_i32 = arith.constant 0 : i32
    %c0_i32_0 = arith.constant 0 : i32
    %c0_i32_1 = arith.constant 0 : i32
    %c0_i32_2 = arith.constant 0 : i32
    %c0_i32_3 = arith.constant 0 : i32
    return %c0_i32, %c0_i32_0, %c0_i32_1, %c0_i32_2 : i32, i32, i32, i32
  }
  func.func @transform_2(%arg0: i32) -> (i32, i32, i32, i32) {
    %c0_i32 = arith.constant 0 : i32
    %c0_i32_0 = arith.constant 0 : i32
    %c0_i32_1 = arith.constant 0 : i32
    %c0_i32_2 = arith.constant 0 : i32
    %c0_i32_3 = arith.constant 0 : i32
    return %c0_i32, %c0_i32_0, %c0_i32_1, %c0_i32_2 : i32, i32, i32, i32
  }
  func.func @transform_3(%arg0: i32) -> (i32, i32, i32) {
    %c0_i32 = arith.constant 0 : i32
    %c0_i32_0 = arith.constant 0 : i32
    %c0_i32_1 = arith.constant 0 : i32
    %c0_i32_2 = arith.constant 0 : i32
    return %c0_i32, %c0_i32_0, %c0_i32_1 : i32, i32, i32
  }
  func.func @transform_4(%arg0: i32) -> (i32, i32) {
    %c0_i32 = arith.constant 0 : i32
    %c0_i32_0 = arith.constant 0 : i32
    %c0_i32_1 = arith.constant 0 : i32
    return %c0_i32, %c0_i32_0 : i32, i32
  }
  func.func @transform_5(%arg0: i32) -> (i32, i32) {
    %c0_i32 = arith.constant 0 : i32
    %c0_i32_0 = arith.constant 0 : i32
    %c0_i32_1 = arith.constant 0 : i32
    return %c0_i32, %c0_i32_0 : i32, i32
  }
  func.func @transform_6(%arg0: i32) -> (i32, i32) {
    %c0_i32 = arith.constant 0 : i32
    %c0_i32_0 = arith.constant 0 : i32
    %c0_i32_1 = arith.constant 0 : i32
    return %c0_i32, %c0_i32_0 : i32, i32
  }
  func.func @transform_7(%arg0: i32) -> (i32, i32) {
    %c0_i32 = arith.constant 0 : i32
    %c0_i32_0 = arith.constant 0 : i32
    %c0_i32_1 = arith.constant 0 : i32
    return %c0_i32, %c0_i32_0 : i32, i32
  }
  func.func @transform_8(%arg0: i32) -> (i32, i32) {
    %c0_i32 = arith.constant 0 : i32
    %c0_i32_0 = arith.constant 0 : i32
    %c0_i32_1 = arith.constant 0 : i32
    return %c0_i32, %c0_i32_0 : i32, i32
  }
  func.func @transform_9(%arg0: i32) -> (i32, i32) {
    %c0_i32 = arith.constant 0 : i32
    %c0_i32_0 = arith.constant 0 : i32
    %c0_i32_1 = arith.constant 0 : i32
    return %c0_i32, %c0_i32_0 : i32, i32
  }
  func.func @transform_10(%arg0: i32) -> (i32, i32) {
    %c0_i32 = arith.constant 0 : i32
    %c0_i32_0 = arith.constant 0 : i32
    %c0_i32_1 = arith.constant 0 : i32
    return %c0_i32, %c0_i32_0 : i32, i32
  }
  func.func @transform_11(%arg0: i32) -> (i32, i32) {
    %c0_i32 = arith.constant 0 : i32
    %c0_i32_0 = arith.constant 0 : i32
    %c0_i32_1 = arith.constant 0 : i32
    return %c0_i32, %c0_i32_0 : i32, i32
  }
  func.func @transform_12(%arg0: i32) -> (i32, i32) {
    %c0_i32 = arith.constant 0 : i32
    %c0_i32_0 = arith.constant 0 : i32
    %c0_i32_1 = arith.constant 0 : i32
    return %c0_i32, %c0_i32_0 : i32, i32
  }
  func.func @transform_13(%arg0: i32) -> (i32, i32, i32) {
    %c0_i32 = arith.constant 0 : i32
    %c0_i32_0 = arith.constant 0 : i32
    %c0_i32_1 = arith.constant 0 : i32
    return %arg0, %c0_i32, %c0_i32_0 : i32, i32, i32
  }
}

module attributes {stable_mosaic.version = 11 : i64} {
  func.func @_encoder_layer_kernel(%arg0: i32, %arg1: memref<8x4x32xf32, #tpu.memory_space<vmem>>, %arg2: memref<3x4x32x8xf32, #tpu.memory_space<vmem>>, %arg3: memref<3x4x1x8xf32, #tpu.memory_space<vmem>>, %arg4: memref<4x8x32xf32, #tpu.memory_space<vmem>>, %arg5: memref<1x32xf32, #tpu.memory_space<vmem>>, %arg6: memref<1x32xf32, #tpu.memory_space<vmem>>, %arg7: memref<1x32xf32, #tpu.memory_space<vmem>>, %arg8: memref<32x64xf32, #tpu.memory_space<vmem>>, %arg9: memref<1x64xf32, #tpu.memory_space<vmem>>, %arg10: memref<64x32xf32, #tpu.memory_space<vmem>>, %arg11: memref<1x32xf32, #tpu.memory_space<vmem>>, %arg12: memref<1x32xf32, #tpu.memory_space<vmem>>, %arg13: memref<1x32xf32, #tpu.memory_space<vmem>>, %arg14: memref<8x4x32xf32, #tpu.memory_space<vmem>>) attributes {dimension_semantics = [#tpu.dimension_semantics<parallel>], iteration_bounds = array<i64: 2>, scalar_prefetch = 0 : i64, scratch_operands = 0 : i64, tpu.core_type = #tpu.core_type<tc>, window_params = [{transform_indices = @transform_0, window_bounds = array<i64: 8, 4, 32>}, {pipeline_mode = #tpu.pipeline_mode<synchronous>, transform_indices = @transform_1, window_bounds = array<i64: 3, 4, 32, 8>}, {pipeline_mode = #tpu.pipeline_mode<synchronous>, transform_indices = @transform_2, window_bounds = array<i64: 3, 4, 1, 8>}, {pipeline_mode = #tpu.pipeline_mode<synchronous>, transform_indices = @transform_3, window_bounds = array<i64: 4, 8, 32>}, {pipeline_mode = #tpu.pipeline_mode<synchronous>, transform_indices = @transform_4, window_bounds = array<i64: 1, 32>}, {pipeline_mode = #tpu.pipeline_mode<synchronous>, transform_indices = @transform_5, window_bounds = array<i64: 1, 32>}, {pipeline_mode = #tpu.pipeline_mode<synchronous>, transform_indices = @transform_6, window_bounds = array<i64: 1, 32>}, {pipeline_mode = #tpu.pipeline_mode<synchronous>, transform_indices = @transform_7, window_bounds = array<i64: 32, 64>}, {pipeline_mode = #tpu.pipeline_mode<synchronous>, transform_indices = @transform_8, window_bounds = array<i64: 1, 64>}, {pipeline_mode = #tpu.pipeline_mode<synchronous>, transform_indices = @transform_9, window_bounds = array<i64: 64, 32>}, {pipeline_mode = #tpu.pipeline_mode<synchronous>, transform_indices = @transform_10, window_bounds = array<i64: 1, 32>}, {pipeline_mode = #tpu.pipeline_mode<synchronous>, transform_indices = @transform_11, window_bounds = array<i64: 1, 32>}, {pipeline_mode = #tpu.pipeline_mode<synchronous>, transform_indices = @transform_12, window_bounds = array<i64: 1, 32>}, {transform_indices = @transform_13, window_bounds = array<i64: 8, 4, 32>}]} {
    %c0 = arith.constant 0 : index
    %c0_0 = arith.constant 0 : index
    %c0_1 = arith.constant 0 : index
    %0 = vector.load %arg1[%c0, %c0_0, %c0_1] : memref<8x4x32xf32, #tpu.memory_space<vmem>>, vector<8x4x32xf32>
    %cst = arith.constant 0.000000e+00 : f32
    %1 = vector.broadcast %cst : f32 to vector<8x4x32xf32>
    %c0_2 = arith.constant 0 : index
    %c0_3 = arith.constant 0 : index
    %c0_4 = arith.constant 0 : index
    %c0_5 = arith.constant 0 : index
    %2 = vector.load %arg2[%c0_2, %c0_3, %c0_4, %c0_5] : memref<3x4x32x8xf32, #tpu.memory_space<vmem>>, vector<1x1x32x8xf32>
    %3 = vector.shape_cast %2 : vector<1x1x32x8xf32> to vector<32x8xf32>
    %4 = arith.truncf %3 : vector<32x8xf32> to vector<32x8xbf16>
    %5 = vector.shape_cast %4 : vector<32x8xbf16> to vector<1x32x8xbf16>
    %6 = vector.shape_cast %5 : vector<1x32x8xbf16> to vector<1x32x8xbf16>
    %7 = vector.broadcast %6 : vector<1x32x8xbf16> to vector<8x32x8xbf16>
    %8 = arith.truncf %0 : vector<8x4x32xf32> to vector<8x4x32xbf16>
    %cst_6 = arith.constant dense<0.000000e+00> : vector<8x4x8xf32>
    %9 = tpu.matmul %8, %7, %cst_6 {dimension_numbers = #tpu.dot_dimension_numbers<[2], [1], [1], [2], [0, 0, 0, 1, 1, 2], [0], [0]>} : vector<8x4x32xbf16>, vector<8x32x8xbf16>, vector<8x4x8xf32> -> vector<8x4x8xf32>
    %c0_7 = arith.constant 0 : index
    %c0_8 = arith.constant 0 : index
    %c0_9 = arith.constant 0 : index
    %c0_10 = arith.constant 0 : index
    %10 = vector.load %arg3[%c0_7, %c0_8, %c0_9, %c0_10] : memref<3x4x1x8xf32, #tpu.memory_space<vmem>>, vector<1x1x1x8xf32>
    %11 = vector.shape_cast %10 : vector<1x1x1x8xf32> to vector<1x8xf32>
    %12 = vector.shape_cast %11 : vector<1x8xf32> to vector<1x1x8xf32>
    %13 = vector.broadcast %12 : vector<1x1x8xf32> to vector<8x4x8xf32>
    %14 = arith.addf %9, %13 : vector<8x4x8xf32>
    %c1 = arith.constant 1 : index
    %c0_11 = arith.constant 0 : index
    %c0_12 = arith.constant 0 : index
    %c0_13 = arith.constant 0 : index
    %15 = vector.load %arg2[%c1, %c0_11, %c0_12, %c0_13] : memref<3x4x32x8xf32, #tpu.memory_space<vmem>>, vector<1x1x32x8xf32>
    %16 = vector.shape_cast %15 : vector<1x1x32x8xf32> to vector<32x8xf32>
    %17 = arith.truncf %16 : vector<32x8xf32> to vector<32x8xbf16>
    %18 = vector.shape_cast %17 : vector<32x8xbf16> to vector<1x32x8xbf16>
    %19 = vector.shape_cast %18 : vector<1x32x8xbf16> to vector<1x32x8xbf16>
    %20 = vector.broadcast %19 : vector<1x32x8xbf16> to vector<8x32x8xbf16>
    %21 = arith.truncf %0 : vector<8x4x32xf32> to vector<8x4x32xbf16>
    %cst_14 = arith.constant dense<0.000000e+00> : vector<8x4x8xf32>
    %22 = tpu.matmul %21, %20, %cst_14 {dimension_numbers = #tpu.dot_dimension_numbers<[2], [1], [1], [2], [0, 0, 0, 1, 1, 2], [0], [0]>} : vector<8x4x32xbf16>, vector<8x32x8xbf16>, vector<8x4x8xf32> -> vector<8x4x8xf32>
    %c1_15 = arith.constant 1 : index
    %c0_16 = arith.constant 0 : index
    %c0_17 = arith.constant 0 : index
    %c0_18 = arith.constant 0 : index
    %23 = vector.load %arg3[%c1_15, %c0_16, %c0_17, %c0_18] : memref<3x4x1x8xf32, #tpu.memory_space<vmem>>, vector<1x1x1x8xf32>
    %24 = vector.shape_cast %23 : vector<1x1x1x8xf32> to vector<1x8xf32>
    %25 = vector.shape_cast %24 : vector<1x8xf32> to vector<1x1x8xf32>
    %26 = vector.broadcast %25 : vector<1x1x8xf32> to vector<8x4x8xf32>
    %27 = arith.addf %22, %26 : vector<8x4x8xf32>
    %c2 = arith.constant 2 : index
    %c0_19 = arith.constant 0 : index
    %c0_20 = arith.constant 0 : index
    %c0_21 = arith.constant 0 : index
    %28 = vector.load %arg2[%c2, %c0_19, %c0_20, %c0_21] : memref<3x4x32x8xf32, #tpu.memory_space<vmem>>, vector<1x1x32x8xf32>
    %29 = vector.shape_cast %28 : vector<1x1x32x8xf32> to vector<32x8xf32>
    %30 = arith.truncf %29 : vector<32x8xf32> to vector<32x8xbf16>
    %31 = vector.shape_cast %30 : vector<32x8xbf16> to vector<1x32x8xbf16>
    %32 = vector.shape_cast %31 : vector<1x32x8xbf16> to vector<1x32x8xbf16>
    %33 = vector.broadcast %32 : vector<1x32x8xbf16> to vector<8x32x8xbf16>
    %34 = arith.truncf %0 : vector<8x4x32xf32> to vector<8x4x32xbf16>
    %cst_22 = arith.constant dense<0.000000e+00> : vector<8x4x8xf32>
    %35 = tpu.matmul %34, %33, %cst_22 {dimension_numbers = #tpu.dot_dimension_numbers<[2], [1], [1], [2], [0, 0, 0, 1, 1, 2], [0], [0]>} : vector<8x4x32xbf16>, vector<8x32x8xbf16>, vector<8x4x8xf32> -> vector<8x4x8xf32>
    %c2_23 = arith.constant 2 : index
    %c0_24 = arith.constant 0 : index
    %c0_25 = arith.constant 0 : index
    %c0_26 = arith.constant 0 : index
    %36 = vector.load %arg3[%c2_23, %c0_24, %c0_25, %c0_26] : memref<3x4x1x8xf32, #tpu.memory_space<vmem>>, vector<1x1x1x8xf32>
    %37 = vector.shape_cast %36 : vector<1x1x1x8xf32> to vector<1x8xf32>
    %38 = vector.shape_cast %37 : vector<1x8xf32> to vector<1x1x8xf32>
    %39 = vector.broadcast %38 : vector<1x1x8xf32> to vector<8x4x8xf32>
    %40 = arith.addf %35, %39 : vector<8x4x8xf32>
    %41 = arith.truncf %14 : vector<8x4x8xf32> to vector<8x4x8xbf16>
    %42 = arith.truncf %27 : vector<8x4x8xf32> to vector<8x4x8xbf16>
    %cst_27 = arith.constant dense<0.000000e+00> : vector<8x4x4xf32>
    %43 = tpu.matmul %41, %42, %cst_27 {dimension_numbers = #tpu.dot_dimension_numbers<[2], [2], [1], [1], [0, 0, 0, 1, 1, 1], [0], [0]>} : vector<8x4x8xbf16>, vector<8x4x8xbf16>, vector<8x4x4xf32> -> vector<8x4x4xf32>
    %cst_28 = arith.constant 0.353553385 : f32
    %44 = vector.broadcast %cst_28 : f32 to vector<8x4x4xf32>
    %45 = arith.mulf %43, %44 : vector<8x4x4xf32>
    %cst_29 = arith.constant dense<0xFF800000> : vector<8x4xf32>
    %46 = vector.multi_reduction <maximumf>, %45, %cst_29 [2] : vector<8x4x4xf32> to vector<8x4xf32>
    %47 = vector.shape_cast %46 : vector<8x4xf32> to vector<8x4x1xf32>
    %48 = vector.broadcast %47 : vector<8x4x1xf32> to vector<8x4x4xf32>
    %49 = arith.subf %45, %48 : vector<8x4x4xf32>
    %50 = math.exp %49 : vector<8x4x4xf32>
    %cst_30 = arith.constant dense<0.000000e+00> : vector<8x4xf32>
    %51 = vector.multi_reduction <add>, %50, %cst_30 [2] : vector<8x4x4xf32> to vector<8x4xf32>
    %52 = vector.shape_cast %51 : vector<8x4xf32> to vector<8x4x1xf32>
    %53 = tpu.reciprocal %52 {approx = true} : vector<8x4x1xf32> -> vector<8x4x1xf32>
    %54 = vector.broadcast %53 : vector<8x4x1xf32> to vector<8x4x4xf32>
    %55 = arith.mulf %50, %54 : vector<8x4x4xf32>
    %56 = arith.truncf %55 : vector<8x4x4xf32> to vector<8x4x4xbf16>
    %57 = arith.truncf %40 : vector<8x4x8xf32> to vector<8x4x8xbf16>
    %cst_31 = arith.constant dense<0.000000e+00> : vector<8x4x8xf32>
    %58 = tpu.matmul %56, %57, %cst_31 {dimension_numbers = #tpu.dot_dimension_numbers<[2], [1], [1], [2], [0, 0, 0, 1, 1, 2], [0], [0]>} : vector<8x4x4xbf16>, vector<8x4x8xbf16>, vector<8x4x8xf32> -> vector<8x4x8xf32>
    %c0_32 = arith.constant 0 : index
    %c0_33 = arith.constant 0 : index
    %c0_34 = arith.constant 0 : index
    %59 = vector.load %arg4[%c0_32, %c0_33, %c0_34] : memref<4x8x32xf32, #tpu.memory_space<vmem>>, vector<1x8x32xf32>
    %60 = vector.shape_cast %59 : vector<1x8x32xf32> to vector<8x32xf32>
    %61 = arith.truncf %60 : vector<8x32xf32> to vector<8x32xbf16>
    %62 = vector.shape_cast %61 : vector<8x32xbf16> to vector<1x8x32xbf16>
    %63 = vector.shape_cast %62 : vector<1x8x32xbf16> to vector<1x8x32xbf16>
    %64 = vector.broadcast %63 : vector<1x8x32xbf16> to vector<8x8x32xbf16>
    %65 = arith.truncf %58 : vector<8x4x8xf32> to vector<8x4x8xbf16>
    %cst_35 = arith.constant dense<0.000000e+00> : vector<8x4x32xf32>
    %66 = tpu.matmul %65, %64, %cst_35 {dimension_numbers = #tpu.dot_dimension_numbers<[2], [1], [1], [2], [0, 0, 0, 1, 1, 2], [0], [0]>} : vector<8x4x8xbf16>, vector<8x8x32xbf16>, vector<8x4x32xf32> -> vector<8x4x32xf32>
    %67 = arith.addf %1, %66 : vector<8x4x32xf32>
    %c0_36 = arith.constant 0 : index
    %c1_37 = arith.constant 1 : index
    %c0_38 = arith.constant 0 : index
    %c0_39 = arith.constant 0 : index
    %68 = vector.load %arg2[%c0_36, %c1_37, %c0_38, %c0_39] : memref<3x4x32x8xf32, #tpu.memory_space<vmem>>, vector<1x1x32x8xf32>
    %69 = vector.shape_cast %68 : vector<1x1x32x8xf32> to vector<32x8xf32>
    %70 = arith.truncf %69 : vector<32x8xf32> to vector<32x8xbf16>
    %71 = vector.shape_cast %70 : vector<32x8xbf16> to vector<1x32x8xbf16>
    %72 = vector.shape_cast %71 : vector<1x32x8xbf16> to vector<1x32x8xbf16>
    %73 = vector.broadcast %72 : vector<1x32x8xbf16> to vector<8x32x8xbf16>
    %74 = arith.truncf %0 : vector<8x4x32xf32> to vector<8x4x32xbf16>
    %cst_40 = arith.constant dense<0.000000e+00> : vector<8x4x8xf32>
    %75 = tpu.matmul %74, %73, %cst_40 {dimension_numbers = #tpu.dot_dimension_numbers<[2], [1], [1], [2], [0, 0, 0, 1, 1, 2], [0], [0]>} : vector<8x4x32xbf16>, vector<8x32x8xbf16>, vector<8x4x8xf32> -> vector<8x4x8xf32>
    %c0_41 = arith.constant 0 : index
    %c1_42 = arith.constant 1 : index
    %c0_43 = arith.constant 0 : index
    %c0_44 = arith.constant 0 : index
    %76 = vector.load %arg3[%c0_41, %c1_42, %c0_43, %c0_44] : memref<3x4x1x8xf32, #tpu.memory_space<vmem>>, vector<1x1x1x8xf32>
    %77 = vector.shape_cast %76 : vector<1x1x1x8xf32> to vector<1x8xf32>
    %78 = vector.shape_cast %77 : vector<1x8xf32> to vector<1x1x8xf32>
    %79 = vector.broadcast %78 : vector<1x1x8xf32> to vector<8x4x8xf32>
    %80 = arith.addf %75, %79 : vector<8x4x8xf32>
    %c1_45 = arith.constant 1 : index
    %c1_46 = arith.constant 1 : index
    %c0_47 = arith.constant 0 : index
    %c0_48 = arith.constant 0 : index
    %81 = vector.load %arg2[%c1_45, %c1_46, %c0_47, %c0_48] : memref<3x4x32x8xf32, #tpu.memory_space<vmem>>, vector<1x1x32x8xf32>
    %82 = vector.shape_cast %81 : vector<1x1x32x8xf32> to vector<32x8xf32>
    %83 = arith.truncf %82 : vector<32x8xf32> to vector<32x8xbf16>
    %84 = vector.shape_cast %83 : vector<32x8xbf16> to vector<1x32x8xbf16>
    %85 = vector.shape_cast %84 : vector<1x32x8xbf16> to vector<1x32x8xbf16>
    %86 = vector.broadcast %85 : vector<1x32x8xbf16> to vector<8x32x8xbf16>
    %87 = arith.truncf %0 : vector<8x4x32xf32> to vector<8x4x32xbf16>
    %cst_49 = arith.constant dense<0.000000e+00> : vector<8x4x8xf32>
    %88 = tpu.matmul %87, %86, %cst_49 {dimension_numbers = #tpu.dot_dimension_numbers<[2], [1], [1], [2], [0, 0, 0, 1, 1, 2], [0], [0]>} : vector<8x4x32xbf16>, vector<8x32x8xbf16>, vector<8x4x8xf32> -> vector<8x4x8xf32>
    %c1_50 = arith.constant 1 : index
    %c1_51 = arith.constant 1 : index
    %c0_52 = arith.constant 0 : index
    %c0_53 = arith.constant 0 : index
    %89 = vector.load %arg3[%c1_50, %c1_51, %c0_52, %c0_53] : memref<3x4x1x8xf32, #tpu.memory_space<vmem>>, vector<1x1x1x8xf32>
    %90 = vector.shape_cast %89 : vector<1x1x1x8xf32> to vector<1x8xf32>
    %91 = vector.shape_cast %90 : vector<1x8xf32> to vector<1x1x8xf32>
    %92 = vector.broadcast %91 : vector<1x1x8xf32> to vector<8x4x8xf32>
    %93 = arith.addf %88, %92 : vector<8x4x8xf32>
    %c2_54 = arith.constant 2 : index
    %c1_55 = arith.constant 1 : index
    %c0_56 = arith.constant 0 : index
    %c0_57 = arith.constant 0 : index
    %94 = vector.load %arg2[%c2_54, %c1_55, %c0_56, %c0_57] : memref<3x4x32x8xf32, #tpu.memory_space<vmem>>, vector<1x1x32x8xf32>
    %95 = vector.shape_cast %94 : vector<1x1x32x8xf32> to vector<32x8xf32>
    %96 = arith.truncf %95 : vector<32x8xf32> to vector<32x8xbf16>
    %97 = vector.shape_cast %96 : vector<32x8xbf16> to vector<1x32x8xbf16>
    %98 = vector.shape_cast %97 : vector<1x32x8xbf16> to vector<1x32x8xbf16>
    %99 = vector.broadcast %98 : vector<1x32x8xbf16> to vector<8x32x8xbf16>
    %100 = arith.truncf %0 : vector<8x4x32xf32> to vector<8x4x32xbf16>
    %cst_58 = arith.constant dense<0.000000e+00> : vector<8x4x8xf32>
    %101 = tpu.matmul %100, %99, %cst_58 {dimension_numbers = #tpu.dot_dimension_numbers<[2], [1], [1], [2], [0, 0, 0, 1, 1, 2], [0], [0]>} : vector<8x4x32xbf16>, vector<8x32x8xbf16>, vector<8x4x8xf32> -> vector<8x4x8xf32>
    %c2_59 = arith.constant 2 : index
    %c1_60 = arith.constant 1 : index
    %c0_61 = arith.constant 0 : index
    %c0_62 = arith.constant 0 : index
    %102 = vector.load %arg3[%c2_59, %c1_60, %c0_61, %c0_62] : memref<3x4x1x8xf32, #tpu.memory_space<vmem>>, vector<1x1x1x8xf32>
    %103 = vector.shape_cast %102 : vector<1x1x1x8xf32> to vector<1x8xf32>
    %104 = vector.shape_cast %103 : vector<1x8xf32> to vector<1x1x8xf32>
    %105 = vector.broadcast %104 : vector<1x1x8xf32> to vector<8x4x8xf32>
    %106 = arith.addf %101, %105 : vector<8x4x8xf32>
    %107 = arith.truncf %80 : vector<8x4x8xf32> to vector<8x4x8xbf16>
    %108 = arith.truncf %93 : vector<8x4x8xf32> to vector<8x4x8xbf16>
    %cst_63 = arith.constant dense<0.000000e+00> : vector<8x4x4xf32>
    %109 = tpu.matmul %107, %108, %cst_63 {dimension_numbers = #tpu.dot_dimension_numbers<[2], [2], [1], [1], [0, 0, 0, 1, 1, 1], [0], [0]>} : vector<8x4x8xbf16>, vector<8x4x8xbf16>, vector<8x4x4xf32> -> vector<8x4x4xf32>
    %cst_64 = arith.constant 0.353553385 : f32
    %110 = vector.broadcast %cst_64 : f32 to vector<8x4x4xf32>
    %111 = arith.mulf %109, %110 : vector<8x4x4xf32>
    %cst_65 = arith.constant dense<0xFF800000> : vector<8x4xf32>
    %112 = vector.multi_reduction <maximumf>, %111, %cst_65 [2] : vector<8x4x4xf32> to vector<8x4xf32>
    %113 = vector.shape_cast %112 : vector<8x4xf32> to vector<8x4x1xf32>
    %114 = vector.broadcast %113 : vector<8x4x1xf32> to vector<8x4x4xf32>
    %115 = arith.subf %111, %114 : vector<8x4x4xf32>
    %116 = math.exp %115 : vector<8x4x4xf32>
    %cst_66 = arith.constant dense<0.000000e+00> : vector<8x4xf32>
    %117 = vector.multi_reduction <add>, %116, %cst_66 [2] : vector<8x4x4xf32> to vector<8x4xf32>
    %118 = vector.shape_cast %117 : vector<8x4xf32> to vector<8x4x1xf32>
    %119 = tpu.reciprocal %118 {approx = true} : vector<8x4x1xf32> -> vector<8x4x1xf32>
    %120 = vector.broadcast %119 : vector<8x4x1xf32> to vector<8x4x4xf32>
    %121 = arith.mulf %116, %120 : vector<8x4x4xf32>
    %122 = arith.truncf %121 : vector<8x4x4xf32> to vector<8x4x4xbf16>
    %123 = arith.truncf %106 : vector<8x4x8xf32> to vector<8x4x8xbf16>
    %cst_67 = arith.constant dense<0.000000e+00> : vector<8x4x8xf32>
    %124 = tpu.matmul %122, %123, %cst_67 {dimension_numbers = #tpu.dot_dimension_numbers<[2], [1], [1], [2], [0, 0, 0, 1, 1, 2], [0], [0]>} : vector<8x4x4xbf16>, vector<8x4x8xbf16>, vector<8x4x8xf32> -> vector<8x4x8xf32>
    %c1_68 = arith.constant 1 : index
    %c0_69 = arith.constant 0 : index
    %c0_70 = arith.constant 0 : index
    %125 = vector.load %arg4[%c1_68, %c0_69, %c0_70] : memref<4x8x32xf32, #tpu.memory_space<vmem>>, vector<1x8x32xf32>
    %126 = vector.shape_cast %125 : vector<1x8x32xf32> to vector<8x32xf32>
    %127 = arith.truncf %126 : vector<8x32xf32> to vector<8x32xbf16>
    %128 = vector.shape_cast %127 : vector<8x32xbf16> to vector<1x8x32xbf16>
    %129 = vector.shape_cast %128 : vector<1x8x32xbf16> to vector<1x8x32xbf16>
    %130 = vector.broadcast %129 : vector<1x8x32xbf16> to vector<8x8x32xbf16>
    %131 = arith.truncf %124 : vector<8x4x8xf32> to vector<8x4x8xbf16>
    %cst_71 = arith.constant dense<0.000000e+00> : vector<8x4x32xf32>
    %132 = tpu.matmul %131, %130, %cst_71 {dimension_numbers = #tpu.dot_dimension_numbers<[2], [1], [1], [2], [0, 0, 0, 1, 1, 2], [0], [0]>} : vector<8x4x8xbf16>, vector<8x8x32xbf16>, vector<8x4x32xf32> -> vector<8x4x32xf32>
    %133 = arith.addf %67, %132 : vector<8x4x32xf32>
    %c0_72 = arith.constant 0 : index
    %c2_73 = arith.constant 2 : index
    %c0_74 = arith.constant 0 : index
    %c0_75 = arith.constant 0 : index
    %134 = vector.load %arg2[%c0_72, %c2_73, %c0_74, %c0_75] : memref<3x4x32x8xf32, #tpu.memory_space<vmem>>, vector<1x1x32x8xf32>
    %135 = vector.shape_cast %134 : vector<1x1x32x8xf32> to vector<32x8xf32>
    %136 = arith.truncf %135 : vector<32x8xf32> to vector<32x8xbf16>
    %137 = vector.shape_cast %136 : vector<32x8xbf16> to vector<1x32x8xbf16>
    %138 = vector.shape_cast %137 : vector<1x32x8xbf16> to vector<1x32x8xbf16>
    %139 = vector.broadcast %138 : vector<1x32x8xbf16> to vector<8x32x8xbf16>
    %140 = arith.truncf %0 : vector<8x4x32xf32> to vector<8x4x32xbf16>
    %cst_76 = arith.constant dense<0.000000e+00> : vector<8x4x8xf32>
    %141 = tpu.matmul %140, %139, %cst_76 {dimension_numbers = #tpu.dot_dimension_numbers<[2], [1], [1], [2], [0, 0, 0, 1, 1, 2], [0], [0]>} : vector<8x4x32xbf16>, vector<8x32x8xbf16>, vector<8x4x8xf32> -> vector<8x4x8xf32>
    %c0_77 = arith.constant 0 : index
    %c2_78 = arith.constant 2 : index
    %c0_79 = arith.constant 0 : index
    %c0_80 = arith.constant 0 : index
    %142 = vector.load %arg3[%c0_77, %c2_78, %c0_79, %c0_80] : memref<3x4x1x8xf32, #tpu.memory_space<vmem>>, vector<1x1x1x8xf32>
    %143 = vector.shape_cast %142 : vector<1x1x1x8xf32> to vector<1x8xf32>
    %144 = vector.shape_cast %143 : vector<1x8xf32> to vector<1x1x8xf32>
    %145 = vector.broadcast %144 : vector<1x1x8xf32> to vector<8x4x8xf32>
    %146 = arith.addf %141, %145 : vector<8x4x8xf32>
    %c1_81 = arith.constant 1 : index
    %c2_82 = arith.constant 2 : index
    %c0_83 = arith.constant 0 : index
    %c0_84 = arith.constant 0 : index
    %147 = vector.load %arg2[%c1_81, %c2_82, %c0_83, %c0_84] : memref<3x4x32x8xf32, #tpu.memory_space<vmem>>, vector<1x1x32x8xf32>
    %148 = vector.shape_cast %147 : vector<1x1x32x8xf32> to vector<32x8xf32>
    %149 = arith.truncf %148 : vector<32x8xf32> to vector<32x8xbf16>
    %150 = vector.shape_cast %149 : vector<32x8xbf16> to vector<1x32x8xbf16>
    %151 = vector.shape_cast %150 : vector<1x32x8xbf16> to vector<1x32x8xbf16>
    %152 = vector.broadcast %151 : vector<1x32x8xbf16> to vector<8x32x8xbf16>
    %153 = arith.truncf %0 : vector<8x4x32xf32> to vector<8x4x32xbf16>
    %cst_85 = arith.constant dense<0.000000e+00> : vector<8x4x8xf32>
    %154 = tpu.matmul %153, %152, %cst_85 {dimension_numbers = #tpu.dot_dimension_numbers<[2], [1], [1], [2], [0, 0, 0, 1, 1, 2], [0], [0]>} : vector<8x4x32xbf16>, vector<8x32x8xbf16>, vector<8x4x8xf32> -> vector<8x4x8xf32>
    %c1_86 = arith.constant 1 : index
    %c2_87 = arith.constant 2 : index
    %c0_88 = arith.constant 0 : index
    %c0_89 = arith.constant 0 : index
    %155 = vector.load %arg3[%c1_86, %c2_87, %c0_88, %c0_89] : memref<3x4x1x8xf32, #tpu.memory_space<vmem>>, vector<1x1x1x8xf32>
    %156 = vector.shape_cast %155 : vector<1x1x1x8xf32> to vector<1x8xf32>
    %157 = vector.shape_cast %156 : vector<1x8xf32> to vector<1x1x8xf32>
    %158 = vector.broadcast %157 : vector<1x1x8xf32> to vector<8x4x8xf32>
    %159 = arith.addf %154, %158 : vector<8x4x8xf32>
    %c2_90 = arith.constant 2 : index
    %c2_91 = arith.constant 2 : index
    %c0_92 = arith.constant 0 : index
    %c0_93 = arith.constant 0 : index
    %160 = vector.load %arg2[%c2_90, %c2_91, %c0_92, %c0_93] : memref<3x4x32x8xf32, #tpu.memory_space<vmem>>, vector<1x1x32x8xf32>
    %161 = vector.shape_cast %160 : vector<1x1x32x8xf32> to vector<32x8xf32>
    %162 = arith.truncf %161 : vector<32x8xf32> to vector<32x8xbf16>
    %163 = vector.shape_cast %162 : vector<32x8xbf16> to vector<1x32x8xbf16>
    %164 = vector.shape_cast %163 : vector<1x32x8xbf16> to vector<1x32x8xbf16>
    %165 = vector.broadcast %164 : vector<1x32x8xbf16> to vector<8x32x8xbf16>
    %166 = arith.truncf %0 : vector<8x4x32xf32> to vector<8x4x32xbf16>
    %cst_94 = arith.constant dense<0.000000e+00> : vector<8x4x8xf32>
    %167 = tpu.matmul %166, %165, %cst_94 {dimension_numbers = #tpu.dot_dimension_numbers<[2], [1], [1], [2], [0, 0, 0, 1, 1, 2], [0], [0]>} : vector<8x4x32xbf16>, vector<8x32x8xbf16>, vector<8x4x8xf32> -> vector<8x4x8xf32>
    %c2_95 = arith.constant 2 : index
    %c2_96 = arith.constant 2 : index
    %c0_97 = arith.constant 0 : index
    %c0_98 = arith.constant 0 : index
    %168 = vector.load %arg3[%c2_95, %c2_96, %c0_97, %c0_98] : memref<3x4x1x8xf32, #tpu.memory_space<vmem>>, vector<1x1x1x8xf32>
    %169 = vector.shape_cast %168 : vector<1x1x1x8xf32> to vector<1x8xf32>
    %170 = vector.shape_cast %169 : vector<1x8xf32> to vector<1x1x8xf32>
    %171 = vector.broadcast %170 : vector<1x1x8xf32> to vector<8x4x8xf32>
    %172 = arith.addf %167, %171 : vector<8x4x8xf32>
    %173 = arith.truncf %146 : vector<8x4x8xf32> to vector<8x4x8xbf16>
    %174 = arith.truncf %159 : vector<8x4x8xf32> to vector<8x4x8xbf16>
    %cst_99 = arith.constant dense<0.000000e+00> : vector<8x4x4xf32>
    %175 = tpu.matmul %173, %174, %cst_99 {dimension_numbers = #tpu.dot_dimension_numbers<[2], [2], [1], [1], [0, 0, 0, 1, 1, 1], [0], [0]>} : vector<8x4x8xbf16>, vector<8x4x8xbf16>, vector<8x4x4xf32> -> vector<8x4x4xf32>
    %cst_100 = arith.constant 0.353553385 : f32
    %176 = vector.broadcast %cst_100 : f32 to vector<8x4x4xf32>
    %177 = arith.mulf %175, %176 : vector<8x4x4xf32>
    %cst_101 = arith.constant dense<0xFF800000> : vector<8x4xf32>
    %178 = vector.multi_reduction <maximumf>, %177, %cst_101 [2] : vector<8x4x4xf32> to vector<8x4xf32>
    %179 = vector.shape_cast %178 : vector<8x4xf32> to vector<8x4x1xf32>
    %180 = vector.broadcast %179 : vector<8x4x1xf32> to vector<8x4x4xf32>
    %181 = arith.subf %177, %180 : vector<8x4x4xf32>
    %182 = math.exp %181 : vector<8x4x4xf32>
    %cst_102 = arith.constant dense<0.000000e+00> : vector<8x4xf32>
    %183 = vector.multi_reduction <add>, %182, %cst_102 [2] : vector<8x4x4xf32> to vector<8x4xf32>
    %184 = vector.shape_cast %183 : vector<8x4xf32> to vector<8x4x1xf32>
    %185 = tpu.reciprocal %184 {approx = true} : vector<8x4x1xf32> -> vector<8x4x1xf32>
    %186 = vector.broadcast %185 : vector<8x4x1xf32> to vector<8x4x4xf32>
    %187 = arith.mulf %182, %186 : vector<8x4x4xf32>
    %188 = arith.truncf %187 : vector<8x4x4xf32> to vector<8x4x4xbf16>
    %189 = arith.truncf %172 : vector<8x4x8xf32> to vector<8x4x8xbf16>
    %cst_103 = arith.constant dense<0.000000e+00> : vector<8x4x8xf32>
    %190 = tpu.matmul %188, %189, %cst_103 {dimension_numbers = #tpu.dot_dimension_numbers<[2], [1], [1], [2], [0, 0, 0, 1, 1, 2], [0], [0]>} : vector<8x4x4xbf16>, vector<8x4x8xbf16>, vector<8x4x8xf32> -> vector<8x4x8xf32>
    %c2_104 = arith.constant 2 : index
    %c0_105 = arith.constant 0 : index
    %c0_106 = arith.constant 0 : index
    %191 = vector.load %arg4[%c2_104, %c0_105, %c0_106] : memref<4x8x32xf32, #tpu.memory_space<vmem>>, vector<1x8x32xf32>
    %192 = vector.shape_cast %191 : vector<1x8x32xf32> to vector<8x32xf32>
    %193 = arith.truncf %192 : vector<8x32xf32> to vector<8x32xbf16>
    %194 = vector.shape_cast %193 : vector<8x32xbf16> to vector<1x8x32xbf16>
    %195 = vector.shape_cast %194 : vector<1x8x32xbf16> to vector<1x8x32xbf16>
    %196 = vector.broadcast %195 : vector<1x8x32xbf16> to vector<8x8x32xbf16>
    %197 = arith.truncf %190 : vector<8x4x8xf32> to vector<8x4x8xbf16>
    %cst_107 = arith.constant dense<0.000000e+00> : vector<8x4x32xf32>
    %198 = tpu.matmul %197, %196, %cst_107 {dimension_numbers = #tpu.dot_dimension_numbers<[2], [1], [1], [2], [0, 0, 0, 1, 1, 2], [0], [0]>} : vector<8x4x8xbf16>, vector<8x8x32xbf16>, vector<8x4x32xf32> -> vector<8x4x32xf32>
    %199 = arith.addf %133, %198 : vector<8x4x32xf32>
    %c0_108 = arith.constant 0 : index
    %c3 = arith.constant 3 : index
    %c0_109 = arith.constant 0 : index
    %c0_110 = arith.constant 0 : index
    %200 = vector.load %arg2[%c0_108, %c3, %c0_109, %c0_110] : memref<3x4x32x8xf32, #tpu.memory_space<vmem>>, vector<1x1x32x8xf32>
    %201 = vector.shape_cast %200 : vector<1x1x32x8xf32> to vector<32x8xf32>
    %202 = arith.truncf %201 : vector<32x8xf32> to vector<32x8xbf16>
    %203 = vector.shape_cast %202 : vector<32x8xbf16> to vector<1x32x8xbf16>
    %204 = vector.shape_cast %203 : vector<1x32x8xbf16> to vector<1x32x8xbf16>
    %205 = vector.broadcast %204 : vector<1x32x8xbf16> to vector<8x32x8xbf16>
    %206 = arith.truncf %0 : vector<8x4x32xf32> to vector<8x4x32xbf16>
    %cst_111 = arith.constant dense<0.000000e+00> : vector<8x4x8xf32>
    %207 = tpu.matmul %206, %205, %cst_111 {dimension_numbers = #tpu.dot_dimension_numbers<[2], [1], [1], [2], [0, 0, 0, 1, 1, 2], [0], [0]>} : vector<8x4x32xbf16>, vector<8x32x8xbf16>, vector<8x4x8xf32> -> vector<8x4x8xf32>
    %c0_112 = arith.constant 0 : index
    %c3_113 = arith.constant 3 : index
    %c0_114 = arith.constant 0 : index
    %c0_115 = arith.constant 0 : index
    %208 = vector.load %arg3[%c0_112, %c3_113, %c0_114, %c0_115] : memref<3x4x1x8xf32, #tpu.memory_space<vmem>>, vector<1x1x1x8xf32>
    %209 = vector.shape_cast %208 : vector<1x1x1x8xf32> to vector<1x8xf32>
    %210 = vector.shape_cast %209 : vector<1x8xf32> to vector<1x1x8xf32>
    %211 = vector.broadcast %210 : vector<1x1x8xf32> to vector<8x4x8xf32>
    %212 = arith.addf %207, %211 : vector<8x4x8xf32>
    %c1_116 = arith.constant 1 : index
    %c3_117 = arith.constant 3 : index
    %c0_118 = arith.constant 0 : index
    %c0_119 = arith.constant 0 : index
    %213 = vector.load %arg2[%c1_116, %c3_117, %c0_118, %c0_119] : memref<3x4x32x8xf32, #tpu.memory_space<vmem>>, vector<1x1x32x8xf32>
    %214 = vector.shape_cast %213 : vector<1x1x32x8xf32> to vector<32x8xf32>
    %215 = arith.truncf %214 : vector<32x8xf32> to vector<32x8xbf16>
    %216 = vector.shape_cast %215 : vector<32x8xbf16> to vector<1x32x8xbf16>
    %217 = vector.shape_cast %216 : vector<1x32x8xbf16> to vector<1x32x8xbf16>
    %218 = vector.broadcast %217 : vector<1x32x8xbf16> to vector<8x32x8xbf16>
    %219 = arith.truncf %0 : vector<8x4x32xf32> to vector<8x4x32xbf16>
    %cst_120 = arith.constant dense<0.000000e+00> : vector<8x4x8xf32>
    %220 = tpu.matmul %219, %218, %cst_120 {dimension_numbers = #tpu.dot_dimension_numbers<[2], [1], [1], [2], [0, 0, 0, 1, 1, 2], [0], [0]>} : vector<8x4x32xbf16>, vector<8x32x8xbf16>, vector<8x4x8xf32> -> vector<8x4x8xf32>
    %c1_121 = arith.constant 1 : index
    %c3_122 = arith.constant 3 : index
    %c0_123 = arith.constant 0 : index
    %c0_124 = arith.constant 0 : index
    %221 = vector.load %arg3[%c1_121, %c3_122, %c0_123, %c0_124] : memref<3x4x1x8xf32, #tpu.memory_space<vmem>>, vector<1x1x1x8xf32>
    %222 = vector.shape_cast %221 : vector<1x1x1x8xf32> to vector<1x8xf32>
    %223 = vector.shape_cast %222 : vector<1x8xf32> to vector<1x1x8xf32>
    %224 = vector.broadcast %223 : vector<1x1x8xf32> to vector<8x4x8xf32>
    %225 = arith.addf %220, %224 : vector<8x4x8xf32>
    %c2_125 = arith.constant 2 : index
    %c3_126 = arith.constant 3 : index
    %c0_127 = arith.constant 0 : index
    %c0_128 = arith.constant 0 : index
    %226 = vector.load %arg2[%c2_125, %c3_126, %c0_127, %c0_128] : memref<3x4x32x8xf32, #tpu.memory_space<vmem>>, vector<1x1x32x8xf32>
    %227 = vector.shape_cast %226 : vector<1x1x32x8xf32> to vector<32x8xf32>
    %228 = arith.truncf %227 : vector<32x8xf32> to vector<32x8xbf16>
    %229 = vector.shape_cast %228 : vector<32x8xbf16> to vector<1x32x8xbf16>
    %230 = vector.shape_cast %229 : vector<1x32x8xbf16> to vector<1x32x8xbf16>
    %231 = vector.broadcast %230 : vector<1x32x8xbf16> to vector<8x32x8xbf16>
    %232 = arith.truncf %0 : vector<8x4x32xf32> to vector<8x4x32xbf16>
    %cst_129 = arith.constant dense<0.000000e+00> : vector<8x4x8xf32>
    %233 = tpu.matmul %232, %231, %cst_129 {dimension_numbers = #tpu.dot_dimension_numbers<[2], [1], [1], [2], [0, 0, 0, 1, 1, 2], [0], [0]>} : vector<8x4x32xbf16>, vector<8x32x8xbf16>, vector<8x4x8xf32> -> vector<8x4x8xf32>
    %c2_130 = arith.constant 2 : index
    %c3_131 = arith.constant 3 : index
    %c0_132 = arith.constant 0 : index
    %c0_133 = arith.constant 0 : index
    %234 = vector.load %arg3[%c2_130, %c3_131, %c0_132, %c0_133] : memref<3x4x1x8xf32, #tpu.memory_space<vmem>>, vector<1x1x1x8xf32>
    %235 = vector.shape_cast %234 : vector<1x1x1x8xf32> to vector<1x8xf32>
    %236 = vector.shape_cast %235 : vector<1x8xf32> to vector<1x1x8xf32>
    %237 = vector.broadcast %236 : vector<1x1x8xf32> to vector<8x4x8xf32>
    %238 = arith.addf %233, %237 : vector<8x4x8xf32>
    %239 = arith.truncf %212 : vector<8x4x8xf32> to vector<8x4x8xbf16>
    %240 = arith.truncf %225 : vector<8x4x8xf32> to vector<8x4x8xbf16>
    %cst_134 = arith.constant dense<0.000000e+00> : vector<8x4x4xf32>
    %241 = tpu.matmul %239, %240, %cst_134 {dimension_numbers = #tpu.dot_dimension_numbers<[2], [2], [1], [1], [0, 0, 0, 1, 1, 1], [0], [0]>} : vector<8x4x8xbf16>, vector<8x4x8xbf16>, vector<8x4x4xf32> -> vector<8x4x4xf32>
    %cst_135 = arith.constant 0.353553385 : f32
    %242 = vector.broadcast %cst_135 : f32 to vector<8x4x4xf32>
    %243 = arith.mulf %241, %242 : vector<8x4x4xf32>
    %cst_136 = arith.constant dense<0xFF800000> : vector<8x4xf32>
    %244 = vector.multi_reduction <maximumf>, %243, %cst_136 [2] : vector<8x4x4xf32> to vector<8x4xf32>
    %245 = vector.shape_cast %244 : vector<8x4xf32> to vector<8x4x1xf32>
    %246 = vector.broadcast %245 : vector<8x4x1xf32> to vector<8x4x4xf32>
    %247 = arith.subf %243, %246 : vector<8x4x4xf32>
    %248 = math.exp %247 : vector<8x4x4xf32>
    %cst_137 = arith.constant dense<0.000000e+00> : vector<8x4xf32>
    %249 = vector.multi_reduction <add>, %248, %cst_137 [2] : vector<8x4x4xf32> to vector<8x4xf32>
    %250 = vector.shape_cast %249 : vector<8x4xf32> to vector<8x4x1xf32>
    %251 = tpu.reciprocal %250 {approx = true} : vector<8x4x1xf32> -> vector<8x4x1xf32>
    %252 = vector.broadcast %251 : vector<8x4x1xf32> to vector<8x4x4xf32>
    %253 = arith.mulf %248, %252 : vector<8x4x4xf32>
    %254 = arith.truncf %253 : vector<8x4x4xf32> to vector<8x4x4xbf16>
    %255 = arith.truncf %238 : vector<8x4x8xf32> to vector<8x4x8xbf16>
    %cst_138 = arith.constant dense<0.000000e+00> : vector<8x4x8xf32>
    %256 = tpu.matmul %254, %255, %cst_138 {dimension_numbers = #tpu.dot_dimension_numbers<[2], [1], [1], [2], [0, 0, 0, 1, 1, 2], [0], [0]>} : vector<8x4x4xbf16>, vector<8x4x8xbf16>, vector<8x4x8xf32> -> vector<8x4x8xf32>
    %c3_139 = arith.constant 3 : index
    %c0_140 = arith.constant 0 : index
    %c0_141 = arith.constant 0 : index
    %257 = vector.load %arg4[%c3_139, %c0_140, %c0_141] : memref<4x8x32xf32, #tpu.memory_space<vmem>>, vector<1x8x32xf32>
    %258 = vector.shape_cast %257 : vector<1x8x32xf32> to vector<8x32xf32>
    %259 = arith.truncf %258 : vector<8x32xf32> to vector<8x32xbf16>
    %260 = vector.shape_cast %259 : vector<8x32xbf16> to vector<1x8x32xbf16>
    %261 = vector.shape_cast %260 : vector<1x8x32xbf16> to vector<1x8x32xbf16>
    %262 = vector.broadcast %261 : vector<1x8x32xbf16> to vector<8x8x32xbf16>
    %263 = arith.truncf %256 : vector<8x4x8xf32> to vector<8x4x8xbf16>
    %cst_142 = arith.constant dense<0.000000e+00> : vector<8x4x32xf32>
    %264 = tpu.matmul %263, %262, %cst_142 {dimension_numbers = #tpu.dot_dimension_numbers<[2], [1], [1], [2], [0, 0, 0, 1, 1, 2], [0], [0]>} : vector<8x4x8xbf16>, vector<8x8x32xbf16>, vector<8x4x32xf32> -> vector<8x4x32xf32>
    %265 = arith.addf %199, %264 : vector<8x4x32xf32>
    %c0_143 = arith.constant 0 : index
    %c0_144 = arith.constant 0 : index
    %266 = vector.load %arg5[%c0_143, %c0_144] : memref<1x32xf32, #tpu.memory_space<vmem>>, vector<1x32xf32>
    %267 = vector.shape_cast %266 : vector<1x32xf32> to vector<1x1x32xf32>
    %268 = vector.broadcast %267 : vector<1x1x32xf32> to vector<8x4x32xf32>
    %269 = arith.addf %265, %268 : vector<8x4x32xf32>
    %270 = arith.addf %0, %269 : vector<8x4x32xf32>
    %c0_145 = arith.constant 0 : index
    %c0_146 = arith.constant 0 : index
    %271 = vector.load %arg6[%c0_145, %c0_146] : memref<1x32xf32, #tpu.memory_space<vmem>>, vector<1x32xf32>
    %272 = vector.shape_cast %271 : vector<1x32xf32> to vector<1x1x32xf32>
    %c0_147 = arith.constant 0 : index
    %c0_148 = arith.constant 0 : index
    %273 = vector.load %arg7[%c0_147, %c0_148] : memref<1x32xf32, #tpu.memory_space<vmem>>, vector<1x32xf32>
    %274 = vector.shape_cast %273 : vector<1x32xf32> to vector<1x1x32xf32>
    %cst_149 = arith.constant dense<0.000000e+00> : vector<8x4xf32>
    %275 = vector.multi_reduction <add>, %270, %cst_149 [2] : vector<8x4x32xf32> to vector<8x4xf32>
    %276 = vector.shape_cast %275 : vector<8x4xf32> to vector<8x4x1xf32>
    %cst_150 = arith.constant 3.200000e+01 : f32
    %277 = vector.broadcast %cst_150 : f32 to vector<8x4x1xf32>
    %278 = arith.divf %276, %277 : vector<8x4x1xf32>
    %279 = vector.broadcast %278 : vector<8x4x1xf32> to vector<8x4x32xf32>
    %280 = arith.subf %270, %279 : vector<8x4x32xf32>
    %281 = arith.mulf %280, %280 : vector<8x4x32xf32>
    %cst_151 = arith.constant dense<0.000000e+00> : vector<8x4xf32>
    %282 = vector.multi_reduction <add>, %281, %cst_151 [2] : vector<8x4x32xf32> to vector<8x4xf32>
    %283 = vector.shape_cast %282 : vector<8x4xf32> to vector<8x4x1xf32>
    %cst_152 = arith.constant 3.200000e+01 : f32
    %284 = vector.broadcast %cst_152 : f32 to vector<8x4x1xf32>
    %285 = arith.divf %283, %284 : vector<8x4x1xf32>
    %cst_153 = arith.constant 9.99999974E-6 : f32
    %286 = vector.broadcast %cst_153 : f32 to vector<8x4x1xf32>
    %287 = arith.addf %285, %286 : vector<8x4x1xf32>
    %288 = math.rsqrt %287 : vector<8x4x1xf32>
    %289 = vector.broadcast %288 : vector<8x4x1xf32> to vector<8x4x32xf32>
    %290 = arith.mulf %280, %289 : vector<8x4x32xf32>
    %291 = vector.broadcast %272 : vector<1x1x32xf32> to vector<8x4x32xf32>
    %292 = arith.mulf %290, %291 : vector<8x4x32xf32>
    %293 = vector.broadcast %274 : vector<1x1x32xf32> to vector<8x4x32xf32>
    %294 = arith.addf %292, %293 : vector<8x4x32xf32>
    %c0_154 = arith.constant 0 : index
    %c0_155 = arith.constant 0 : index
    %295 = vector.load %arg8[%c0_154, %c0_155] : memref<32x64xf32, #tpu.memory_space<vmem>>, vector<32x64xf32>
    %296 = arith.truncf %295 : vector<32x64xf32> to vector<32x64xbf16>
    %297 = vector.shape_cast %296 : vector<32x64xbf16> to vector<1x32x64xbf16>
    %298 = vector.shape_cast %297 : vector<1x32x64xbf16> to vector<1x32x64xbf16>
    %299 = vector.broadcast %298 : vector<1x32x64xbf16> to vector<8x32x64xbf16>
    %300 = arith.truncf %294 : vector<8x4x32xf32> to vector<8x4x32xbf16>
    %cst_156 = arith.constant dense<0.000000e+00> : vector<8x4x64xf32>
    %301 = tpu.matmul %300, %299, %cst_156 {dimension_numbers = #tpu.dot_dimension_numbers<[2], [1], [1], [2], [0, 0, 0, 1, 1, 2], [0], [0]>} : vector<8x4x32xbf16>, vector<8x32x64xbf16>, vector<8x4x64xf32> -> vector<8x4x64xf32>
    %c0_157 = arith.constant 0 : index
    %c0_158 = arith.constant 0 : index
    %302 = vector.load %arg9[%c0_157, %c0_158] : memref<1x64xf32, #tpu.memory_space<vmem>>, vector<1x64xf32>
    %303 = vector.shape_cast %302 : vector<1x64xf32> to vector<1x1x64xf32>
    %304 = vector.broadcast %303 : vector<1x1x64xf32> to vector<8x4x64xf32>
    %305 = arith.addf %301, %304 : vector<8x4x64xf32>
    %cst_159 = arith.constant 5.000000e-01 : f32
    %306 = vector.broadcast %cst_159 : f32 to vector<8x4x64xf32>
    %307 = arith.mulf %306, %305 : vector<8x4x64xf32>
    %cst_160 = arith.constant 4.471500e-02 : f32
    %308 = vector.broadcast %cst_160 : f32 to vector<8x4x64xf32>
    %309 = arith.mulf %308, %305 : vector<8x4x64xf32>
    %310 = arith.mulf %309, %305 : vector<8x4x64xf32>
    %311 = arith.mulf %310, %305 : vector<8x4x64xf32>
    %312 = arith.addf %305, %311 : vector<8x4x64xf32>
    %cst_161 = arith.constant 0.797884583 : f32
    %313 = vector.broadcast %cst_161 : f32 to vector<8x4x64xf32>
    %314 = arith.mulf %313, %312 : vector<8x4x64xf32>
    %315 = math.tanh %314 : vector<8x4x64xf32>
    %cst_162 = arith.constant 1.000000e+00 : f32
    %316 = vector.broadcast %cst_162 : f32 to vector<8x4x64xf32>
    %317 = arith.addf %316, %315 : vector<8x4x64xf32>
    %318 = arith.mulf %307, %317 : vector<8x4x64xf32>
    %c0_163 = arith.constant 0 : index
    %c0_164 = arith.constant 0 : index
    %319 = vector.load %arg10[%c0_163, %c0_164] : memref<64x32xf32, #tpu.memory_space<vmem>>, vector<64x32xf32>
    %320 = arith.truncf %319 : vector<64x32xf32> to vector<64x32xbf16>
    %321 = vector.shape_cast %320 : vector<64x32xbf16> to vector<1x64x32xbf16>
    %322 = vector.shape_cast %321 : vector<1x64x32xbf16> to vector<1x64x32xbf16>
    %323 = vector.broadcast %322 : vector<1x64x32xbf16> to vector<8x64x32xbf16>
    %324 = arith.truncf %318 : vector<8x4x64xf32> to vector<8x4x64xbf16>
    %cst_165 = arith.constant dense<0.000000e+00> : vector<8x4x32xf32>
    %325 = tpu.matmul %324, %323, %cst_165 {dimension_numbers = #tpu.dot_dimension_numbers<[2], [1], [1], [2], [0, 0, 0, 1, 1, 2], [0], [0]>} : vector<8x4x64xbf16>, vector<8x64x32xbf16>, vector<8x4x32xf32> -> vector<8x4x32xf32>
    %c0_166 = arith.constant 0 : index
    %c0_167 = arith.constant 0 : index
    %326 = vector.load %arg11[%c0_166, %c0_167] : memref<1x32xf32, #tpu.memory_space<vmem>>, vector<1x32xf32>
    %327 = vector.shape_cast %326 : vector<1x32xf32> to vector<1x1x32xf32>
    %328 = vector.broadcast %327 : vector<1x1x32xf32> to vector<8x4x32xf32>
    %329 = arith.addf %325, %328 : vector<8x4x32xf32>
    %330 = arith.addf %294, %329 : vector<8x4x32xf32>
    %c0_168 = arith.constant 0 : index
    %c0_169 = arith.constant 0 : index
    %331 = vector.load %arg12[%c0_168, %c0_169] : memref<1x32xf32, #tpu.memory_space<vmem>>, vector<1x32xf32>
    %332 = vector.shape_cast %331 : vector<1x32xf32> to vector<1x1x32xf32>
    %c0_170 = arith.constant 0 : index
    %c0_171 = arith.constant 0 : index
    %333 = vector.load %arg13[%c0_170, %c0_171] : memref<1x32xf32, #tpu.memory_space<vmem>>, vector<1x32xf32>
    %334 = vector.shape_cast %333 : vector<1x32xf32> to vector<1x1x32xf32>
    %cst_172 = arith.constant dense<0.000000e+00> : vector<8x4xf32>
    %335 = vector.multi_reduction <add>, %330, %cst_172 [2] : vector<8x4x32xf32> to vector<8x4xf32>
    %336 = vector.shape_cast %335 : vector<8x4xf32> to vector<8x4x1xf32>
    %cst_173 = arith.constant 3.200000e+01 : f32
    %337 = vector.broadcast %cst_173 : f32 to vector<8x4x1xf32>
    %338 = arith.divf %336, %337 : vector<8x4x1xf32>
    %339 = vector.broadcast %338 : vector<8x4x1xf32> to vector<8x4x32xf32>
    %340 = arith.subf %330, %339 : vector<8x4x32xf32>
    %341 = arith.mulf %340, %340 : vector<8x4x32xf32>
    %cst_174 = arith.constant dense<0.000000e+00> : vector<8x4xf32>
    %342 = vector.multi_reduction <add>, %341, %cst_174 [2] : vector<8x4x32xf32> to vector<8x4xf32>
    %343 = vector.shape_cast %342 : vector<8x4xf32> to vector<8x4x1xf32>
    %cst_175 = arith.constant 3.200000e+01 : f32
    %344 = vector.broadcast %cst_175 : f32 to vector<8x4x1xf32>
    %345 = arith.divf %343, %344 : vector<8x4x1xf32>
    %cst_176 = arith.constant 9.99999974E-6 : f32
    %346 = vector.broadcast %cst_176 : f32 to vector<8x4x1xf32>
    %347 = arith.addf %345, %346 : vector<8x4x1xf32>
    %348 = math.rsqrt %347 : vector<8x4x1xf32>
    %349 = vector.broadcast %348 : vector<8x4x1xf32> to vector<8x4x32xf32>
    %350 = arith.mulf %340, %349 : vector<8x4x32xf32>
    %351 = vector.broadcast %332 : vector<1x1x32xf32> to vector<8x4x32xf32>
    %352 = arith.mulf %350, %351 : vector<8x4x32xf32>
    %353 = vector.broadcast %334 : vector<1x1x32xf32> to vector<8x4x32xf32>
    %354 = arith.addf %352, %353 : vector<8x4x32xf32>
    %c0_177 = arith.constant 0 : index
    %c0_178 = arith.constant 0 : index
    %c0_179 = arith.constant 0 : index
    %355 = vector.load %arg14[%c0_177, %c0_178, %c0_179] : memref<8x4x32xf32, #tpu.memory_space<vmem>>, vector<8x4x32xf32>
    tpu.vector_store %arg14[%c0_177, %c0_178, %c0_179], %354 {strides = array<i32>} : memref<8x4x32xf32, #tpu.memory_space<vmem>>, vector<8x4x32xf32>,
    return
  }
  func.func @transform_0(%arg0: i32) -> (i32, i32, i32) {
    %c0_i32 = arith.constant 0 : i32
    %c0_i32_0 = arith.constant 0 : i32
    %c0_i32_1 = arith.constant 0 : i32
    return %arg0, %c0_i32, %c0_i32_0 : i32, i32, i32
  }
  func.func @transform_1(%arg0: i32) -> (i32, i32, i32, i32) {
    %c0_i32 = arith.constant 0 : i32
    %c0_i32_0 = arith.constant 0 : i32
    %c0_i32_1 = arith.constant 0 : i32
    %c0_i32_2 = arith.constant 0 : i32
    %c0_i32_3 = arith.constant 0 : i32
    return %c0_i32, %c0_i32_0, %c0_i32_1, %c0_i32_2 : i32, i32, i32, i32
  }
  func.func @transform_2(%arg0: i32) -> (i32, i32, i32, i32) {
    %c0_i32 = arith.constant 0 : i32
    %c0_i32_0 = arith.constant 0 : i32
    %c0_i32_1 = arith.constant 0 : i32
    %c0_i32_2 = arith.constant 0 : i32
    %c0_i32_3 = arith.constant 0 : i32
    return %c0_i32, %c0_i32_0, %c0_i32_1, %c0_i32_2 : i32, i32, i32, i32
  }
  func.func @transform_3(%arg0: i32) -> (i32, i32, i32) {
    %c0_i32 = arith.constant 0 : i32
    %c0_i32_0 = arith.constant 0 : i32
    %c0_i32_1 = arith.constant 0 : i32
    %c0_i32_2 = arith.constant 0 : i32
    return %c0_i32, %c0_i32_0, %c0_i32_1 : i32, i32, i32
  }
  func.func @transform_4(%arg0: i32) -> (i32, i32) {
    %c0_i32 = arith.constant 0 : i32
    %c0_i32_0 = arith.constant 0 : i32
    %c0_i32_1 = arith.constant 0 : i32
    return %c0_i32, %c0_i32_0 : i32, i32
  }
  func.func @transform_5(%arg0: i32) -> (i32, i32) {
    %c0_i32 = arith.constant 0 : i32
    %c0_i32_0 = arith.constant 0 : i32
    %c0_i32_1 = arith.constant 0 : i32
    return %c0_i32, %c0_i32_0 : i32, i32
  }
  func.func @transform_6(%arg0: i32) -> (i32, i32) {
    %c0_i32 = arith.constant 0 : i32
    %c0_i32_0 = arith.constant 0 : i32
    %c0_i32_1 = arith.constant 0 : i32
    return %c0_i32, %c0_i32_0 : i32, i32
  }
  func.func @transform_7(%arg0: i32) -> (i32, i32) {
    %c0_i32 = arith.constant 0 : i32
    %c0_i32_0 = arith.constant 0 : i32
    %c0_i32_1 = arith.constant 0 : i32
    return %c0_i32, %c0_i32_0 : i32, i32
  }
  func.func @transform_8(%arg0: i32) -> (i32, i32) {
    %c0_i32 = arith.constant 0 : i32
    %c0_i32_0 = arith.constant 0 : i32
    %c0_i32_1 = arith.constant 0 : i32
    return %c0_i32, %c0_i32_0 : i32, i32
  }
  func.func @transform_9(%arg0: i32) -> (i32, i32) {
    %c0_i32 = arith.constant 0 : i32
    %c0_i32_0 = arith.constant 0 : i32
    %c0_i32_1 = arith.constant 0 : i32
    return %c0_i32, %c0_i32_0 : i32, i32
  }
  func.func @transform_10(%arg0: i32) -> (i32, i32) {
    %c0_i32 = arith.constant 0 : i32
    %c0_i32_0 = arith.constant 0 : i32
    %c0_i32_1 = arith.constant 0 : i32
    return %c0_i32, %c0_i32_0 : i32, i32
  }
  func.func @transform_11(%arg0: i32) -> (i32, i32) {
    %c0_i32 = arith.constant 0 : i32
    %c0_i32_0 = arith.constant 0 : i32
    %c0_i32_1 = arith.constant 0 : i32
    return %c0_i32, %c0_i32_0 : i32, i32
  }
  func.func @transform_12(%arg0: i32) -> (i32, i32) {
    %c0_i32 = arith.constant 0 : i32
    %c0_i32_0 = arith.constant 0 : i32
    %c0_i32_1 = arith.constant 0 : i32
    return %c0_i32, %c0_i32_0 : i32, i32
  }
  func.func @transform_13(%arg0: i32) -> (i32, i32, i32) {
    %c0_i32 = arith.constant 0 : i32
    %c0_i32_0 = arith.constant 0 : i32
    %c0_i32_1 = arith.constant 0 : i32
    return %arg0, %c0_i32, %c0_i32_0 : i32, i32, i32
  }
}

module attributes {stable_mosaic.version = 11 : i64} {
  func.func @_residual_gate_kernel(%arg0: i32, %arg1: memref<32x32xf32, #tpu.memory_space<vmem>>, %arg2: memref<32x32xf32, #tpu.memory_space<vmem>>, %arg3: memref<32x32xf32, #tpu.memory_space<vmem>>, %arg4: memref<32x32xf32, #tpu.memory_space<vmem>>, %arg5: memref<32x32xf32, #tpu.memory_space<vmem>>, %arg6: memref<1x32xf32, #tpu.memory_space<vmem>>, %arg7: memref<1x32xf32, #tpu.memory_space<vmem>>, %arg8: memref<32x32xf32, #tpu.memory_space<vmem>>, %arg9: memref<32x32xf32, #tpu.memory_space<vmem>>, %arg10: memref<1x32xf32, #tpu.memory_space<vmem>>, %arg11: memref<1x32xf32, #tpu.memory_space<vmem>>, %arg12: memref<32x32xf32, #tpu.memory_space<vmem>>, %arg13: memref<32x32xf32, #tpu.memory_space<vmem>>, %arg14: memref<1x32xf32, #tpu.memory_space<vmem>>, %arg15: memref<1x32xf32, #tpu.memory_space<vmem>>, %arg16: memref<32x32xf32, #tpu.memory_space<vmem>>, %arg17: memref<32x32xf32, #tpu.memory_space<vmem>>) attributes {dimension_semantics = [#tpu.dimension_semantics<parallel>], iteration_bounds = array<i64: 2>, scalar_prefetch = 0 : i64, scratch_operands = 0 : i64, tpu.core_type = #tpu.core_type<tc>, window_params = [{transform_indices = @transform_0, window_bounds = array<i64: 32, 32>}, {transform_indices = @transform_1, window_bounds = array<i64: 32, 32>}, {transform_indices = @transform_2, window_bounds = array<i64: 32, 32>}, {pipeline_mode = #tpu.pipeline_mode<synchronous>, transform_indices = @transform_3, window_bounds = array<i64: 32, 32>}, {pipeline_mode = #tpu.pipeline_mode<synchronous>, transform_indices = @transform_4, window_bounds = array<i64: 32, 32>}, {pipeline_mode = #tpu.pipeline_mode<synchronous>, transform_indices = @transform_5, window_bounds = array<i64: 1, 32>}, {pipeline_mode = #tpu.pipeline_mode<synchronous>, transform_indices = @transform_6, window_bounds = array<i64: 1, 32>}, {pipeline_mode = #tpu.pipeline_mode<synchronous>, transform_indices = @transform_7, window_bounds = array<i64: 32, 32>}, {pipeline_mode = #tpu.pipeline_mode<synchronous>, transform_indices = @transform_8, window_bounds = array<i64: 32, 32>}, {pipeline_mode = #tpu.pipeline_mode<synchronous>, transform_indices = @transform_9, window_bounds = array<i64: 1, 32>}, {pipeline_mode = #tpu.pipeline_mode<synchronous>, transform_indices = @transform_10, window_bounds = array<i64: 1, 32>}, {pipeline_mode = #tpu.pipeline_mode<synchronous>, transform_indices = @transform_11, window_bounds = array<i64: 32, 32>}, {pipeline_mode = #tpu.pipeline_mode<synchronous>, transform_indices = @transform_12, window_bounds = array<i64: 32, 32>}, {pipeline_mode = #tpu.pipeline_mode<synchronous>, transform_indices = @transform_13, window_bounds = array<i64: 1, 32>}, {pipeline_mode = #tpu.pipeline_mode<synchronous>, transform_indices = @transform_14, window_bounds = array<i64: 1, 32>}, {transform_indices = @transform_15, window_bounds = array<i64: 32, 32>}, {transform_indices = @transform_16, window_bounds = array<i64: 32, 32>}]} {
    %c0 = arith.constant 0 : index
    %c0_0 = arith.constant 0 : index
    %0 = vector.load %arg1[%c0, %c0_0] : memref<32x32xf32, #tpu.memory_space<vmem>>, vector<32x32xf32>
    %c0_1 = arith.constant 0 : index
    %c0_2 = arith.constant 0 : index
    %1 = vector.load %arg2[%c0_1, %c0_2] : memref<32x32xf32, #tpu.memory_space<vmem>>, vector<32x32xf32>
    %c0_3 = arith.constant 0 : index
    %c0_4 = arith.constant 0 : index
    %2 = vector.load %arg4[%c0_3, %c0_4] : memref<32x32xf32, #tpu.memory_space<vmem>>, vector<32x32xf32>
    %3 = arith.truncf %0 : vector<32x32xf32> to vector<32x32xbf16>
    %4 = arith.truncf %2 : vector<32x32xf32> to vector<32x32xbf16>
    %cst = arith.constant dense<0.000000e+00> : vector<32x32xf32>
    %5 = tpu.matmul %3, %4, %cst {dimension_numbers = #tpu.dot_dimension_numbers<[1], [0], [0], [1], [0, 0, 1, 1], [], []>} : vector<32x32xbf16>, vector<32x32xbf16>, vector<32x32xf32> -> vector<32x32xf32>
    %c0_5 = arith.constant 0 : index
    %c0_6 = arith.constant 0 : index
    %6 = vector.load %arg8[%c0_5, %c0_6] : memref<32x32xf32, #tpu.memory_space<vmem>>, vector<32x32xf32>
    %7 = arith.truncf %1 : vector<32x32xf32> to vector<32x32xbf16>
    %8 = arith.truncf %6 : vector<32x32xf32> to vector<32x32xbf16>
    %cst_7 = arith.constant dense<0.000000e+00> : vector<32x32xf32>
    %9 = tpu.matmul %7, %8, %cst_7 {dimension_numbers = #tpu.dot_dimension_numbers<[1], [0], [0], [1], [0, 0, 1, 1], [], []>} : vector<32x32xbf16>, vector<32x32xbf16>, vector<32x32xf32> -> vector<32x32xf32>
    %10 = arith.addf %5, %9 : vector<32x32xf32>
    %c0_8 = arith.constant 0 : index
    %c0_9 = arith.constant 0 : index
    %11 = vector.load %arg6[%c0_8, %c0_9] : memref<1x32xf32, #tpu.memory_space<vmem>>, vector<1x32xf32>
    %12 = vector.broadcast %11 : vector<1x32xf32> to vector<32x32xf32>
    %13 = arith.addf %10, %12 : vector<32x32xf32>
    %c0_10 = arith.constant 0 : index
    %c0_11 = arith.constant 0 : index
    %14 = vector.load %arg10[%c0_10, %c0_11] : memref<1x32xf32, #tpu.memory_space<vmem>>, vector<1x32xf32>
    %15 = vector.broadcast %14 : vector<1x32xf32> to vector<32x32xf32>
    %16 = arith.addf %13, %15 : vector<32x32xf32>
    %c0_12 = arith.constant 0 : index
    %c0_13 = arith.constant 0 : index
    %17 = vector.load %arg5[%c0_12, %c0_13] : memref<32x32xf32, #tpu.memory_space<vmem>>, vector<32x32xf32>
    %18 = arith.truncf %0 : vector<32x32xf32> to vector<32x32xbf16>
    %19 = arith.truncf %17 : vector<32x32xf32> to vector<32x32xbf16>
    %cst_14 = arith.constant dense<0.000000e+00> : vector<32x32xf32>
    %20 = tpu.matmul %18, %19, %cst_14 {dimension_numbers = #tpu.dot_dimension_numbers<[1], [0], [0], [1], [0, 0, 1, 1], [], []>} : vector<32x32xbf16>, vector<32x32xbf16>, vector<32x32xf32> -> vector<32x32xf32>
    %c0_15 = arith.constant 0 : index
    %c0_16 = arith.constant 0 : index
    %21 = vector.load %arg9[%c0_15, %c0_16] : memref<32x32xf32, #tpu.memory_space<vmem>>, vector<32x32xf32>
    %22 = arith.truncf %1 : vector<32x32xf32> to vector<32x32xbf16>
    %23 = arith.truncf %21 : vector<32x32xf32> to vector<32x32xbf16>
    %cst_17 = arith.constant dense<0.000000e+00> : vector<32x32xf32>
    %24 = tpu.matmul %22, %23, %cst_17 {dimension_numbers = #tpu.dot_dimension_numbers<[1], [0], [0], [1], [0, 0, 1, 1], [], []>} : vector<32x32xbf16>, vector<32x32xbf16>, vector<32x32xf32> -> vector<32x32xf32>
    %25 = arith.addf %20, %24 : vector<32x32xf32>
    %c0_18 = arith.constant 0 : index
    %c0_19 = arith.constant 0 : index
    %26 = vector.load %arg7[%c0_18, %c0_19] : memref<1x32xf32, #tpu.memory_space<vmem>>, vector<1x32xf32>
    %27 = vector.broadcast %26 : vector<1x32xf32> to vector<32x32xf32>
    %28 = arith.addf %25, %27 : vector<32x32xf32>
    %c0_20 = arith.constant 0 : index
    %c0_21 = arith.constant 0 : index
    %29 = vector.load %arg11[%c0_20, %c0_21] : memref<1x32xf32, #tpu.memory_space<vmem>>, vector<1x32xf32>
    %30 = vector.broadcast %29 : vector<1x32xf32> to vector<32x32xf32>
    %31 = arith.addf %28, %30 : vector<32x32xf32>
    %cst_22 = arith.constant 5.000000e-01 : f32
    %32 = vector.broadcast %cst_22 : f32 to vector<32x32xf32>
    %33 = arith.mulf %32, %16 : vector<32x32xf32>
    %34 = math.tanh %33 : vector<32x32xf32>
    %cst_23 = arith.constant 1.000000e+00 : f32
    %35 = vector.broadcast %cst_23 : f32 to vector<32x32xf32>
    %36 = arith.addf %35, %34 : vector<32x32xf32>
    %cst_24 = arith.constant 5.000000e-01 : f32
    %37 = vector.broadcast %cst_24 : f32 to vector<32x32xf32>
    %38 = arith.mulf %37, %36 : vector<32x32xf32>
    %39 = math.tanh %31 : vector<32x32xf32>
    %40 = arith.mulf %38, %39 : vector<32x32xf32>
    %c0_25 = arith.constant 0 : index
    %c0_26 = arith.constant 0 : index
    %41 = vector.load %arg3[%c0_25, %c0_26] : memref<32x32xf32, #tpu.memory_space<vmem>>, vector<32x32xf32>
    %c0_27 = arith.constant 0 : index
    %c0_28 = arith.constant 0 : index
    %42 = vector.load %arg12[%c0_27, %c0_28] : memref<32x32xf32, #tpu.memory_space<vmem>>, vector<32x32xf32>
    %43 = arith.truncf %40 : vector<32x32xf32> to vector<32x32xbf16>
    %44 = arith.truncf %42 : vector<32x32xf32> to vector<32x32xbf16>
    %cst_29 = arith.constant dense<0.000000e+00> : vector<32x32xf32>
    %45 = tpu.matmul %43, %44, %cst_29 {dimension_numbers = #tpu.dot_dimension_numbers<[1], [0], [0], [1], [0, 0, 1, 1], [], []>} : vector<32x32xbf16>, vector<32x32xbf16>, vector<32x32xf32> -> vector<32x32xf32>
    %46 = arith.addf %41, %45 : vector<32x32xf32>
    %c0_30 = arith.constant 0 : index
    %c0_31 = arith.constant 0 : index
    %47 = vector.load %arg14[%c0_30, %c0_31] : memref<1x32xf32, #tpu.memory_space<vmem>>, vector<1x32xf32>
    %48 = vector.broadcast %47 : vector<1x32xf32> to vector<32x32xf32>
    %49 = arith.addf %46, %48 : vector<32x32xf32>
    %cst_32 = arith.constant 0.707106769 : f32
    %50 = vector.broadcast %cst_32 : f32 to vector<32x32xf32>
    %51 = arith.mulf %49, %50 : vector<32x32xf32>
    %c0_33 = arith.constant 0 : index
    %c0_34 = arith.constant 0 : index
    %52 = vector.load %arg16[%c0_33, %c0_34] : memref<32x32xf32, #tpu.memory_space<vmem>>, vector<32x32xf32>
    tpu.vector_store %arg16[%c0_33, %c0_34], %51 {strides = array<i32>} : memref<32x32xf32, #tpu.memory_space<vmem>>, vector<32x32xf32>,
    %c0_35 = arith.constant 0 : index
    %c0_36 = arith.constant 0 : index
    %53 = vector.load %arg13[%c0_35, %c0_36] : memref<32x32xf32, #tpu.memory_space<vmem>>, vector<32x32xf32>
    %54 = arith.truncf %40 : vector<32x32xf32> to vector<32x32xbf16>
    %55 = arith.truncf %53 : vector<32x32xf32> to vector<32x32xbf16>
    %cst_37 = arith.constant dense<0.000000e+00> : vector<32x32xf32>
    %56 = tpu.matmul %54, %55, %cst_37 {dimension_numbers = #tpu.dot_dimension_numbers<[1], [0], [0], [1], [0, 0, 1, 1], [], []>} : vector<32x32xbf16>, vector<32x32xbf16>, vector<32x32xf32> -> vector<32x32xf32>
    %c0_38 = arith.constant 0 : index
    %c0_39 = arith.constant 0 : index
    %57 = vector.load %arg15[%c0_38, %c0_39] : memref<1x32xf32, #tpu.memory_space<vmem>>, vector<1x32xf32>
    %58 = vector.broadcast %57 : vector<1x32xf32> to vector<32x32xf32>
    %59 = arith.addf %56, %58 : vector<32x32xf32>
    %c0_40 = arith.constant 0 : index
    %c0_41 = arith.constant 0 : index
    %60 = vector.load %arg17[%c0_40, %c0_41] : memref<32x32xf32, #tpu.memory_space<vmem>>, vector<32x32xf32>
    tpu.vector_store %arg17[%c0_40, %c0_41], %59 {strides = array<i32>} : memref<32x32xf32, #tpu.memory_space<vmem>>, vector<32x32xf32>,
    return
  }
  func.func @transform_0(%arg0: i32) -> (i32, i32) {
    %c0_i32 = arith.constant 0 : i32
    %c0_i32_0 = arith.constant 0 : i32
    return %arg0, %c0_i32 : i32, i32
  }
  func.func @transform_1(%arg0: i32) -> (i32, i32) {
    %c0_i32 = arith.constant 0 : i32
    %c0_i32_0 = arith.constant 0 : i32
    return %arg0, %c0_i32 : i32, i32
  }
  func.func @transform_2(%arg0: i32) -> (i32, i32) {
    %c0_i32 = arith.constant 0 : i32
    %c0_i32_0 = arith.constant 0 : i32
    return %arg0, %c0_i32 : i32, i32
  }
  func.func @transform_3(%arg0: i32) -> (i32, i32) {
    %c0_i32 = arith.constant 0 : i32
    %c0_i32_0 = arith.constant 0 : i32
    %c0_i32_1 = arith.constant 0 : i32
    return %c0_i32, %c0_i32_0 : i32, i32
  }
  func.func @transform_4(%arg0: i32) -> (i32, i32) {
    %c0_i32 = arith.constant 0 : i32
    %c0_i32_0 = arith.constant 0 : i32
    %c0_i32_1 = arith.constant 0 : i32
    return %c0_i32, %c0_i32_0 : i32, i32
  }
  func.func @transform_5(%arg0: i32) -> (i32, i32) {
    %c0_i32 = arith.constant 0 : i32
    %c0_i32_0 = arith.constant 0 : i32
    %c0_i32_1 = arith.constant 0 : i32
    return %c0_i32, %c0_i32_0 : i32, i32
  }
  func.func @transform_6(%arg0: i32) -> (i32, i32) {
    %c0_i32 = arith.constant 0 : i32
    %c0_i32_0 = arith.constant 0 : i32
    %c0_i32_1 = arith.constant 0 : i32
    return %c0_i32, %c0_i32_0 : i32, i32
  }
  func.func @transform_7(%arg0: i32) -> (i32, i32) {
    %c0_i32 = arith.constant 0 : i32
    %c0_i32_0 = arith.constant 0 : i32
    %c0_i32_1 = arith.constant 0 : i32
    return %c0_i32, %c0_i32_0 : i32, i32
  }
  func.func @transform_8(%arg0: i32) -> (i32, i32) {
    %c0_i32 = arith.constant 0 : i32
    %c0_i32_0 = arith.constant 0 : i32
    %c0_i32_1 = arith.constant 0 : i32
    return %c0_i32, %c0_i32_0 : i32, i32
  }
  func.func @transform_9(%arg0: i32) -> (i32, i32) {
    %c0_i32 = arith.constant 0 : i32
    %c0_i32_0 = arith.constant 0 : i32
    %c0_i32_1 = arith.constant 0 : i32
    return %c0_i32, %c0_i32_0 : i32, i32
  }
  func.func @transform_10(%arg0: i32) -> (i32, i32) {
    %c0_i32 = arith.constant 0 : i32
    %c0_i32_0 = arith.constant 0 : i32
    %c0_i32_1 = arith.constant 0 : i32
    return %c0_i32, %c0_i32_0 : i32, i32
  }
  func.func @transform_11(%arg0: i32) -> (i32, i32) {
    %c0_i32 = arith.constant 0 : i32
    %c0_i32_0 = arith.constant 0 : i32
    %c0_i32_1 = arith.constant 0 : i32
    return %c0_i32, %c0_i32_0 : i32, i32
  }
  func.func @transform_12(%arg0: i32) -> (i32, i32) {
    %c0_i32 = arith.constant 0 : i32
    %c0_i32_0 = arith.constant 0 : i32
    %c0_i32_1 = arith.constant 0 : i32
    return %c0_i32, %c0_i32_0 : i32, i32
  }
  func.func @transform_13(%arg0: i32) -> (i32, i32) {
    %c0_i32 = arith.constant 0 : i32
    %c0_i32_0 = arith.constant 0 : i32
    %c0_i32_1 = arith.constant 0 : i32
    return %c0_i32, %c0_i32_0 : i32, i32
  }
  func.func @transform_14(%arg0: i32) -> (i32, i32) {
    %c0_i32 = arith.constant 0 : i32
    %c0_i32_0 = arith.constant 0 : i32
    %c0_i32_1 = arith.constant 0 : i32
    return %c0_i32, %c0_i32_0 : i32, i32
  }
  func.func @transform_15(%arg0: i32) -> (i32, i32) {
    %c0_i32 = arith.constant 0 : i32
    %c0_i32_0 = arith.constant 0 : i32
    return %arg0, %c0_i32 : i32, i32
  }
  func.func @transform_16(%arg0: i32) -> (i32, i32) {
    %c0_i32 = arith.constant 0 : i32
    %c0_i32_0 = arith.constant 0 : i32
    return %arg0, %c0_i32 : i32, i32
  }
}

module attributes {stable_mosaic.version = 11 : i64} {
  func.func @_residual_gate_kernel(%arg0: i32, %arg1: memref<32x32xf32, #tpu.memory_space<vmem>>, %arg2: memref<32x32xf32, #tpu.memory_space<vmem>>, %arg3: memref<32x32xf32, #tpu.memory_space<vmem>>, %arg4: memref<32x32xf32, #tpu.memory_space<vmem>>, %arg5: memref<32x32xf32, #tpu.memory_space<vmem>>, %arg6: memref<1x32xf32, #tpu.memory_space<vmem>>, %arg7: memref<1x32xf32, #tpu.memory_space<vmem>>, %arg8: memref<32x32xf32, #tpu.memory_space<vmem>>, %arg9: memref<32x32xf32, #tpu.memory_space<vmem>>, %arg10: memref<1x32xf32, #tpu.memory_space<vmem>>, %arg11: memref<1x32xf32, #tpu.memory_space<vmem>>, %arg12: memref<32x32xf32, #tpu.memory_space<vmem>>, %arg13: memref<32x32xf32, #tpu.memory_space<vmem>>, %arg14: memref<1x32xf32, #tpu.memory_space<vmem>>, %arg15: memref<1x32xf32, #tpu.memory_space<vmem>>, %arg16: memref<32x32xf32, #tpu.memory_space<vmem>>, %arg17: memref<32x32xf32, #tpu.memory_space<vmem>>) attributes {dimension_semantics = [#tpu.dimension_semantics<parallel>], iteration_bounds = array<i64: 2>, scalar_prefetch = 0 : i64, scratch_operands = 0 : i64, tpu.core_type = #tpu.core_type<tc>, window_params = [{transform_indices = @transform_0, window_bounds = array<i64: 32, 32>}, {transform_indices = @transform_1, window_bounds = array<i64: 32, 32>}, {transform_indices = @transform_2, window_bounds = array<i64: 32, 32>}, {pipeline_mode = #tpu.pipeline_mode<synchronous>, transform_indices = @transform_3, window_bounds = array<i64: 32, 32>}, {pipeline_mode = #tpu.pipeline_mode<synchronous>, transform_indices = @transform_4, window_bounds = array<i64: 32, 32>}, {pipeline_mode = #tpu.pipeline_mode<synchronous>, transform_indices = @transform_5, window_bounds = array<i64: 1, 32>}, {pipeline_mode = #tpu.pipeline_mode<synchronous>, transform_indices = @transform_6, window_bounds = array<i64: 1, 32>}, {pipeline_mode = #tpu.pipeline_mode<synchronous>, transform_indices = @transform_7, window_bounds = array<i64: 32, 32>}, {pipeline_mode = #tpu.pipeline_mode<synchronous>, transform_indices = @transform_8, window_bounds = array<i64: 32, 32>}, {pipeline_mode = #tpu.pipeline_mode<synchronous>, transform_indices = @transform_9, window_bounds = array<i64: 1, 32>}, {pipeline_mode = #tpu.pipeline_mode<synchronous>, transform_indices = @transform_10, window_bounds = array<i64: 1, 32>}, {pipeline_mode = #tpu.pipeline_mode<synchronous>, transform_indices = @transform_11, window_bounds = array<i64: 32, 32>}, {pipeline_mode = #tpu.pipeline_mode<synchronous>, transform_indices = @transform_12, window_bounds = array<i64: 32, 32>}, {pipeline_mode = #tpu.pipeline_mode<synchronous>, transform_indices = @transform_13, window_bounds = array<i64: 1, 32>}, {pipeline_mode = #tpu.pipeline_mode<synchronous>, transform_indices = @transform_14, window_bounds = array<i64: 1, 32>}, {transform_indices = @transform_15, window_bounds = array<i64: 32, 32>}, {transform_indices = @transform_16, window_bounds = array<i64: 32, 32>}]} {
    %c0 = arith.constant 0 : index
    %c0_0 = arith.constant 0 : index
    %0 = vector.load %arg1[%c0, %c0_0] : memref<32x32xf32, #tpu.memory_space<vmem>>, vector<32x32xf32>
    %c0_1 = arith.constant 0 : index
    %c0_2 = arith.constant 0 : index
    %1 = vector.load %arg2[%c0_1, %c0_2] : memref<32x32xf32, #tpu.memory_space<vmem>>, vector<32x32xf32>
    %c0_3 = arith.constant 0 : index
    %c0_4 = arith.constant 0 : index
    %2 = vector.load %arg4[%c0_3, %c0_4] : memref<32x32xf32, #tpu.memory_space<vmem>>, vector<32x32xf32>
    %3 = arith.truncf %0 : vector<32x32xf32> to vector<32x32xbf16>
    %4 = arith.truncf %2 : vector<32x32xf32> to vector<32x32xbf16>
    %cst = arith.constant dense<0.000000e+00> : vector<32x32xf32>
    %5 = tpu.matmul %3, %4, %cst {dimension_numbers = #tpu.dot_dimension_numbers<[1], [0], [0], [1], [0, 0, 1, 1], [], []>} : vector<32x32xbf16>, vector<32x32xbf16>, vector<32x32xf32> -> vector<32x32xf32>
    %c0_5 = arith.constant 0 : index
    %c0_6 = arith.constant 0 : index
    %6 = vector.load %arg8[%c0_5, %c0_6] : memref<32x32xf32, #tpu.memory_space<vmem>>, vector<32x32xf32>
    %7 = arith.truncf %1 : vector<32x32xf32> to vector<32x32xbf16>
    %8 = arith.truncf %6 : vector<32x32xf32> to vector<32x32xbf16>
    %cst_7 = arith.constant dense<0.000000e+00> : vector<32x32xf32>
    %9 = tpu.matmul %7, %8, %cst_7 {dimension_numbers = #tpu.dot_dimension_numbers<[1], [0], [0], [1], [0, 0, 1, 1], [], []>} : vector<32x32xbf16>, vector<32x32xbf16>, vector<32x32xf32> -> vector<32x32xf32>
    %10 = arith.addf %5, %9 : vector<32x32xf32>
    %c0_8 = arith.constant 0 : index
    %c0_9 = arith.constant 0 : index
    %11 = vector.load %arg6[%c0_8, %c0_9] : memref<1x32xf32, #tpu.memory_space<vmem>>, vector<1x32xf32>
    %12 = vector.broadcast %11 : vector<1x32xf32> to vector<32x32xf32>
    %13 = arith.addf %10, %12 : vector<32x32xf32>
    %c0_10 = arith.constant 0 : index
    %c0_11 = arith.constant 0 : index
    %14 = vector.load %arg10[%c0_10, %c0_11] : memref<1x32xf32, #tpu.memory_space<vmem>>, vector<1x32xf32>
    %15 = vector.broadcast %14 : vector<1x32xf32> to vector<32x32xf32>
    %16 = arith.addf %13, %15 : vector<32x32xf32>
    %c0_12 = arith.constant 0 : index
    %c0_13 = arith.constant 0 : index
    %17 = vector.load %arg5[%c0_12, %c0_13] : memref<32x32xf32, #tpu.memory_space<vmem>>, vector<32x32xf32>
    %18 = arith.truncf %0 : vector<32x32xf32> to vector<32x32xbf16>
    %19 = arith.truncf %17 : vector<32x32xf32> to vector<32x32xbf16>
    %cst_14 = arith.constant dense<0.000000e+00> : vector<32x32xf32>
    %20 = tpu.matmul %18, %19, %cst_14 {dimension_numbers = #tpu.dot_dimension_numbers<[1], [0], [0], [1], [0, 0, 1, 1], [], []>} : vector<32x32xbf16>, vector<32x32xbf16>, vector<32x32xf32> -> vector<32x32xf32>
    %c0_15 = arith.constant 0 : index
    %c0_16 = arith.constant 0 : index
    %21 = vector.load %arg9[%c0_15, %c0_16] : memref<32x32xf32, #tpu.memory_space<vmem>>, vector<32x32xf32>
    %22 = arith.truncf %1 : vector<32x32xf32> to vector<32x32xbf16>
    %23 = arith.truncf %21 : vector<32x32xf32> to vector<32x32xbf16>
    %cst_17 = arith.constant dense<0.000000e+00> : vector<32x32xf32>
    %24 = tpu.matmul %22, %23, %cst_17 {dimension_numbers = #tpu.dot_dimension_numbers<[1], [0], [0], [1], [0, 0, 1, 1], [], []>} : vector<32x32xbf16>, vector<32x32xbf16>, vector<32x32xf32> -> vector<32x32xf32>
    %25 = arith.addf %20, %24 : vector<32x32xf32>
    %c0_18 = arith.constant 0 : index
    %c0_19 = arith.constant 0 : index
    %26 = vector.load %arg7[%c0_18, %c0_19] : memref<1x32xf32, #tpu.memory_space<vmem>>, vector<1x32xf32>
    %27 = vector.broadcast %26 : vector<1x32xf32> to vector<32x32xf32>
    %28 = arith.addf %25, %27 : vector<32x32xf32>
    %c0_20 = arith.constant 0 : index
    %c0_21 = arith.constant 0 : index
    %29 = vector.load %arg11[%c0_20, %c0_21] : memref<1x32xf32, #tpu.memory_space<vmem>>, vector<1x32xf32>
    %30 = vector.broadcast %29 : vector<1x32xf32> to vector<32x32xf32>
    %31 = arith.addf %28, %30 : vector<32x32xf32>
    %cst_22 = arith.constant 5.000000e-01 : f32
    %32 = vector.broadcast %cst_22 : f32 to vector<32x32xf32>
    %33 = arith.mulf %32, %16 : vector<32x32xf32>
    %34 = math.tanh %33 : vector<32x32xf32>
    %cst_23 = arith.constant 1.000000e+00 : f32
    %35 = vector.broadcast %cst_23 : f32 to vector<32x32xf32>
    %36 = arith.addf %35, %34 : vector<32x32xf32>
    %cst_24 = arith.constant 5.000000e-01 : f32
    %37 = vector.broadcast %cst_24 : f32 to vector<32x32xf32>
    %38 = arith.mulf %37, %36 : vector<32x32xf32>
    %39 = math.tanh %31 : vector<32x32xf32>
    %40 = arith.mulf %38, %39 : vector<32x32xf32>
    %c0_25 = arith.constant 0 : index
    %c0_26 = arith.constant 0 : index
    %41 = vector.load %arg3[%c0_25, %c0_26] : memref<32x32xf32, #tpu.memory_space<vmem>>, vector<32x32xf32>
    %c0_27 = arith.constant 0 : index
    %c0_28 = arith.constant 0 : index
    %42 = vector.load %arg12[%c0_27, %c0_28] : memref<32x32xf32, #tpu.memory_space<vmem>>, vector<32x32xf32>
    %43 = arith.truncf %40 : vector<32x32xf32> to vector<32x32xbf16>
    %44 = arith.truncf %42 : vector<32x32xf32> to vector<32x32xbf16>
    %cst_29 = arith.constant dense<0.000000e+00> : vector<32x32xf32>
    %45 = tpu.matmul %43, %44, %cst_29 {dimension_numbers = #tpu.dot_dimension_numbers<[1], [0], [0], [1], [0, 0, 1, 1], [], []>} : vector<32x32xbf16>, vector<32x32xbf16>, vector<32x32xf32> -> vector<32x32xf32>
    %46 = arith.addf %41, %45 : vector<32x32xf32>
    %c0_30 = arith.constant 0 : index
    %c0_31 = arith.constant 0 : index
    %47 = vector.load %arg14[%c0_30, %c0_31] : memref<1x32xf32, #tpu.memory_space<vmem>>, vector<1x32xf32>
    %48 = vector.broadcast %47 : vector<1x32xf32> to vector<32x32xf32>
    %49 = arith.addf %46, %48 : vector<32x32xf32>
    %cst_32 = arith.constant 0.707106769 : f32
    %50 = vector.broadcast %cst_32 : f32 to vector<32x32xf32>
    %51 = arith.mulf %49, %50 : vector<32x32xf32>
    %c0_33 = arith.constant 0 : index
    %c0_34 = arith.constant 0 : index
    %52 = vector.load %arg16[%c0_33, %c0_34] : memref<32x32xf32, #tpu.memory_space<vmem>>, vector<32x32xf32>
    tpu.vector_store %arg16[%c0_33, %c0_34], %51 {strides = array<i32>} : memref<32x32xf32, #tpu.memory_space<vmem>>, vector<32x32xf32>,
    %c0_35 = arith.constant 0 : index
    %c0_36 = arith.constant 0 : index
    %53 = vector.load %arg13[%c0_35, %c0_36] : memref<32x32xf32, #tpu.memory_space<vmem>>, vector<32x32xf32>
    %54 = arith.truncf %40 : vector<32x32xf32> to vector<32x32xbf16>
    %55 = arith.truncf %53 : vector<32x32xf32> to vector<32x32xbf16>
    %cst_37 = arith.constant dense<0.000000e+00> : vector<32x32xf32>
    %56 = tpu.matmul %54, %55, %cst_37 {dimension_numbers = #tpu.dot_dimension_numbers<[1], [0], [0], [1], [0, 0, 1, 1], [], []>} : vector<32x32xbf16>, vector<32x32xbf16>, vector<32x32xf32> -> vector<32x32xf32>
    %c0_38 = arith.constant 0 : index
    %c0_39 = arith.constant 0 : index
    %57 = vector.load %arg15[%c0_38, %c0_39] : memref<1x32xf32, #tpu.memory_space<vmem>>, vector<1x32xf32>
    %58 = vector.broadcast %57 : vector<1x32xf32> to vector<32x32xf32>
    %59 = arith.addf %56, %58 : vector<32x32xf32>
    %c0_40 = arith.constant 0 : index
    %c0_41 = arith.constant 0 : index
    %60 = vector.load %arg17[%c0_40, %c0_41] : memref<32x32xf32, #tpu.memory_space<vmem>>, vector<32x32xf32>
    tpu.vector_store %arg17[%c0_40, %c0_41], %59 {strides = array<i32>} : memref<32x32xf32, #tpu.memory_space<vmem>>, vector<32x32xf32>,
    return
  }
  func.func @transform_0(%arg0: i32) -> (i32, i32) {
    %c0_i32 = arith.constant 0 : i32
    %c0_i32_0 = arith.constant 0 : i32
    return %arg0, %c0_i32 : i32, i32
  }
  func.func @transform_1(%arg0: i32) -> (i32, i32) {
    %c0_i32 = arith.constant 0 : i32
    %c0_i32_0 = arith.constant 0 : i32
    return %arg0, %c0_i32 : i32, i32
  }
  func.func @transform_2(%arg0: i32) -> (i32, i32) {
    %c0_i32 = arith.constant 0 : i32
    %c0_i32_0 = arith.constant 0 : i32
    return %arg0, %c0_i32 : i32, i32
  }
  func.func @transform_3(%arg0: i32) -> (i32, i32) {
    %c0_i32 = arith.constant 0 : i32
    %c0_i32_0 = arith.constant 0 : i32
    %c0_i32_1 = arith.constant 0 : i32
    return %c0_i32, %c0_i32_0 : i32, i32
  }
  func.func @transform_4(%arg0: i32) -> (i32, i32) {
    %c0_i32 = arith.constant 0 : i32
    %c0_i32_0 = arith.constant 0 : i32
    %c0_i32_1 = arith.constant 0 : i32
    return %c0_i32, %c0_i32_0 : i32, i32
  }
  func.func @transform_5(%arg0: i32) -> (i32, i32) {
    %c0_i32 = arith.constant 0 : i32
    %c0_i32_0 = arith.constant 0 : i32
    %c0_i32_1 = arith.constant 0 : i32
    return %c0_i32, %c0_i32_0 : i32, i32
  }
  func.func @transform_6(%arg0: i32) -> (i32, i32) {
    %c0_i32 = arith.constant 0 : i32
    %c0_i32_0 = arith.constant 0 : i32
    %c0_i32_1 = arith.constant 0 : i32
    return %c0_i32, %c0_i32_0 : i32, i32
  }
  func.func @transform_7(%arg0: i32) -> (i32, i32) {
    %c0_i32 = arith.constant 0 : i32
    %c0_i32_0 = arith.constant 0 : i32
    %c0_i32_1 = arith.constant 0 : i32
    return %c0_i32, %c0_i32_0 : i32, i32
  }
  func.func @transform_8(%arg0: i32) -> (i32, i32) {
    %c0_i32 = arith.constant 0 : i32
    %c0_i32_0 = arith.constant 0 : i32
    %c0_i32_1 = arith.constant 0 : i32
    return %c0_i32, %c0_i32_0 : i32, i32
  }
  func.func @transform_9(%arg0: i32) -> (i32, i32) {
    %c0_i32 = arith.constant 0 : i32
    %c0_i32_0 = arith.constant 0 : i32
    %c0_i32_1 = arith.constant 0 : i32
    return %c0_i32, %c0_i32_0 : i32, i32
  }
  func.func @transform_10(%arg0: i32) -> (i32, i32) {
    %c0_i32 = arith.constant 0 : i32
    %c0_i32_0 = arith.constant 0 : i32
    %c0_i32_1 = arith.constant 0 : i32
    return %c0_i32, %c0_i32_0 : i32, i32
  }
  func.func @transform_11(%arg0: i32) -> (i32, i32) {
    %c0_i32 = arith.constant 0 : i32
    %c0_i32_0 = arith.constant 0 : i32
    %c0_i32_1 = arith.constant 0 : i32
    return %c0_i32, %c0_i32_0 : i32, i32
  }
  func.func @transform_12(%arg0: i32) -> (i32, i32) {
    %c0_i32 = arith.constant 0 : i32
    %c0_i32_0 = arith.constant 0 : i32
    %c0_i32_1 = arith.constant 0 : i32
    return %c0_i32, %c0_i32_0 : i32, i32
  }
  func.func @transform_13(%arg0: i32) -> (i32, i32) {
    %c0_i32 = arith.constant 0 : i32
    %c0_i32_0 = arith.constant 0 : i32
    %c0_i32_1 = arith.constant 0 : i32
    return %c0_i32, %c0_i32_0 : i32, i32
  }
  func.func @transform_14(%arg0: i32) -> (i32, i32) {
    %c0_i32 = arith.constant 0 : i32
    %c0_i32_0 = arith.constant 0 : i32
    %c0_i32_1 = arith.constant 0 : i32
    return %c0_i32, %c0_i32_0 : i32, i32
  }
  func.func @transform_15(%arg0: i32) -> (i32, i32) {
    %c0_i32 = arith.constant 0 : i32
    %c0_i32_0 = arith.constant 0 : i32
    return %arg0, %c0_i32 : i32, i32
  }
  func.func @transform_16(%arg0: i32) -> (i32, i32) {
    %c0_i32 = arith.constant 0 : i32
    %c0_i32_0 = arith.constant 0 : i32
    return %arg0, %c0_i32 : i32, i32
  }
}

module attributes {stable_mosaic.version = 11 : i64} {
  func.func @_output_proj_kernel(%arg0: i32, %arg1: memref<32x32xf32, #tpu.memory_space<vmem>>, %arg2: memref<32x32xf32, #tpu.memory_space<vmem>>, %arg3: memref<1x32xf32, #tpu.memory_space<vmem>>, %arg4: memref<32x1xf32, #tpu.memory_space<vmem>>, %arg5: memref<1x1xf32, #tpu.memory_space<vmem>>, %arg6: memref<32x1xf32, #tpu.memory_space<vmem>>) attributes {dimension_semantics = [#tpu.dimension_semantics<parallel>], iteration_bounds = array<i64: 2>, scalar_prefetch = 0 : i64, scratch_operands = 0 : i64, tpu.core_type = #tpu.core_type<tc>, window_params = [{transform_indices = @transform_0, window_bounds = array<i64: 32, 32>}, {pipeline_mode = #tpu.pipeline_mode<synchronous>, transform_indices = @transform_1, window_bounds = array<i64: 32, 32>}, {pipeline_mode = #tpu.pipeline_mode<synchronous>, transform_indices = @transform_2, window_bounds = array<i64: 1, 32>}, {pipeline_mode = #tpu.pipeline_mode<synchronous>, transform_indices = @transform_3, window_bounds = array<i64: 32, 1>}, {pipeline_mode = #tpu.pipeline_mode<synchronous>, transform_indices = @transform_4, window_bounds = array<i64: 1, 1>}, {transform_indices = @transform_5, window_bounds = array<i64: 32, 1>}]} {
    %c0 = arith.constant 0 : index
    %c0_0 = arith.constant 0 : index
    %0 = vector.load %arg1[%c0, %c0_0] : memref<32x32xf32, #tpu.memory_space<vmem>>, vector<32x32xf32>
    %cst = arith.constant 0.707106769 : f32
    %1 = vector.broadcast %cst : f32 to vector<32x32xf32>
    %2 = arith.mulf %0, %1 : vector<32x32xf32>
    %c0_1 = arith.constant 0 : index
    %c0_2 = arith.constant 0 : index
    %3 = vector.load %arg2[%c0_1, %c0_2] : memref<32x32xf32, #tpu.memory_space<vmem>>, vector<32x32xf32>
    %4 = arith.truncf %2 : vector<32x32xf32> to vector<32x32xbf16>
    %5 = arith.truncf %3 : vector<32x32xf32> to vector<32x32xbf16>
    %cst_3 = arith.constant dense<0.000000e+00> : vector<32x32xf32>
    %6 = tpu.matmul %4, %5, %cst_3 {dimension_numbers = #tpu.dot_dimension_numbers<[1], [0], [0], [1], [0, 0, 1, 1], [], []>} : vector<32x32xbf16>, vector<32x32xbf16>, vector<32x32xf32> -> vector<32x32xf32>
    %c0_4 = arith.constant 0 : index
    %c0_5 = arith.constant 0 : index
    %7 = vector.load %arg3[%c0_4, %c0_5] : memref<1x32xf32, #tpu.memory_space<vmem>>, vector<1x32xf32>
    %8 = vector.broadcast %7 : vector<1x32xf32> to vector<32x32xf32>
    %9 = arith.addf %6, %8 : vector<32x32xf32>
    %cst_6 = arith.constant 0.000000e+00 : f32
    %10 = vector.broadcast %cst_6 : f32 to vector<32x32xf32>
    %11 = arith.maximumf %9, %10 : vector<32x32xf32>
    %c0_7 = arith.constant 0 : index
    %c0_8 = arith.constant 0 : index
    %12 = vector.load %arg4[%c0_7, %c0_8] : memref<32x1xf32, #tpu.memory_space<vmem>>, vector<32x1xf32>
    %13 = arith.truncf %11 : vector<32x32xf32> to vector<32x32xbf16>
    %14 = arith.truncf %12 : vector<32x1xf32> to vector<32x1xbf16>
    %cst_9 = arith.constant dense<0.000000e+00> : vector<32x1xf32>
    %15 = tpu.matmul %13, %14, %cst_9 {dimension_numbers = #tpu.dot_dimension_numbers<[1], [0], [0], [1], [0, 0, 1, 1], [], []>} : vector<32x32xbf16>, vector<32x1xbf16>, vector<32x1xf32> -> vector<32x1xf32>
    %c0_10 = arith.constant 0 : index
    %c0_11 = arith.constant 0 : index
    %16 = vector.load %arg5[%c0_10, %c0_11] : memref<1x1xf32, #tpu.memory_space<vmem>>, vector<1x1xf32>
    %17 = vector.broadcast %16 : vector<1x1xf32> to vector<32x1xf32>
    %18 = arith.addf %15, %17 : vector<32x1xf32>
    %c0_12 = arith.constant 0 : index
    %c0_13 = arith.constant 0 : index
    %19 = vector.load %arg6[%c0_12, %c0_13] : memref<32x1xf32, #tpu.memory_space<vmem>>, vector<32x1xf32>
    tpu.vector_store %arg6[%c0_12, %c0_13], %18 {strides = array<i32>} : memref<32x1xf32, #tpu.memory_space<vmem>>, vector<32x1xf32>,
    return
  }
  func.func @transform_0(%arg0: i32) -> (i32, i32) {
    %c0_i32 = arith.constant 0 : i32
    %c0_i32_0 = arith.constant 0 : i32
    return %arg0, %c0_i32 : i32, i32
  }
  func.func @transform_1(%arg0: i32) -> (i32, i32) {
    %c0_i32 = arith.constant 0 : i32
    %c0_i32_0 = arith.constant 0 : i32
    %c0_i32_1 = arith.constant 0 : i32
    return %c0_i32, %c0_i32_0 : i32, i32
  }
  func.func @transform_2(%arg0: i32) -> (i32, i32) {
    %c0_i32 = arith.constant 0 : i32
    %c0_i32_0 = arith.constant 0 : i32
    %c0_i32_1 = arith.constant 0 : i32
    return %c0_i32, %c0_i32_0 : i32, i32
  }
  func.func @transform_3(%arg0: i32) -> (i32, i32) {
    %c0_i32 = arith.constant 0 : i32
    %c0_i32_0 = arith.constant 0 : i32
    %c0_i32_1 = arith.constant 0 : i32
    return %c0_i32, %c0_i32_0 : i32, i32
  }
  func.func @transform_4(%arg0: i32) -> (i32, i32) {
    %c0_i32 = arith.constant 0 : i32
    %c0_i32_0 = arith.constant 0 : i32
    %c0_i32_1 = arith.constant 0 : i32
    return %c0_i32, %c0_i32_0 : i32, i32
  }
  func.func @transform_5(%arg0: i32) -> (i32, i32) {
    %c0_i32 = arith.constant 0 : i32
    %c0_i32_0 = arith.constant 0 : i32
    return %arg0, %c0_i32 : i32, i32
  }
}

</mosaic_0001>

<bundles_post_ra>
// kernel: run.8
= control target key start
LH: loop header
LB: loop body
LE: loop exit
PB: predicated region body
PF: predicated region fallthrough
CT: control target
= control target key end

     0   :  { %s332_s12 = smov 0   ;;  %s359_s0 = inlined_call_operand.vmem [shape: f32[64,1], index: 0, kind: input, shape index: {}]   ;;  %s360_s1 = inlined_call_operand.vmem [shape: f32[1,32], index: 1, kind: input, shape index: {}]   ;;  %s361_s2 = inlined_call_operand.vmem [shape: f32[1,32], index: 2, kind: input, shape index: {}]   ;;  %s362_s3 = inlined_call_operand.vmem [shape: f32[64,32], index: 3, kind: output, shape index: {}]  }
   0x1 LB: > { %s279_s13 = sadd.s32 4294967295, %s309_s12   ;;  %p283_p0 = scmp.ge.s32.totalorder %s309_s12, 1  ;;  %s309_s12 = sphi %s332_s12, %s13_s12  }
   0x2   : > { %p138_p1 = scmp.lt.s32.totalorder %s309_s12, 3 }
   0x4   : > { %p139_p2 = pnand %p283_p0, %p138_p1 }
   0x5   : > { %s284_s14 = sshll.u32 (!%p139_p2), %s279_s13, 2 }
   0x6   : > { %142 = sbr.rel (%p139_p2) target bundleno = 146 (0x92), region = 32  ;;  %p163_p3 = scmp.lt.s32.totalorder (!%p139_p2), %s284_s14, 7 }
   0xb   : > { %v311_v0 = vmov 0   ;;  %s364_s14 = smov (!%p163_p3, %s284_s14), 7  ;;  %v301_v5 = vld [vmem:[%s360_s1] ss:$0 sm:$0xff]  ;;  %vm218_vm0 = vcmask 261120  }
   0xc   : > { %300 = vset.pattern.permute.xlu1 %v311_v0  ;;  %299 = vset.pattern.permute.xlu0 %v311_v0  ;;  %s285_s15 = sshll.u32 %s364_s14, 3  ;;  %v302_v6 = vld [vmem:[%s361_s2] ss:$0 sm:$0xff] }
   0xd   : > { %s166_s18 = scalar_lea.vmem %s359_s0, %s285_s15  ;;  %s172_s25 = scalar_lea.vmem %s362_s3, %s285_s15 }
   0xe   : > { %v176_v1 = vld [vmem:[%s166_s18 + $0x10] sm:$0xff]  ;;  %v174_v2 = vld [vmem:[%s166_s18] sm:$0xff]  ;;  %v177_v3 = vld [vmem:[%s166_s18 + $0x18] sm:$0xff] }
   0xf   : > { %191 = vperm.xlu1 %300, %v176_v1   ;;  %181 = vperm.xlu0 %299, %v174_v2   ;;  %v175_v4 = vld [vmem:[%s166_s18 + $0x8] sm:$0xff] }
  0x17   : > { %196 = vperm.xlu1 %300, %v177_v3   ;;  %186 = vperm.xlu0 %299, %v175_v4  }
  0x81   : > { %v192_v7 = vpop.permute.xlu1 %191  ;;  %v182_v8 = vpop.permute.xlu0 %181 }
  0x82   : > { %v202_v9 = vmul.f32 %v301_v5, %v182_v8  ;;  %v204_v12 = vmul.f32 %v301_v5, %v192_v7 }
  0x84   : > { %v210_v10 = vadd.f32 %v302_v6, %v202_v9  ;;  %v212_v17 = vadd.f32 %v302_v6, %v204_v12 }
  0x86   : > { %v214_v11 = vmax.f32 %v210_v10, 0.0  ;;  %v216_v21 = vmax.f32 %v212_v17, 0.0 }
  0x88   : > { %219 = vst.msk [vmem:[%s172_s25] sm:$0xff] %vm218_vm0, %v214_v11 }
  0x89   : > { %v197_v13 = vpop.permute.xlu1 %196  ;;  %v187_v14 = vpop.permute.xlu0 %186  ;;  %221 = vst.msk [vmem:[%s172_s25 + $0x10] sm:$0xff] %vm218_vm0, %v216_v21 }
  0x8a   : > { %v205_v15 = vmul.f32 %v301_v5, %v197_v13  ;;  %v203_v16 = vmul.f32 %v301_v5, %v187_v14 }
  0x8c   : > { %v213_v18 = vadd.f32 %v302_v6, %v205_v15  ;;  %v211_v19 = vadd.f32 %v302_v6, %v203_v16 }
  0x8e   : > { %v215_v20 = vmax.f32 %v211_v19, 0.0  ;;  %v217_v22 = vmax.f32 %v213_v18, 0.0 }
  0x90   : > { %220 = vst.msk [vmem:[%s172_s25 + $0x8] sm:$0xff] %vm218_vm0, %v215_v20 }
  0x91   : > { %222 = vst.msk [vmem:[%s172_s25 + $0x18] sm:$0xff] %vm218_vm0, %v217_v22 }
  0x92 PF: > { %s13_s12 = sadd.s32 1, %s309_s12  }
  0x93   : > { %p10_p4 = scmp.ge.s32.totalorder %s13_s12, 4  }
  0x95   :  { %12 = sbr.rel (!%p10_p4) target bundleno = 1 (0x1), region = 62 }

// kernel: run.11
= control target key start
LH: loop header
LB: loop body
LE: loop exit
PB: predicated region body
PF: predicated region fallthrough
CT: control target
= control target key end

     0   :  { %s1125_s21 = smov 0   ;;  %s1280_s0 = inlined_call_operand.vmem [shape: f32[64,32], index: 0, kind: input, shape index: {}]   ;;  %s1281_s1 = inlined_call_operand.vmem [shape: f32[64,32], index: 1, kind: input, shape index: {}]   ;;  %s1282_s2 = inlined_call_operand.vmem [shape: f32[64,32], index: 2, kind: input, shape index: {}]   ;;  %s1283_s3 = inlined_call_operand.vmem [shape: f32[32,32], index: 3, kind: input, shape index: {}]   ;;  %s1284_s4 = inlined_call_operand.vmem [shape: f32[32,32], index: 4, kind: input, shape index: {}]   ;;  %s1285_s5 = inlined_call_operand.vmem [shape: f32[1,32], index: 5, kind: input, shape index: {}]   ;;  %s1286_s6 = inlined_call_operand.vmem [shape: f32[1,32], index: 6, kind: input, shape index: {}]   ;;  %s1287_s7 = inlined_call_operand.vmem [shape: f32[32,32], index: 7, kind: input, shape index: {}]   ;;  %s1288_s8 = inlined_call_operand.vmem [shape: f32[32,32], index: 8, kind: input, shape index: {}]   ;;  %s1289_s9 = inlined_call_operand.vmem [shape: f32[1,32], index: 9, kind: input, shape index: {}]   ;;  %s1290_s10 = inlined_call_operand.vmem [shape: f32[1,32], index: 10, kind: input, shape index: {}]   ;;  %s1291_s11 = inlined_call_operand.vmem [shape: f32[32,32], index: 11, kind: input, shape index: {}]   ;;  %s1292_s12 = inlined_call_operand.vmem [shape: f32[32,32], index: 12, kind: input, shape index: {}]   ;;  %s1293_s13 = inlined_call_operand.vmem [shape: f32[1,32], index: 13, kind: input, shape index: {}]   ;;  %s1294_s14 = inlined_call_operand.vmem [shape: f32[1,32], index: 14, kind: input, shape index: {}]   ;;  %s1295_s15 = inlined_call_operand.vmem [shape: f32[64,32], index: 15, kind: output, shape index: {0}]   ;;  %s1296_s16 = inlined_call_operand.vmem [shape: f32[64,32], index: 16, kind: output, shape index: {1}]  }
   0x1   :  { %1297 = sst [smem:[#allocation2_spill]] %s1280_s0 }
   0x2 LB: > { %s969_s22 = sadd.s32 4294967295, %s1038_s21   ;;  %p973_p0 = scmp.ge.s32.totalorder %s1038_s21, 1  ;;  %s1038_s21 = sphi %s1125_s21, %s27_s21  }
   0x3   : > { %p488_p1 = scmp.lt.s32.totalorder %s1038_s21, 3 }
   0x5   : > { %p489_p2 = pnand %p973_p0, %p488_p1 }
   0x6   : > { %s974_s29 = sshll.u32 (!%p489_p2), %s969_s22, 2  ;;  %s1298_s23 = sld [smem:[#allocation2_spill]] (!%p489_p2) }
   0x7   : > { %492 = sbr.rel (%p489_p2) target bundleno = 353 (0x161), region = 80  ;;  %p554_p3 = scmp.lt.s32.totalorder (!%p489_p2), %s974_s29, 7 }
   0xc   : > { %v602_v0 = vld [vmem:[%s1287_s7 + $0x10] sm:$0xff]  ;;  %v603_v1 = vld [vmem:[%s1287_s7 + $0x18] sm:$0xff]  ;;  %v600_v5 = vld [vmem:[%s1287_s7] sm:$0xff]  ;;  %s1300_s29 = smov (!%p554_p3, %s974_s29), 7  ;;  %vm608_vm0 = vcmask 261120  }
   0xd   : > { %v594_v2 = vld [vmem:[%s1283_s3 + $0x10] sm:$0xff]  ;;  %v607_v3 = vpack.c.bf16 %v603_v1, %v602_v0  ;;  %v595_v4 = vld [vmem:[%s1283_s3 + $0x18] sm:$0xff]  ;;  %v601_v6 = vld [vmem:[%s1287_s7 + $0x8] sm:$0xff]  ;;  %s1178_s27 = sshll.u32 %s1300_s29, 3 }
   0xe   : > { %v599_v7 = vpack.c.bf16 %v595_v4, %v594_v2  ;;  %v592_v8 = vld [vmem:[%s1283_s3] sm:$0xff]  ;;  %v593_v9 = vld [vmem:[%s1283_s3 + $0x8] sm:$0xff]  ;;  %v683_v10 = vld [vmem:[%s1288_s8 + $0x10] sm:$0xff]  ;;  %v606_v11 = vpack.c.bf16 %v601_v6, %v600_v5  ;;  %s563_s18 = scalar_lea.vmem %s1281_s1, %s1178_s27  ;;  %s557_s24 = scalar_lea.vmem %s1298_s23, %s1178_s27 }
   0xf   : > { %998 = vmatpush.bf16.msra.mxu2 %v607_v3  ;;  %v684_v12 = vld [vmem:[%s1288_s8 + $0x18] sm:$0xff]  ;;  %v677_v13 = vld [vmem:[%s1284_s4 + $0x10] sm:$0xff]  ;;  %621 = vmatpush.bf16.msra.mxu0 %v607_v3  ;;  %v598_v15 = vpack.c.bf16 %v593_v9, %v592_v8  ;;  %v681_v17 = vld [vmem:[%s1288_s8] sm:$0xff]  ;;  %s1243_s29 = scalar_lea.vmem %s1282_s2, %s1178_s27  ;;  %s1256_s17 = scalar_lea.vmem %s1296_s16, %s1178_s27 }
  0x10   : > { %v678_v14 = vld [vmem:[%s1284_s4 + $0x18] sm:$0xff]  ;;  %1000 = vmatpush.bf16.msra.mxu3 %v599_v7  ;;  %v686_v16 = vpack.c.bf16 %v684_v12, %v683_v10  ;;  %646 = vmatpush.bf16.msra.mxu1 %v599_v7  ;;  %v682_v18 = vld [vmem:[%s1288_s8 + $0x8] sm:$0xff]  ;;  %v675_v19 = vld [vmem:[%s1284_s4] sm:$0xff]  ;;  %s575_s20 = scalar_lea.vmem %s1295_s15, %s1178_s27 }
  0x11   : > { %v680_v20 = vpack.c.bf16 %v678_v14, %v677_v13  ;;  %v676_v21 = vld [vmem:[%s1284_s4 + $0x8] sm:$0xff]  ;;  %v590_v22 = vld [vmem:[%s563_s18 + $0x10] sm:$0xff]  ;;  %v591_v23 = vld [vmem:[%s563_s18 + $0x18] sm:$0xff]  ;;  %v685_v29 = vpack.c.bf16 %v682_v18, %v681_v17 }
  0x12   : > { %v586_v24 = vld [vmem:[%s557_s24 + $0x10] sm:$0xff]  ;;  %v605_v25 = vpack.c.bf16 %v591_v23, %v590_v22  ;;  %v587_v26 = vld [vmem:[%s557_s24 + $0x18] sm:$0xff]  ;;  %v588_v27 = vld [vmem:[%s563_s18] sm:$0xff]  ;;  %v679_v34 = vpack.c.bf16 %v676_v21, %v675_v19 }
  0x13   : > { %999 = vmatpush.bf16.msra.mxu2 %v606_v11  ;;  %622 = vmatpush.bf16.msra.mxu0 %v606_v11  ;;  %v589_v28 = vld [vmem:[%s563_s18 + $0x8] sm:$0xff]  ;;  %v597_v30 = vpack.c.bf16 %v587_v26, %v586_v24  ;;  %v584_v32 = vld [vmem:[%s557_s24] sm:$0xff]  ;;  %v771_v39 = vld [vmem:[%s1291_s11 + $0x10] sm:$0xff] }
  0x14   : > { %1001 = vmatpush.bf16.msra.mxu3 %v598_v15  ;;  %647 = vmatpush.bf16.msra.mxu1 %v598_v15  ;;  %v604_v31 = vpack.c.bf16 %v589_v28, %v588_v27  ;;  %v585_v33 = vld [vmem:[%s557_s24 + $0x8] sm:$0xff]  ;;  %v772_v40 = vld [vmem:[%s1291_s11 + $0x18] sm:$0xff]  ;;  %v824_v41 = vld [vmem:[%s1292_s12 + $0x10] sm:$0xff] }
  0x15   : > { %v596_v35 = vpack.c.bf16 %v585_v33, %v584_v32  ;;  %v776_v43 = vpack.c.bf16 %v772_v40, %v771_v39  ;;  %v825_v44 = vld [vmem:[%s1292_s12 + $0x18] sm:$0xff]  ;;  %v769_v48 = vld [vmem:[%s1291_s11] sm:$0xff]  ;;  %v770_v49 = vld [vmem:[%s1291_s11 + $0x8] sm:$0xff] }
  0x16   : > { %985 = vmatmul.msk.bf16.vlgmr.msra.gmra.mxu2 %vm608_vm0, %v605_v25  ;;  %984 = vmatmul.msk.bf16.vlgmr.msra.gmra.mxu0 %vm608_vm0, %v604_v31  ;;  %v827_v45 = vpack.c.bf16 %v825_v44, %v824_v41  ;;  %v822_v50 = vld [vmem:[%s1292_s12] sm:$0xff]  ;;  %v775_v52 = vpack.c.bf16 %v770_v49, %v769_v48  ;;  %v823_v53 = vld [vmem:[%s1292_s12 + $0x8] sm:$0xff] }
  0x17   : > { %693 = vmatpush.bf16.msrb.mxu2 %v686_v16  ;;  %987 = vmatmul.msk.bf16.vlgmr.msra.gmra.mxu3 %vm608_vm0, %v597_v30  ;;  %v826_v54 = vpack.c.bf16 %v823_v53, %v822_v50  ;;  %v1010_v55 = vld [vmem:[%s1285_s5] ss:$0 sm:$0xff] }
  0x18   : > { %712 = vmatpush.bf16.msrb.mxu3 %v680_v20  ;;  %986 = vmatmul.msk.bf16.vlgmr.msra.gmra.mxu1 %vm608_vm0, %v596_v35  ;;  %v1011_v60 = vld [vmem:[%s1289_s9] ss:$0 sm:$0xff] }
  0x19   : > { %789 = vmatpush.bf16.msrb.mxu0 %v776_v43  ;;  %838 = vmatpush.bf16.msrb.mxu1 %v827_v45  ;;  %v1012_v4 = vld [vmem:[%s1286_s6] ss:$0 sm:$0xff] }
  0x1a   : > { %v1013_v7 = vld [vmem:[%s1290_s10] ss:$0 sm:$0xff] }
  0x1b   : > { %694 = vmatpush.bf16.msrb.mxu2 %v685_v29 }
  0x1c   : > { %713 = vmatpush.bf16.msrb.mxu3 %v679_v34 }
  0x1d   : > { %790 = vmatpush.bf16.msrb.mxu0 %v775_v52  ;;  %839 = vmatpush.bf16.msrb.mxu1 %v826_v54  ;;  %v1015_v54 = vld [vmem:[%s1294_s14] ss:$0 sm:$0xff] }
  0x26   : > { %988 = vmatmul.msk.bf16.vlgmr.msrb.gmra.mxu2 %vm608_vm0, %v604_v31 }
  0x27   : > { %990 = vmatmul.msk.bf16.vlgmr.msrb.gmra.mxu3 %vm608_vm0, %v596_v35 }
  0x36   : > { %989 = vmatmul.msk.bf16.gmra.mxu2 %vm608_vm0, %v605_v25 }
  0x37   : > { %991 = vmatmul.msk.bf16.gmra.mxu3 %vm608_vm0, %v597_v30 }
  0x93   : > { %v624_v36 = vpop.f32.mrf.mxu0 }
  0x95   : > { %v649_v37 = vpop.f32.mrf.mxu1 }
  0x96   : > { %v650_v51 = vadd.f32 %v649_v37, %v624_v36 }
  0x98   : > { %v663_v59 = vadd.f32 %v1010_v55, %v650_v51 }
  0x99   : > { %v629_v38 = vpop.f32.mrf.mxu2 }
  0x9a   : > { %v654_v42 = vpop.f32.mrf.mxu3  ;;  %v671_v62 = vadd.f32 %v1011_v60, %v663_v59 }
  0x9b   : > { %v626_v46 = vpop.f32.mrf.mxu0  ;;  %v655_v8 = vadd.f32 %v654_v42, %v629_v38 }
  0x9c   : > { %v741_v2 = vmul.f32 0.5, %v671_v62 }
  0x9d   : > { %v651_v47 = vpop.f32.mrf.mxu1  ;;  %v665_v14 = vadd.f32 %v1010_v55, %v655_v8 }
  0x9e   : > { %v652_v57 = vadd.f32 %v651_v47, %v626_v46  ;;  %1016 = vtanh.f32 %v741_v2 }
  0x9f   : > { %v673_v20 = vadd.f32 %v1011_v60, %v665_v14 }
  0xa0   : > { %v664_v61 = vadd.f32 %v1010_v55, %v652_v57 }
  0xa1   : > { %v631_v56 = vpop.f32.mrf.mxu2  ;;  %v743_v27 = vmul.f32 0.5, %v673_v20 }
  0xa2   : > { %v656_v58 = vpop.f32.mrf.mxu3  ;;  %v672_v63 = vadd.f32 %v1011_v60, %v664_v61 }
  0xa3   : > { %v657_v9 = vadd.f32 %v656_v58, %v631_v56  ;;  %v1014_v56 = vld [vmem:[%s1293_s13] ss:$0 sm:$0xff] }
  0xa4   : > { %v742_v5 = vmul.f32 0.5, %v672_v63  ;;  %v1017_v15 = vpop.eup %1016  ;;  %v766_v63 = vld [vmem:[%s1243_s29 + $0x8] sm:$0xff] }
  0xa5   : > { %v666_v16 = vadd.f32 %v1010_v55, %v657_v9  ;;  %v749_v21 = vadd.f32 1.0, %v1017_v15  ;;  %v765_v55 = vld [vmem:[%s1243_s29] sm:$0xff] }
  0xa6   : > { %1018 = vtanh.f32 %v742_v5 }
  0xa7   : > { %v674_v22 = vadd.f32 %v1011_v60, %v666_v16  ;;  %v753_v28 = vmul.f32 0.5, %v749_v21 }
  0xa9   : > { %v696_v0 = vpop.f32.mrf.mxu2  ;;  %v744_v30 = vmul.f32 0.5, %v674_v22 }
  0xaa   : > { %v715_v1 = vpop.f32.mrf.mxu3 }
  0xab   : > { %v716_v3 = vadd.f32 %v715_v1, %v696_v0 }
  0xac   : > { %v1019_v18 = vpop.eup %1018 }
  0xad   : > { %v729_v6 = vadd.f32 %v1012_v4, %v716_v3  ;;  %v750_v24 = vadd.f32 1.0, %v1019_v18 }
  0xaf   : > { %v737_v12 = vadd.f32 %v1013_v7, %v729_v6  ;;  %v754_v31 = vmul.f32 0.5, %v750_v24  ;;  %v767_v6 = vld [vmem:[%s1243_s29 + $0x10] sm:$0xff] }
  0xb1   : > { %v698_v10 = vpop.f32.mrf.mxu2  ;;  %1020 = vtanh.f32 %v737_v12 }
  0xb2   : > { %v717_v11 = vpop.f32.mrf.mxu3 }
  0xb3   : > { %v718_v13 = vadd.f32 %v717_v11, %v698_v10 }
  0xb5   : > { %v730_v17 = vadd.f32 %v1012_v4, %v718_v13  ;;  %v768_v13 = vld [vmem:[%s1243_s29 + $0x18] sm:$0xff] }
  0xb7   : > { %v738_v19 = vadd.f32 %v1013_v7, %v730_v17  ;;  %v1021_v29 = vpop.eup %1020 }
  0xb8   : > { %v761_v34 = vmul.f32 %v1021_v29, %v753_v28 }
  0xb9   : > { %1022 = vtanh.f32 %v738_v19  ;;  %v701_v23 = vpop.f32.mrf.mxu2 }
  0xba   : > { %v720_v25 = vpop.f32.mrf.mxu3  ;;  %1024 = vtanh.f32 %v743_v27 }
  0xbb   : > { %v721_v26 = vadd.f32 %v720_v25, %v701_v23  ;;  %1026 = vtanh.f32 %v744_v30 }
  0xbd   : > { %v731_v33 = vadd.f32 %v1012_v4, %v721_v26 }
  0xbf   : > { %v1023_v32 = vpop.eup %1022  ;;  %v739_v39 = vadd.f32 %v1013_v7, %v731_v33 }
  0xc0   : > { %v762_v35 = vmul.f32 %v1023_v32, %v754_v31  ;;  %v1025_v42 = vpop.eup %1024 }
  0xc1   : > { %v703_v36 = vpop.f32.mrf.mxu2  ;;  %v1027_v43 = vpop.eup %1026  ;;  %1028 = vtanh.f32 %v739_v39  ;;  %v751_v45 = vadd.f32 1.0, %v1025_v42 }
  0xc2   : > { %v722_v37 = vpop.f32.mrf.mxu3  ;;  %v773_v38 = vpack.c.bf16 %v762_v35, %v761_v34  ;;  %v752_v46 = vadd.f32 1.0, %v1027_v43 }
  0xc3   : > { %v723_v40 = vadd.f32 %v722_v37, %v703_v36  ;;  %v755_v48 = vmul.f32 0.5, %v751_v45 }
  0xc4   : > { %992 = vmatmul.msk.bf16.vlgmr.msrb.gmra.mxu0 %vm608_vm0, %v773_v38  ;;  %994 = vmatmul.msk.bf16.vlgmr.msrb.gmra.mxu1 %vm608_vm0, %v773_v38  ;;  %v756_v49 = vmul.f32 0.5, %v752_v46 }
  0xc5   : > { %v732_v41 = vadd.f32 %v1012_v4, %v723_v40 }
  0xc7   : > { %v740_v44 = vadd.f32 %v1013_v7, %v732_v41  ;;  %v1029_v47 = vpop.eup %1028 }
  0xc8   : > { %v763_v51 = vmul.f32 %v1029_v47, %v755_v48 }
  0xc9   : > { %1030 = vtanh.f32 %v740_v44 }
  0xcf   : > { %v1031_v50 = vpop.eup %1030 }
  0xd0   : > { %v764_v52 = vmul.f32 %v1031_v50, %v756_v49 }
  0xd2   : > { %v774_v53 = vpack.c.bf16 %v764_v52, %v763_v51 }
  0xd4   : > { %993 = vmatmul.msk.bf16.gmra.mxu0 %vm608_vm0, %v774_v53  ;;  %995 = vmatmul.msk.bf16.gmra.mxu1 %vm608_vm0, %v774_v53 }
 0x141   : > { %v792_v57 = vpop.f32.mrf.mxu0  ;;  %v841_v58 = vpop.f32.mrf.mxu1 }
 0x142   : > { %v802_v59 = vadd.f32 %v792_v57, %v765_v55  ;;  %v842_v60 = vadd.f32 %v1015_v54, %v841_v58 }
 0x144   : > { %v810_v61 = vadd.f32 %v1014_v56, %v802_v59  ;;  %851 = vst.msk [vmem:[%s1256_s17] sm:$0xff] %vm608_vm0, %v842_v60 }
 0x146   : > { %v814_v62 = vmul.f32 0.70710677, %v810_v61 }
 0x148   : > { %818 = vst.msk [vmem:[%s575_s20] sm:$0xff] %vm608_vm0, %v814_v62 }
 0x149   : > { %v794_v0 = vpop.f32.mrf.mxu0  ;;  %v843_v1 = vpop.f32.mrf.mxu1 }
 0x14a   : > { %v803_v2 = vadd.f32 %v794_v0, %v766_v63  ;;  %v844_v3 = vadd.f32 %v1015_v54, %v843_v1 }
 0x14c   : > { %v811_v4 = vadd.f32 %v1014_v56, %v803_v2  ;;  %852 = vst.msk [vmem:[%s1256_s17 + $0x8] sm:$0xff] %vm608_vm0, %v844_v3 }
 0x14e   : > { %v815_v5 = vmul.f32 0.70710677, %v811_v4 }
 0x150   : > { %819 = vst.msk [vmem:[%s575_s20 + $0x8] sm:$0xff] %vm608_vm0, %v815_v5 }
 0x151   : > { %v797_v7 = vpop.f32.mrf.mxu0  ;;  %v846_v8 = vpop.f32.mrf.mxu1 }
 0x152   : > { %v804_v9 = vadd.f32 %v797_v7, %v767_v6  ;;  %v847_v10 = vadd.f32 %v1015_v54, %v846_v8 }
 0x154   : > { %v812_v11 = vadd.f32 %v1014_v56, %v804_v9  ;;  %853 = vst.msk [vmem:[%s1256_s17 + $0x10] sm:$0xff] %vm608_vm0, %v847_v10 }
 0x156   : > { %v816_v12 = vmul.f32 0.70710677, %v812_v11 }
 0x158   : > { %820 = vst.msk [vmem:[%s575_s20 + $0x10] sm:$0xff] %vm608_vm0, %v816_v12 }
 0x159   : > { %v799_v14 = vpop.f32.mrf.mxu0  ;;  %v848_v15 = vpop.f32.mrf.mxu1 }
 0x15a   : > { %v805_v16 = vadd.f32 %v799_v14, %v768_v13  ;;  %v849_v17 = vadd.f32 %v1015_v54, %v848_v15 }
 0x15c   : > { %v813_v18 = vadd.f32 %v1014_v56, %v805_v16  ;;  %854 = vst.msk [vmem:[%s1256_s17 + $0x18] sm:$0xff] %vm608_vm0, %v849_v17 }
 0x15e   : > { %v817_v19 = vmul.f32 0.70710677, %v813_v18 }
 0x160   : > { %821 = vst.msk [vmem:[%s575_s20 + $0x18] sm:$0xff] %vm608_vm0, %v817_v19 }
 0x161 PF: > { %s27_s21 = sadd.s32 1, %s1038_s21  }
 0x162   : > { %p24_p4 = scmp.ge.s32.totalorder %s27_s21, 4  }
 0x164   :  { %26 = sbr.rel (!%p24_p4) target bundleno = 2 (0x2), region = 128 }

// kernel: run.9
= control target key start
LH: loop header
LB: loop body
LE: loop exit
PB: predicated region body
PF: predicated region fallthrough
CT: control target
= control target key end

     0   :  { %s3475_s25 = smov 0   ;;  %s4147_s0 = inlined_call_operand.vmem [shape: f32[8,8,32], index: 0, kind: input, shape index: {}]   ;;  %s4148_s1 = inlined_call_operand.vmem [shape: f32[3,4,32,8], index: 1, kind: input, shape index: {}]   ;;  %s4149_s2 = inlined_call_operand.vmem [shape: f32[3,4,1,8], index: 2, kind: input, shape index: {}]   ;;  %s4150_s3 = inlined_call_operand.vmem [shape: f32[4,8,32], index: 3, kind: input, shape index: {}]   ;;  %s4151_s4 = inlined_call_operand.vmem [shape: f32[1,32], index: 4, kind: input, shape index: {}]   ;;  %s4152_s5 = inlined_call_operand.vmem [shape: f32[1,32], index: 5, kind: input, shape index: {}]   ;;  %s4153_s6 = inlined_call_operand.vmem [shape: f32[1,32], index: 6, kind: input, shape index: {}]   ;;  %s4154_s7 = inlined_call_operand.vmem [shape: f32[32,64], index: 7, kind: input, shape index: {}]   ;;  %s4155_s8 = inlined_call_operand.vmem [shape: f32[1,64], index: 8, kind: input, shape index: {}]   ;;  %s4156_s9 = inlined_call_operand.vmem [shape: f32[64,32], index: 9, kind: input, shape index: {}]   ;;  %s4157_s10 = inlined_call_operand.vmem [shape: f32[1,32], index: 10, kind: input, shape index: {}]   ;;  %s4158_s11 = inlined_call_operand.vmem [shape: f32[1,32], index: 11, kind: input, shape index: {}]   ;;  %s4159_s12 = inlined_call_operand.vmem [shape: f32[1,32], index: 12, kind: input, shape index: {}]   ;;  %s4160_s13 = inlined_call_operand.vmem [shape: f32[8,8,32], index: 13, kind: output, shape index: {}]  }
   0x1 LB: > { %s3101_s26 = sadd.s32 4294967295, %s3402_s25   ;;  %p3105_p0 = scmp.ge.s32.totalorder %s3402_s25, 1  ;;  %s3402_s25 = sphi %s3475_s25, %s23_s25  }
   0x2   : > { %p388_p1 = scmp.lt.s32.totalorder %s3402_s25, 3 }
   0x4   : > { %p389_p2 = pnand %p3105_p0, %p388_p1 }
   0x5   : > { %s3106_s16 = sshll.u32 (!%p389_p2), %s3101_s26, 2 }
   0x6   : > { %392 = sbr.rel (%p389_p2) target bundleno = 3737 (0xe99), region = 72  ;;  %p433_p3 = scmp.lt.s32.totalorder (!%p389_p2), %s3106_s16, 7 }
   0xb   : > { %v451_v0 = vld [vmem:[%s4148_s1 + $0x10] sm:$0xff]  ;;  %v452_v1 = vld [vmem:[%s4148_s1 + $0x18] sm:$0xff]  ;;  %v449_v2 = vld [vmem:[%s4148_s1] sm:$0xff]  ;;  %s4162_s16 = smov (!%p433_p3, %s3106_s16), 7  ;;  %vm477_vm0 = vcmask 261120   ;;  %vm706_vm1 = vcmask 64512  }
   0xc   : > { %v455_v3 = vpack.c.bf16 %v451_v0, %v451_v0  ;;  %v456_v4 = vpack.c.bf16 %v452_v1, %v452_v1  ;;  %v450_v5 = vld [vmem:[%s4148_s1 + $0x8] sm:$0xff]  ;;  %v453_v6 = vpack.c.bf16 %v449_v2, %v449_v2  ;;  %v3116_v7 = vld [vmem:[%s4148_s1 + $0x90] sm:$0xff]  ;;  %v3117_v8 = vld [vmem:[%s4148_s1 + $0x98] sm:$0xff]  ;;  %s3107_s28 = sshll.u32 %s4162_s16, 3  ;;  %vm842_vm2 = vcmask 1043456  }
   0xd   : > { %v454_v9 = vpack.c.bf16 %v450_v5, %v450_v5  ;;  %v549_v10 = vpack.c.bf16 %v3116_v7, %v3116_v7  ;;  %v550_v11 = vpack.c.bf16 %v3117_v8, %v3117_v8  ;;  %v3114_v12 = vld [vmem:[%s4148_s1 + $0x80] sm:$0xff]  ;;  %v3115_v13 = vld [vmem:[%s4148_s1 + $0x88] sm:$0xff]  ;;  %s3515_s14 = scalar_lea.vmem %s4147_s0, %s3107_s28  ;;  %v3125_v36 = vld [vmem:[%s4148_s1 + $0x110] sm:$0xff]  ;;  %s4128_s22 = scalar_lea.vmem %s4160_s13, %s3107_s28 }
   0xe   : > { %v471_v14 = vunpack.c.l.b16 %v455_v3  ;;  %v472_v15 = vunpack.c.l.b16 %v456_v4  ;;  %v469_v16 = vunpack.c.l.b16 %v453_v6  ;;  %v547_v17 = vpack.c.bf16 %v3114_v12, %v3114_v12  ;;  %v445_v24 = vld [vmem:[%s3515_s14] sm:$0xff]  ;;  %v447_v25 = vld [vmem:[%s3515_s14 + $0x10] sm:$0xff]  ;;  %v448_v26 = vld [vmem:[%s3515_s14 + $0x18] sm:$0xff] }
   0xf   : > { %v470_v18 = vunpack.c.l.b16 %v454_v9  ;;  %v562_v19 = vunpack.c.l.b16 %v549_v10  ;;  %v563_v20 = vunpack.c.l.b16 %v550_v11  ;;  %v548_v21 = vpack.c.bf16 %v3115_v13, %v3115_v13  ;;  %v446_v30 = vld [vmem:[%s3515_s14 + $0x8] sm:$0xff]  ;;  %v3126_v37 = vld [vmem:[%s4148_s1 + $0x118] sm:$0xff]  ;;  %v3123_v42 = vld [vmem:[%s4148_s1 + $0x100] sm:$0xff] }
  0x10   : > { %v474_v22 = vpack.c.b16 %v472_v15, %v471_v14  ;;  %v560_v28 = vunpack.c.l.b16 %v547_v17  ;;  %v3521_v31 = vpack.c.bf16 %v445_v24, %v445_v24  ;;  %v3523_v32 = vpack.c.bf16 %v447_v25, %v447_v25  ;;  %v3124_v43 = vld [vmem:[%s4148_s1 + $0x108] sm:$0xff]  ;;  %v3284_v56 = vld [vmem:[%s4149_s2 + $0x4] ss:$0 sm:$0xff]  ;;  %v3283_v61 = vld [vmem:[%s4149_s2] ss:$0 sm:$0xff] }
  0x11   : > { %v473_v23 = vpack.c.b16 %v470_v18, %v469_v16  ;;  %v565_v27 = vpack.c.b16 %v563_v20, %v562_v19  ;;  %v561_v29 = vunpack.c.l.b16 %v548_v21  ;;  %v3525_v33 = vpack.c.bf16 %v448_v26, %v448_v26  ;;  %v3285_v24 = vld [vmem:[%s4149_s2 + $0x8] ss:$0 sm:$0xff] }
  0x12   : > { %487 = vmatpush.bf16.msra.mxu0 %v474_v22  ;;  %519 = vmatpush.bf16.msra.mxu2 %v474_v22  ;;  %v3527_v35 = vpack.c.bf16 %v446_v30, %v446_v30  ;;  %v627_v38 = vpack.c.bf16 %v3125_v36, %v3125_v36  ;;  %v628_v39 = vpack.c.bf16 %v3126_v37, %v3126_v37 }
  0x13   : > { %535 = vmatpush.bf16.msra.mxu3 %v474_v22  ;;  %503 = vmatpush.bf16.msra.mxu1 %v474_v22  ;;  %v564_v34 = vpack.c.b16 %v561_v29, %v560_v28  ;;  %v625_v45 = vpack.c.bf16 %v3123_v42, %v3123_v42  ;;  %v626_v46 = vpack.c.bf16 %v3124_v43, %v3124_v43 }
  0x14   : > { %v640_v40 = vunpack.c.l.b16 %v627_v38  ;;  %v641_v41 = vunpack.c.l.b16 %v628_v39 }
  0x15   : > { %v638_v47 = vunpack.c.l.b16 %v625_v45  ;;  %v639_v48 = vunpack.c.l.b16 %v626_v46 }
  0x16   : > { %488 = vmatpush.bf16.msra.mxu0 %v473_v23  ;;  %520 = vmatpush.bf16.msra.mxu2 %v473_v23  ;;  %v643_v44 = vpack.c.b16 %v641_v41, %v640_v40 }
  0x17   : > { %536 = vmatpush.bf16.msra.mxu3 %v473_v23  ;;  %504 = vmatpush.bf16.msra.mxu1 %v473_v23  ;;  %v642_v49 = vpack.c.b16 %v639_v48, %v638_v47 }
  0x19   : > { %3110 = vmatmul.msk.bf16.vlgmr.msra.gmra.mxu0 %vm477_vm0, %v3521_v31  ;;  %3112 = vmatmul.msk.bf16.vlgmr.msra.gmra.mxu2 %vm477_vm0, %v3523_v32 }
  0x1a   : > { %574 = vmatpush.bf16.msrb.mxu0 %v565_v27  ;;  %600 = vmatpush.bf16.msrb.mxu2 %v565_v27 }
  0x1b   : > { %3113 = vmatmul.msk.bf16.vlgmr.msra.gmra.mxu3 %vm477_vm0, %v3525_v33  ;;  %587 = vmatpush.bf16.msrb.mxu1 %v565_v27 }
  0x1c   : > { %613 = vmatpush.bf16.msrb.mxu3 %v565_v27  ;;  %3111 = vmatmul.msk.bf16.vlgmr.msra.gmra.mxu1 %vm477_vm0, %v3527_v35 }
  0x1e   : > { %575 = vmatpush.bf16.msrb.mxu0 %v564_v34  ;;  %601 = vmatpush.bf16.msrb.mxu2 %v564_v34 }
  0x1f   : > { %588 = vmatpush.bf16.msrb.mxu1 %v564_v34 }
  0x20   : > { %614 = vmatpush.bf16.msrb.mxu3 %v564_v34 }
  0x22   : > { %678 = vmatpush.bf16.msra.mxu2 %v643_v44  ;;  %652 = vmatpush.bf16.msra.mxu0 %v643_v44 }
  0x23   : > { %665 = vmatpush.bf16.msra.mxu1 %v643_v44 }
  0x24   : > { %691 = vmatpush.bf16.msra.mxu3 %v643_v44 }
  0x26   : > { %679 = vmatpush.bf16.msra.mxu2 %v642_v49  ;;  %653 = vmatpush.bf16.msra.mxu0 %v642_v49 }
  0x27   : > { %666 = vmatpush.bf16.msra.mxu1 %v642_v49 }
  0x28   : > { %692 = vmatpush.bf16.msra.mxu3 %v642_v49 }
  0x29   : > { %3119 = vmatmul.msk.bf16.vlgmr.msrb.gmra.mxu0 %vm477_vm0, %v3521_v31  ;;  %3121 = vmatmul.msk.bf16.vlgmr.msrb.gmra.mxu2 %vm477_vm0, %v3523_v32 }
  0x2b   : > { %3122 = vmatmul.msk.bf16.vlgmr.msrb.gmra.mxu3 %vm477_vm0, %v3525_v33 }
  0x2c   : > { %3120 = vmatmul.msk.bf16.vlgmr.msrb.gmra.mxu1 %vm477_vm0, %v3527_v35 }
  0x39   : > { %3130 = vmatmul.msk.bf16.vlgmr.msra.gmra.mxu2 %vm477_vm0, %v3523_v32  ;;  %3128 = vmatmul.msk.bf16.vlgmr.msra.gmra.mxu0 %vm477_vm0, %v3521_v31 }
  0x3b   : > { %3131 = vmatmul.msk.bf16.vlgmr.msra.gmra.mxu3 %vm477_vm0, %v3525_v33 }
  0x3c   : > { %3129 = vmatmul.msk.bf16.vlgmr.msra.gmra.mxu1 %vm477_vm0, %v3527_v35 }
  0x96   : > { %v490_v50 = vpop.f32.mrf.mxu0 }
  0x97   : > { %v491_v1 = vadd.f32 %v3283_v61, %v490_v50 }
  0x99   : > { %v506_v51 = vpop.f32.mrf.mxu1  ;;  %v698_v11 = vpack.c.bf16 %v491_v1, %v491_v1 }
  0x9a   : > { %v507_v7 = vadd.f32 %v3283_v61, %v506_v51 }
  0x9c   : > { %v522_v52 = vpop.f32.mrf.mxu2  ;;  %v699_v17 = vpack.c.bf16 %v507_v7, %v507_v7 }
  0x9d   : > { %v523_v19 = vadd.f32 %v3283_v61, %v522_v52 }
  0x9e   : > { %v538_v53 = vpop.f32.mrf.mxu3  ;;  %v492_v54 = vpop.f32.mrf.mxu0 }
  0x9f   : > { %v539_v16 = vadd.f32 %v3283_v61, %v538_v53  ;;  %v700_v23 = vpack.c.bf16 %v523_v19, %v523_v19 }
  0xa1   : > { %v508_v55 = vpop.f32.mrf.mxu1  ;;  %v701_v22 = vpack.c.bf16 %v539_v16, %v539_v16 }
  0xa4   : > { %v524_v57 = vpop.f32.mrf.mxu2 }
  0xa6   : > { %v540_v58 = vpop.f32.mrf.mxu3  ;;  %v577_v59 = vpop.f32.mrf.mxu0 }
  0xa7   : > { %v578_v60 = vadd.f32 %v3284_v56, %v577_v59 }
  0xa9   : > { %v702_v62 = vpack.c.bf16 %v578_v60, %v578_v60  ;;  %v590_v63 = vpop.f32.mrf.mxu1 }
  0xaa   : > { %v591_v0 = vadd.f32 %v3284_v56, %v590_v63 }
  0xab   : > { %v711_v2 = vsel %vm706_vm1, %v702_v62, 0 }
  0xac   : > { %v603_v3 = vpop.f32.mrf.mxu2  ;;  %720 = vmatpush.bf16.xpose.msrb.mxu0 %v711_v2  ;;  %v703_v4 = vpack.c.bf16 %v591_v0, %v591_v0 }
  0xad   : > { %v604_v5 = vadd.f32 %v3284_v56, %v603_v3 }
  0xae   : > { %v616_v6 = vpop.f32.mrf.mxu3  ;;  %v730_v9 = vsel %vm706_vm1, %v703_v4, 0  ;;  %v579_v10 = vpop.f32.mrf.mxu0 }
  0xaf   : > { %v617_v8 = vadd.f32 %v3284_v56, %v616_v6  ;;  %v704_v12 = vpack.c.bf16 %v604_v5, %v604_v5  ;;  %739 = vmatpush.bf16.xpose.msrb.mxu1 %v730_v9 }
  0xb1   : > { %v705_v13 = vpack.c.bf16 %v617_v8, %v617_v8  ;;  %v749_v14 = vsel %vm706_vm1, %v704_v12, 0  ;;  %v592_v15 = vpop.f32.mrf.mxu1 }
  0xb2   : > { %758 = vmatpush.bf16.xpose.msrb.mxu2 %v749_v14 }
  0xb3   : > { %v768_v18 = vsel %vm706_vm1, %v705_v13, 0  ;;  %3132 = vmatmul.msk.bf16.vlgmr.msrb.gmra.mxu0 %vm706_vm1, %v698_v11 }
  0xb4   : > { %777 = vmatpush.bf16.xpose.msrb.mxu3 %v768_v18  ;;  %v605_v20 = vpop.f32.mrf.mxu2 }
  0xb6   : > { %v618_v21 = vpop.f32.mrf.mxu3  ;;  %3133 = vmatmul.msk.bf16.vlgmr.msrb.gmra.mxu1 %vm706_vm1, %v699_v17  ;;  %v655_v25 = vpop.f32.mrf.mxu0 }
  0xb7   : > { %v656_v26 = vadd.f32 %v3285_v24, %v655_v25  ;;  %v3142_v21 = vld [vmem:[%s4148_s1 + $0x30] sm:$0xff] }
  0xb9   : > { %3134 = vmatmul.msk.bf16.vlgmr.msrb.gmra.mxu2 %vm706_vm1, %v700_v23  ;;  %v835_v27 = vpack.c.bf16 %v656_v26, %v656_v26  ;;  %v668_v39 = vpop.f32.mrf.mxu1  ;;  %v929_v23 = vpack.c.bf16 %v3142_v21, %v3142_v21 }
  0xba   : > { %v669_v41 = vadd.f32 %v3285_v24, %v668_v39 }
  0xbb   : > { %3135 = vmatmul.msk.bf16.vlgmr.msrb.gmra.mxu3 %vm706_vm1, %v701_v22  ;;  %v844_v28 = vsel %vm842_vm2, %v835_v27, 0  ;;  %v3143_v22 = vld [vmem:[%s4148_s1 + $0x38] sm:$0xff]  ;;  %v942_v25 = vunpack.c.l.b16 %v929_v23  ;;  %v3140_v27 = vld [vmem:[%s4148_s1 + $0x20] sm:$0xff] }
  0xbc   : > { %v681_v29 = vpop.f32.mrf.mxu2  ;;  %853 = vmatpush.bf16.msra.mxu0 %v844_v28  ;;  %v836_v43 = vpack.c.bf16 %v669_v41, %v669_v41  ;;  %v3141_v28 = vld [vmem:[%s4148_s1 + $0x28] sm:$0xff] }
  0xbd   : > { %v682_v30 = vadd.f32 %v3285_v24, %v681_v29 }
  0xbe   : > { %v657_v34 = vpop.f32.mrf.mxu0  ;;  %v694_v40 = vpop.f32.mrf.mxu3  ;;  %v863_v45 = vsel %vm842_vm2, %v836_v43, 0  ;;  %v3151_v43 = vld [vmem:[%s4148_s1 + $0xb0] sm:$0xff] }
  0xbf   : > { %v837_v36 = vpack.c.bf16 %v682_v30, %v682_v30  ;;  %v695_v42 = vadd.f32 %v3285_v24, %v694_v40  ;;  %872 = vmatpush.bf16.msra.mxu1 %v863_v45  ;;  %v930_v24 = vpack.c.bf16 %v3143_v22, %v3143_v22  ;;  %v927_v30 = vpack.c.bf16 %v3140_v27, %v3140_v27 }
  0xc0   : > { %v928_v34 = vpack.c.bf16 %v3141_v28, %v3141_v28  ;;  %v1007_v45 = vpack.c.bf16 %v3151_v43, %v3151_v43 }
  0xc1   : > { %v882_v37 = vsel %vm842_vm2, %v837_v36, 0  ;;  %v838_v44 = vpack.c.bf16 %v695_v42, %v695_v42  ;;  %v670_v47 = vpop.f32.mrf.mxu1  ;;  %v943_v26 = vunpack.c.l.b16 %v930_v24 }
  0xc2   : > { %891 = vmatpush.bf16.msra.mxu2 %v882_v37  ;;  %v940_v37 = vunpack.c.l.b16 %v927_v30  ;;  %v3287_v30 = vld [vmem:[%s4149_s2 + $0x5] ss:$0 sm:$0xff] }
  0xc3   : > { %v901_v46 = vsel %vm842_vm2, %v838_v44, 0  ;;  %v945_v29 = vpack.c.b16 %v943_v26, %v942_v25  ;;  %v3152_v44 = vld [vmem:[%s4148_s1 + $0xb8] sm:$0xff] }
  0xc4   : > { %v683_v38 = vpop.f32.mrf.mxu2  ;;  %910 = vmatpush.bf16.msra.mxu3 %v901_v46  ;;  %v1008_v46 = vpack.c.bf16 %v3152_v44, %v3152_v44 }
  0xc5   : > { %v941_v38 = vunpack.c.l.b16 %v928_v34  ;;  %954 = vmatpush.bf16.msrb.mxu0 %v945_v29  ;;  %967 = vmatpush.bf16.msrb.mxu1 %v945_v29 }
  0xc6   : > { %v696_v48 = vpop.f32.mrf.mxu3  ;;  %980 = vmatpush.bf16.msrb.mxu2 %v945_v29 }
  0xc7   : > { %v944_v39 = vpack.c.b16 %v941_v38, %v940_v37  ;;  %v1020_v48 = vunpack.c.l.b16 %v1007_v45  ;;  %v3286_v37 = vld [vmem:[%s4149_s2 + $0x1] ss:$0 sm:$0xff] }
  0xc8   : > { %993 = vmatpush.bf16.msrb.mxu3 %v945_v29 }
  0xc9   : > { %955 = vmatpush.bf16.msrb.mxu0 %v944_v39  ;;  %968 = vmatpush.bf16.msrb.mxu1 %v944_v39 }
  0xca   : > { %981 = vmatpush.bf16.msrb.mxu2 %v944_v39 }
  0xcc   : > { %994 = vmatpush.bf16.msrb.mxu3 %v944_v39 }
 0x130   : > { %v722_v49 = vpop.f32.mrf.mxu0 }
 0x131   : > { %v783_v50 = vmul.f32 0.35355338, %v722_v49  ;;  %v1021_v49 = vunpack.c.l.b16 %v1008_v46 }
 0x133   : > { %v787_v51 = vsel %vm706_vm1, %v783_v50, -inf  ;;  %v741_v52 = vpop.f32.mrf.mxu1 }
 0x134   : > { %788 = vmax.xlane.f32.xlu2 %v787_v51  ;;  %v784_v53 = vmul.f32 0.35355338, %v741_v52  ;;  %v3150_v51 = vld [vmem:[%s4148_s1 + $0xa8] sm:$0xff]  ;;  %v1023_v52 = vpack.c.b16 %v1021_v49, %v1020_v48 }
 0x136   : > { %v790_v55 = vsel %vm706_vm1, %v784_v53, -inf }
 0x138   : > { %v724_v54 = vpop.f32.mrf.mxu0 }
 0x139   : > { %v1006_v54 = vpack.c.bf16 %v3150_v51, %v3150_v51 }
 0x13b   : > { %v743_v56 = vpop.f32.mrf.mxu1 }
 0x13c   : > { %v760_v57 = vpop.f32.mrf.mxu2  ;;  %791 = vmax.xlane.f32.xlu2 %v790_v55  ;;  %v1019_v56 = vunpack.c.l.b16 %v1006_v54 }
 0x13d   : > { %v785_v58 = vmul.f32 0.35355338, %v760_v57 }
 0x13e   : > { %v779_v59 = vpop.f32.mrf.mxu3 }
 0x13f   : > { %v793_v60 = vsel %vm706_vm1, %v785_v58, -inf  ;;  %v786_v61 = vmul.f32 0.35355338, %v779_v59 }
 0x140   : > { %794 = vmax.xlane.f32.xlu0 %v793_v60 }
 0x141   : > { %v796_v63 = vsel %vm706_vm1, %v786_v61, -inf }
 0x144   : > { %v762_v62 = vpop.f32.mrf.mxu2 }
 0x146   : > { %v781_v0 = vpop.f32.mrf.mxu3 }
 0x148   : > { %797 = vmax.xlane.f32.xlu0 %v796_v63 }
 0x1a7   : > { %v789_v1 = vpop.xlane.xlu2 %788 }
 0x1a8   : > { %v799_v2 = vsub.f32 %v783_v50, %v789_v1  ;;  %v3149_v50 = vld [vmem:[%s4148_s1 + $0xa0] sm:$0xff] }
 0x1aa   : > { %v803_v3 = vmul.f32 1.442695, %v799_v2 }
 0x1ac   : > { %3302 = vpow2.f32 %v803_v3 }
 0x1af   : > { %v792_v9 = vpop.xlane.xlu2 %791 }
 0x1b0   : > { %v800_v13 = vsub.f32 %v784_v53, %v792_v9  ;;  %v1005_v53 = vpack.c.bf16 %v3149_v50, %v3149_v50 }
 0x1b2   : > { %v3303_v4 = vpop.eup %3302  ;;  %v805_v16 = vmul.f32 1.442695, %v800_v13  ;;  %v1018_v55 = vunpack.c.l.b16 %v1005_v53 }
 0x1b3   : > { %v795_v5 = vpop.xlane.xlu0 %794  ;;  %v811_v6 = vsel %vm706_vm1, %v3303_v4, 0.0 }
 0x1b4   : > { %v801_v7 = vsub.f32 %v785_v58, %v795_v5  ;;  %812 = vadd.xlane.f32.xlu0 %v811_v6  ;;  %v1022_v58 = vpack.c.b16 %v1019_v56, %v1018_v55  ;;  %v3160_v5 = vld [vmem:[%s4148_s1 + $0x130] sm:$0xff]  ;;  %v3161_v6 = vld [vmem:[%s4148_s1 + $0x138] sm:$0xff] }
 0x1b6   : > { %v807_v8 = vmul.f32 1.442695, %v801_v7  ;;  %v1085_v7 = vpack.c.bf16 %v3160_v5, %v3160_v5  ;;  %v3288_v5 = vld [vmem:[%s4149_s2 + $0x9] ss:$0 sm:$0xff] }
 0x1b8   : > { %3304 = vpow2.f32 %v807_v8  ;;  %v1086_v8 = vpack.c.bf16 %v3161_v6, %v3161_v6  ;;  %v1098_v9 = vunpack.c.l.b16 %v1085_v7 }
 0x1bb   : > { %v798_v10 = vpop.xlane.xlu0 %797 }
 0x1bc   : > { %v802_v11 = vsub.f32 %v786_v61, %v798_v10  ;;  %v1099_v10 = vunpack.c.l.b16 %v1086_v8 }
 0x1be   : > { %v3305_v12 = vpop.eup %3304  ;;  %v809_v14 = vmul.f32 1.442695, %v802_v11  ;;  %v3158_v11 = vld [vmem:[%s4148_s1 + $0x120] sm:$0xff]  ;;  %v1101_v13 = vpack.c.b16 %v1099_v10, %v1098_v9 }
 0x1bf   : > { %v817_v15 = vsel %vm706_vm1, %v3305_v12, 0.0 }
 0x1c0   : > { %3306 = vpow2.f32 %v809_v14  ;;  %818 = vadd.xlane.f32.xlu1 %v817_v15  ;;  %v1083_v14 = vpack.c.bf16 %v3158_v11, %v3158_v11 }
 0x1c1   : > { %3308 = vpow2.f32 %v805_v16 }
 0x1c6   : > { %v3307_v17 = vpop.eup %3306 }
 0x1c7   : > { %v820_v18 = vsel %vm706_vm1, %v3307_v17, 0.0  ;;  %v3593_v19 = vpop.eup %3308 }
 0x1c8   : > { %821 = vadd.xlane.f32.xlu1 %v820_v18  ;;  %v814_v20 = vsel %vm706_vm1, %v3593_v19, 0.0 }
 0x1d0   : > { %815 = vadd.xlane.f32.xlu1 %v814_v20 }
 0x227   : > { %v813_v36 = vpop.xlane.xlu0 %812 }
 0x228   : > { %3310 = vrcp.f32 %v813_v36 }
 0x22e   : > { %v3311_v40 = vpop.eup %3310 }
 0x22f   : > { %v827_v41 = vmul.f32 %v3311_v40, %v3303_v4 }
 0x231   : > { %v831_v42 = vpack.c.bf16 %v827_v41, %v827_v41 }
 0x233   : > { %v819_v47 = vpop.xlane.xlu1 %818  ;;  %3136 = vmatmul.msk.bf16.vlgmr.msra.gmra.mxu0 %vm706_vm1, %v831_v42 }
 0x234   : > { %3312 = vrcp.f32 %v819_v47  ;;  %1032 = vmatpush.bf16.msra.mxu0 %v1023_v52 }
 0x238   : > { %1033 = vmatpush.bf16.msra.mxu0 %v1022_v58 }
 0x23a   : > { %v3313_v57 = vpop.eup %3312 }
 0x23b   : > { %v829_v59 = vmul.f32 %v3313_v57, %v3305_v12  ;;  %v822_v60 = vpop.xlane.xlu1 %821  ;;  %v3159_v12 = vld [vmem:[%s4148_s1 + $0x128] sm:$0xff] }
 0x23c   : > { %3314 = vrcp.f32 %v822_v60  ;;  %v1084_v15 = vpack.c.bf16 %v3159_v12, %v3159_v12 }
 0x23d   : > { %v833_v61 = vpack.c.bf16 %v829_v59, %v829_v59 }
 0x23e   : > { %v1097_v18 = vunpack.c.l.b16 %v1084_v15 }
 0x23f   : > { %3138 = vmatmul.msk.bf16.vlgmr.msra.gmra.mxu2 %vm706_vm1, %v833_v61 }
 0x240   : > { %1058 = vmatpush.bf16.msra.mxu2 %v1023_v52 }
 0x242   : > { %v3315_v62 = vpop.eup %3314 }
 0x243   : > { %v830_v63 = vmul.f32 %v3315_v62, %v3307_v17  ;;  %v816_v0 = vpop.xlane.xlu1 %815  ;;  %3145 = vmatmul.msk.bf16.vlgmr.msrb.gmra.mxu0 %vm477_vm0, %v3521_v31  ;;  %v1096_v17 = vunpack.c.l.b16 %v1083_v14 }
 0x244   : > { %3316 = vrcp.f32 %v816_v0  ;;  %1059 = vmatpush.bf16.msra.mxu2 %v1022_v58  ;;  %1110 = vmatpush.bf16.msrb.mxu0 %v1101_v13 }
 0x245   : > { %v834_v1 = vpack.c.bf16 %v830_v63, %v830_v63 }
 0x247   : > { %3139 = vmatmul.msk.bf16.vlgmr.msra.gmra.mxu3 %vm706_vm1, %v834_v1 }
 0x248   : > { %1071 = vmatpush.bf16.msra.mxu3 %v1023_v52 }
 0x24a   : > { %v3317_v2 = vpop.eup %3316 }
 0x24b   : > { %v828_v3 = vmul.f32 %v3317_v2, %v3593_v19  ;;  %v1100_v19 = vpack.c.b16 %v1097_v18, %v1096_v17 }
 0x24c   : > { %1072 = vmatpush.bf16.msra.mxu3 %v1022_v58 }
 0x24d   : > { %v832_v4 = vpack.c.bf16 %v828_v3, %v828_v3  ;;  %1111 = vmatpush.bf16.msrb.mxu0 %v1100_v19 }
 0x24f   : > { %3137 = vmatmul.msk.bf16.vlgmr.msra.gmra.mxu1 %vm706_vm1, %v832_v4  ;;  %3147 = vmatmul.msk.bf16.vlgmr.msrb.gmra.mxu2 %vm477_vm0, %v3523_v32 }
 0x250   : > { %1045 = vmatpush.bf16.msra.mxu1 %v1023_v52  ;;  %1136 = vmatpush.bf16.msrb.mxu2 %v1101_v13 }
 0x253   : > { %3154 = vmatmul.msk.bf16.vlgmr.msra.gmra.mxu0 %vm477_vm0, %v3521_v31 }
 0x254   : > { %1046 = vmatpush.bf16.msra.mxu1 %v1022_v58  ;;  %1137 = vmatpush.bf16.msrb.mxu2 %v1100_v19 }
 0x257   : > { %3148 = vmatmul.msk.bf16.vlgmr.msrb.gmra.mxu3 %vm477_vm0, %v3525_v33 }
 0x258   : > { %1149 = vmatpush.bf16.msrb.mxu3 %v1101_v13 }
 0x25c   : > { %1150 = vmatpush.bf16.msrb.mxu3 %v1100_v19 }
 0x25f   : > { %3156 = vmatmul.msk.bf16.vlgmr.msra.gmra.mxu2 %vm477_vm0, %v3523_v32  ;;  %3146 = vmatmul.msk.bf16.vlgmr.msrb.gmra.mxu1 %vm477_vm0, %v3527_v35 }
 0x260   : > { %1123 = vmatpush.bf16.msrb.mxu1 %v1101_v13 }
 0x263   : > { %3163 = vmatmul.msk.bf16.vlgmr.msrb.gmra.mxu0 %vm477_vm0, %v3521_v31 }
 0x264   : > { %1124 = vmatpush.bf16.msrb.mxu1 %v1100_v19 }
 0x267   : > { %3157 = vmatmul.msk.bf16.vlgmr.msra.gmra.mxu3 %vm477_vm0, %v3525_v33 }
 0x26f   : > { %3155 = vmatmul.msk.bf16.vlgmr.msra.gmra.mxu1 %vm477_vm0, %v3527_v35  ;;  %3165 = vmatmul.msk.bf16.vlgmr.msrb.gmra.mxu2 %vm477_vm0, %v3523_v32 }
 0x277   : > { %3166 = vmatmul.msk.bf16.vlgmr.msrb.gmra.mxu3 %vm477_vm0, %v3525_v33 }
 0x27f   : > { %3164 = vmatmul.msk.bf16.vlgmr.msrb.gmra.mxu1 %vm477_vm0, %v3527_v35 }
 0x2b0   : > { %v3654_v16 = vpop.f32.mrf.mxu0 }
 0x2b8   : > { %v857_v20 = vpop.f32.mrf.mxu0 }
 0x2c0   : > { %v957_v22 = vpop.f32.mrf.mxu0 }
 0x2c1   : > { %v958_v41 = vadd.f32 %v3286_v37, %v957_v22 }
 0x2c2   : > { %v3664_v21 = vpop.f32.mrf.mxu2 }
 0x2c3   : > { %v1156_v45 = vpack.c.bf16 %v958_v41, %v958_v41 }
 0x2c8   : > { %v959_v26 = vpop.f32.mrf.mxu0 }
 0x2ca   : > { %v895_v23 = vpop.f32.mrf.mxu2  ;;  %v3666_v24 = vpop.f32.mrf.mxu3 }
 0x2cc   : > { %v3668_v25 = vpop.f32.mrf.mxu1 }
 0x2d0   : > { %v1035_v34 = vpop.f32.mrf.mxu0 }
 0x2d1   : > { %v1036_v36 = vadd.f32 %v3287_v30, %v1035_v34 }
 0x2d2   : > { %v914_v27 = vpop.f32.mrf.mxu3  ;;  %v983_v28 = vpop.f32.mrf.mxu2 }
 0x2d3   : > { %v1160_v40 = vpack.c.bf16 %v1036_v36, %v1036_v36  ;;  %v984_v52 = vadd.f32 %v3286_v37, %v983_v28 }
 0x2d4   : > { %v876_v29 = vpop.f32.mrf.mxu1 }
 0x2d5   : > { %v1168_v42 = vsel %vm706_vm1, %v1160_v40, 0  ;;  %v1158_v57 = vpack.c.bf16 %v984_v52, %v984_v52 }
 0x2d6   : > { %1177 = vmatpush.bf16.xpose.msra.mxu0 %v1168_v42 }
 0x2d8   : > { %v1037_v44 = vpop.f32.mrf.mxu0 }
 0x2da   : > { %v985_v38 = vpop.f32.mrf.mxu2  ;;  %v996_v39 = vpop.f32.mrf.mxu3 }
 0x2db   : > { %v997_v60 = vadd.f32 %v3286_v37, %v996_v39 }
 0x2dc   : > { %v970_v43 = vpop.f32.mrf.mxu1 }
 0x2dd   : > { %3167 = vmatmul.msk.bf16.vlgmr.msra.gmra.mxu0 %vm706_vm1, %v1156_v45  ;;  %v971_v63 = vadd.f32 %v3286_v37, %v970_v43  ;;  %v1159_v2 = vpack.c.bf16 %v997_v60, %v997_v60 }
 0x2df   : > { %v1157_v4 = vpack.c.bf16 %v971_v63, %v971_v63 }
 0x2e0   : > { %v1113_v6 = vpop.f32.mrf.mxu0 }
 0x2e1   : > { %v1114_v7 = vadd.f32 %v3288_v5, %v1113_v6 }
 0x2e2   : > { %v998_v46 = vpop.f32.mrf.mxu3  ;;  %v1061_v47 = vpop.f32.mrf.mxu2 }
 0x2e3   : > { %v1062_v48 = vadd.f32 %v3287_v30, %v1061_v47  ;;  %v1292_v8 = vpack.c.bf16 %v1114_v7, %v1114_v7 }
 0x2e4   : > { %v972_v49 = vpop.f32.mrf.mxu1 }
 0x2e5   : > { %v1162_v50 = vpack.c.bf16 %v1062_v48, %v1062_v48  ;;  %v1300_v11 = vsel %vm842_vm2, %v1292_v8, 0 }
 0x2e6   : > { %1309 = vmatpush.bf16.msrb.mxu0 %v1300_v11 }
 0x2e7   : > { %v1206_v51 = vsel %vm706_vm1, %v1162_v50, 0 }
 0x2e8   : > { %1215 = vmatpush.bf16.xpose.msra.mxu2 %v1206_v51  ;;  %v1115_v17 = vpop.f32.mrf.mxu0 }
 0x2ea   : > { %v1063_v53 = vpop.f32.mrf.mxu2  ;;  %v1074_v54 = vpop.f32.mrf.mxu3 }
 0x2eb   : > { %v1075_v55 = vadd.f32 %v3287_v30, %v1074_v54 }
 0x2ec   : > { %v1048_v56 = vpop.f32.mrf.mxu1 }
 0x2ed   : > { %v1163_v58 = vpack.c.bf16 %v1075_v55, %v1075_v55  ;;  %v1049_v59 = vadd.f32 %v3287_v30, %v1048_v56 }
 0x2ef   : > { %v1225_v61 = vsel %vm706_vm1, %v1163_v58, 0  ;;  %3169 = vmatmul.msk.bf16.vlgmr.msra.gmra.mxu2 %vm706_vm1, %v1158_v57  ;;  %v1161_v62 = vpack.c.bf16 %v1049_v59, %v1049_v59 }
 0x2f0   : > { %1234 = vmatpush.bf16.xpose.msra.mxu3 %v1225_v61 }
 0x2f1   : > { %v1187_v0 = vsel %vm706_vm1, %v1161_v62, 0 }
 0x2f2   : > { %v1076_v1 = vpop.f32.mrf.mxu3  ;;  %1196 = vmatpush.bf16.xpose.msra.mxu1 %v1187_v0  ;;  %v1139_v9 = vpop.f32.mrf.mxu2 }
 0x2f3   : > { %v1140_v12 = vadd.f32 %v3288_v5, %v1139_v9 }
 0x2f4   : > { %v1050_v3 = vpop.f32.mrf.mxu1 }
 0x2f5   : > { %v1294_v14 = vpack.c.bf16 %v1140_v12, %v1140_v12 }
 0x2f7   : > { %3170 = vmatmul.msk.bf16.vlgmr.msra.gmra.mxu3 %vm706_vm1, %v1159_v2  ;;  %v1338_v18 = vsel %vm842_vm2, %v1294_v14, 0 }
 0x2f8   : > { %1347 = vmatpush.bf16.msrb.mxu2 %v1338_v18 }
 0x2f9   : > { %3168 = vmatmul.msk.bf16.vlgmr.msra.gmra.mxu1 %vm706_vm1, %v1157_v4 }
 0x2fa   : > { %v1152_v10 = vpop.f32.mrf.mxu3  ;;  %v1141_v20 = vpop.f32.mrf.mxu2 }
 0x2fb   : > { %v1153_v13 = vadd.f32 %v3288_v5, %v1152_v10 }
 0x2fc   : > { %v1126_v26 = vpop.f32.mrf.mxu1 }
 0x2fd   : > { %v1295_v15 = vpack.c.bf16 %v1153_v13, %v1153_v13  ;;  %v1127_v27 = vadd.f32 %v3288_v5, %v1126_v26 }
 0x2ff   : > { %v1357_v19 = vsel %vm842_vm2, %v1295_v15, 0  ;;  %v1293_v28 = vpack.c.bf16 %v1127_v27, %v1127_v27 }
 0x300   : > { %1366 = vmatpush.bf16.msrb.mxu3 %v1357_v19  ;;  %v3175_v19 = vld [vmem:[%s4150_s3 + $0x8] sm:$0xff] }
 0x301   : > { %v1319_v30 = vsel %vm842_vm2, %v1293_v28, 0  ;;  %v1374_v20 = vpack.c.bf16 %v3175_v19, %v3175_v19  ;;  %v3186_v28 = vld [vmem:[%s4148_s1 + $0x50] sm:$0xff]  ;;  %v3202_v19 = vld [vmem:[%s4148_s1 + $0x140] sm:$0xff] }
 0x302   : > { %v1154_v22 = vpop.f32.mrf.mxu3  ;;  %1328 = vmatpush.bf16.msrb.mxu1 %v1319_v30  ;;  %v1520_v30 = vpack.c.bf16 %v3186_v28, %v3186_v28 }
 0x303   : > { %v1383_v22 = vsel %vm842_vm2, %v1374_v20, 0  ;;  %v3203_v20 = vld [vmem:[%s4148_s1 + $0x148] sm:$0xff] }
 0x304   : > { %v1128_v34 = vpop.f32.mrf.mxu1  ;;  %1424 = vmatpush.bf16.msra.mxu2 %v1383_v22  ;;  %1440 = vmatpush.bf16.msra.mxu3 %v1383_v22  ;;  %v1675_v28 = vpack.c.bf16 %v3203_v20, %v3203_v20 }
 0x305   : > { %1392 = vmatpush.bf16.msra.mxu0 %v1383_v22 }
 0x306   : > { %1408 = vmatpush.bf16.msra.mxu1 %v1383_v22 }
 0x35a   : > { %v1179_v23 = vpop.f32.mrf.mxu0 }
 0x35b   : > { %v1240_v45 = vmul.f32 0.35355338, %v1179_v23  ;;  %v916_v23 = vld [vmem:[%s4150_s3] sm:$0xff] }
 0x35c   : > { %v917_v26 = vpack.c.bf16 %v916_v23, %v916_v23 }
 0x35d   : > { %v1244_v47 = vsel %vm706_vm1, %v1240_v45, -inf }
 0x35e   : > { %v1450_v27 = vsel %vm842_vm2, %v917_v26, 0 }
 0x362   : > { %v1181_v29 = vpop.f32.mrf.mxu0 }
 0x363   : > { %v3187_v29 = vld [vmem:[%s4148_s1 + $0x58] sm:$0xff] }
 0x364   : > { %v1521_v34 = vpack.c.bf16 %v3187_v29, %v3187_v29 }
 0x372   : > { %v1217_v36 = vpop.f32.mrf.mxu2 }
 0x373   : > { %v1242_v37 = vmul.f32 0.35355338, %v1217_v36 }
 0x375   : > { %v1250_v38 = vsel %vm706_vm1, %v1242_v37, -inf }
 0x376   : > { %1251 = vmax.xlane.f32.xlu2 %v1250_v38  ;;  %v1198_v39 = vpop.f32.mrf.mxu1  ;;  %v3185_v38 = vld [vmem:[%s4148_s1 + $0x48] sm:$0xff] }
 0x377   : > { %v1241_v56 = vmul.f32 0.35355338, %v1198_v39  ;;  %v1533_v39 = vunpack.c.l.b16 %v1520_v30  ;;  %v1688_v30 = vunpack.c.l.b16 %v1675_v28 }
 0x379   : > { %v1247_v62 = vsel %vm706_vm1, %v1241_v56, -inf }
 0x37a   : > { %v1219_v40 = vpop.f32.mrf.mxu2  ;;  %v1236_v41 = vpop.f32.mrf.mxu3 }
 0x37b   : > { %v1243_v42 = vmul.f32 0.35355338, %v1236_v41  ;;  %v1534_v40 = vunpack.c.l.b16 %v1521_v34 }
 0x37d   : > { %v1253_v43 = vsel %vm706_vm1, %v1243_v42, -inf }
 0x37e   : > { %1254 = vmax.xlane.f32.xlu0 %v1253_v43  ;;  %v1200_v44 = vpop.f32.mrf.mxu1 }
 0x382   : > { %v1238_v46 = vpop.f32.mrf.mxu3 }
 0x386   : > { %1245 = vmax.xlane.f32.xlu0 %v1244_v47 }
 0x3e9   : > { %v1252_v48 = vpop.xlane.xlu2 %1251 }
 0x3ea   : > { %v1258_v49 = vsub.f32 %v1242_v37, %v1252_v48  ;;  %v3184_v37 = vld [vmem:[%s4148_s1 + $0x40] sm:$0xff] }
 0x3eb   : > { %v1518_v41 = vpack.c.bf16 %v3184_v37, %v3184_v37 }
 0x3ec   : > { %v1264_v50 = vmul.f32 1.442695, %v1258_v49 }
 0x3ed   : > { %v1531_v46 = vunpack.c.l.b16 %v1518_v41 }
 0x3ee   : > { %3318 = vpow2.f32 %v1264_v50 }
 0x3f1   : > { %v1255_v51 = vpop.xlane.xlu0 %1254 }
 0x3f2   : > { %v1259_v52 = vsub.f32 %v1243_v42, %v1255_v51  ;;  %v1519_v42 = vpack.c.bf16 %v3185_v38, %v3185_v38 }
 0x3f4   : > { %v3319_v53 = vpop.eup %3318  ;;  %v1266_v54 = vmul.f32 1.442695, %v1259_v52  ;;  %v1532_v47 = vunpack.c.l.b16 %v1519_v42  ;;  %v3195_v52 = vld [vmem:[%s4148_s1 + $0xd0] sm:$0xff] }
 0x3f5   : > { %v1274_v55 = vsel %vm706_vm1, %v3319_v53, 0.0 }
 0x3f6   : > { %3320 = vpow2.f32 %v1266_v54  ;;  %1275 = vadd.xlane.f32.xlu1 %v1274_v55  ;;  %v3723_v51 = vpack.c.b16 %v1532_v47, %v1531_v46 }
 0x3f9   : > { %v1246_v57 = vpop.xlane.xlu0 %1245 }
 0x3fa   : > { %v1256_v58 = vsub.f32 %v1240_v45, %v1246_v57  ;;  %v1536_v45 = vpack.c.b16 %v1534_v40, %v1533_v39  ;;  %v919_v39 = vpack.c.bf16 %v3668_v25, %v3668_v25 }
 0x3fc   : > { %v3321_v59 = vpop.eup %3320  ;;  %v1260_v60 = vmul.f32 1.442695, %v1256_v58 }
 0x3fd   : > { %v1277_v61 = vsel %vm706_vm1, %v3321_v59, 0.0 }
 0x3fe   : > { %3322 = vpow2.f32 %v1260_v60  ;;  %1278 = vadd.xlane.f32.xlu2 %v1277_v61  ;;  %1248 = vmax.xlane.f32.xlu1 %v1247_v62  ;;  %v3194_v60 = vld [vmem:[%s4148_s1 + $0xc8] sm:$0xff] }
 0x404   : > { %v3323_v63 = vpop.eup %3322 }
 0x405   : > { %v1268_v0 = vsel %vm706_vm1, %v3323_v63, 0.0 }
 0x406   : > { %1269 = vadd.xlane.f32.xlu2 %v1268_v0 }
 0x469   : > { %v1276_v1 = vpop.xlane.xlu1 %1275 }
 0x46a   : > { %3324 = vrcp.f32 %v1276_v1 }
 0x470   : > { %v3325_v2 = vpop.eup %3324 }
 0x471   : > { %v1286_v3 = vmul.f32 %v3325_v2, %v3319_v53  ;;  %v1249_v4 = vpop.xlane.xlu1 %1248  ;;  %v1279_v5 = vpop.xlane.xlu2 %1278  ;;  %v3196_v53 = vld [vmem:[%s4148_s1 + $0xd8] sm:$0xff]  ;;  %v1597_v2 = vpack.c.bf16 %v3194_v60, %v3194_v60 }
 0x472   : > { %v1257_v6 = vsub.f32 %v1241_v56, %v1249_v4  ;;  %3326 = vrcp.f32 %v1279_v5  ;;  %v1598_v56 = vpack.c.bf16 %v3195_v52, %v3195_v52  ;;  %v1599_v57 = vpack.c.bf16 %v3196_v53, %v3196_v53 }
 0x473   : > { %v1290_v7 = vpack.c.bf16 %v1286_v3, %v1286_v3 }
 0x474   : > { %v1262_v8 = vmul.f32 1.442695, %v1257_v6  ;;  %v1612_v0 = vunpack.c.l.b16 %v1599_v57  ;;  %v1610_v6 = vunpack.c.l.b16 %v1597_v2  ;;  %v3289_v57 = vld [vmem:[%s4149_s2 + $0x2] ss:$0 sm:$0xff] }
 0x475   : > { %3173 = vmatmul.msk.bf16.vlgmr.msrb.gmra.mxu2 %vm706_vm1, %v1290_v7  ;;  %v920_v7 = vpack.c.bf16 %v3664_v21, %v3664_v21 }
 0x476   : > { %3328 = vpow2.f32 %v1262_v8  ;;  %1491 = vmatpush.bf16.msrb.mxu2 %v1450_v27 }
 0x478   : > { %v3327_v9 = vpop.eup %3326 }
 0x479   : > { %v1287_v10 = vmul.f32 %v3327_v9, %v3321_v59  ;;  %v1270_v11 = vpop.xlane.xlu2 %1269  ;;  %v3193_v59 = vld [vmem:[%s4148_s1 + $0xc0] sm:$0xff] }
 0x47a   : > { %3330 = vrcp.f32 %v1270_v11  ;;  %v1596_v1 = vpack.c.bf16 %v3193_v59, %v3193_v59  ;;  %v918_v11 = vpack.c.bf16 %v3654_v16, %v3654_v16 }
 0x47b   : > { %v1291_v12 = vpack.c.bf16 %v1287_v10, %v1287_v10  ;;  %v921_v10 = vpack.c.bf16 %v3666_v24, %v3666_v24  ;;  %v3204_v24 = vld [vmem:[%s4148_s1 + $0x150] sm:$0xff] }
 0x47c   : > { %v3329_v13 = vpop.eup %3328  ;;  %v1609_v5 = vunpack.c.l.b16 %v1596_v1 }
 0x47d   : > { %3174 = vmatmul.msk.bf16.vlgmr.msrb.gmra.mxu3 %vm706_vm1, %v1291_v12  ;;  %v1271_v14 = vsel %vm706_vm1, %v3329_v13, 0.0  ;;  %v3205_v12 = vld [vmem:[%s4148_s1 + $0x158] sm:$0xff] }
 0x47e   : > { %1272 = vadd.xlane.f32.xlu0 %v1271_v14  ;;  %1507 = vmatpush.bf16.msrb.mxu3 %v1450_v27  ;;  %v1613_v9 = vpack.c.b16 %v1610_v6, %v1609_v5  ;;  %v1676_v14 = vpack.c.bf16 %v3204_v24, %v3204_v24 }
 0x480   : > { %v3331_v15 = vpop.eup %3330 }
 0x481   : > { %v1284_v17 = vmul.f32 %v3331_v15, %v3323_v63  ;;  %v1611_v63 = vunpack.c.l.b16 %v1598_v56  ;;  %v1677_v15 = vpack.c.bf16 %v3205_v12, %v3205_v12 }
 0x483   : > { %v1288_v18 = vpack.c.bf16 %v1284_v17, %v1284_v17  ;;  %v1614_v4 = vpack.c.b16 %v1612_v0, %v1611_v63  ;;  %v1689_v17 = vunpack.c.l.b16 %v1676_v14 }
 0x485   : > { %3171 = vmatmul.msk.bf16.vlgmr.msrb.gmra.mxu0 %vm706_vm1, %v1288_v18  ;;  %v1690_v18 = vunpack.c.l.b16 %v1677_v15 }
 0x486   : > { %1459 = vmatpush.bf16.msrb.mxu0 %v1450_v27 }
 0x487   : > { %v1692_v26 = vpack.c.b16 %v1690_v18, %v1689_v17  ;;  %v3291_v18 = vld [vmem:[%s4149_s2 + $0xa] ss:$0 sm:$0xff] }
 0x4f1   : > { %v1273_v36 = vpop.xlane.xlu0 %1272 }
 0x4f2   : > { %3332 = vrcp.f32 %v1273_v36 }
 0x4f8   : > { %v3333_v43 = vpop.eup %3332  ;;  %v1349_v44 = vpop.f32.mrf.mxu2 }
 0x4f9   : > { %v1285_v48 = vmul.f32 %v3333_v43, %v3329_v13  ;;  %v1377_v49 = vpack.c.bf16 %v1349_v44, %v1349_v44 }
 0x4fb   : > { %v1289_v50 = vpack.c.bf16 %v1285_v48, %v1285_v48  ;;  %3178 = vmatmul.msk.bf16.vlgmr.msra.gmra.mxu2 %vm706_vm1, %v1377_v49 }
 0x4fc   : > { %1571 = vmatpush.bf16.msra.mxu2 %v1536_v45 }
 0x4fd   : > { %3172 = vmatmul.msk.bf16.vlgmr.msrb.gmra.mxu1 %vm706_vm1, %v1289_v50 }
 0x4fe   : > { %1475 = vmatpush.bf16.msrb.mxu1 %v1450_v27  ;;  %v1674_v27 = vpack.c.bf16 %v3202_v19, %v3202_v19 }
 0x500   : > { %v1351_v54 = vpop.f32.mrf.mxu2  ;;  %v1368_v55 = vpop.f32.mrf.mxu3  ;;  %1572 = vmatpush.bf16.msra.mxu2 %v3723_v51  ;;  %v1687_v29 = vunpack.c.l.b16 %v1674_v27 }
 0x501   : > { %v1378_v58 = vpack.c.bf16 %v1368_v55, %v1368_v55  ;;  %v3290_v54 = vld [vmem:[%s4149_s2 + $0x6] ss:$0 sm:$0xff] }
 0x502   : > { %v1311_v61 = vpop.f32.mrf.mxu0  ;;  %v1691_v37 = vpack.c.b16 %v1688_v30, %v1687_v29 }
 0x503   : > { %v1375_v62 = vpack.c.bf16 %v1311_v61, %v1311_v61  ;;  %3179 = vmatmul.msk.bf16.vlgmr.msra.gmra.mxu3 %vm706_vm1, %v1378_v58 }
 0x504   : > { %1584 = vmatpush.bf16.msra.mxu3 %v1536_v45 }
 0x505   : > { %3176 = vmatmul.msk.bf16.vlgmr.msra.gmra.mxu0 %vm706_vm1, %v1375_v62 }
 0x506   : > { %1545 = vmatpush.bf16.msra.mxu0 %v1536_v45 }
 0x508   : > { %v1370_v3 = vpop.f32.mrf.mxu3  ;;  %1585 = vmatpush.bf16.msra.mxu3 %v3723_v51 }
 0x50a   : > { %v1313_v8 = vpop.f32.mrf.mxu0  ;;  %1546 = vmatpush.bf16.msra.mxu0 %v3723_v51 }
 0x50b   : > { %3182 = vmatmul.msk.bf16.vlgmr.msrb.gmra.mxu2 %vm706_vm1, %v920_v7 }
 0x50c   : > { %1649 = vmatpush.bf16.msrb.mxu2 %v1614_v4 }
 0x510   : > { %1650 = vmatpush.bf16.msrb.mxu2 %v1613_v9 }
 0x513   : > { %3183 = vmatmul.msk.bf16.vlgmr.msrb.gmra.mxu3 %vm706_vm1, %v921_v10 }
 0x514   : > { %1662 = vmatpush.bf16.msrb.mxu3 %v1614_v4 }
 0x515   : > { %3180 = vmatmul.msk.bf16.vlgmr.msrb.gmra.mxu0 %vm706_vm1, %v918_v11 }
 0x516   : > { %1623 = vmatpush.bf16.msrb.mxu0 %v1614_v4 }
 0x518   : > { %1663 = vmatpush.bf16.msrb.mxu3 %v1613_v9 }
 0x51a   : > { %1624 = vmatpush.bf16.msrb.mxu0 %v1613_v9 }
 0x51b   : > { %3191 = vmatmul.msk.bf16.vlgmr.msra.gmra.mxu2 %vm477_vm0, %v3523_v32 }
 0x51c   : > { %1727 = vmatpush.bf16.msra.mxu2 %v1692_v26 }
 0x520   : > { %1728 = vmatpush.bf16.msra.mxu2 %v1691_v37 }
 0x523   : > { %3192 = vmatmul.msk.bf16.vlgmr.msra.gmra.mxu3 %vm477_vm0, %v3525_v33 }
 0x524   : > { %1740 = vmatpush.bf16.msra.mxu3 %v1692_v26 }
 0x525   : > { %3189 = vmatmul.msk.bf16.vlgmr.msra.gmra.mxu0 %vm477_vm0, %v3521_v31 }
 0x526   : > { %1701 = vmatpush.bf16.msra.mxu0 %v1692_v26 }
 0x528   : > { %1741 = vmatpush.bf16.msra.mxu3 %v1691_v37 }
 0x52a   : > { %1702 = vmatpush.bf16.msra.mxu0 %v1691_v37 }
 0x52b   : > { %3200 = vmatmul.msk.bf16.vlgmr.msrb.gmra.mxu2 %vm477_vm0, %v3523_v32 }
 0x533   : > { %3201 = vmatmul.msk.bf16.vlgmr.msrb.gmra.mxu3 %vm477_vm0, %v3525_v33 }
 0x535   : > { %3198 = vmatmul.msk.bf16.vlgmr.msrb.gmra.mxu0 %vm477_vm0, %v3521_v31 }
 0x53b   : > { %3209 = vmatmul.msk.bf16.vlgmr.msra.gmra.mxu2 %vm477_vm0, %v3523_v32 }
 0x543   : > { %3210 = vmatmul.msk.bf16.vlgmr.msra.gmra.mxu3 %vm477_vm0, %v3525_v33 }
 0x545   : > { %3207 = vmatmul.msk.bf16.vlgmr.msra.gmra.mxu0 %vm477_vm0, %v3521_v31 }
 0x57a   : > { %v1330_v16 = vpop.f32.mrf.mxu1 }
 0x57b   : > { %v1376_v21 = vpack.c.bf16 %v1330_v16, %v1330_v16 }
 0x57d   : > { %3177 = vmatmul.msk.bf16.vlgmr.msra.gmra.mxu1 %vm706_vm1, %v1376_v21 }
 0x57e   : > { %v1426_v13 = vpop.f32.mrf.mxu2  ;;  %1558 = vmatpush.bf16.msra.mxu1 %v1536_v45 }
 0x582   : > { %v1332_v22 = vpop.f32.mrf.mxu1  ;;  %v1394_v23 = vpop.f32.mrf.mxu0  ;;  %1559 = vmatpush.bf16.msra.mxu1 %v3723_v51 }
 0x586   : > { %v1428_v34 = vpop.f32.mrf.mxu2  ;;  %v1442_v36 = vpop.f32.mrf.mxu3 }
 0x58a   : > { %v1396_v38 = vpop.f32.mrf.mxu0 }
 0x58d   : > { %3181 = vmatmul.msk.bf16.vlgmr.msrb.gmra.mxu1 %vm706_vm1, %v919_v39 }
 0x58e   : > { %v1444_v40 = vpop.f32.mrf.mxu3  ;;  %v1493_v41 = vpop.f32.mrf.mxu2  ;;  %1636 = vmatpush.bf16.msrb.mxu1 %v1614_v4 }
 0x58f   : > { %v3787_v42 = vadd.f32 %v1493_v41, %v1426_v13 }
 0x592   : > { %v1461_v43 = vpop.f32.mrf.mxu0  ;;  %1637 = vmatpush.bf16.msrb.mxu1 %v1613_v9 }
 0x593   : > { %v3789_v44 = vadd.f32 %v1461_v43, %v1394_v23 }
 0x596   : > { %v1495_v25 = vpop.f32.mrf.mxu2  ;;  %v1509_v45 = vpop.f32.mrf.mxu3 }
 0x597   : > { %v3791_v46 = vadd.f32 %v1509_v45, %v1442_v36 }
 0x59a   : > { %v1463_v47 = vpop.f32.mrf.mxu0 }
 0x59d   : > { %3190 = vmatmul.msk.bf16.vlgmr.msra.gmra.mxu1 %vm477_vm0, %v3527_v35 }
 0x59e   : > { %v1511_v48 = vpop.f32.mrf.mxu3  ;;  %v1574_v49 = vpop.f32.mrf.mxu2  ;;  %1714 = vmatpush.bf16.msra.mxu1 %v1692_v26 }
 0x59f   : > { %v1575_v61 = vadd.f32 %v3289_v57, %v1574_v49 }
 0x5a1   : > { %v1749_v3 = vpack.c.bf16 %v1575_v61, %v1575_v61 }
 0x5a2   : > { %v1548_v50 = vpop.f32.mrf.mxu0  ;;  %1715 = vmatpush.bf16.msra.mxu1 %v1691_v37 }
 0x5a3   : > { %v1549_v4 = vadd.f32 %v3289_v57, %v1548_v50 }
 0x5a5   : > { %v1747_v9 = vpack.c.bf16 %v1549_v4, %v1549_v4 }
 0x5a6   : > { %v1576_v51 = vpop.f32.mrf.mxu2  ;;  %v1587_v52 = vpop.f32.mrf.mxu3 }
 0x5a7   : > { %v1588_v10 = vadd.f32 %v3289_v57, %v1587_v52 }
 0x5a9   : > { %v1750_v21 = vpack.c.bf16 %v1588_v10, %v1588_v10 }
 0x5aa   : > { %v1550_v53 = vpop.f32.mrf.mxu0 }
 0x5ad   : > { %3199 = vmatmul.msk.bf16.vlgmr.msrb.gmra.mxu1 %vm477_vm0, %v3527_v35 }
 0x5ae   : > { %v1589_v55 = vpop.f32.mrf.mxu3  ;;  %v1652_v56 = vpop.f32.mrf.mxu2 }
 0x5af   : > { %v1653_v58 = vadd.f32 %v3290_v54, %v1652_v56 }
 0x5b1   : > { %v1753_v59 = vpack.c.bf16 %v1653_v58, %v1653_v58 }
 0x5b2   : > { %v1626_v60 = vpop.f32.mrf.mxu0 }
 0x5b3   : > { %v1797_v62 = vsel %vm706_vm1, %v1753_v59, 0  ;;  %v1627_v63 = vadd.f32 %v3290_v54, %v1626_v60 }
 0x5b4   : > { %1806 = vmatpush.bf16.xpose.msrb.mxu2 %v1797_v62 }
 0x5b5   : > { %v1751_v0 = vpack.c.bf16 %v1627_v63, %v1627_v63 }
 0x5b6   : > { %v1665_v1 = vpop.f32.mrf.mxu3  ;;  %v1654_v2 = vpop.f32.mrf.mxu2 }
 0x5b7   : > { %v1759_v5 = vsel %vm706_vm1, %v1751_v0, 0  ;;  %v1666_v6 = vadd.f32 %v3290_v54, %v1665_v1 }
 0x5b8   : > { %1768 = vmatpush.bf16.xpose.msrb.mxu0 %v1759_v5 }
 0x5b9   : > { %v1754_v7 = vpack.c.bf16 %v1666_v6, %v1666_v6 }
 0x5ba   : > { %v1628_v8 = vpop.f32.mrf.mxu0 }
 0x5bb   : > { %v1816_v11 = vsel %vm706_vm1, %v1754_v7, 0  ;;  %3213 = vmatmul.msk.bf16.vlgmr.msrb.gmra.mxu2 %vm706_vm1, %v1749_v3 }
 0x5bc   : > { %1825 = vmatpush.bf16.xpose.msrb.mxu3 %v1816_v11 }
 0x5bd   : > { %3208 = vmatmul.msk.bf16.vlgmr.msra.gmra.mxu1 %vm477_vm0, %v3527_v35 }
 0x5be   : > { %v1667_v16 = vpop.f32.mrf.mxu3  ;;  %v1730_v17 = vpop.f32.mrf.mxu2 }
 0x5bf   : > { %3211 = vmatmul.msk.bf16.vlgmr.msrb.gmra.mxu0 %vm706_vm1, %v1747_v9  ;;  %v1731_v20 = vadd.f32 %v3291_v18, %v1730_v17 }
 0x5c1   : > { %v1885_v27 = vpack.c.bf16 %v1731_v20, %v1731_v20 }
 0x5c2   : > { %v1704_v15 = vpop.f32.mrf.mxu0 }
 0x5c3   : > { %3214 = vmatmul.msk.bf16.vlgmr.msrb.gmra.mxu3 %vm706_vm1, %v1750_v21  ;;  %v1705_v19 = vadd.f32 %v3291_v18, %v1704_v15  ;;  %v1929_v34 = vsel %vm842_vm2, %v1885_v27, 0 }
 0x5c4   : > { %1938 = vmatpush.bf16.msra.mxu2 %v1929_v34 }
 0x5c5   : > { %v1883_v26 = vpack.c.bf16 %v1705_v19, %v1705_v19 }
 0x5c6   : > { %v1743_v23 = vpop.f32.mrf.mxu3  ;;  %v1732_v37 = vpop.f32.mrf.mxu2 }
 0x5c7   : > { %v1744_v28 = vadd.f32 %v3291_v18, %v1743_v23  ;;  %v1891_v30 = vsel %vm842_vm2, %v1883_v26, 0 }
 0x5c8   : > { %1900 = vmatpush.bf16.msra.mxu0 %v1891_v30 }
 0x5c9   : > { %v1886_v36 = vpack.c.bf16 %v1744_v28, %v1744_v28 }
 0x5ca   : > { %v1706_v29 = vpop.f32.mrf.mxu0 }
 0x5cb   : > { %v1948_v38 = vsel %vm842_vm2, %v1886_v36, 0 }
 0x5cc   : > { %1957 = vmatpush.bf16.msra.mxu3 %v1948_v38 }
 0x5ce   : > { %v1745_v40 = vpop.f32.mrf.mxu3 }
 0x5fa   : > { %v1410_v24 = vpop.f32.mrf.mxu1 }
 0x602   : > { %v1412_v12 = vpop.f32.mrf.mxu1 }
 0x60a   : > { %v1477_v13 = vpop.f32.mrf.mxu1 }
 0x60b   : > { %v3811_v14 = vadd.f32 %v1477_v13, %v1410_v24 }
 0x612   : > { %v1479_v22 = vpop.f32.mrf.mxu1 }
 0x61a   : > { %v1561_v39 = vpop.f32.mrf.mxu1 }
 0x61b   : > { %v1562_v48 = vadd.f32 %v3289_v57, %v1561_v39 }
 0x61d   : > { %v1748_v50 = vpack.c.bf16 %v1562_v48, %v1562_v48  ;;  %v3219_v48 = vld [vmem:[%s4150_s3 + $0x10] sm:$0xff] }
 0x622   : > { %v1563_v41 = vpop.f32.mrf.mxu1 }
 0x62a   : > { %v1639_v43 = vpop.f32.mrf.mxu1 }
 0x62b   : > { %v1640_v25 = vadd.f32 %v3290_v54, %v1639_v43 }
 0x62d   : > { %v1752_v45 = vpack.c.bf16 %v1640_v25, %v1640_v25 }
 0x62f   : > { %v1778_v47 = vsel %vm706_vm1, %v1752_v45, 0 }
 0x630   : > { %1787 = vmatpush.bf16.xpose.msrb.mxu1 %v1778_v47 }
 0x632   : > { %v1641_v49 = vpop.f32.mrf.mxu1 }
 0x633   : > { %v1965_v49 = vpack.c.bf16 %v3219_v48, %v3219_v48 }
 0x637   : > { %3212 = vmatmul.msk.bf16.vlgmr.msrb.gmra.mxu1 %vm706_vm1, %v1748_v50  ;;  %v1974_v50 = vsel %vm842_vm2, %v1965_v49, 0 }
 0x638   : > { %1983 = vmatpush.bf16.msrb.mxu0 %v1974_v50  ;;  %2015 = vmatpush.bf16.msrb.mxu2 %v1974_v50 }
 0x639   : > { %2031 = vmatpush.bf16.msrb.mxu3 %v1974_v50 }
 0x63a   : > { %v1717_v51 = vpop.f32.mrf.mxu1 }
 0x63b   : > { %v1718_v52 = vadd.f32 %v3291_v18, %v1717_v51  ;;  %v3226_v51 = vld [vmem:[%s4148_s1 + $0x70] sm:$0xff] }
 0x63c   : > { %v1770_v53 = vpop.f32.mrf.mxu0 }
 0x63d   : > { %v1831_v55 = vmul.f32 0.35355338, %v1770_v53  ;;  %v1884_v56 = vpack.c.bf16 %v1718_v52, %v1718_v52  ;;  %v3227_v52 = vld [vmem:[%s4148_s1 + $0x78] sm:$0xff]  ;;  %v2048_v53 = vpack.c.bf16 %v3226_v51, %v3226_v51 }
 0x63e   : > { %v1808_v58 = vpop.f32.mrf.mxu2 }
 0x63f   : > { %v1833_v59 = vmul.f32 0.35355338, %v1808_v58  ;;  %v1835_v60 = vsel %vm706_vm1, %v1831_v55, -inf  ;;  %v1910_v54 = vsel %vm842_vm2, %v1884_v56, 0  ;;  %v2061_v56 = vunpack.c.l.b16 %v2048_v53 }
 0x640   : > { %1836 = vmax.xlane.f32.xlu0 %v1835_v60  ;;  %1919 = vmatpush.bf16.msra.mxu1 %v1910_v54  ;;  %v3225_v60 = vld [vmem:[%s4148_s1 + $0x68] sm:$0xff] }
 0x641   : > { %v1841_v61 = vsel %vm706_vm1, %v1833_v59, -inf }
 0x642   : > { %1842 = vmax.xlane.f32.xlu1 %v1841_v61  ;;  %v1719_v57 = vpop.f32.mrf.mxu1 }
 0x643   : > { %v2047_v57 = vpack.c.bf16 %v3225_v60, %v3225_v60 }
 0x644   : > { %v1772_v62 = vpop.f32.mrf.mxu0  ;;  %1999 = vmatpush.bf16.msrb.mxu1 %v1974_v50 }
 0x646   : > { %v1827_v63 = vpop.f32.mrf.mxu3  ;;  %v1810_v0 = vpop.f32.mrf.mxu2 }
 0x647   : > { %v1834_v1 = vmul.f32 0.35355338, %v1827_v63  ;;  %v2060_v63 = vunpack.c.l.b16 %v2047_v57 }
 0x649   : > { %v1844_v2 = vsel %vm706_vm1, %v1834_v1, -inf }
 0x64a   : > { %1845 = vmax.xlane.f32.xlu2 %v1844_v2  ;;  %v3235_v2 = vld [vmem:[%s4148_s1 + $0xf0] sm:$0xff] }
 0x64e   : > { %v1829_v3 = vpop.f32.mrf.mxu3 }
 0x64f   : > { %v3236_v3 = vld [vmem:[%s4148_s1 + $0xf8] sm:$0xff] }
 0x6b3   : > { %v1837_v4 = vpop.xlane.xlu0 %1836 }
 0x6b4   : > { %v1847_v5 = vsub.f32 %v1831_v55, %v1837_v4  ;;  %v1789_v6 = vpop.f32.mrf.mxu1  ;;  %v2049_v55 = vpack.c.bf16 %v3227_v52, %v3227_v52 }
 0x6b5   : > { %v1832_v7 = vmul.f32 0.35355338, %v1789_v6  ;;  %v1843_v8 = vpop.xlane.xlu1 %1842  ;;  %v2126_v6 = vpack.c.bf16 %v3235_v2, %v3235_v2 }
 0x6b6   : > { %v1851_v9 = vmul.f32 1.442695, %v1847_v5  ;;  %v1849_v10 = vsub.f32 %v1833_v59, %v1843_v8  ;;  %v2062_v58 = vunpack.c.l.b16 %v2049_v55  ;;  %v3224_v59 = vld [vmem:[%s4148_s1 + $0x60] sm:$0xff] }
 0x6b7   : > { %v1838_v11 = vsel %vm706_vm1, %v1832_v7, -inf  ;;  %v2046_v61 = vpack.c.bf16 %v3224_v59, %v3224_v59 }
 0x6b8   : > { %3334 = vpow2.f32 %v1851_v9  ;;  %v1855_v16 = vmul.f32 1.442695, %v1849_v10  ;;  %1839 = vmax.xlane.f32.xlu1 %v1838_v11  ;;  %v2064_v54 = vpack.c.b16 %v2062_v58, %v2061_v56  ;;  %v3233_v9 = vld [vmem:[%s4148_s1 + $0xe0] sm:$0xff]  ;;  %v3234_v10 = vld [vmem:[%s4148_s1 + $0xe8] sm:$0xff]  ;;  %v2139_v11 = vunpack.c.l.b16 %v2126_v6 }
 0x6b9   : > { %v2059_v62 = vunpack.c.l.b16 %v2046_v61 }
 0x6ba   : > { %3336 = vpow2.f32 %v1855_v16 }
 0x6bb   : > { %v2063_v0 = vpack.c.b16 %v2060_v63, %v2059_v62 }
 0x6bc   : > { %v1791_v21 = vpop.f32.mrf.mxu1 }
 0x6bd   : > { %v1846_v24 = vpop.xlane.xlu2 %1845  ;;  %v2124_v21 = vpack.c.bf16 %v3233_v9, %v3233_v9 }
 0x6be   : > { %v3335_v12 = vpop.eup %3334  ;;  %v1850_v13 = vsub.f32 %v1834_v1, %v1846_v24  ;;  %v2125_v24 = vpack.c.bf16 %v3234_v10, %v3234_v10 }
 0x6bf   : > { %v1859_v15 = vsel %vm706_vm1, %v3335_v12, 0.0 }
 0x6c0   : > { %v3337_v17 = vpop.eup %3336  ;;  %v1857_v18 = vmul.f32 1.442695, %v1850_v13  ;;  %1860 = vadd.xlane.f32.xlu1 %v1859_v15  ;;  %v2137_v15 = vunpack.c.l.b16 %v2124_v21 }
 0x6c1   : > { %v1865_v19 = vsel %vm706_vm1, %v3337_v17, 0.0 }
 0x6c2   : > { %3338 = vpow2.f32 %v1857_v18  ;;  %1866 = vadd.xlane.f32.xlu2 %v1865_v19 }
 0x6c8   : > { %v3339_v20 = vpop.eup %3338 }
 0x6c9   : > { %v1868_v22 = vsel %vm706_vm1, %v3339_v20, 0.0 }
 0x6ca   : > { %1869 = vadd.xlane.f32.xlu0 %v1868_v22 }
 0x72b   : > { %v1840_v23 = vpop.xlane.xlu1 %1839 }
 0x72c   : > { %v1848_v26 = vsub.f32 %v1832_v7, %v1840_v23  ;;  %v2127_v7 = vpack.c.bf16 %v3236_v3, %v3236_v3 }
 0x72e   : > { %v1853_v27 = vmul.f32 1.442695, %v1848_v26  ;;  %v2140_v16 = vunpack.c.l.b16 %v2127_v7 }
 0x730   : > { %3340 = vpow2.f32 %v1853_v27  ;;  %v2142_v13 = vpack.c.b16 %v2140_v16, %v2139_v11 }
 0x733   : > { %v1861_v28 = vpop.xlane.xlu1 %1860 }
 0x734   : > { %3342 = vrcp.f32 %v1861_v28 }
 0x735   : > { %v1867_v29 = vpop.xlane.xlu2 %1866 }
 0x736   : > { %v3341_v30 = vpop.eup %3340  ;;  %3344 = vrcp.f32 %v1867_v29 }
 0x737   : > { %v1862_v34 = vsel %vm706_vm1, %v3341_v30, 0.0 }
 0x738   : > { %1863 = vadd.xlane.f32.xlu2 %v1862_v34  ;;  %v3245_v34 = vld [vmem:[%s4148_s1 + $0x178] sm:$0xff] }
 0x73a   : > { %v3343_v36 = vpop.eup %3342 }
 0x73b   : > { %v1875_v37 = vmul.f32 %v3343_v36, %v3335_v12 }
 0x73c   : > { %v3345_v38 = vpop.eup %3344 }
 0x73d   : > { %v1879_v39 = vpack.c.bf16 %v1875_v37, %v1875_v37  ;;  %v1877_v40 = vmul.f32 %v3345_v38, %v3337_v17  ;;  %v1870_v41 = vpop.xlane.xlu0 %1869  ;;  %v2138_v17 = vunpack.c.l.b16 %v2125_v24  ;;  %v2205_v37 = vpack.c.bf16 %v3245_v34, %v3245_v34 }
 0x73e   : > { %3346 = vrcp.f32 %v1870_v41  ;;  %v3243_v41 = vld [vmem:[%s4148_s1 + $0x168] sm:$0xff] }
 0x73f   : > { %v1881_v43 = vpack.c.bf16 %v1877_v40, %v1877_v40  ;;  %3215 = vmatmul.msk.bf16.vlgmr.msra.gmra.mxu0 %vm706_vm1, %v1879_v39  ;;  %v2141_v19 = vpack.c.b16 %v2138_v17, %v2137_v15  ;;  %v2218_v39 = vunpack.c.l.b16 %v2205_v37  ;;  %v3242_v40 = vld [vmem:[%s4148_s1 + $0x160] sm:$0xff] }
 0x740   : > { %2073 = vmatpush.bf16.msra.mxu0 %v2064_v54 }
 0x741   : > { %3217 = vmatmul.msk.bf16.vlgmr.msra.gmra.mxu2 %vm706_vm1, %v1881_v43 }
 0x742   : > { %2099 = vmatpush.bf16.msra.mxu2 %v2064_v54 }
 0x744   : > { %v3347_v25 = vpop.eup %3346  ;;  %2074 = vmatpush.bf16.msra.mxu0 %v2063_v0 }
 0x745   : > { %v1878_v45 = vmul.f32 %v3347_v25, %v3339_v20  ;;  %v2202_v25 = vpack.c.bf16 %v3242_v40, %v3242_v40 }
 0x746   : > { %2100 = vmatpush.bf16.msra.mxu2 %v2063_v0 }
 0x747   : > { %v1882_v47 = vpack.c.bf16 %v1878_v45, %v1878_v45  ;;  %v2203_v45 = vpack.c.bf16 %v3243_v41, %v3243_v41 }
 0x749   : > { %3218 = vmatmul.msk.bf16.vlgmr.msra.gmra.mxu3 %vm706_vm1, %v1882_v47  ;;  %v2215_v47 = vunpack.c.l.b16 %v2202_v25  ;;  %v2216_v48 = vunpack.c.l.b16 %v2203_v45 }
 0x74a   : > { %2112 = vmatpush.bf16.msra.mxu3 %v2064_v54 }
 0x74b   : > { %v2219_v50 = vpack.c.b16 %v2216_v48, %v2215_v47 }
 0x74e   : > { %2113 = vmatpush.bf16.msra.mxu3 %v2063_v0 }
 0x7ab   : > { %v1864_v1 = vpop.xlane.xlu2 %1863 }
 0x7ac   : > { %3348 = vrcp.f32 %v1864_v1 }
 0x7b2   : > { %v3349_v4 = vpop.eup %3348 }
 0x7b3   : > { %v1876_v5 = vmul.f32 %v3349_v4, %v3341_v30  ;;  %v3244_v30 = vld [vmem:[%s4148_s1 + $0x170] sm:$0xff] }
 0x7b4   : > { %v2204_v36 = vpack.c.bf16 %v3244_v30, %v3244_v30 }
 0x7b5   : > { %v1880_v8 = vpack.c.bf16 %v1876_v5, %v1876_v5 }
 0x7b6   : > { %v2217_v38 = vunpack.c.l.b16 %v2204_v36 }
 0x7b7   : > { %3216 = vmatmul.msk.bf16.vlgmr.msra.gmra.mxu1 %vm706_vm1, %v1880_v8 }
 0x7b8   : > { %2086 = vmatpush.bf16.msra.mxu1 %v2064_v54  ;;  %v2220_v43 = vpack.c.b16 %v2218_v39, %v2217_v38 }
 0x7bc   : > { %v1902_v12 = vpop.f32.mrf.mxu0  ;;  %2087 = vmatpush.bf16.msra.mxu1 %v2063_v0 }
 0x7bd   : > { %v1966_v18 = vpack.c.bf16 %v1902_v12, %v1902_v12 }
 0x7bf   : > { %3220 = vmatmul.msk.bf16.vlgmr.msrb.gmra.mxu0 %vm706_vm1, %v1966_v18 }
 0x7c0   : > { %2151 = vmatpush.bf16.msrb.mxu0 %v2142_v13 }
 0x7c4   : > { %v1904_v20 = vpop.f32.mrf.mxu0  ;;  %v1940_v22 = vpop.f32.mrf.mxu2  ;;  %2152 = vmatpush.bf16.msrb.mxu0 %v2141_v19 }
 0x7c5   : > { %v1968_v23 = vpack.c.bf16 %v1940_v22, %v1940_v22 }
 0x7c7   : > { %3222 = vmatmul.msk.bf16.vlgmr.msrb.gmra.mxu2 %vm706_vm1, %v1968_v23  ;;  %v3294_v23 = vld [vmem:[%s4149_s2 + $0xb] ss:$0 sm:$0xff] }
 0x7c8   : > { %2177 = vmatpush.bf16.msrb.mxu2 %v2142_v13 }
 0x7cc   : > { %v1942_v26 = vpop.f32.mrf.mxu2  ;;  %v1959_v27 = vpop.f32.mrf.mxu3  ;;  %2178 = vmatpush.bf16.msrb.mxu2 %v2141_v19 }
 0x7cd   : > { %v1969_v28 = vpack.c.bf16 %v1959_v27, %v1959_v27 }
 0x7cf   : > { %3223 = vmatmul.msk.bf16.vlgmr.msrb.gmra.mxu3 %vm706_vm1, %v1969_v28  ;;  %3229 = vmatmul.msk.bf16.vlgmr.msra.gmra.mxu0 %vm477_vm0, %v3521_v31 }
 0x7d0   : > { %2190 = vmatpush.bf16.msrb.mxu3 %v2142_v13  ;;  %2229 = vmatpush.bf16.msra.mxu0 %v2220_v43 }
 0x7d4   : > { %v1961_v29 = vpop.f32.mrf.mxu3  ;;  %2191 = vmatpush.bf16.msrb.mxu3 %v2141_v19  ;;  %2230 = vmatpush.bf16.msra.mxu0 %v2219_v50 }
 0x7d7   : > { %3231 = vmatmul.msk.bf16.vlgmr.msra.gmra.mxu2 %vm477_vm0, %v3523_v32 }
 0x7d8   : > { %2255 = vmatpush.bf16.msra.mxu2 %v2220_v43 }
 0x7dc   : > { %2256 = vmatpush.bf16.msra.mxu2 %v2219_v50 }
 0x7df   : > { %3232 = vmatmul.msk.bf16.vlgmr.msra.gmra.mxu3 %vm477_vm0, %v3525_v33  ;;  %3238 = vmatmul.msk.bf16.vlgmr.msrb.gmra.mxu0 %vm477_vm0, %v3521_v31 }
 0x7e0   : > { %2268 = vmatpush.bf16.msra.mxu3 %v2220_v43 }
 0x7e4   : > { %2269 = vmatpush.bf16.msra.mxu3 %v2219_v50 }
 0x7e7   : > { %3240 = vmatmul.msk.bf16.vlgmr.msrb.gmra.mxu2 %vm477_vm0, %v3523_v32 }
 0x7ef   : > { %3241 = vmatmul.msk.bf16.vlgmr.msrb.gmra.mxu3 %vm477_vm0, %v3525_v33  ;;  %3247 = vmatmul.msk.bf16.vlgmr.msra.gmra.mxu0 %vm477_vm0, %v3521_v31 }
 0x7f7   : > { %3249 = vmatmul.msk.bf16.vlgmr.msra.gmra.mxu2 %vm477_vm0, %v3523_v32 }
 0x7ff   : > { %3250 = vmatmul.msk.bf16.vlgmr.msra.gmra.mxu3 %vm477_vm0, %v3525_v33 }
 0x834   : > { %v1921_v49 = vpop.f32.mrf.mxu1 }
 0x835   : > { %v1967_v51 = vpack.c.bf16 %v1921_v49, %v1921_v49 }
 0x837   : > { %3221 = vmatmul.msk.bf16.vlgmr.msrb.gmra.mxu1 %vm706_vm1, %v1967_v51 }
 0x838   : > { %2164 = vmatpush.bf16.msrb.mxu1 %v2142_v13 }
 0x83c   : > { %v1923_v52 = vpop.f32.mrf.mxu1  ;;  %v1985_v53 = vpop.f32.mrf.mxu0  ;;  %2165 = vmatpush.bf16.msrb.mxu1 %v2141_v19 }
 0x83d   : > { %v3897_v55 = vadd.f32 %v1985_v53, %v3789_v44  ;;  %v3293_v44 = vld [vmem:[%s4149_s2 + $0x7] ss:$0 sm:$0xff] }
 0x844   : > { %v1987_v56 = vpop.f32.mrf.mxu0 }
 0x847   : > { %3230 = vmatmul.msk.bf16.vlgmr.msra.gmra.mxu1 %vm477_vm0, %v3527_v35 }
 0x848   : > { %2242 = vmatpush.bf16.msra.mxu1 %v2220_v43 }
 0x84a   : > { %v2017_v58 = vpop.f32.mrf.mxu2 }
 0x84b   : > { %v3902_v31 = vadd.f32 %v2017_v58, %v3787_v42  ;;  %v3292_v42 = vld [vmem:[%s4149_s2 + $0x3] ss:$0 sm:$0xff] }
 0x84c   : > { %v2076_v59 = vpop.f32.mrf.mxu0  ;;  %2243 = vmatpush.bf16.msra.mxu1 %v2219_v50 }
 0x84d   : > { %v2077_v1 = vadd.f32 %v3292_v42, %v2076_v59 }
 0x84f   : > { %v2275_v5 = vpack.c.bf16 %v2077_v1, %v2077_v1 }
 0x852   : > { %v2019_v32 = vpop.f32.mrf.mxu2  ;;  %v2033_v60 = vpop.f32.mrf.mxu3 }
 0x853   : > { %v3905_v33 = vadd.f32 %v2033_v60, %v3791_v46 }
 0x854   : > { %v2078_v54 = vpop.f32.mrf.mxu0 }
 0x857   : > { %3239 = vmatmul.msk.bf16.vlgmr.msrb.gmra.mxu1 %vm477_vm0, %v3527_v35 }
 0x85a   : > { %v2035_v61 = vpop.f32.mrf.mxu3  ;;  %v2102_v57 = vpop.f32.mrf.mxu2 }
 0x85b   : > { %v2103_v10 = vadd.f32 %v3292_v42, %v2102_v57 }
 0x85c   : > { %v2154_v62 = vpop.f32.mrf.mxu0 }
 0x85d   : > { %v2155_v63 = vadd.f32 %v3293_v44, %v2154_v62  ;;  %v2277_v24 = vpack.c.bf16 %v2103_v10, %v2103_v10 }
 0x85f   : > { %v2279_v0 = vpack.c.bf16 %v2155_v63, %v2155_v63 }
 0x861   : > { %v2287_v46 = vsel %vm706_vm1, %v2279_v0, 0 }
 0x862   : > { %v2104_v2 = vpop.f32.mrf.mxu2  ;;  %v2115_v3 = vpop.f32.mrf.mxu3  ;;  %2296 = vmatpush.bf16.xpose.msrb.mxu0 %v2287_v46 }
 0x863   : > { %v2116_v15 = vadd.f32 %v3292_v42, %v2115_v3 }
 0x864   : > { %v2156_v4 = vpop.f32.mrf.mxu0 }
 0x865   : > { %v2278_v18 = vpack.c.bf16 %v2116_v15, %v2116_v15 }
 0x867   : > { %3248 = vmatmul.msk.bf16.vlgmr.msra.gmra.mxu1 %vm477_vm0, %v3527_v35 }
 0x869   : > { %3251 = vmatmul.msk.bf16.vlgmr.msrb.gmra.mxu0 %vm706_vm1, %v2275_v5 }
 0x86a   : > { %v2117_v6 = vpop.f32.mrf.mxu3  ;;  %v2180_v7 = vpop.f32.mrf.mxu2 }
 0x86b   : > { %v2181_v8 = vadd.f32 %v3293_v44, %v2180_v7 }
 0x86c   : > { %v2232_v22 = vpop.f32.mrf.mxu0 }
 0x86d   : > { %v2281_v9 = vpack.c.bf16 %v2181_v8, %v2181_v8  ;;  %v2233_v26 = vadd.f32 %v3294_v23, %v2232_v22 }
 0x86f   : > { %v2325_v11 = vsel %vm706_vm1, %v2281_v9, 0  ;;  %v2411_v28 = vpack.c.bf16 %v2233_v26, %v2233_v26 }
 0x870   : > { %2334 = vmatpush.bf16.xpose.msrb.mxu2 %v2325_v11 }
 0x871   : > { %v2419_v30 = vsel %vm842_vm2, %v2411_v28, 0 }
 0x872   : > { %v2193_v16 = vpop.f32.mrf.mxu3  ;;  %v2182_v21 = vpop.f32.mrf.mxu2  ;;  %2428 = vmatpush.bf16.msra.mxu0 %v2419_v30 }
 0x873   : > { %v2194_v12 = vadd.f32 %v3293_v44, %v2193_v16 }
 0x874   : > { %v2234_v29 = vpop.f32.mrf.mxu0 }
 0x875   : > { %v2282_v13 = vpack.c.bf16 %v2194_v12, %v2194_v12 }
 0x877   : > { %v2344_v17 = vsel %vm706_vm1, %v2282_v13, 0  ;;  %3253 = vmatmul.msk.bf16.vlgmr.msrb.gmra.mxu2 %vm706_vm1, %v2277_v24 }
 0x878   : > { %2353 = vmatpush.bf16.xpose.msrb.mxu3 %v2344_v17 }
 0x87a   : > { %v2195_v35 = vpop.f32.mrf.mxu3  ;;  %v2258_v36 = vpop.f32.mrf.mxu2 }
 0x87b   : > { %v2259_v37 = vadd.f32 %v3294_v23, %v2258_v36 }
 0x87d   : > { %v2413_v38 = vpack.c.bf16 %v2259_v37, %v2259_v37 }
 0x87f   : > { %3254 = vmatmul.msk.bf16.vlgmr.msrb.gmra.mxu3 %vm706_vm1, %v2278_v18  ;;  %v2457_v41 = vsel %vm842_vm2, %v2413_v38, 0 }
 0x880   : > { %2466 = vmatpush.bf16.msra.mxu2 %v2457_v41 }
 0x882   : > { %v2271_v39 = vpop.f32.mrf.mxu3  ;;  %v2260_v25 = vpop.f32.mrf.mxu2 }
 0x883   : > { %v2272_v40 = vadd.f32 %v3294_v23, %v2271_v39 }
 0x885   : > { %v2414_v43 = vpack.c.bf16 %v2272_v40, %v2272_v40 }
 0x887   : > { %v2476_v45 = vsel %vm842_vm2, %v2414_v43, 0 }
 0x888   : > { %2485 = vmatpush.bf16.msra.mxu3 %v2476_v45 }
 0x88a   : > { %v2273_v47 = vpop.f32.mrf.mxu3 }
 0x8b4   : > { %v2001_v19 = vpop.f32.mrf.mxu1 }
 0x8b5   : > { %v3924_v20 = vadd.f32 %v2001_v19, %v3811_v14 }
 0x8bc   : > { %v2003_v27 = vpop.f32.mrf.mxu1 }
 0x8c4   : > { %v2089_v34 = vpop.f32.mrf.mxu1 }
 0x8c5   : > { %v2090_v52 = vadd.f32 %v3292_v42, %v2089_v34 }
 0x8c7   : > { %v2276_v56 = vpack.c.bf16 %v2090_v52, %v2090_v52 }
 0x8cc   : > { %v2091_v14 = vpop.f32.mrf.mxu1 }
 0x8d4   : > { %v2167_v48 = vpop.f32.mrf.mxu1 }
 0x8d5   : > { %v2168_v49 = vadd.f32 %v3293_v44, %v2167_v48  ;;  %v3259_v48 = vld [vmem:[%s4150_s3 + $0x18] sm:$0xff] }
 0x8d7   : > { %v2280_v50 = vpack.c.bf16 %v2168_v49, %v2168_v49  ;;  %v2493_v49 = vpack.c.bf16 %v3259_v48, %v3259_v48 }
 0x8d9   : > { %v2306_v51 = vsel %vm706_vm1, %v2280_v50, 0  ;;  %v2502_v50 = vsel %vm842_vm2, %v2493_v49, 0 }
 0x8da   : > { %2315 = vmatpush.bf16.xpose.msrb.mxu1 %v2306_v51  ;;  %2511 = vmatpush.bf16.msrb.mxu0 %v2502_v50 }
 0x8db   : > { %2543 = vmatpush.bf16.msrb.mxu2 %v2502_v50  ;;  %2559 = vmatpush.bf16.msrb.mxu3 %v2502_v50 }
 0x8dc   : > { %v2169_v53 = vpop.f32.mrf.mxu1 }
 0x8e1   : > { %3252 = vmatmul.msk.bf16.vlgmr.msrb.gmra.mxu1 %vm706_vm1, %v2276_v56 }
 0x8e4   : > { %v2245_v60 = vpop.f32.mrf.mxu1 }
 0x8e5   : > { %v2246_v54 = vadd.f32 %v3294_v23, %v2245_v60 }
 0x8e6   : > { %v2298_v58 = vpop.f32.mrf.mxu0 }
 0x8e7   : > { %v2359_v59 = vmul.f32 0.35355338, %v2298_v58  ;;  %v2412_v61 = vpack.c.bf16 %v2246_v54, %v2246_v54 }
 0x8e9   : > { %v2363_v32 = vsel %vm706_vm1, %v2359_v59, -inf  ;;  %v2438_v44 = vsel %vm842_vm2, %v2412_v61, 0 }
 0x8ea   : > { %2364 = vmax.xlane.f32.xlu2 %v2363_v32  ;;  %2447 = vmatpush.bf16.msra.mxu1 %v2438_v44 }
 0x8ec   : > { %v2247_v62 = vpop.f32.mrf.mxu1 }
 0x8ee   : > { %v2300_v57 = vpop.f32.mrf.mxu0  ;;  %2527 = vmatpush.bf16.msrb.mxu1 %v2502_v50 }
 0x8fa   : > { %v2336_v63 = vpop.f32.mrf.mxu2 }
 0x8fb   : > { %v2361_v0 = vmul.f32 0.35355338, %v2336_v63 }
 0x8fd   : > { %v2369_v42 = vsel %vm706_vm1, %v2361_v0, -inf }
 0x8fe   : > { %2370 = vmax.xlane.f32.xlu0 %v2369_v42  ;;  %v3295_v42 = vld [vmem:[%s4151_s4] ss:$0 sm:$0xff] }
 0x902   : > { %v2355_v1 = vpop.f32.mrf.mxu3  ;;  %v2338_v46 = vpop.f32.mrf.mxu2 }
 0x903   : > { %v2362_v2 = vmul.f32 0.35355338, %v2355_v1 }
 0x905   : > { %v2372_v3 = vsel %vm706_vm1, %v2362_v2, -inf }
 0x906   : > { %2373 = vmax.xlane.f32.xlu1 %v2372_v3 }
 0x90a   : > { %v2357_v4 = vpop.f32.mrf.mxu3 }
 0x90b   : > { %v3392_v4 = vld [vmem:[%s3515_s14] sm:$0xff] }
 0x95d   : > { %v2365_v5 = vpop.xlane.xlu2 %2364 }
 0x95e   : > { %v2375_v6 = vsub.f32 %v2359_v59, %v2365_v5  ;;  %v2317_v7 = vpop.f32.mrf.mxu1 }
 0x95f   : > { %v2360_v8 = vmul.f32 0.35355338, %v2317_v7 }
 0x960   : > { %v2379_v9 = vmul.f32 1.442695, %v2375_v6 }
 0x961   : > { %v2366_v10 = vsel %vm706_vm1, %v2360_v8, -inf }
 0x962   : > { %3350 = vpow2.f32 %v2379_v9  ;;  %2367 = vmax.xlane.f32.xlu0 %v2366_v10 }
 0x966   : > { %v2319_v11 = vpop.f32.mrf.mxu1 }
 0x967   : > { %v3393_v11 = vld [vmem:[%s3515_s14 + $0x10] sm:$0xff] }
 0x968   : > { %v3351_v16 = vpop.eup %3350 }
 0x969   : > { %v2387_v21 = vsel %vm706_vm1, %v3351_v16, 0.0 }
 0x96a   : > { %2388 = vadd.xlane.f32.xlu0 %v2387_v21 }
 0x971   : > { %v2371_v24 = vpop.xlane.xlu0 %2370 }
 0x972   : > { %v2377_v12 = vsub.f32 %v2361_v0, %v2371_v24 }
 0x974   : > { %v2383_v13 = vmul.f32 1.442695, %v2377_v12 }
 0x976   : > { %3352 = vpow2.f32 %v2383_v13 }
 0x979   : > { %v2374_v15 = vpop.xlane.xlu1 %2373 }
 0x97a   : > { %v2378_v17 = vsub.f32 %v2362_v2, %v2374_v15  ;;  %v3394_v15 = vld [vmem:[%s3515_s14 + $0x18] sm:$0xff] }
 0x97c   : > { %v3353_v35 = vpop.eup %3352  ;;  %v2385_v18 = vmul.f32 1.442695, %v2378_v17 }
 0x97d   : > { %v2393_v19 = vsel %vm706_vm1, %v3353_v35, 0.0 }
 0x97e   : > { %3354 = vpow2.f32 %v2385_v18  ;;  %2394 = vadd.xlane.f32.xlu1 %v2393_v19  ;;  %v3404_v19 = vmov 32.0  }
 0x984   : > { %v3355_v22 = vpop.eup %3354 }
 0x985   : > { %v2396_v23 = vsel %vm706_vm1, %v3355_v22, 0.0 }
 0x986   : > { %2397 = vadd.xlane.f32.xlu2 %v2396_v23 }
 0x9d5   : > { %v2368_v26 = vpop.xlane.xlu0 %2367 }
 0x9d6   : > { %v2376_v27 = vsub.f32 %v2360_v8, %v2368_v26 }
 0x9d8   : > { %v2381_v28 = vmul.f32 1.442695, %v2376_v27 }
 0x9da   : > { %3356 = vpow2.f32 %v2381_v28 }
 0x9dd   : > { %v2389_v29 = vpop.xlane.xlu0 %2388 }
 0x9de   : > { %3358 = vrcp.f32 %v2389_v29 }
 0x9e0   : > { %v3357_v30 = vpop.eup %3356 }
 0x9e1   : > { %v2390_v34 = vsel %vm706_vm1, %v3357_v30, 0.0 }
 0x9e2   : > { %2391 = vadd.xlane.f32.xlu1 %v2390_v34 }
 0x9e4   : > { %v3359_v36 = vpop.eup %3358 }
 0x9e5   : > { %v2403_v37 = vmul.f32 %v3359_v36, %v3351_v16 }
 0x9e7   : > { %v2407_v38 = vpack.c.bf16 %v2403_v37, %v2403_v37  ;;  %v3395_v37 = vld [vmem:[%s3515_s14 + $0x8] sm:$0xff] }
 0x9e9   : > { %3255 = vmatmul.msk.bf16.vlgmr.msra.gmra.mxu0 %vm706_vm1, %v2407_v38 }
 0x9f1   : > { %v2395_v39 = vpop.xlane.xlu1 %2394 }
 0x9f2   : > { %3360 = vrcp.f32 %v2395_v39 }
 0x9f8   : > { %v3361_v40 = vpop.eup %3360 }
 0x9f9   : > { %v2405_v14 = vmul.f32 %v3361_v40, %v3353_v35  ;;  %v2398_v41 = vpop.xlane.xlu2 %2397 }
 0x9fa   : > { %3362 = vrcp.f32 %v2398_v41 }
 0x9fb   : > { %v2409_v43 = vpack.c.bf16 %v2405_v14, %v2405_v14 }
 0x9fd   : > { %3257 = vmatmul.msk.bf16.vlgmr.msra.gmra.mxu2 %vm706_vm1, %v2409_v43 }
 0xa00   : > { %v3363_v25 = vpop.eup %3362 }
 0xa01   : > { %v2406_v45 = vmul.f32 %v3363_v25, %v3355_v22 }
 0xa03   : > { %v2410_v47 = vpack.c.bf16 %v2406_v45, %v2406_v45 }
 0xa05   : > { %3258 = vmatmul.msk.bf16.vlgmr.msra.gmra.mxu3 %vm706_vm1, %v2410_v47 }
 0xa55   : > { %v2392_v51 = vpop.xlane.xlu1 %2391 }
 0xa56   : > { %3364 = vrcp.f32 %v2392_v51 }
 0xa57   : > { %3366 = vrcp.f32 %v3404_v19 }
 0xa5c   : > { %v3365_v52 = vpop.eup %3364 }
 0xa5d   : > { %v2404_v53 = vmul.f32 %v3365_v52, %v3357_v30 }
 0xa5f   : > { %v2408_v56 = vpack.c.bf16 %v2404_v53, %v2404_v53 }
 0xa61   : > { %3256 = vmatmul.msk.bf16.vlgmr.msra.gmra.mxu1 %vm706_vm1, %v2408_v56  ;;  %v2694_v56 = vld [vmem:[%s4154_s7 + $0x10] sm:$0xff] }
 0xa66   : > { %v2430_v58 = vpop.f32.mrf.mxu0 }
 0xa67   : > { %v2494_v59 = vpack.c.bf16 %v2430_v58, %v2430_v58  ;;  %v2695_v58 = vld [vmem:[%s4154_s7 + $0x18] sm:$0xff] }
 0xa69   : > { %3260 = vmatmul.msk.bf16.vlgmr.msrb.gmra.mxu0 %vm706_vm1, %v2494_v59  ;;  %v2698_v59 = vpack.c.bf16 %v2694_v56, %v2694_v56 }
 0xa6e   : > { %v2432_v32 = vpop.f32.mrf.mxu0 }
 0xa6f   : > { %v2699_v32 = vpack.c.bf16 %v2695_v58, %v2695_v58 }
 0xa80   : > { %v2468_v60 = vpop.f32.mrf.mxu2 }
 0xa81   : > { %v2496_v54 = vpack.c.bf16 %v2468_v60, %v2468_v60  ;;  %v2714_v60 = vunpack.c.l.b16 %v2698_v59 }
 0xa83   : > { %3262 = vmatmul.msk.bf16.vlgmr.msrb.gmra.mxu2 %vm706_vm1, %v2496_v54  ;;  %v2715_v54 = vunpack.c.l.b16 %v2699_v32 }
 0xa88   : > { %v2470_v61 = vpop.f32.mrf.mxu2  ;;  %v2487_v57 = vpop.f32.mrf.mxu3 }
 0xa89   : > { %v2497_v44 = vpack.c.bf16 %v2487_v57, %v2487_v57  ;;  %v2692_v61 = vld [vmem:[%s4154_s7] sm:$0xff]  ;;  %v2693_v57 = vld [vmem:[%s4154_s7 + $0x8] sm:$0xff] }
 0xa8b   : > { %3263 = vmatmul.msk.bf16.vlgmr.msrb.gmra.mxu3 %vm706_vm1, %v2497_v44  ;;  %v2717_v44 = vpack.c.b16 %v2715_v54, %v2714_v60 }
 0xa8d   : > { %2729 = vmatpush.bf16.msra.mxu0 %v2717_v44  ;;  %2761 = vmatpush.bf16.msra.mxu2 %v2717_v44 }
 0xa8e   : > { %2777 = vmatpush.bf16.msra.mxu3 %v2717_v44  ;;  %2745 = vmatpush.bf16.msra.mxu1 %v2717_v44 }
 0xa90   : > { %v2489_v62 = vpop.f32.mrf.mxu3 }
 0xa91   : > { %v2696_v62 = vpack.c.bf16 %v2692_v61, %v2692_v61  ;;  %v2827_v61 = vld [vmem:[%s4156_s9 + $0x38] sm:$0xff] }
 0xade   : > { %v2449_v63 = vpop.f32.mrf.mxu1 }
 0xadf   : > { %v2495_v0 = vpack.c.bf16 %v2449_v63, %v2449_v63  ;;  %v2697_v63 = vpack.c.bf16 %v2693_v57, %v2693_v57 }
 0xae1   : > { %3261 = vmatmul.msk.bf16.vlgmr.msrb.gmra.mxu1 %vm706_vm1, %v2495_v0  ;;  %vm2868_vm1 = vcmask 523264  }
 0xae6   : > { %v2451_v1 = vpop.f32.mrf.mxu1  ;;  %v2513_v46 = vpop.f32.mrf.mxu0 }
 0xae7   : > { %v2565_v2 = vadd.f32 %v2513_v46, %v3897_v55  ;;  %v2713_v1 = vunpack.c.l.b16 %v2697_v63 }
 0xae9   : > { %v2573_v3 = vadd.f32 %v3295_v42, %v2565_v2 }
 0xaeb   : > { %v2577_v5 = vadd.f32 %v3392_v4, %v2573_v3 }
 0xaed   : > { %v2583_v6 = vsel %vm477_vm0, %v2577_v5, 0.0 }
 0xaee   : > { %v2515_v7 = vpop.f32.mrf.mxu0  ;;  %2584 = vadd.xlane.f32.xlu1 %v2583_v6 }
 0xb06   : > { %v2545_v8 = vpop.f32.mrf.mxu2 }
 0xb07   : > { %v2567_v9 = vadd.f32 %v2545_v8, %v3902_v31  ;;  %v3367_v31 = vpop.eup %3366 }
 0xb08   : > { %v2596_v22 = vmul.f32 32.0, %v3367_v31  ;;  %vm2600_vm3 = vweird.f32 %v3367_v31 }
 0xb09   : > { %v2575_v10 = vadd.f32 %v3295_v42, %v2567_v9 }
 0xb0a   : > { %v2597_v23 = vsub.f32 1.0, %v2596_v22 }
 0xb0b   : > { %v2579_v16 = vadd.f32 %v3393_v11, %v2575_v10 }
 0xb0c   : > { %v2598_v26 = vmul.f32 %v3367_v31, %v2597_v23 }
 0xb0d   : > { %v2589_v21 = vsel %vm477_vm0, %v2579_v16, 0.0 }
 0xb0e   : > { %v2547_v24 = vpop.f32.mrf.mxu2  ;;  %2590 = vadd.xlane.f32.xlu2 %v2589_v21  ;;  %v2561_v12 = vpop.f32.mrf.mxu3  ;;  %v2599_v27 = vadd.f32 %v3367_v31, %v2598_v26 }
 0xb0f   : > { %v2568_v55 = vadd.f32 %v2561_v12, %v3905_v33  ;;  %v4012_v12 = vld [vmem:[%s4152_s5] ss:$0 sm:$0xff] }
 0xb10   : > { %v3968_v33 = vsel %vm2600_vm3, %v3367_v31, %v2599_v27 }
 0xb11   : > { %v2576_v13 = vadd.f32 %v3295_v42, %v2568_v55 }
 0xb13   : > { %v2580_v17 = vadd.f32 %v3394_v15, %v2576_v13  ;;  %v4017_v13 = vld [vmem:[%s4153_s6] ss:$0 sm:$0xff] }
 0xb15   : > { %v2592_v35 = vsel %vm477_vm0, %v2580_v17, 0.0 }
 0xb16   : > { %2593 = vadd.xlane.f32.xlu0 %v2592_v35  ;;  %v2563_v18 = vpop.f32.mrf.mxu3 }
 0xb5e   : > { %v2529_v28 = vpop.f32.mrf.mxu1 }
 0xb5f   : > { %v2566_v29 = vadd.f32 %v2529_v28, %v3924_v20 }
 0xb61   : > { %v2574_v30 = vadd.f32 %v3295_v42, %v2566_v29  ;;  %v2585_v34 = vpop.xlane.xlu1 %2584  ;;  %v2712_v42 = vunpack.c.l.b16 %v2696_v62  ;;  %v2835_v62 = vpack.c.bf16 %v2827_v61, %v2827_v61 }
 0xb62   : > { %v2602_v36 = vmul.f32 %v3968_v33, %v2585_v34 }
 0xb63   : > { %v2578_v38 = vadd.f32 %v3395_v37, %v2574_v30  ;;  %v2716_v2 = vpack.c.b16 %v2713_v1, %v2712_v42  ;;  %v2859_v42 = vunpack.c.l.b16 %v2835_v62  ;;  %v2824_v1 = vld [vmem:[%s4156_s9 + $0x20] sm:$0xff] }
 0xb64   : > { %v3972_v39 = vsub.f32 %v2577_v5, %v2602_v36 }
 0xb65   : > { %v2586_v40 = vsel %vm477_vm0, %v2578_v38, 0.0  ;;  %2730 = vmatpush.bf16.msra.mxu0 %v2716_v2  ;;  %2762 = vmatpush.bf16.msra.mxu2 %v2716_v2 }
 0xb66   : > { %v2531_v14 = vpop.f32.mrf.mxu1  ;;  %2587 = vadd.xlane.f32.xlu2 %v2586_v40  ;;  %v2610_v41 = vmul.f32 %v3972_v39, %v3972_v39  ;;  %2778 = vmatpush.bf16.msra.mxu3 %v2716_v2 }
 0xb67   : > { %2746 = vmatpush.bf16.msra.mxu1 %v2716_v2 }
 0xb68   : > { %v2614_v43 = vsel %vm477_vm0, %v2610_v41, 0.0 }
 0xb6e   : > { %2615 = vadd.xlane.f32.xlu2 %v2614_v43 }
 0xb81   : > { %v2591_v20 = vpop.xlane.xlu2 %2590 }
 0xb82   : > { %v2604_v25 = vmul.f32 %v3968_v33, %v2591_v20 }
 0xb84   : > { %v3979_v45 = vsub.f32 %v2579_v16, %v2604_v25 }
 0xb86   : > { %v2612_v47 = vmul.f32 %v3979_v45, %v3979_v45 }
 0xb88   : > { %v2620_v48 = vsel %vm477_vm0, %v2612_v47, 0.0 }
 0xb89   : > { %v2594_v49 = vpop.xlane.xlu0 %2593  ;;  %2621 = vadd.xlane.f32.xlu0 %v2620_v48 }
 0xb8a   : > { %v2605_v50 = vmul.f32 %v3968_v33, %v2594_v49 }
 0xb8c   : > { %v3985_v51 = vsub.f32 %v2580_v17, %v2605_v50 }
 0xb8e   : > { %v2613_v52 = vmul.f32 %v3985_v51, %v3985_v51 }
 0xb90   : > { %v2623_v53 = vsel %vm477_vm0, %v2613_v52, 0.0 }
 0xb91   : > { %2624 = vadd.xlane.f32.xlu1 %v2623_v53 }
 0xbd9   : > { %v2588_v0 = vpop.xlane.xlu2 %2587 }
 0xbda   : > { %v2603_v46 = vmul.f32 %v3968_v33, %v2588_v0 }
 0xbdc   : > { %v4003_v3 = vsub.f32 %v2578_v38, %v2603_v46  ;;  %v2825_v46 = vld [vmem:[%s4156_s9 + $0x28] sm:$0xff] }
 0xbde   : > { %v2611_v4 = vmul.f32 %v4003_v3, %v4003_v3 }
 0xbe0   : > { %v2617_v5 = vsel %vm477_vm0, %v2611_v4, 0.0 }
 0xbe1   : > { %2618 = vadd.xlane.f32.xlu0 %v2617_v5  ;;  %v2616_v6 = vpop.xlane.xlu2 %2615  ;;  %v2832_v5 = vpack.c.bf16 %v2824_v1, %v2824_v1 }
 0xbe2   : > { %v2626_v7 = vmul.f32 %v2616_v6, %v3968_v33  ;;  %v2833_v6 = vpack.c.bf16 %v2825_v46, %v2825_v46 }
 0xbe4   : > { %v2630_v8 = vadd.f32 1e-05, %v2626_v7 }
 0xbe6   : > { %3368 = vrsqrt.f32 %v2630_v8  ;;  %vm2640_vm5 = vweird.f32 %v2630_v8 }
 0xbec   : > { %v3369_v9 = vpop.eup %3368 }
 0xbed   : > { %v2635_v10 = vmul.f32 %v3369_v9, %v2630_v8  ;;  %vm2641_vm4 = vweird.f32 %v3369_v9  ;;  %v2856_v8 = vunpack.c.l.b16 %v2832_v5 }
 0xbee   : > { %vm2642_vm6 = vmor %vm2640_vm5, %vm2641_vm4 }
 0xbef   : > { %v2636_v11 = vmul.f32 %v3369_v9, %v2635_v10  ;;  %v2822_v10 = vld [vmem:[%s4156_s9 + $0x10] sm:$0xff] }
 0xbf1   : > { %v2637_v16 = vmul.f32 0.5, %v2636_v11  ;;  %v2823_v11 = vld [vmem:[%s4156_s9 + $0x18] sm:$0xff] }
 0xbf3   : > { %v2638_v21 = vsub.f32 1.5, %v2637_v16 }
 0xbf5   : > { %v2639_v24 = vmul.f32 %v3369_v9, %v2638_v21 }
 0xbf7   : > { %v2643_v55 = vsel %vm2642_vm6, %v3369_v9, %v2639_v24  ;;  %v2857_v9 = vunpack.c.l.b16 %v2833_v6  ;;  %v2830_v24 = vpack.c.bf16 %v2822_v10, %v2822_v10 }
 0xbf8   : > { %v2674_v15 = vmul.f32 %v2643_v55, %v3972_v39  ;;  %v2831_v55 = vpack.c.bf16 %v2823_v11, %v2823_v11 }
 0xbf9   : > { %v2862_v21 = vpack.c.b16 %v2857_v9, %v2856_v8 }
 0xbfa   : > { %v2681_v17 = vmul.f32 %v4012_v12, %v2674_v15 }
 0xbfc   : > { %v4022_v35 = vadd.f32 %v4017_v13, %v2681_v17  ;;  %v2622_v18 = vpop.xlane.xlu0 %2621  ;;  %v2854_v17 = vunpack.c.l.b16 %v2830_v24 }
 0xbfd   : > { %v2628_v19 = vmul.f32 %v2622_v18, %v3968_v33  ;;  %v2855_v18 = vunpack.c.l.b16 %v2831_v55 }
 0xbfe   : > { %v2700_v31 = vpack.c.bf16 %v4022_v35, %v4022_v35 }
 0xbff   : > { %v2632_v22 = vadd.f32 1e-05, %v2628_v19 }
 0xc00   : > { %3264 = vmatmul.msk.bf16.vlgmr.msra.gmra.mxu0 %vm477_vm0, %v2700_v31  ;;  %v2820_v31 = vld [vmem:[%s4156_s9] sm:$0xff] }
 0xc01   : > { %3370 = vrsqrt.f32 %v2632_v22  ;;  %vm2660_vm8 = vweird.f32 %v2632_v22 }
 0xc04   : > { %v2625_v23 = vpop.xlane.xlu1 %2624 }
 0xc05   : > { %v2629_v26 = vmul.f32 %v2625_v23, %v3968_v33  ;;  %v2861_v23 = vpack.c.b16 %v2855_v18, %v2854_v17 }
 0xc07   : > { %v3371_v27 = vpop.eup %3370  ;;  %v2633_v28 = vadd.f32 1e-05, %v2629_v26  ;;  %v2828_v26 = vpack.c.bf16 %v2820_v31, %v2820_v31 }
 0xc08   : > { %v2655_v29 = vmul.f32 %v3371_v27, %v2632_v22  ;;  %vm2661_vm7 = vweird.f32 %v3371_v27  ;;  %v2821_v22 = vld [vmem:[%s4156_s9 + $0x8] sm:$0xff] }
 0xc09   : > { %3372 = vrsqrt.f32 %v2633_v28  ;;  %vm2662_vm9 = vmor %vm2660_vm8, %vm2661_vm7  ;;  %vm2670_vm11 = vweird.f32 %v2633_v28 }
 0xc0a   : > { %v2656_v30 = vmul.f32 %v3371_v27, %v2655_v29 }
 0xc0c   : > { %v2657_v34 = vmul.f32 0.5, %v2656_v30 }
 0xc0e   : > { %v2658_v36 = vsub.f32 1.5, %v2657_v34 }
 0xc0f   : > { %v3373_v37 = vpop.eup %3372 }
 0xc10   : > { %v2659_v38 = vmul.f32 %v3371_v27, %v2658_v36  ;;  %v2665_v39 = vmul.f32 %v3373_v37, %v2633_v28  ;;  %vm2671_vm10 = vweird.f32 %v3373_v37  ;;  %v2852_v28 = vunpack.c.l.b16 %v2828_v26  ;;  %v3299_v26 = vld [vmem:[%s4157_s10] ss:$0 sm:$0xff] }
 0xc11   : > { %vm2672_vm12 = vmor %vm2670_vm11, %vm2671_vm10 }
 0xc12   : > { %v2663_v40 = vsel %vm2662_vm9, %v3371_v27, %v2659_v38  ;;  %v2666_v14 = vmul.f32 %v3373_v37, %v2665_v39  ;;  %v2829_v27 = vpack.c.bf16 %v2821_v22, %v2821_v22 }
 0xc13   : > { %v2676_v41 = vmul.f32 %v2663_v40, %v3979_v45 }
 0xc14   : > { %v2667_v43 = vmul.f32 0.5, %v2666_v14  ;;  %v2853_v29 = vunpack.c.l.b16 %v2829_v27 }
 0xc15   : > { %v2683_v20 = vmul.f32 %v4012_v12, %v2676_v41 }
 0xc16   : > { %v2668_v25 = vsub.f32 1.5, %v2667_v43  ;;  %v2860_v30 = vpack.c.b16 %v2853_v29, %v2852_v28 }
 0xc17   : > { %v4032_v47 = vadd.f32 %v4017_v13, %v2683_v20 }
 0xc18   : > { %v2669_v48 = vmul.f32 %v3373_v37, %v2668_v25 }
 0xc19   : > { %v2702_v49 = vpack.c.bf16 %v4032_v47, %v4032_v47 }
 0xc1a   : > { %v2673_v50 = vsel %vm2672_vm12, %v3373_v37, %v2669_v48 }
 0xc1b   : > { %v2677_v52 = vmul.f32 %v2673_v50, %v3985_v51  ;;  %3266 = vmatmul.msk.bf16.vlgmr.msra.gmra.mxu2 %vm477_vm0, %v2702_v49  ;;  %v2826_v51 = vld [vmem:[%s4156_s9 + $0x30] sm:$0xff] }
 0xc1c   : > { %v2834_v44 = vpack.c.bf16 %v2826_v51, %v2826_v51 }
 0xc1d   : > { %v2684_v45 = vmul.f32 %v4012_v12, %v2677_v52 }
 0xc1e   : > { %v2858_v0 = vunpack.c.l.b16 %v2834_v44 }
 0xc1f   : > { %v4040_v53 = vadd.f32 %v4017_v13, %v2684_v45 }
 0xc20   : > { %v2863_v4 = vpack.c.b16 %v2859_v42, %v2858_v0 }
 0xc21   : > { %v2703_v56 = vpack.c.bf16 %v4040_v53, %v4040_v53 }
 0xc22   : > { %2876 = vmatpush.bf16.msrb.mxu0 %v2863_v4  ;;  %2908 = vmatpush.bf16.msrb.mxu2 %v2863_v4 }
 0xc23   : > { %3267 = vmatmul.msk.bf16.vlgmr.msra.gmra.mxu3 %vm477_vm0, %v2703_v56  ;;  %2892 = vmatpush.bf16.msrb.mxu1 %v2863_v4 }
 0xc24   : > { %2924 = vmatpush.bf16.msrb.mxu3 %v2863_v4 }
 0xc26   : > { %2877 = vmatpush.bf16.msrb.mxu0 %v2862_v21  ;;  %2909 = vmatpush.bf16.msrb.mxu2 %v2862_v21 }
 0xc27   : > { %2893 = vmatpush.bf16.msrb.mxu1 %v2862_v21 }
 0xc28   : > { %2925 = vmatpush.bf16.msrb.mxu3 %v2862_v21 }
 0xc2a   : > { %2878 = vmatpush.bf16.msrb.mxu0 %v2861_v23  ;;  %2910 = vmatpush.bf16.msrb.mxu2 %v2861_v23 }
 0xc2b   : > { %2894 = vmatpush.bf16.msrb.mxu1 %v2861_v23 }
 0xc2c   : > { %2926 = vmatpush.bf16.msrb.mxu3 %v2861_v23 }
 0xc2e   : > { %2879 = vmatpush.bf16.msrb.mxu0 %v2860_v30  ;;  %2911 = vmatpush.bf16.msrb.mxu2 %v2860_v30 }
 0xc2f   : > { %2895 = vmatpush.bf16.msrb.mxu1 %v2860_v30 }
 0xc30   : > { %2927 = vmatpush.bf16.msrb.mxu3 %v2860_v30 }
 0xc54   : > { %v2619_v58 = vpop.xlane.xlu0 %2618 }
 0xc55   : > { %v2627_v59 = vmul.f32 %v2619_v58, %v3968_v33 }
 0xc57   : > { %v2631_v32 = vadd.f32 1e-05, %v2627_v59 }
 0xc59   : > { %3374 = vrsqrt.f32 %v2631_v32  ;;  %vm2650_vm14 = vweird.f32 %v2631_v32 }
 0xc5f   : > { %v3375_v60 = vpop.eup %3374 }
 0xc60   : > { %v2645_v54 = vmul.f32 %v3375_v60, %v2631_v32  ;;  %vm2651_vm13 = vweird.f32 %v3375_v60 }
 0xc61   : > { %vm2652_vm15 = vmor %vm2650_vm14, %vm2651_vm13 }
 0xc62   : > { %v2646_v57 = vmul.f32 %v3375_v60, %v2645_v54 }
 0xc64   : > { %v2647_v63 = vmul.f32 0.5, %v2646_v57 }
 0xc66   : > { %v2648_v2 = vsub.f32 1.5, %v2647_v63 }
 0xc68   : > { %v2649_v7 = vmul.f32 %v3375_v60, %v2648_v2 }
 0xc6a   : > { %v2653_v16 = vsel %vm2652_vm15, %v3375_v60, %v2649_v7 }
 0xc6b   : > { %v2675_v15 = vmul.f32 %v2653_v16, %v4003_v3 }
 0xc6d   : > { %v2682_v19 = vmul.f32 %v4012_v12, %v2675_v15 }
 0xc6f   : > { %v4073_v3 = vadd.f32 %v4017_v13, %v2682_v19  ;;  %v3298_v13 = vld [vmem:[%s4155_s8] ss:$0 sm:$0xff] }
 0xc71   : > { %v2701_v12 = vpack.c.bf16 %v4073_v3, %v4073_v3 }
 0xc73   : > { %3265 = vmatmul.msk.bf16.vlgmr.msra.gmra.mxu1 %vm477_vm0, %v2701_v12 }
 0xc7d   : > { %v2732_v34 = vpop.f32.mrf.mxu0 }
 0xc7e   : > { %v2733_v36 = vadd.f32 %v3298_v13, %v2732_v34 }
 0xc80   : > { %v2788_v37 = vmul.f32 0.044715, %v2733_v36  ;;  %v2784_v20 = vmul.f32 0.5, %v2733_v36 }
 0xc82   : > { %v2792_v38 = vmul.f32 %v2788_v37, %v2733_v36 }
 0xc84   : > { %v2796_v39 = vmul.f32 %v2792_v38, %v2733_v36 }
 0xc85   : > { %v2734_v40 = vpop.f32.mrf.mxu0 }
 0xc86   : > { %v2800_v14 = vadd.f32 %v2796_v39, %v2733_v36 }
 0xc88   : > { %v2804_v41 = vmul.f32 0.7978846, %v2800_v14 }
 0xc8a   : > { %3376 = vtanh.f32 %v2804_v41 }
 0xc90   : > { %v3377_v43 = vpop.eup %3376 }
 0xc91   : > { %v2812_v25 = vadd.f32 1.0, %v3377_v43 }
 0xc93   : > { %v2816_v48 = vmul.f32 %v2812_v25, %v2784_v20 }
 0xc95   : > { %v2836_v49 = vpack.c.bf16 %v2816_v48, %v2816_v48 }
 0xc97   : > { %3268 = vmatmul.msk.bf16.vlgmr.msrb.gmra.mxu0 %vm2868_vm1, %v2836_v49 }
 0xc9e   : > { %v2764_v50 = vpop.f32.mrf.mxu2 }
 0xc9f   : > { %v2765_v52 = vadd.f32 %v3298_v13, %v2764_v50 }
 0xca1   : > { %v2790_v45 = vmul.f32 0.044715, %v2765_v52  ;;  %v2786_v1 = vmul.f32 0.5, %v2765_v52 }
 0xca3   : > { %v2794_v56 = vmul.f32 %v2790_v45, %v2765_v52 }
 0xca5   : > { %v2798_v58 = vmul.f32 %v2794_v56, %v2765_v52 }
 0xca6   : > { %v2766_v59 = vpop.f32.mrf.mxu2  ;;  %v2780_v32 = vpop.f32.mrf.mxu3 }
 0xca7   : > { %v2802_v60 = vadd.f32 %v2798_v58, %v2765_v52  ;;  %v2781_v54 = vadd.f32 %v3298_v13, %v2780_v32 }
 0xca9   : > { %v2806_v51 = vmul.f32 0.7978846, %v2802_v60  ;;  %v2791_v61 = vmul.f32 0.044715, %v2781_v54  ;;  %v2787_v6 = vmul.f32 0.5, %v2781_v54 }
 0xcab   : > { %3378 = vtanh.f32 %v2806_v51  ;;  %v2795_v57 = vmul.f32 %v2791_v61, %v2781_v54 }
 0xcad   : > { %v2799_v44 = vmul.f32 %v2795_v57, %v2781_v54 }
 0xcae   : > { %v2782_v62 = vpop.f32.mrf.mxu3 }
 0xcaf   : > { %v2803_v63 = vadd.f32 %v2799_v44, %v2781_v54 }
 0xcb1   : > { %v3379_v0 = vpop.eup %3378  ;;  %v2807_v42 = vmul.f32 0.7978846, %v2803_v63 }
 0xcb2   : > { %v2814_v46 = vadd.f32 1.0, %v3379_v0 }
 0xcb3   : > { %3380 = vtanh.f32 %v2807_v42 }
 0xcb4   : > { %v2818_v2 = vmul.f32 %v2814_v46, %v2786_v1 }
 0xcb6   : > { %v2838_v4 = vpack.c.bf16 %v2818_v2, %v2818_v2 }
 0xcb8   : > { %3270 = vmatmul.msk.bf16.vlgmr.msrb.gmra.mxu2 %vm2868_vm1, %v2838_v4 }
 0xcb9   : > { %v3381_v5 = vpop.eup %3380 }
 0xcba   : > { %v2815_v7 = vadd.f32 1.0, %v3381_v5 }
 0xcbc   : > { %v2819_v8 = vmul.f32 %v2815_v7, %v2787_v6 }
 0xcbe   : > { %v2839_v9 = vpack.c.bf16 %v2819_v8, %v2819_v8 }
 0xcc0   : > { %3271 = vmatmul.msk.bf16.vlgmr.msrb.gmra.mxu3 %vm2868_vm1, %v2839_v9 }
 0xcf0   : > { %v2748_v10 = vpop.f32.mrf.mxu1 }
 0xcf1   : > { %v2749_v11 = vadd.f32 %v3298_v13, %v2748_v10  ;;  %v3300_v10 = vld [vmem:[%s4158_s11] ss:$0 sm:$0xff] }
 0xcf3   : > { %v2789_v16 = vmul.f32 0.044715, %v2749_v11  ;;  %v2785_v19 = vmul.f32 0.5, %v2749_v11 }
 0xcf5   : > { %v2793_v21 = vmul.f32 %v2789_v16, %v2749_v11  ;;  %v3301_v16 = vld [vmem:[%s4159_s12] ss:$0 sm:$0xff] }
 0xcf7   : > { %v2797_v24 = vmul.f32 %v2793_v21, %v2749_v11 }
 0xcf8   : > { %v2750_v55 = vpop.f32.mrf.mxu1 }
 0xcf9   : > { %v2801_v15 = vadd.f32 %v2797_v24, %v2749_v11 }
 0xcfb   : > { %v2805_v17 = vmul.f32 0.7978846, %v2801_v15 }
 0xcfd   : > { %3382 = vtanh.f32 %v2805_v17 }
 0xd03   : > { %v3383_v18 = vpop.eup %3382 }
 0xd04   : > { %v2813_v31 = vadd.f32 1.0, %v3383_v18 }
 0xd06   : > { %v2817_v22 = vmul.f32 %v2813_v31, %v2785_v19 }
 0xd08   : > { %v2837_v23 = vpack.c.bf16 %v2817_v22, %v2817_v22 }
 0xd0a   : > { %3269 = vmatmul.msk.bf16.vlgmr.msrb.gmra.mxu1 %vm2868_vm1, %v2837_v23 }
 0xd14   : > { %v2881_v27 = vpop.f32.mrf.mxu0 }
 0xd15   : > { %v2882_v28 = vadd.f32 %v3299_v26, %v2881_v27 }
 0xd17   : > { %v2933_v29 = vadd.f32 %v2882_v28, %v4022_v35 }
 0xd19   : > { %v2939_v12 = vsel %vm477_vm0, %v2933_v29, 0.0 }
 0xd1a   : > { %2940 = vadd.xlane.f32.xlu1 %v2939_v12 }
 0xd1c   : > { %v2883_v30 = vpop.f32.mrf.mxu0 }
 0xd3b   : > { %v2913_v13 = vpop.f32.mrf.mxu2 }
 0xd3c   : > { %v2914_v34 = vadd.f32 %v3299_v26, %v2913_v13 }
 0xd3e   : > { %v2935_v36 = vadd.f32 %v2914_v34, %v4032_v47 }
 0xd40   : > { %v2945_v37 = vsel %vm477_vm0, %v2935_v36, 0.0 }
 0xd41   : > { %2946 = vadd.xlane.f32.xlu0 %v2945_v37 }
 0xd43   : > { %v2915_v38 = vpop.f32.mrf.mxu2  ;;  %v2929_v39 = vpop.f32.mrf.mxu3 }
 0xd44   : > { %v2930_v40 = vadd.f32 %v3299_v26, %v2929_v39 }
 0xd46   : > { %v2936_v14 = vadd.f32 %v2930_v40, %v4040_v53 }
 0xd48   : > { %v2948_v41 = vsel %vm477_vm0, %v2936_v14, 0.0 }
 0xd49   : > { %2949 = vadd.xlane.f32.xlu1 %v2948_v41 }
 0xd4b   : > { %v2931_v35 = vpop.f32.mrf.mxu3 }
 0xd87   : > { %v2897_v43 = vpop.f32.mrf.mxu1 }
 0xd88   : > { %v2898_v20 = vadd.f32 %v3299_v26, %v2897_v43 }
 0xd8a   : > { %v2934_v25 = vadd.f32 %v2898_v20, %v4073_v3 }
 0xd8c   : > { %v2942_v48 = vsel %vm477_vm0, %v2934_v25, 0.0 }
 0xd8d   : > { %2943 = vadd.xlane.f32.xlu2 %v2942_v48  ;;  %v2941_v47 = vpop.xlane.xlu1 %2940 }
 0xd8e   : > { %v2951_v49 = vmul.f32 %v2941_v47, %v3968_v33 }
 0xd8f   : > { %v2899_v50 = vpop.f32.mrf.mxu1 }
 0xd90   : > { %v2955_v52 = vsub.f32 %v2933_v29, %v2951_v49 }
 0xd92   : > { %v2959_v45 = vmul.f32 %v2955_v52, %v2955_v52 }
 0xd94   : > { %v2963_v56 = vsel %vm477_vm0, %v2959_v45, 0.0 }
 0xd95   : > { %2964 = vadd.xlane.f32.xlu2 %v2963_v56 }
 0xdb4   : > { %v2947_v53 = vpop.xlane.xlu0 %2946 }
 0xdb5   : > { %v2953_v58 = vmul.f32 %v2947_v53, %v3968_v33 }
 0xdb7   : > { %v4099_v59 = vsub.f32 %v2935_v36, %v2953_v58 }
 0xdb9   : > { %v2961_v3 = vmul.f32 %v4099_v59, %v4099_v59 }
 0xdbb   : > { %v2969_v32 = vsel %vm477_vm0, %v2961_v3, 0.0 }
 0xdbc   : > { %2970 = vadd.xlane.f32.xlu1 %v2969_v32  ;;  %v2950_v60 = vpop.xlane.xlu1 %2949 }
 0xdbd   : > { %v2954_v54 = vmul.f32 %v2950_v60, %v3968_v33 }
 0xdbf   : > { %v4105_v51 = vsub.f32 %v2936_v14, %v2954_v54 }
 0xdc1   : > { %v2962_v61 = vmul.f32 %v4105_v51, %v4105_v51 }
 0xdc3   : > { %v2972_v57 = vsel %vm477_vm0, %v2962_v61, 0.0 }
 0xdc4   : > { %2973 = vadd.xlane.f32.xlu2 %v2972_v57 }
 0xe00   : > { %v2944_v44 = vpop.xlane.xlu2 %2943 }
 0xe01   : > { %v2952_v62 = vmul.f32 %v2944_v44, %v3968_v33 }
 0xe03   : > { %v4111_v63 = vsub.f32 %v2934_v25, %v2952_v62 }
 0xe05   : > { %v2960_v0 = vmul.f32 %v4111_v63, %v4111_v63 }
 0xe07   : > { %v2966_v42 = vsel %vm477_vm0, %v2960_v0, 0.0 }
 0xe08   : > { %2967 = vadd.xlane.f32.xlu0 %v2966_v42  ;;  %v2965_v1 = vpop.xlane.xlu2 %2964 }
 0xe09   : > { %v2975_v46 = vmul.f32 %v2965_v1, %v3968_v33 }
 0xe0b   : > { %v2979_v2 = vadd.f32 1e-05, %v2975_v46 }
 0xe0d   : > { %3384 = vrsqrt.f32 %v2979_v2  ;;  %vm2989_vm3 = vweird.f32 %v2979_v2 }
 0xe13   : > { %v3385_v4 = vpop.eup %3384 }
 0xe14   : > { %v2984_v5 = vmul.f32 %v3385_v4, %v2979_v2  ;;  %vm2990_vm2 = vweird.f32 %v3385_v4 }
 0xe15   : > { %vm2991_vm4 = vmor %vm2989_vm3, %vm2990_vm2 }
 0xe16   : > { %v2985_v6 = vmul.f32 %v3385_v4, %v2984_v5 }
 0xe18   : > { %v2986_v7 = vmul.f32 0.5, %v2985_v6 }
 0xe1a   : > { %v2987_v8 = vsub.f32 1.5, %v2986_v7 }
 0xe1c   : > { %v2988_v9 = vmul.f32 %v3385_v4, %v2987_v8 }
 0xe1e   : > { %v2992_v11 = vsel %vm2991_vm4, %v3385_v4, %v2988_v9 }
 0xe1f   : > { %v3023_v21 = vmul.f32 %v2992_v11, %v2955_v52 }
 0xe21   : > { %v3030_v24 = vmul.f32 %v3300_v10, %v3023_v21 }
 0xe23   : > { %v3037_v55 = vadd.f32 %v3301_v16, %v3030_v24 }
 0xe25   : > { %3041 = vst.msk [vmem:[%s4128_s22] sm:$0xff] %vm477_vm0, %v3037_v55 }
 0xe2f   : > { %v2971_v15 = vpop.xlane.xlu1 %2970 }
 0xe30   : > { %v2977_v18 = vmul.f32 %v2971_v15, %v3968_v33 }
 0xe32   : > { %v2981_v31 = vadd.f32 1e-05, %v2977_v18 }
 0xe34   : > { %3386 = vrsqrt.f32 %v2981_v31  ;;  %vm3009_vm7 = vweird.f32 %v2981_v31 }
 0xe37   : > { %v2974_v17 = vpop.xlane.xlu2 %2973 }
 0xe38   : > { %v2978_v19 = vmul.f32 %v2974_v17, %v3968_v33 }
 0xe3a   : > { %v2982_v22 = vadd.f32 1e-05, %v2978_v19  ;;  %v3387_v23 = vpop.eup %3386 }
 0xe3b   : > { %v3004_v27 = vmul.f32 %v3387_v23, %v2981_v31  ;;  %vm3010_vm5 = vweird.f32 %v3387_v23 }
 0xe3c   : > { %3388 = vrsqrt.f32 %v2982_v22  ;;  %vm3011_vm8 = vmor %vm3009_vm7, %vm3010_vm5  ;;  %vm3019_vm9 = vweird.f32 %v2982_v22 }
 0xe3d   : > { %v3005_v12 = vmul.f32 %v3387_v23, %v3004_v27 }
 0xe3f   : > { %v3006_v36 = vmul.f32 0.5, %v3005_v12 }
 0xe41   : > { %v3007_v38 = vsub.f32 1.5, %v3006_v36 }
 0xe42   : > { %v3389_v26 = vpop.eup %3388 }
 0xe43   : > { %v3014_v28 = vmul.f32 %v3389_v26, %v2982_v22  ;;  %v3008_v41 = vmul.f32 %v3387_v23, %v3007_v38  ;;  %vm3020_vm6 = vweird.f32 %v3389_v26 }
 0xe44   : > { %vm3021_vm10 = vmor %vm3019_vm9, %vm3020_vm6 }
 0xe45   : > { %v3015_v13 = vmul.f32 %v3389_v26, %v3014_v28  ;;  %v3012_v25 = vsel %vm3011_vm8, %v3387_v23, %v3008_v41 }
 0xe46   : > { %v3025_v47 = vmul.f32 %v3012_v25, %v4099_v59 }
 0xe47   : > { %v3016_v37 = vmul.f32 0.5, %v3015_v13 }
 0xe48   : > { %v3032_v56 = vmul.f32 %v3300_v10, %v3025_v47 }
 0xe49   : > { %v3017_v39 = vsub.f32 1.5, %v3016_v37 }
 0xe4a   : > { %v3039_v32 = vadd.f32 %v3301_v16, %v3032_v56 }
 0xe4b   : > { %v3018_v35 = vmul.f32 %v3389_v26, %v3017_v39 }
 0xe4c   : > { %3043 = vst.msk [vmem:[%s4128_s22 + $0x10] sm:$0xff] %vm477_vm0, %v3039_v32 }
 0xe7b   : > { %v2968_v29 = vpop.xlane.xlu0 %2967 }
 0xe7c   : > { %v2976_v30 = vmul.f32 %v2968_v29, %v3968_v33  ;;  %v3022_v33 = vsel %vm3021_vm10, %v3389_v26, %v3018_v35 }
 0xe7d   : > { %v3026_v50 = vmul.f32 %v3022_v33, %v4105_v51 }
 0xe7e   : > { %v2980_v34 = vadd.f32 1e-05, %v2976_v30 }
 0xe7f   : > { %v3033_v53 = vmul.f32 %v3300_v10, %v3026_v50 }
 0xe80   : > { %3390 = vrsqrt.f32 %v2980_v34  ;;  %vm2999_vm12 = vweird.f32 %v2980_v34 }
 0xe81   : > { %v3040_v60 = vadd.f32 %v3301_v16, %v3033_v53 }
 0xe83   : > { %3044 = vst.msk [vmem:[%s4128_s22 + $0x18] sm:$0xff] %vm477_vm0, %v3040_v60 }
 0xe86   : > { %v3391_v40 = vpop.eup %3390 }
 0xe87   : > { %v2994_v14 = vmul.f32 %v3391_v40, %v2980_v34  ;;  %vm3000_vm11 = vweird.f32 %v3391_v40 }
 0xe88   : > { %vm3001_vm13 = vmor %vm2999_vm12, %vm3000_vm11 }
 0xe89   : > { %v2995_v43 = vmul.f32 %v3391_v40, %v2994_v14 }
 0xe8b   : > { %v2996_v20 = vmul.f32 0.5, %v2995_v43 }
 0xe8d   : > { %v2997_v48 = vsub.f32 1.5, %v2996_v20 }
 0xe8f   : > { %v2998_v49 = vmul.f32 %v3391_v40, %v2997_v48 }
 0xe91   : > { %v3002_v52 = vsel %vm3001_vm13, %v3391_v40, %v2998_v49 }
 0xe92   : > { %v3024_v45 = vmul.f32 %v3002_v52, %v4111_v63 }
 0xe94   : > { %v3031_v58 = vmul.f32 %v3300_v10, %v3024_v45 }
 0xe96   : > { %v3038_v3 = vadd.f32 %v3301_v16, %v3031_v58 }
 0xe98   : > { %3042 = vst.msk [vmem:[%s4128_s22 + $0x8] sm:$0xff] %vm477_vm0, %v3038_v3 }
 0xe99 PF: > { %s23_s25 = sadd.s32 1, %s3402_s25  }
 0xe9a   : > { %p20_p4 = scmp.ge.s32.totalorder %s23_s25, 4  }
 0xe9c   :  { %22 = sbr.rel (!%p20_p4) target bundleno = 1 (0x1), region = 127 }

// kernel: run.14
= control target key start
LH: loop header
LB: loop body
LE: loop exit
PB: predicated region body
PF: predicated region fallthrough
CT: control target
= control target key end

     0   :  { %s1470_s0 = inlined_call_operand.vmem [shape: f32[64,32], index: 0, kind: input, shape index: {}]   ;;  %s1471_s1 = inlined_call_operand.vmem [shape: f32[64,32], index: 1, kind: input, shape index: {}]   ;;  %s1472_s2 = inlined_call_operand.vmem [shape: f32[64,32], index: 2, kind: input, shape index: {}]   ;;  %s1473_s3 = inlined_call_operand.vmem [shape: f32[32,32], index: 3, kind: input, shape index: {}]   ;;  %s1474_s4 = inlined_call_operand.vmem [shape: f32[32,32], index: 4, kind: input, shape index: {}]   ;;  %s1475_s5 = inlined_call_operand.vmem [shape: f32[1,32], index: 5, kind: input, shape index: {}]   ;;  %s1476_s6 = inlined_call_operand.vmem [shape: f32[1,32], index: 6, kind: input, shape index: {}]   ;;  %s1477_s7 = inlined_call_operand.vmem [shape: f32[32,32], index: 7, kind: input, shape index: {}]   ;;  %s1478_s8 = inlined_call_operand.vmem [shape: f32[32,32], index: 8, kind: input, shape index: {}]   ;;  %s1479_s9 = inlined_call_operand.vmem [shape: f32[1,32], index: 9, kind: input, shape index: {}]   ;;  %s1480_s10 = inlined_call_operand.vmem [shape: f32[1,32], index: 10, kind: input, shape index: {}]   ;;  %s1481_s11 = inlined_call_operand.vmem [shape: f32[32,32], index: 11, kind: input, shape index: {}]   ;;  %s1482_s12 = inlined_call_operand.vmem [shape: f32[32,32], index: 12, kind: input, shape index: {}]   ;;  %s1483_s13 = inlined_call_operand.vmem [shape: f32[1,32], index: 13, kind: input, shape index: {}]   ;;  %s1484_s14 = inlined_call_operand.vmem [shape: f32[1,32], index: 14, kind: input, shape index: {}]   ;;  %s1485_s15 = inlined_call_operand.hbm [shape: f32[64,32], index: 15, kind: output, shape index: {0}]   ;;  %s1486_s16 = inlined_call_operand.vmem [shape: f32[64,32], index: 16, kind: output, shape index: {1}]  }
   0x1   :  { %1492 = sst [smem:[#allocation10_spill]] %s1470_s0 }
   0x2   :  { %1493 = sst [smem:[#allocation11_spill]] %s1473_s3 }
   0x3   :  { %1494 = sst [smem:[#allocation12_spill]] %s1477_s7 }
   0x4   :  { %22 = vsyncpa [#allocation3], 0 }
   0x5   :  { %24 = vsyncpa [#allocation3 + $0x1], 0  ;;  %s1238_s21 = smov 0   ;;  %s1240_s22 = smov 0  }
   0x6   :  { %s1242_s23 = smov 0   ;;  %s1244_s24 = smov 0  }
   0x7 LB: > { %1495 = sst [smem:[#allocation5_spill]] %s1137_s21  ;;  %s1259_s25 = sadd.s32 4294967295, %s1149_s24   ;;  %s1149_s24 = sphi %s1244_s24, %s1507_s24   ;;  %s1145_s23 = sphi %s1242_s23, %s1509_s23   ;;  %s1141_s22 = sphi %s1240_s22, %s1511_s22   ;;  %s1137_s21 = sphi %s1238_s21, %s1510_s21  }
   0x8   : > { %1496 = sst [smem:[#allocation6_spill]] %s1145_s23  ;;  %s989_s26 = sadd.s32 4294967294, %s1149_s24  }
   0x9   : > { %s1263_s27 = sadd.s32 1, %s1149_s24   ;;  %s367_s28 = sadd.s32 1, %s1145_s23 }
   0xa   : > { %1497 = sst [smem:[#allocation7_spill]] %s1263_s27  ;;  %s364_s29 = ssub.s32 %s1149_s24, %s1263_s27 }
   0xb   : > { %p377_p0 = scmp.ne.s32.totalorder %s1145_s23, %s1141_s22  ;;  %p365_p1 = scmp.eq.s32.totalorder %s364_s29, 0 }
   0xc   : > { %p378_p2 = scmp.eq.s32.totalorder %s1259_s25, 1  ;;  %p383_p3 = scmp.ne.s32.totalorder %s1141_s22, %s1137_s21 }
   0xd   : > { %p384_p4 = scmp.eq.s32.totalorder %s989_s26, 1  ;;  %p992_p7 = scmp.ge.s32.totalorder %s1149_s24, 1 }
   0xe   : > { %s1274_s30 = scalar_select %p365_p1, %s1145_s23, %s367_s28  }
   0xf   : > { %p1276_p5 = por %p378_p2, %p377_p0  ;;  %p1280_p6 = por %p384_p4, %p383_p3 }
  0x10   : > { %1498 = sst [smem:[#allocation8_spill]] %s1274_s30  ;;  %p491_p8 = scmp.lt.s32.totalorder %s1149_s24, 3 }
  0x11   : > { %s1500_s17 = scalar_select %p1280_p6, 1, 0 }
  0x12   : > { %p492_p9 = pnand %p992_p7, %p491_p8 }
  0x13   : > { %1501 = sst [smem:[#allocation9_spill]] %s1500_s17  ;;  %s994_s30 = sshll.u32 (!%p492_p9), %s1259_s25, 2 }
  0x14   : > { %495 = sbr.rel (%p492_p9) target bundleno = 370 (0x172), region = 80  ;;  %s1502_s7 = sld [smem:[#allocation12_spill]] (!%p492_p9) }
  0x15   : > { %s1503_s3 = sld [smem:[#allocation11_spill]] (!%p492_p9)  ;;  %p557_p10 = scmp.lt.s32.totalorder (!%p492_p9), %s994_s30, 7 }
  0x16   : > { %s1504_s27 = sld [smem:[#allocation10_spill]] (!%p492_p9)  ;;  %s546_s19 = sand.u32 (!%p492_p9), 1, %s1141_s22  }
  0x19   : > { %v681_v10 = vld [vmem:[%s1478_s8 + $0x10] sm:$0xff]  ;;  %s1513_s30 = smov (!%p557_p10, %s994_s30), 7  ;;  %v682_v12 = vld [vmem:[%s1478_s8 + $0x18] sm:$0xff]  ;;  %v679_v17 = vld [vmem:[%s1478_s8] sm:$0xff]  ;;  %vm606_vm0 = vcmask 261120  }
  0x1a   : > { %v600_v0 = vld [vmem:[%s1502_s7 + $0x10] sm:$0xff]  ;;  %v601_v1 = vld [vmem:[%s1502_s7 + $0x18] sm:$0xff]  ;;  %v598_v5 = vld [vmem:[%s1502_s7] sm:$0xff]  ;;  %v684_v16 = vpack.c.bf16 %v682_v12, %v681_v10  ;;  %s1332_s18 = sshll.u32 %s1513_s30, 3 }
  0x1b   : > { %v592_v2 = vld [vmem:[%s1503_s3 + $0x10] sm:$0xff]  ;;  %v605_v3 = vpack.c.bf16 %v601_v1, %v600_v0  ;;  %v593_v4 = vld [vmem:[%s1503_s3 + $0x18] sm:$0xff]  ;;  %v599_v6 = vld [vmem:[%s1502_s7 + $0x8] sm:$0xff]  ;;  %s566_s29 = scalar_lea.vmem %s1471_s1, %s1332_s18  ;;  %s1397_s30 = scalar_lea.vmem %s1472_s2, %s1332_s18 }
  0x1c   : > { %v597_v7 = vpack.c.bf16 %v593_v4, %v592_v2  ;;  %v590_v8 = vld [vmem:[%s1503_s3] sm:$0xff]  ;;  %v591_v9 = vld [vmem:[%s1503_s3 + $0x8] sm:$0xff]  ;;  %v604_v11 = vpack.c.bf16 %v599_v6, %v598_v5  ;;  %v675_v13 = vld [vmem:[%s1474_s4 + $0x10] sm:$0xff]  ;;  %s560_s7 = scalar_lea.vmem %s1504_s27, %s1332_s18  ;;  %s1411_s23 = scalar_lea.vmem %s1486_s16, %s1332_s18 }
  0x1d   : > { %1020 = vmatpush.bf16.msra.mxu2 %v605_v3  ;;  %v676_v14 = vld [vmem:[%s1474_s4 + $0x18] sm:$0xff]  ;;  %619 = vmatpush.bf16.msra.mxu0 %v605_v3  ;;  %v596_v15 = vpack.c.bf16 %v591_v9, %v590_v8  ;;  %v680_v18 = vld [vmem:[%s1478_s8 + $0x8] sm:$0xff]  ;;  %v673_v19 = vld [vmem:[%s1474_s4] sm:$0xff]  ;;  %s993_s27 = sshll.u32 %s546_s19, 5  ;;  %s1019_s18 = sshll.u32 %s1259_s25, 5 }
  0x1e   : > { %1022 = vmatpush.bf16.msra.mxu3 %v597_v7  ;;  %644 = vmatpush.bf16.msra.mxu1 %v597_v7  ;;  %v678_v20 = vpack.c.bf16 %v676_v14, %v675_v13  ;;  %v674_v21 = vld [vmem:[%s1474_s4 + $0x8] sm:$0xff]  ;;  %v588_v22 = vld [vmem:[%s566_s29 + $0x10] sm:$0xff]  ;;  %v589_v23 = vld [vmem:[%s566_s29 + $0x18] sm:$0xff]  ;;  %v683_v29 = vpack.c.bf16 %v680_v18, %v679_v17  ;;  %s1418_s3 = scalar_lea.vmem [#allocation2], %s993_s27  ;;  %s870_s17 = scalar_lea.hbm %s1485_s15, %s1019_s18 }
  0x1f   : > { %v584_v24 = vld [vmem:[%s560_s7 + $0x10] sm:$0xff]  ;;  %v603_v25 = vpack.c.bf16 %v589_v23, %v588_v22  ;;  %v585_v26 = vld [vmem:[%s560_s7 + $0x18] sm:$0xff]  ;;  %v586_v27 = vld [vmem:[%s566_s29] sm:$0xff]  ;;  %v677_v34 = vpack.c.bf16 %v674_v21, %v673_v19  ;;  %s871_s20 = sshll.u32 %s1418_s3, 4  ;;  %s873_s26 = sshll.u32 %s870_s17, 4  ;;  %s872_s20 = int_to_ptr.vmem [resolvable:$true] %s871_s20  ;;  %s874_s26 = int_to_ptr.hbm [resolvable:$true] %s873_s26 }
  0x20   : > { %v587_v28 = vld [vmem:[%s566_s29 + $0x8] sm:$0xff]  ;;  %v595_v30 = vpack.c.bf16 %v585_v26, %v584_v24  ;;  %v582_v32 = vld [vmem:[%s560_s7] sm:$0xff]  ;;  %v769_v39 = vld [vmem:[%s1481_s11 + $0x10] sm:$0xff]  ;;  %s854_s25 = scalar_lea.sflag [#allocation3], %s546_s19  ;;  %s1107_s18 = scalar_lea.hbm %s1485_s15, 64 }
  0x21   : > { %1021 = vmatpush.bf16.msra.mxu2 %v604_v11  ;;  %620 = vmatpush.bf16.msra.mxu0 %v604_v11  ;;  %v602_v31 = vpack.c.bf16 %v587_v28, %v586_v27  ;;  %v583_v33 = vld [vmem:[%s560_s7 + $0x8] sm:$0xff]  ;;  %v770_v40 = vld [vmem:[%s1481_s11 + $0x18] sm:$0xff]  ;;  %v822_v41 = vld [vmem:[%s1482_s12 + $0x10] sm:$0xff] }
  0x22   : > { %1023 = vmatpush.bf16.msra.mxu3 %v596_v15  ;;  %645 = vmatpush.bf16.msra.mxu1 %v596_v15  ;;  %v594_v35 = vpack.c.bf16 %v583_v33, %v582_v32  ;;  %v774_v43 = vpack.c.bf16 %v770_v40, %v769_v39  ;;  %v823_v44 = vld [vmem:[%s1482_s12 + $0x18] sm:$0xff]  ;;  %v767_v48 = vld [vmem:[%s1481_s11] sm:$0xff]  ;;  %v768_v49 = vld [vmem:[%s1481_s11 + $0x8] sm:$0xff] }
  0x23   : > { %v825_v45 = vpack.c.bf16 %v823_v44, %v822_v41  ;;  %v820_v50 = vld [vmem:[%s1482_s12] sm:$0xff]  ;;  %v773_v52 = vpack.c.bf16 %v768_v49, %v767_v48  ;;  %v821_v53 = vld [vmem:[%s1482_s12 + $0x8] sm:$0xff] }
  0x24   : > { %1003 = vmatmul.msk.bf16.vlgmr.msra.gmra.mxu2 %vm606_vm0, %v603_v25  ;;  %1002 = vmatmul.msk.bf16.vlgmr.msra.gmra.mxu0 %vm606_vm0, %v602_v31  ;;  %v824_v54 = vpack.c.bf16 %v821_v53, %v820_v50  ;;  %v1065_v55 = vld [vmem:[%s1475_s5] ss:$0 sm:$0xff] }
  0x25   : > { %691 = vmatpush.bf16.msrb.mxu2 %v684_v16  ;;  %1005 = vmatmul.msk.bf16.vlgmr.msra.gmra.mxu3 %vm606_vm0, %v595_v30  ;;  %v1066_v60 = vld [vmem:[%s1479_s9] ss:$0 sm:$0xff] }
  0x26   : > { %710 = vmatpush.bf16.msrb.mxu3 %v678_v20  ;;  %1004 = vmatmul.msk.bf16.vlgmr.msra.gmra.mxu1 %vm606_vm0, %v594_v35  ;;  %v1067_v4 = vld [vmem:[%s1476_s6] ss:$0 sm:$0xff] }
  0x27   : > { %787 = vmatpush.bf16.msrb.mxu0 %v774_v43  ;;  %836 = vmatpush.bf16.msrb.mxu1 %v825_v45  ;;  %v1068_v7 = vld [vmem:[%s1480_s10] ss:$0 sm:$0xff] }
  0x29   : > { %692 = vmatpush.bf16.msrb.mxu2 %v683_v29 }
  0x2a   : > { %711 = vmatpush.bf16.msrb.mxu3 %v677_v34 }
  0x2b   : > { %788 = vmatpush.bf16.msrb.mxu0 %v773_v52  ;;  %837 = vmatpush.bf16.msrb.mxu1 %v824_v54  ;;  %v1070_v54 = vld [vmem:[%s1484_s14] ss:$0 sm:$0xff] }
  0x34   : > { %1006 = vmatmul.msk.bf16.vlgmr.msrb.gmra.mxu2 %vm606_vm0, %v602_v31 }
  0x35   : > { %1008 = vmatmul.msk.bf16.vlgmr.msrb.gmra.mxu3 %vm606_vm0, %v594_v35 }
  0x44   : > { %1007 = vmatmul.msk.bf16.gmra.mxu2 %vm606_vm0, %v603_v25 }
  0x45   : > { %1009 = vmatmul.msk.bf16.gmra.mxu3 %vm606_vm0, %v595_v30 }
  0xa1   : > { %v622_v36 = vpop.f32.mrf.mxu0 }
  0xa3   : > { %v647_v37 = vpop.f32.mrf.mxu1 }
  0xa4   : > { %v648_v51 = vadd.f32 %v647_v37, %v622_v36 }
  0xa6   : > { %v661_v59 = vadd.f32 %v1065_v55, %v648_v51 }
  0xa7   : > { %v627_v38 = vpop.f32.mrf.mxu2 }
  0xa8   : > { %v652_v42 = vpop.f32.mrf.mxu3  ;;  %v669_v62 = vadd.f32 %v1066_v60, %v661_v59 }
  0xa9   : > { %v624_v46 = vpop.f32.mrf.mxu0  ;;  %v653_v8 = vadd.f32 %v652_v42, %v627_v38 }
  0xaa   : > { %v739_v2 = vmul.f32 0.5, %v669_v62 }
  0xab   : > { %v649_v47 = vpop.f32.mrf.mxu1  ;;  %v663_v14 = vadd.f32 %v1065_v55, %v653_v8 }
  0xac   : > { %v650_v57 = vadd.f32 %v649_v47, %v624_v46  ;;  %1071 = vtanh.f32 %v739_v2 }
  0xad   : > { %v671_v20 = vadd.f32 %v1066_v60, %v663_v14 }
  0xae   : > { %v662_v61 = vadd.f32 %v1065_v55, %v650_v57 }
  0xaf   : > { %v629_v56 = vpop.f32.mrf.mxu2  ;;  %v741_v27 = vmul.f32 0.5, %v671_v20 }
  0xb0   : > { %v654_v58 = vpop.f32.mrf.mxu3  ;;  %v670_v63 = vadd.f32 %v1066_v60, %v662_v61 }
  0xb1   : > { %v655_v9 = vadd.f32 %v654_v58, %v629_v56  ;;  %v1069_v56 = vld [vmem:[%s1483_s13] ss:$0 sm:$0xff] }
  0xb2   : > { %v740_v5 = vmul.f32 0.5, %v670_v63  ;;  %v1072_v15 = vpop.eup %1071  ;;  %v764_v63 = vld [vmem:[%s1397_s30 + $0x8] sm:$0xff] }
  0xb3   : > { %v664_v16 = vadd.f32 %v1065_v55, %v655_v9  ;;  %v747_v21 = vadd.f32 1.0, %v1072_v15  ;;  %v763_v55 = vld [vmem:[%s1397_s30] sm:$0xff] }
  0xb4   : > { %1073 = vtanh.f32 %v740_v5 }
  0xb5   : > { %v672_v22 = vadd.f32 %v1066_v60, %v664_v16  ;;  %v751_v28 = vmul.f32 0.5, %v747_v21 }
  0xb7   : > { %v694_v0 = vpop.f32.mrf.mxu2  ;;  %v742_v30 = vmul.f32 0.5, %v672_v22 }
  0xb8   : > { %v713_v1 = vpop.f32.mrf.mxu3 }
  0xb9   : > { %v714_v3 = vadd.f32 %v713_v1, %v694_v0 }
  0xba   : > { %v1074_v18 = vpop.eup %1073 }
  0xbb   : > { %v727_v6 = vadd.f32 %v1067_v4, %v714_v3  ;;  %v748_v24 = vadd.f32 1.0, %v1074_v18 }
  0xbd   : > { %v735_v12 = vadd.f32 %v1068_v7, %v727_v6  ;;  %v752_v31 = vmul.f32 0.5, %v748_v24  ;;  %v765_v6 = vld [vmem:[%s1397_s30 + $0x10] sm:$0xff] }
  0xbf   : > { %v696_v10 = vpop.f32.mrf.mxu2  ;;  %1075 = vtanh.f32 %v735_v12 }
  0xc0   : > { %v715_v11 = vpop.f32.mrf.mxu3 }
  0xc1   : > { %v716_v13 = vadd.f32 %v715_v11, %v696_v10 }
  0xc3   : > { %v728_v17 = vadd.f32 %v1067_v4, %v716_v13  ;;  %v766_v13 = vld [vmem:[%s1397_s30 + $0x18] sm:$0xff]  ;;  %s1101_s30 = sshra.s32 %s874_s26, 4  ;;  %s1102_s30 = int_to_ptr.hbm [resolvable:$true] %s1101_s30 }
  0xc4   : > { %s1103_s28 = scalar_lea.hbm %s1102_s30, 32  ;;  %p1108_p0 = scmp.lt.s32.totalorder %s1102_s30, %s1485_s15 }
  0xc5   : > { %v736_v19 = vadd.f32 %v1068_v7, %v728_v17  ;;  %v1076_v29 = vpop.eup %1075  ;;  %p1104_p11 = scmp.ne.s32.totalorder %s1102_s30, %s1103_s28  ;;  %p1109_p1 = scmp.lt.s32.totalorder %s1107_s18, %s1103_s28 }
  0xc6   : > { %v759_v34 = vmul.f32 %v1076_v29, %v751_v28 }
  0xc7   : > { %1077 = vtanh.f32 %v736_v19  ;;  %v699_v23 = vpop.f32.mrf.mxu2  ;;  %p1105_p12 = pnand %p1104_p11, %p1276_p5  ;;  %p1110_p2 = por %p1109_p1, %p1108_p0 }
  0xc8   : > { %v718_v25 = vpop.f32.mrf.mxu3  ;;  %1079 = vtanh.f32 %v741_v27 }
  0xc9   : > { %v719_v26 = vadd.f32 %v718_v25, %v699_v23  ;;  %1081 = vtanh.f32 %v742_v30  ;;  %p1106_p13 = pneg %p1105_p12 }
  0xcb   : > { %v729_v33 = vadd.f32 %v1067_v4, %v719_v26  ;;  %p1111_p3 = pnand %p1110_p2, %p1106_p13 }
  0xcd   : > { %v1078_v32 = vpop.eup %1077  ;;  %v737_v39 = vadd.f32 %v1068_v7, %v729_v33 }
  0xce   : > { %v760_v35 = vmul.f32 %v1078_v32, %v752_v31  ;;  %v1080_v42 = vpop.eup %1079 }
  0xcf   : > { %v701_v36 = vpop.f32.mrf.mxu2  ;;  %v1082_v43 = vpop.eup %1081  ;;  %1083 = vtanh.f32 %v737_v39  ;;  %v749_v45 = vadd.f32 1.0, %v1080_v42 }
  0xd0   : > { %v720_v37 = vpop.f32.mrf.mxu3  ;;  %v771_v38 = vpack.c.bf16 %v760_v35, %v759_v34  ;;  %v750_v46 = vadd.f32 1.0, %v1082_v43 }
  0xd1   : > { %v721_v40 = vadd.f32 %v720_v37, %v701_v36  ;;  %v753_v48 = vmul.f32 0.5, %v749_v45 }
  0xd2   : > { %1010 = vmatmul.msk.bf16.vlgmr.msrb.gmra.mxu0 %vm606_vm0, %v771_v38  ;;  %1012 = vmatmul.msk.bf16.vlgmr.msrb.gmra.mxu1 %vm606_vm0, %v771_v38  ;;  %v754_v49 = vmul.f32 0.5, %v750_v46 }
  0xd3   : > { %v730_v41 = vadd.f32 %v1067_v4, %v721_v40 }
  0xd5   : > { %v738_v44 = vadd.f32 %v1068_v7, %v730_v41  ;;  %v1084_v47 = vpop.eup %1083 }
  0xd6   : > { %v761_v51 = vmul.f32 %v1084_v47, %v753_v48 }
  0xd7   : > { %1085 = vtanh.f32 %v738_v44 }
  0xdd   : > { %v1086_v50 = vpop.eup %1085 }
  0xde   : > { %v762_v52 = vmul.f32 %v1086_v50, %v754_v49 }
  0xe0   : > { %v772_v53 = vpack.c.bf16 %v762_v52, %v761_v51 }
  0xe2   : > { %1011 = vmatmul.msk.bf16.gmra.mxu0 %vm606_vm0, %v772_v53  ;;  %1013 = vmatmul.msk.bf16.gmra.mxu1 %vm606_vm0, %v772_v53 }
 0x14f   : > { %v790_v57 = vpop.f32.mrf.mxu0  ;;  %v839_v58 = vpop.f32.mrf.mxu1 }
 0x150   : > { %v800_v59 = vadd.f32 %v790_v57, %v763_v55  ;;  %v840_v60 = vadd.f32 %v1070_v54, %v839_v58 }
 0x152   : > { %v808_v61 = vadd.f32 %v1069_v56, %v800_v59  ;;  %849 = vst.msk [vmem:[%s1411_s23] sm:$0xff] %vm606_vm0, %v840_v60 }
 0x154   : > { %v812_v62 = vmul.f32 0.70710677, %v808_v61 }
 0x156   : > { %816 = vst.msk [vmem:[%s1418_s3] sm:$0xff] %vm606_vm0, %v812_v62 }
 0x157   : > { %v792_v0 = vpop.f32.mrf.mxu0  ;;  %v841_v1 = vpop.f32.mrf.mxu1 }
 0x158   : > { %v801_v2 = vadd.f32 %v792_v0, %v764_v63  ;;  %v842_v3 = vadd.f32 %v1070_v54, %v841_v1 }
 0x15a   : > { %v809_v4 = vadd.f32 %v1069_v56, %v801_v2  ;;  %850 = vst.msk [vmem:[%s1411_s23 + $0x8] sm:$0xff] %vm606_vm0, %v842_v3 }
 0x15c   : > { %v813_v5 = vmul.f32 0.70710677, %v809_v4 }
 0x15e   : > { %817 = vst.msk [vmem:[%s1418_s3 + $0x8] sm:$0xff] %vm606_vm0, %v813_v5 }
 0x15f   : > { %v795_v7 = vpop.f32.mrf.mxu0  ;;  %v844_v8 = vpop.f32.mrf.mxu1 }
 0x160   : > { %v802_v9 = vadd.f32 %v795_v7, %v765_v6  ;;  %v845_v10 = vadd.f32 %v1070_v54, %v844_v8 }
 0x162   : > { %v810_v11 = vadd.f32 %v1069_v56, %v802_v9  ;;  %851 = vst.msk [vmem:[%s1411_s23 + $0x10] sm:$0xff] %vm606_vm0, %v845_v10 }
 0x164   : > { %v814_v12 = vmul.f32 0.70710677, %v810_v11 }
 0x166   : > { %818 = vst.msk [vmem:[%s1418_s3 + $0x10] sm:$0xff] %vm606_vm0, %v814_v12 }
 0x167   : > { %v797_v14 = vpop.f32.mrf.mxu0  ;;  %v846_v15 = vpop.f32.mrf.mxu1 }
 0x168   : > { %v803_v16 = vadd.f32 %v797_v14, %v766_v13  ;;  %v847_v17 = vadd.f32 %v1070_v54, %v846_v15 }
 0x16a   : > { %v811_v18 = vadd.f32 %v1069_v56, %v803_v16  ;;  %852 = vst.msk [vmem:[%s1411_s23 + $0x18] sm:$0xff] %vm606_vm0, %v847_v17 }
 0x16c   : > { %v815_v19 = vmul.f32 0.70710677, %v811_v18 }
 0x16e   : > { %819 = vst.msk [vmem:[%s1418_s3 + $0x18] sm:$0xff] %vm606_vm0, %v815_v19 }
 0x16f   : > { %1114 = shalt.err (!%p1111_p3)
}
 0x170   : > { %s1151_s19 = smov 128   ;;  %s1152_s3 = smov 8  }
 0x171   : > { %1024 = dma.vmem_to_hbm [thread:$0]  (%p1276_p5), %s872_s20, 512, %s874_s26, %s854_s25, %s1151_s19, %s1151_s19, %s1152_s3  }
 0x172 PF: > { %s1505_s21 = sld [smem:[#allocation5_spill]]  ;;  %p1030_p4 = scmp.ge.s32.totalorder %s1149_s24, 2 }
 0x174   : > { %p1027_p7 = pnand %p1030_p4, %p1280_p6 }
 0x176   : > { %p1028_p8 = pneg %p1027_p7 }
 0x178   : > { %s892_s29 = sand.u32 1, %s1505_s21  }
 0x179   : > { %s893_s27 = scalar_lea.sflag [#allocation3], %s892_s29 }
 0x17a   : > { %1132 = dma.done.wait (%p1028_p8), %s893_s27, 512  }
 0x17b   : > { %1134 = vsyncadd (%p1028_p8), %s893_s27, 4294966784  ;;  %s1507_s24 = sld [smem:[#allocation7_spill]]  ;;  %s1510_s21 = smov %s1141_s22 }
 0x17c   : > { %s1508_s30 = sld [smem:[#allocation6_spill]] }
 0x17d   : > { %s1509_s23 = sld [smem:[#allocation8_spill]] }
 0x181   : > { %p27_p9 = scmp.ge.s32.totalorder %s1507_s24, 4  }
 0x182   : > { %s1511_s22 = smov %s1508_s30 }
 0x183   :  { %29 = sbr.rel (!%p27_p9) target bundleno = 7 (0x7), region = 133 }
 0x188   :  { %907 = vsyncpa [#allocation3], 1 }
 0x189   :  { %909 = vsyncpa [#allocation3 + $0x1], 1 }

// kernel: run.15
= control target key start
LH: loop header
LB: loop body
LE: loop exit
PB: predicated region body
PF: predicated region fallthrough
CT: control target
= control target key end

     0   :  { %s449_s20 = smov 0   ;;  %s504_s0 = inlined_call_operand.vmem [shape: f32[64,32], index: 0, kind: input, shape index: {}]   ;;  %s505_s1 = inlined_call_operand.vmem [shape: f32[32,32], index: 1, kind: input, shape index: {}]   ;;  %s506_s2 = inlined_call_operand.vmem [shape: f32[1,32], index: 2, kind: input, shape index: {}]   ;;  %s507_s3 = inlined_call_operand.vmem [shape: f32[32,1], index: 3, kind: input, shape index: {}]   ;;  %s508_s4 = inlined_call_operand.<no memory space> [shape: f32[1,1], index: 4, kind: input, shape index: {}]   ;;  %s509_s5 = inlined_call_operand.vmem [shape: f32[64,1], index: 5, kind: output, shape index: {}]  }
   0x1   :  { %v10_v0 = vstv %s508_s4 }
   0x2   :  { %11 = vst [vmem:[#allocation2] sm:$0x1] %v10_v0 }
   0x3 LB: > { %s379_s21 = sadd.s32 4294967295, %s414_s20   ;;  %p383_p0 = scmp.ge.s32.totalorder %s414_s20, 1  ;;  %s414_s20 = sphi %s449_s20, %s17_s20  }
   0x4   : > { %p190_p1 = scmp.lt.s32.totalorder %s414_s20, 3 }
   0x6   : > { %p191_p2 = pnand %p383_p0, %p190_p1 }
   0x7   : > { %s384_s27 = sshll.u32 (!%p191_p2), %s379_s21, 2 }
   0x8   : > { %194 = sbr.rel (%p191_p2) target bundleno = 312 (0x138), region = 40  ;;  %p219_p3 = scmp.lt.s32.totalorder (!%p191_p2), %s384_s27, 7 }
   0xd   : > { %v241_v1 = vld [vmem:[%s505_s1 + $0x10] sm:$0xff]  ;;  %v242_v2 = vld [vmem:[%s505_s1 + $0x18] sm:$0xff]  ;;  %v239_v3 = vld [vmem:[%s505_s1] sm:$0xff]  ;;  %s511_s27 = smov (!%p219_p3, %s384_s27), 7  ;;  %vm251_vm0 = vcmask 261120   ;;  %vm318_vm1 = vcmask 7168  }
   0xe   : > { %v246_v4 = vpack.c.bf16 %v242_v2, %v241_v1  ;;  %v240_v5 = vld [vmem:[%s505_s1 + $0x8] sm:$0xff]  ;;  %s385_s30 = sshll.u32 %s511_s27, 3  ;;  %v283_v17 = vld [vmem:[%s507_s3 + $0x10] sm:$0xff]  ;;  %v284_v18 = vld [vmem:[%s507_s3 + $0x18] sm:$0xff] }
   0xf   : > { %v245_v6 = vpack.c.bf16 %v240_v5, %v239_v3  ;;  %s222_s8 = scalar_lea.vmem %s504_s0, %s385_s30  ;;  %v288_v19 = vpack.c.bf16 %v284_v18, %v283_v17  ;;  %v281_v20 = vld [vmem:[%s507_s3] sm:$0xff]  ;;  %v282_v21 = vld [vmem:[%s507_s3 + $0x8] sm:$0xff]  ;;  %s228_s22 = scalar_lea.vmem %s509_s5, %s385_s30 }
  0x10   : > { %264 = vmatpush.bf16.msra.mxu0 %v246_v4  ;;  %394 = vmatpush.bf16.msra.mxu2 %v246_v4  ;;  %v231_v7 = vld [vmem:[%s222_s8] sm:$0xff]  ;;  %v232_v8 = vld [vmem:[%s222_s8 + $0x8] sm:$0xff]  ;;  %v233_v9 = vld [vmem:[%s222_s8 + $0x10] sm:$0xff]  ;;  %v287_v22 = vpack.c.bf16 %v282_v21, %v281_v20 }
  0x11   : > { %v235_v10 = vmul.f32 0.70710677, %v231_v7  ;;  %v236_v11 = vmul.f32 0.70710677, %v232_v8  ;;  %v234_v12 = vld [vmem:[%s222_s8 + $0x18] sm:$0xff]  ;;  %305 = vmatpush.bf16.msra.mxu1 %v288_v19  ;;  %396 = vmatpush.bf16.msra.mxu3 %v288_v19 }
  0x12   : > { %v237_v13 = vmul.f32 0.70710677, %v233_v9  ;;  %v238_v14 = vmul.f32 0.70710677, %v234_v12  ;;  %v406_v24 = vld [vmem:[%s506_s2] ss:$0 sm:$0xff] }
  0x13   : > { %v243_v15 = vpack.c.bf16 %v236_v11, %v235_v10  ;;  %v407_v38 = vld [vmem:[#allocation2] ss:$0 sm:$0xff] }
  0x14   : > { %265 = vmatpush.bf16.msra.mxu0 %v245_v6  ;;  %395 = vmatpush.bf16.msra.mxu2 %v245_v6  ;;  %v244_v16 = vpack.c.bf16 %v238_v14, %v237_v13 }
  0x15   : > { %306 = vmatpush.bf16.msra.mxu1 %v287_v22  ;;  %397 = vmatpush.bf16.msra.mxu3 %v287_v22 }
  0x17   : > { %388 = vmatmul.msk.bf16.vlgmr.msra.gmra.mxu0 %vm251_vm0, %v243_v15  ;;  %389 = vmatmul.msk.bf16.vlgmr.msra.gmra.mxu2 %vm251_vm0, %v244_v16 }
  0x94   : > { %v267_v23 = vpop.f32.mrf.mxu0 }
  0x95   : > { %v268_v25 = vadd.f32 %v406_v24, %v267_v23 }
  0x97   : > { %v277_v28 = vmax.f32 %v268_v25, 0.0 }
  0x9a   : > { %v272_v26 = vpop.f32.mrf.mxu2 }
  0x9b   : > { %v273_v32 = vadd.f32 %v406_v24, %v272_v26 }
  0x9c   : > { %v269_v27 = vpop.f32.mrf.mxu0 }
  0x9d   : > { %v270_v29 = vadd.f32 %v406_v24, %v269_v27  ;;  %v279_v35 = vmax.f32 %v273_v32, 0.0 }
  0x9f   : > { %v278_v30 = vmax.f32 %v270_v29, 0.0 }
  0xa1   : > { %v285_v31 = vpack.c.bf16 %v278_v30, %v277_v28 }
  0xa2   : > { %v274_v33 = vpop.f32.mrf.mxu2 }
  0xa3   : > { %390 = vmatmul.msk.bf16.vlgmr.msra.gmra.mxu1 %vm251_vm0, %v285_v31  ;;  %v275_v34 = vadd.f32 %v406_v24, %v274_v33 }
  0xa5   : > { %v280_v36 = vmax.f32 %v275_v34, 0.0 }
  0xa7   : > { %v286_v37 = vpack.c.bf16 %v280_v36, %v279_v35 }
  0xa9   : > { %391 = vmatmul.msk.bf16.vlgmr.msra.gmra.mxu3 %vm251_vm0, %v286_v37 }
 0x120   : > { %v308_v39 = vpop.f32.mrf.mxu1 }
 0x121   : > { %v309_v40 = vadd.f32 %v407_v38, %v308_v39 }
 0x123   : > { %319 = vst.msk [vmem:[%s228_s22] sm:$0xff] %vm318_vm1, %v309_v40 }
 0x128   : > { %v310_v41 = vpop.f32.mrf.mxu1 }
 0x129   : > { %v311_v42 = vadd.f32 %v407_v38, %v310_v41 }
 0x12b   : > { %320 = vst.msk [vmem:[%s228_s22 + $0x8] sm:$0xff] %vm318_vm1, %v311_v42 }
 0x12c   : > { %v313_v43 = vpop.f32.mrf.mxu3 }
 0x12d   : > { %v314_v44 = vadd.f32 %v407_v38, %v313_v43 }
 0x12f   : > { %321 = vst.msk [vmem:[%s228_s22 + $0x10] sm:$0xff] %vm318_vm1, %v314_v44 }
 0x134   : > { %v315_v45 = vpop.f32.mrf.mxu3 }
 0x135   : > { %v316_v46 = vadd.f32 %v407_v38, %v315_v45 }
 0x137   : > { %322 = vst.msk [vmem:[%s228_s22 + $0x18] sm:$0xff] %vm318_vm1, %v316_v46 }
 0x138 PF: > { %s17_s20 = sadd.s32 1, %s414_s20  }
 0x139   : > { %p14_p4 = scmp.ge.s32.totalorder %s17_s20, 4  }
 0x13b   :  { %16 = sbr.rel (!%p14_p4) target bundleno = 3 (0x3), region = 70 }

// kernel: run.10
= control target key start
LH: loop header
LB: loop body
LE: loop exit
PB: predicated region body
PF: predicated region fallthrough
CT: control target
= control target key end

     0   :  { %s5843_s25 = smov 0   ;;  %s7301_s0 = inlined_call_operand.vmem [shape: f32[16,4,32], index: 0, kind: input, shape index: {}]   ;;  %s7302_s1 = inlined_call_operand.vmem [shape: f32[3,4,32,8], index: 1, kind: input, shape index: {}]   ;;  %s7303_s2 = inlined_call_operand.vmem [shape: f32[3,4,1,8], index: 2, kind: input, shape index: {}]   ;;  %s7304_s3 = inlined_call_operand.vmem [shape: f32[4,8,32], index: 3, kind: input, shape index: {}]   ;;  %s7305_s4 = inlined_call_operand.vmem [shape: f32[1,32], index: 4, kind: input, shape index: {}]   ;;  %s7306_s5 = inlined_call_operand.vmem [shape: f32[1,32], index: 5, kind: input, shape index: {}]   ;;  %s7307_s6 = inlined_call_operand.vmem [shape: f32[1,32], index: 6, kind: input, shape index: {}]   ;;  %s7308_s7 = inlined_call_operand.vmem [shape: f32[32,64], index: 7, kind: input, shape index: {}]   ;;  %s7309_s8 = inlined_call_operand.vmem [shape: f32[1,64], index: 8, kind: input, shape index: {}]   ;;  %s7310_s9 = inlined_call_operand.vmem [shape: f32[64,32], index: 9, kind: input, shape index: {}]   ;;  %s7311_s10 = inlined_call_operand.vmem [shape: f32[1,32], index: 10, kind: input, shape index: {}]   ;;  %s7312_s11 = inlined_call_operand.vmem [shape: f32[1,32], index: 11, kind: input, shape index: {}]   ;;  %s7313_s12 = inlined_call_operand.vmem [shape: f32[1,32], index: 12, kind: input, shape index: {}]   ;;  %s7314_s13 = inlined_call_operand.vmem [shape: f32[16,4,32], index: 13, kind: output, shape index: {}]  }
   0x1 LB: > { %s5273_s26 = sadd.s32 4294967295, %s5770_s25   ;;  %p5277_p0 = scmp.ge.s32.totalorder %s5770_s25, 1  ;;  %s5770_s25 = sphi %s5843_s25, %s23_s25  }
   0x2   : > { %p388_p1 = scmp.lt.s32.totalorder %s5770_s25, 3 }
   0x4   : > { %p389_p2 = pnand %p5277_p0, %p388_p1 }
   0x5   : > { %s5278_s16 = sshll.u32 (!%p389_p2), %s5273_s26, 3 }
   0x6   : > { %392 = sbr.rel (%p389_p2) target bundleno = 3887 (0xf2f), region = 72  ;;  %p433_p3 = scmp.lt.s32.totalorder (!%p389_p2), %s5278_s16, 15 }
   0xb   : > { %v455_v0 = vld [vmem:[%s7302_s1 + $0x10] sm:$0xff]  ;;  %v456_v1 = vld [vmem:[%s7302_s1 + $0x18] sm:$0xff]  ;;  %v453_v2 = vld [vmem:[%s7302_s1] sm:$0xff]  ;;  %s7316_s16 = smov (!%p433_p3, %s5278_s16), 15  ;;  %vm485_vm0 = vcmask 261120   ;;  %vm890_vm1 = vcmask 64512  }
   0xc   : > { %v459_v3 = vpack.c.bf16 %v455_v0, %v455_v0  ;;  %v460_v4 = vpack.c.bf16 %v456_v1, %v456_v1  ;;  %v454_v5 = vld [vmem:[%s7302_s1 + $0x8] sm:$0xff]  ;;  %v457_v6 = vpack.c.bf16 %v453_v2, %v453_v2  ;;  %v5292_v8 = vld [vmem:[%s7302_s1 + $0x90] sm:$0xff]  ;;  %v5293_v9 = vld [vmem:[%s7302_s1 + $0x98] sm:$0xff]  ;;  %s5279_s26 = sshll.u32 %s7316_s16, 2  ;;  %vm1160_vm2 = vcmask 1041408  }
   0xd   : > { %v458_v7 = vpack.c.bf16 %v454_v5, %v454_v5  ;;  %v5290_v14 = vld [vmem:[%s7302_s1 + $0x80] sm:$0xff]  ;;  %v621_v16 = vpack.c.bf16 %v5292_v8, %v5292_v8  ;;  %v622_v17 = vpack.c.bf16 %v5293_v9, %v5293_v9  ;;  %v5291_v18 = vld [vmem:[%s7302_s1 + $0x88] sm:$0xff]  ;;  %s5883_s14 = scalar_lea.vmem %s7301_s0, %s5279_s26  ;;  %v5305_v40 = vld [vmem:[%s7302_s1 + $0x110] sm:$0xff]  ;;  %vm1051_vm3 = vcmask 27648   ;;  %s7246_s22 = scalar_lea.vmem %s7314_s13, %s5279_s26 }
   0xe   : > { %v479_v10 = vunpack.c.l.b16 %v459_v3  ;;  %v480_v11 = vunpack.c.l.b16 %v460_v4  ;;  %v477_v12 = vunpack.c.l.b16 %v457_v6  ;;  %v447_v20 = vld [vmem:[%s5883_s14 + $0x8] sm:$0xf]  ;;  %v448_v21 = vld [vmem:[%s5883_s14 + $0xc] sm:$0xf]  ;;  %v619_v24 = vpack.c.bf16 %v5290_v14, %v5290_v14  ;;  %v451_v32 = vld [vmem:[%s5883_s14 + $0x18] sm:$0xf] }
   0xf   : > { %v478_v13 = vunpack.c.l.b16 %v458_v7  ;;  %v634_v22 = vunpack.c.l.b16 %v621_v16  ;;  %v635_v23 = vunpack.c.l.b16 %v622_v17  ;;  %v620_v25 = vpack.c.bf16 %v5291_v18, %v5291_v18  ;;  %v452_v33 = vld [vmem:[%s5883_s14 + $0x1c] sm:$0xf]  ;;  %v445_v36 = vld [vmem:[%s5883_s14] sm:$0xf]  ;;  %v446_v37 = vld [vmem:[%s5883_s14 + $0x4] sm:$0xf] }
  0x10   : > { %v482_v15 = vpack.c.b16 %v480_v11, %v479_v10  ;;  %v5887_v26 = vpack.c.bf16 %v447_v20, %v447_v20  ;;  %v5889_v27 = vpack.c.bf16 %v448_v21, %v448_v21  ;;  %v632_v29 = vunpack.c.l.b16 %v619_v24  ;;  %v5306_v41 = vld [vmem:[%s7302_s1 + $0x118] sm:$0xff]  ;;  %v449_v46 = vld [vmem:[%s5883_s14 + $0x10] sm:$0xf]  ;;  %v5303_v49 = vld [vmem:[%s7302_s1 + $0x100] sm:$0xff] }
  0x11   : > { %v481_v19 = vpack.c.b16 %v478_v13, %v477_v12  ;;  %v5891_v28 = vpack.c.b16 %v635_v23, %v634_v22  ;;  %v633_v30 = vunpack.c.l.b16 %v620_v25  ;;  %v5905_v34 = vpack.c.bf16 %v451_v32, %v451_v32  ;;  %v5304_v50 = vld [vmem:[%s7302_s1 + $0x108] sm:$0xff]  ;;  %v450_v53 = vld [vmem:[%s5883_s14 + $0x14] sm:$0xf]  ;;  %v5990_v2 = vld [vmem:[%s7303_s2 + $0x4] ss:$0 sm:$0xff] }
  0x12   : > { %527 = vmatpush.bf16.msra.mxu2 %v482_v15  ;;  %543 = vmatpush.bf16.msra.mxu3 %v482_v15  ;;  %v5907_v35 = vpack.c.bf16 %v452_v33, %v452_v33  ;;  %v5917_v38 = vpack.c.bf16 %v445_v36, %v445_v36  ;;  %v5919_v39 = vpack.c.bf16 %v446_v37, %v446_v37  ;;  %v6001_v9 = vld [vmem:[%s7303_s2] ss:$0 sm:$0xff]  ;;  %vm1156_vm4 = vcmask 31744  }
  0x13   : > { %495 = vmatpush.bf16.msra.mxu0 %v482_v15  ;;  %511 = vmatpush.bf16.msra.mxu1 %v482_v15  ;;  %v5899_v31 = vpack.c.b16 %v633_v30, %v632_v29  ;;  %v751_v42 = vpack.c.bf16 %v5305_v40, %v5305_v40  ;;  %v752_v43 = vpack.c.bf16 %v5306_v41, %v5306_v41  ;;  %vm2156_vm5 = vcmask 1043456  }
  0x14   : > { %v5938_v48 = vpack.c.bf16 %v449_v46, %v449_v46  ;;  %v749_v51 = vpack.c.bf16 %v5303_v49, %v5303_v49  ;;  %v750_v52 = vpack.c.bf16 %v5304_v50, %v5304_v50  ;;  %v5963_v56 = vpack.c.bf16 %v450_v53, %v450_v53 }
  0x15   : > { %v764_v44 = vunpack.c.l.b16 %v751_v42  ;;  %v765_v45 = vunpack.c.l.b16 %v752_v43  ;;  %vm4382_vm6 = vcmask 257024  }
  0x16   : > { %528 = vmatpush.bf16.msra.mxu2 %v481_v19  ;;  %544 = vmatpush.bf16.msra.mxu3 %v481_v19  ;;  %v762_v54 = vunpack.c.l.b16 %v749_v51  ;;  %v763_v55 = vunpack.c.l.b16 %v750_v52 }
  0x17   : > { %496 = vmatpush.bf16.msra.mxu0 %v481_v19  ;;  %512 = vmatpush.bf16.msra.mxu1 %v481_v19  ;;  %v767_v47 = vpack.c.b16 %v765_v45, %v764_v44 }
  0x18   : > { %v766_v57 = vpack.c.b16 %v763_v55, %v762_v54 }
  0x19   : > { %5284 = vmatmul.msk.bf16.vlgmr.msra.gmra.mxu2 %vm485_vm0, %v5887_v26  ;;  %5285 = vmatmul.msk.bf16.vlgmr.msra.gmra.mxu3 %vm485_vm0, %v5889_v27 }
  0x1a   : > { %591 = vmatpush.bf16.msrb.mxu2 %v482_v15  ;;  %607 = vmatpush.bf16.msrb.mxu3 %v482_v15 }
  0x1b   : > { %559 = vmatpush.bf16.msrb.mxu0 %v482_v15  ;;  %575 = vmatpush.bf16.msrb.mxu1 %v482_v15 }
  0x1c   : > { %5282 = vmatmul.msk.bf16.vlgmr.msra.gmra.mxu0 %vm485_vm0, %v5917_v38  ;;  %5283 = vmatmul.msk.bf16.vlgmr.msra.gmra.mxu1 %vm485_vm0, %v5919_v39 }
  0x1e   : > { %592 = vmatpush.bf16.msrb.mxu2 %v481_v19  ;;  %608 = vmatpush.bf16.msrb.mxu3 %v481_v19 }
  0x1f   : > { %560 = vmatpush.bf16.msrb.mxu0 %v481_v19  ;;  %576 = vmatpush.bf16.msrb.mxu1 %v481_v19 }
  0x22   : > { %672 = vmatpush.bf16.msra.mxu2 %v5891_v28  ;;  %685 = vmatpush.bf16.msra.mxu3 %v5891_v28 }
  0x23   : > { %646 = vmatpush.bf16.msra.mxu0 %v5891_v28  ;;  %659 = vmatpush.bf16.msra.mxu1 %v5891_v28 }
  0x26   : > { %673 = vmatpush.bf16.msra.mxu2 %v5899_v31  ;;  %686 = vmatpush.bf16.msra.mxu3 %v5899_v31 }
  0x27   : > { %647 = vmatpush.bf16.msra.mxu0 %v5899_v31  ;;  %660 = vmatpush.bf16.msra.mxu1 %v5899_v31 }
  0x29   : > { %5288 = vmatmul.msk.bf16.vlgmr.msrb.gmra.mxu2 %vm485_vm0, %v5905_v34  ;;  %5289 = vmatmul.msk.bf16.vlgmr.msrb.gmra.mxu3 %vm485_vm0, %v5907_v35 }
  0x2a   : > { %724 = vmatpush.bf16.msrb.mxu2 %v5891_v28  ;;  %737 = vmatpush.bf16.msrb.mxu3 %v5891_v28 }
  0x2c   : > { %5286 = vmatmul.msk.bf16.vlgmr.msrb.gmra.mxu0 %vm485_vm0, %v5938_v48  ;;  %5287 = vmatmul.msk.bf16.vlgmr.msrb.gmra.mxu1 %vm485_vm0, %v5963_v56 }
  0x2d   : > { %698 = vmatpush.bf16.msrb.mxu0 %v5891_v28  ;;  %711 = vmatpush.bf16.msrb.mxu1 %v5891_v28 }
  0x2e   : > { %725 = vmatpush.bf16.msrb.mxu2 %v5899_v31  ;;  %738 = vmatpush.bf16.msrb.mxu3 %v5899_v31 }
  0x31   : > { %699 = vmatpush.bf16.msrb.mxu0 %v5899_v31  ;;  %712 = vmatpush.bf16.msrb.mxu1 %v5899_v31 }
  0x39   : > { %5297 = vmatmul.msk.bf16.vlgmr.msra.gmra.mxu2 %vm485_vm0, %v5887_v26  ;;  %5298 = vmatmul.msk.bf16.vlgmr.msra.gmra.mxu3 %vm485_vm0, %v5889_v27 }
  0x3a   : > { %802 = vmatpush.bf16.msra.mxu2 %v767_v47  ;;  %815 = vmatpush.bf16.msra.mxu3 %v767_v47 }
  0x3c   : > { %5295 = vmatmul.msk.bf16.vlgmr.msra.gmra.mxu0 %vm485_vm0, %v5917_v38  ;;  %5296 = vmatmul.msk.bf16.vlgmr.msra.gmra.mxu1 %vm485_vm0, %v5919_v39 }
  0x3d   : > { %776 = vmatpush.bf16.msra.mxu0 %v767_v47  ;;  %789 = vmatpush.bf16.msra.mxu1 %v767_v47 }
  0x3e   : > { %803 = vmatpush.bf16.msra.mxu2 %v766_v57  ;;  %816 = vmatpush.bf16.msra.mxu3 %v766_v57 }
  0x41   : > { %777 = vmatpush.bf16.msra.mxu0 %v766_v57  ;;  %790 = vmatpush.bf16.msra.mxu1 %v766_v57 }
  0x49   : > { %5301 = vmatmul.msk.bf16.vlgmr.msrb.gmra.mxu2 %vm485_vm0, %v5905_v34  ;;  %5302 = vmatmul.msk.bf16.vlgmr.msrb.gmra.mxu3 %vm485_vm0, %v5907_v35 }
  0x4a   : > { %854 = vmatpush.bf16.msrb.mxu2 %v767_v47  ;;  %867 = vmatpush.bf16.msrb.mxu3 %v767_v47 }
  0x4c   : > { %5299 = vmatmul.msk.bf16.vlgmr.msrb.gmra.mxu0 %vm485_vm0, %v5938_v48  ;;  %5300 = vmatmul.msk.bf16.vlgmr.msrb.gmra.mxu1 %vm485_vm0, %v5963_v56 }
  0x4d   : > { %828 = vmatpush.bf16.msrb.mxu0 %v767_v47  ;;  %841 = vmatpush.bf16.msrb.mxu1 %v767_v47 }
  0x4e   : > { %855 = vmatpush.bf16.msrb.mxu2 %v766_v57  ;;  %868 = vmatpush.bf16.msrb.mxu3 %v766_v57 }
  0x51   : > { %829 = vmatpush.bf16.msrb.mxu0 %v766_v57  ;;  %842 = vmatpush.bf16.msrb.mxu1 %v766_v57 }
  0x59   : > { %5310 = vmatmul.msk.bf16.vlgmr.msra.gmra.mxu2 %vm485_vm0, %v5887_v26  ;;  %5311 = vmatmul.msk.bf16.vlgmr.msra.gmra.mxu3 %vm485_vm0, %v5889_v27 }
  0x5c   : > { %5308 = vmatmul.msk.bf16.vlgmr.msra.gmra.mxu0 %vm485_vm0, %v5917_v38  ;;  %5309 = vmatmul.msk.bf16.vlgmr.msra.gmra.mxu1 %vm485_vm0, %v5919_v39 }
  0x69   : > { %5314 = vmatmul.msk.bf16.vlgmr.msrb.gmra.mxu2 %vm485_vm0, %v5905_v34  ;;  %5315 = vmatmul.msk.bf16.vlgmr.msrb.gmra.mxu3 %vm485_vm0, %v5907_v35 }
  0x6c   : > { %5312 = vmatmul.msk.bf16.vlgmr.msrb.gmra.mxu0 %vm485_vm0, %v5938_v48  ;;  %5313 = vmatmul.msk.bf16.vlgmr.msrb.gmra.mxu1 %vm485_vm0, %v5963_v56 }
  0x99   : > { %v498_v3 = vpop.f32.mrf.mxu0  ;;  %v5992_v4 = vpop.f32.mrf.mxu1 }
  0x9a   : > { %v499_v47 = vadd.f32 %v6001_v9, %v498_v3 }
  0x9c   : > { %v530_v58 = vpop.f32.mrf.mxu2  ;;  %v546_v59 = vpop.f32.mrf.mxu3  ;;  %v874_v51 = vpack.c.bf16 %v499_v47, %v499_v47 }
  0x9d   : > { %v531_v16 = vadd.f32 %v6001_v9, %v530_v58  ;;  %v547_v17 = vadd.f32 %v6001_v9, %v546_v59 }
  0x9f   : > { %v876_v20 = vpack.c.bf16 %v531_v16, %v531_v16  ;;  %v877_v21 = vpack.c.bf16 %v547_v17, %v547_v17 }
  0xa1   : > { %v500_v14 = vpop.f32.mrf.mxu0  ;;  %v516_v15 = vpop.f32.mrf.mxu1 }
  0xa2   : > { %v515_v15 = vadd.f32 %v6001_v9, %v5992_v4 }
  0xa4   : > { %v532_v60 = vpop.f32.mrf.mxu2  ;;  %v548_v61 = vpop.f32.mrf.mxu3 }
  0xa5   : > { %v6028_v61 = vld [vmem:[%s7303_s2 + $0x8] ss:$0 sm:$0xff] }
  0xa9   : > { %v562_v22 = vpop.f32.mrf.mxu0  ;;  %v578_v58 = vpop.f32.mrf.mxu1 }
  0xaa   : > { %v563_v55 = vadd.f32 %v6001_v9, %v562_v22 }
  0xac   : > { %v594_v62 = vpop.f32.mrf.mxu2  ;;  %v610_v63 = vpop.f32.mrf.mxu3  ;;  %v878_v60 = vpack.c.bf16 %v563_v55, %v563_v55 }
  0xad   : > { %v595_v36 = vadd.f32 %v6001_v9, %v594_v62  ;;  %v611_v37 = vadd.f32 %v6001_v9, %v610_v63 }
  0xaf   : > { %v880_v42 = vpack.c.bf16 %v595_v36, %v595_v36  ;;  %v881_v43 = vpack.c.bf16 %v611_v37, %v611_v37 }
  0xb1   : > { %v564_v33 = vpop.f32.mrf.mxu0  ;;  %v580_v62 = vpop.f32.mrf.mxu1 }
  0xb2   : > { %v579_v33 = vadd.f32 %v6001_v9, %v578_v58 }
  0xb4   : > { %v596_v0 = vpop.f32.mrf.mxu2  ;;  %v612_v1 = vpop.f32.mrf.mxu3 }
  0xb9   : > { %v649_v44 = vpop.f32.mrf.mxu0 }
  0xba   : > { %v650_v45 = vadd.f32 %v5990_v2, %v649_v44 }
  0xbc   : > { %v675_v5 = vpop.f32.mrf.mxu2  ;;  %v688_v6 = vpop.f32.mrf.mxu3  ;;  %v882_v46 = vpack.c.bf16 %v650_v45, %v650_v45 }
  0xbd   : > { %v676_v7 = vadd.f32 %v5990_v2, %v675_v5  ;;  %v689_v8 = vadd.f32 %v5990_v2, %v688_v6 }
  0xbe   : > { %v895_v49 = vsel %vm890_vm1, %v882_v46, 0 }
  0xbf   : > { %v884_v10 = vpack.c.bf16 %v676_v7, %v676_v7  ;;  %v885_v11 = vpack.c.bf16 %v689_v8, %v689_v8  ;;  %904 = vmatpush.bf16.xpose.msra.mxu0 %v895_v49 }
  0xc1   : > { %v933_v12 = vsel %vm890_vm1, %v884_v10, 0  ;;  %v952_v13 = vsel %vm890_vm1, %v885_v11, 0  ;;  %v651_v50 = vpop.f32.mrf.mxu0  ;;  %v662_v10 = vpop.f32.mrf.mxu1 }
  0xc2   : > { %942 = vmatpush.bf16.xpose.msra.mxu2 %v933_v12  ;;  %961 = vmatpush.bf16.xpose.msra.mxu3 %v952_v13  ;;  %v663_v11 = vadd.f32 %v5990_v2, %v662_v10 }
  0xc4   : > { %v677_v18 = vpop.f32.mrf.mxu2  ;;  %v690_v19 = vpop.f32.mrf.mxu3  ;;  %v883_v14 = vpack.c.bf16 %v663_v11, %v663_v11 }
  0xc5   : > { %v875_v18 = vpack.c.bf16 %v515_v15, %v515_v15 }
  0xc6   : > { %5316 = vmatmul.msk.bf16.vlgmr.msra.gmra.mxu0 %vm890_vm1, %v874_v51  ;;  %v914_v16 = vsel %vm890_vm1, %v883_v14, 0 }
  0xc7   : > { %923 = vmatpush.bf16.xpose.msra.mxu1 %v914_v16 }
  0xc9   : > { %5318 = vmatmul.msk.bf16.vlgmr.msra.gmra.mxu2 %vm890_vm1, %v876_v20  ;;  %5319 = vmatmul.msk.bf16.vlgmr.msra.gmra.mxu3 %vm890_vm1, %v877_v21  ;;  %v701_v52 = vpop.f32.mrf.mxu0  ;;  %v664_v17 = vpop.f32.mrf.mxu1 }
  0xca   : > { %v702_v53 = vadd.f32 %v5990_v2, %v701_v52 }
  0xcc   : > { %v727_v23 = vpop.f32.mrf.mxu2  ;;  %v740_v24 = vpop.f32.mrf.mxu3  ;;  %v886_v54 = vpack.c.bf16 %v702_v53, %v702_v53 }
  0xcd   : > { %v728_v25 = vadd.f32 %v5990_v2, %v727_v23  ;;  %v741_v28 = vadd.f32 %v5990_v2, %v740_v24 }
  0xce   : > { %v971_v57 = vsel %vm890_vm1, %v886_v54, 0  ;;  %5317 = vmatmul.msk.bf16.vlgmr.msra.gmra.mxu1 %vm890_vm1, %v875_v18 }
  0xcf   : > { %v888_v29 = vpack.c.bf16 %v728_v25, %v728_v25  ;;  %v889_v30 = vpack.c.bf16 %v741_v28, %v741_v28  ;;  %980 = vmatpush.bf16.xpose.msrb.mxu0 %v971_v57 }
  0xd1   : > { %v1009_v31 = vsel %vm890_vm1, %v888_v29, 0  ;;  %v1028_v32 = vsel %vm890_vm1, %v889_v30, 0  ;;  %v703_v59 = vpop.f32.mrf.mxu0  ;;  %v714_v4 = vpop.f32.mrf.mxu1 }
  0xd2   : > { %1018 = vmatpush.bf16.xpose.msrb.mxu2 %v1009_v31  ;;  %1037 = vmatpush.bf16.xpose.msrb.mxu3 %v1028_v32  ;;  %v715_v29 = vadd.f32 %v5990_v2, %v714_v4 }
  0xd4   : > { %v729_v40 = vpop.f32.mrf.mxu2  ;;  %v742_v41 = vpop.f32.mrf.mxu3  ;;  %v887_v32 = vpack.c.bf16 %v715_v29, %v715_v29 }
  0xd5   : > { %v879_v40 = vpack.c.bf16 %v579_v33, %v579_v33 }
  0xd6   : > { %5320 = vmatmul.msk.bf16.vlgmr.msrb.gmra.mxu0 %vm890_vm1, %v878_v60  ;;  %v990_v36 = vsel %vm890_vm1, %v887_v32, 0 }
  0xd7   : > { %999 = vmatpush.bf16.xpose.msrb.mxu1 %v990_v36 }
  0xd9   : > { %5322 = vmatmul.msk.bf16.vlgmr.msrb.gmra.mxu2 %vm890_vm1, %v880_v42  ;;  %5323 = vmatmul.msk.bf16.vlgmr.msrb.gmra.mxu3 %vm890_vm1, %v881_v43  ;;  %v716_v37 = vpop.f32.mrf.mxu1  ;;  %v779_v41 = vpop.f32.mrf.mxu0 }
  0xda   : > { %v780_v43 = vadd.f32 %v6028_v61, %v779_v41 }
  0xdc   : > { %v805_v63 = vpop.f32.mrf.mxu2  ;;  %v818_v0 = vpop.f32.mrf.mxu3  ;;  %v1148_v45 = vpack.c.bf16 %v780_v43, %v780_v43 }
  0xdd   : > { %v806_v1 = vadd.f32 %v6028_v61, %v805_v63  ;;  %v819_v3 = vadd.f32 %v6028_v61, %v818_v0 }
  0xde   : > { %5321 = vmatmul.msk.bf16.vlgmr.msrb.gmra.mxu1 %vm890_vm1, %v879_v40  ;;  %v1162_v9 = vsel %vm1160_vm2, %v1148_v45, 0 }
  0xdf   : > { %v1150_v5 = vpack.c.bf16 %v806_v1, %v806_v1  ;;  %v1151_v6 = vpack.c.bf16 %v819_v3, %v819_v3  ;;  %1171 = vmatpush.bf16.msra.mxu0 %v1162_v9 }
  0xe1   : > { %v1200_v7 = vsel %vm1160_vm2, %v1150_v5, 0  ;;  %v1219_v8 = vsel %vm1160_vm2, %v1151_v6, 0  ;;  %v792_v42 = vpop.f32.mrf.mxu1  ;;  %v781_v52 = vpop.f32.mrf.mxu0 }
  0xe2   : > { %1209 = vmatpush.bf16.msra.mxu2 %v1200_v7  ;;  %1228 = vmatpush.bf16.msra.mxu3 %v1219_v8  ;;  %v793_v44 = vadd.f32 %v6028_v61, %v792_v42 }
  0xe4   : > { %v807_v12 = vpop.f32.mrf.mxu2  ;;  %v820_v13 = vpop.f32.mrf.mxu3  ;;  %v1149_v2 = vpack.c.bf16 %v793_v44, %v793_v44 }
  0xe6   : > { %v1181_v50 = vsel %vm1160_vm2, %v1149_v2, 0 }
  0xe7   : > { %1190 = vmatpush.bf16.msra.mxu1 %v1181_v50 }
  0xe9   : > { %v794_v53 = vpop.f32.mrf.mxu1  ;;  %v831_v59 = vpop.f32.mrf.mxu0 }
  0xea   : > { %v832_v62 = vadd.f32 %v6028_v61, %v831_v59 }
  0xec   : > { %v857_v19 = vpop.f32.mrf.mxu2  ;;  %v870_v20 = vpop.f32.mrf.mxu3  ;;  %v1152_v0 = vpack.c.bf16 %v832_v62, %v832_v62 }
  0xed   : > { %v858_v21 = vadd.f32 %v6028_v61, %v857_v19  ;;  %v871_v22 = vadd.f32 %v6028_v61, %v870_v20 }
  0xee   : > { %v1238_v7 = vsel %vm1160_vm2, %v1152_v0, 0  ;;  %v5333_v0 = vld [vmem:[%s7302_s1 + $0x28] sm:$0xff] }
  0xef   : > { %v1154_v23 = vpack.c.bf16 %v858_v21, %v858_v21  ;;  %v1155_v24 = vpack.c.bf16 %v871_v22, %v871_v22  ;;  %1247 = vmatpush.bf16.msrb.mxu0 %v1238_v7 }
  0xf1   : > { %v1276_v25 = vsel %vm1160_vm2, %v1154_v23, 0  ;;  %v1295_v28 = vsel %vm1160_vm2, %v1155_v24, 0  ;;  %v844_v60 = vpop.f32.mrf.mxu1  ;;  %v833_v11 = vpop.f32.mrf.mxu0 }
  0xf2   : > { %1285 = vmatpush.bf16.msrb.mxu2 %v1276_v25  ;;  %1304 = vmatpush.bf16.msrb.mxu3 %v1295_v28  ;;  %v845_v63 = vadd.f32 %v6028_v61, %v844_v60 }
  0xf4   : > { %v859_v30 = vpop.f32.mrf.mxu2  ;;  %v872_v31 = vpop.f32.mrf.mxu3  ;;  %v1153_v1 = vpack.c.bf16 %v845_v63, %v845_v63  ;;  %v5332_v63 = vld [vmem:[%s7302_s1 + $0x20] sm:$0xff] }
  0xf6   : > { %v1257_v8 = vsel %vm1160_vm2, %v1153_v1, 0 }
  0xf7   : > { %1266 = vmatpush.bf16.msrb.mxu1 %v1257_v8 }
  0xf9   : > { %v846_v12 = vpop.f32.mrf.mxu1 }
 0x143   : > { %v906_v16 = vpop.f32.mrf.mxu0 }
 0x144   : > { %v1043_v42 = vmul.f32 0.35355338, %v906_v16 }
 0x14b   : > { %v908_v17 = vpop.f32.mrf.mxu0  ;;  %v925_v20 = vpop.f32.mrf.mxu1 }
 0x14c   : > { %v944_v46 = vpop.f32.mrf.mxu2  ;;  %v963_v47 = vpop.f32.mrf.mxu3 }
 0x14d   : > { %v1045_v49 = vmul.f32 0.35355338, %v944_v46  ;;  %v1046_v54 = vmul.f32 0.35355338, %v963_v47  ;;  %v1052_v47 = vsel %vm1051_vm3, %v1043_v42, -inf }
 0x14f   : > { %v1058_v51 = vsel %vm1051_vm3, %v1045_v49, -inf  ;;  %v1061_v58 = vsel %vm1051_vm3, %v1046_v54, -inf }
 0x150   : > { %1059 = vmax.xlane.f32.xlu0 %v1058_v51 }
 0x153   : > { %v982_v18 = vpop.f32.mrf.mxu0  ;;  %v927_v21 = vpop.f32.mrf.mxu1 }
 0x154   : > { %v946_v55 = vpop.f32.mrf.mxu2  ;;  %v965_v57 = vpop.f32.mrf.mxu3 }
 0x155   : > { %v5334_v57 = vld [vmem:[%s7302_s1 + $0x30] sm:$0xff] }
 0x156   : > { %v1327_v60 = vpack.c.bf16 %v5334_v57, %v5334_v57 }
 0x158   : > { %1062 = vmax.xlane.f32.xlu0 %v1061_v58  ;;  %v5335_v58 = vld [vmem:[%s7302_s1 + $0x38] sm:$0xff]  ;;  %v1340_v1 = vunpack.c.l.b16 %v1327_v60 }
 0x159   : > { %v1328_v62 = vpack.c.bf16 %v5335_v58, %v5335_v58 }
 0x15b   : > { %v984_v19 = vpop.f32.mrf.mxu0  ;;  %v1001_v22 = vpop.f32.mrf.mxu1 }
 0x15c   : > { %v1020_v3 = vpop.f32.mrf.mxu2  ;;  %v1039_v5 = vpop.f32.mrf.mxu3  ;;  %v1048_v9 = vmul.f32 0.35355338, %v1001_v22 }
 0x15d   : > { %v1049_v6 = vmul.f32 0.35355338, %v1020_v3  ;;  %v1050_v13 = vmul.f32 0.35355338, %v1039_v5  ;;  %v1341_v3 = vunpack.c.l.b16 %v1328_v62  ;;  %v1325_v5 = vpack.c.bf16 %v5332_v63, %v5332_v63 }
 0x15e   : > { %v1067_v53 = vsel %vm1051_vm3, %v1048_v9, -inf }
 0x15f   : > { %v1070_v10 = vsel %vm1051_vm3, %v1049_v6, -inf  ;;  %v1073_v61 = vsel %vm1051_vm3, %v1050_v13, -inf  ;;  %v6085_v11 = vpack.c.b16 %v1341_v3, %v1340_v1  ;;  %v1338_v12 = vunpack.c.l.b16 %v1325_v5  ;;  %v5360_v3 = vld [vmem:[%s7302_s1 + $0x130] sm:$0xff]  ;;  %v5361_v5 = vld [vmem:[%s7302_s1 + $0x138] sm:$0xff] }
 0x160   : > { %1071 = vmax.xlane.f32.xlu1 %v1070_v10 }
 0x163   : > { %v1003_v23 = vpop.f32.mrf.mxu1 }
 0x164   : > { %v1022_v14 = vpop.f32.mrf.mxu2  ;;  %v1041_v15 = vpop.f32.mrf.mxu3 }
 0x168   : > { %1074 = vmax.xlane.f32.xlu1 %v1073_v61 }
 0x1c3   : > { %v1060_v24 = vpop.xlane.xlu0 %1059 }
 0x1c4   : > { %v1078_v25 = vsub.f32 %v1045_v49, %v1060_v24  ;;  %v1044_v49 = vmul.f32 0.35355338, %v925_v20 }
 0x1c6   : > { %v1088_v28 = vmul.f32 1.442695, %v1078_v25  ;;  %v1055_v52 = vsel %vm1051_vm3, %v1044_v49, -inf }
 0x1c8   : > { %5578 = vpow2.f32 %v1088_v28 }
 0x1cb   : > { %v1063_v4 = vpop.xlane.xlu0 %1062 }
 0x1cc   : > { %v1079_v29 = vsub.f32 %v1046_v54, %v1063_v4  ;;  %v6069_v54 = vmul.f32 0.35355338, %v982_v18 }
 0x1ce   : > { %v5579_v30 = vpop.eup %5578  ;;  %v1090_v31 = vmul.f32 1.442695, %v1079_v29  ;;  %v1064_v55 = vsel %vm1051_vm3, %v6069_v54, -inf }
 0x1cf   : > { %v1106_v32 = vsel %vm1051_vm3, %v5579_v30, 0.0 }
 0x1d0   : > { %5580 = vpow2.f32 %v1090_v31  ;;  %1107 = vadd.xlane.f32.xlu2 %v1106_v32 }
 0x1d3   : > { %v1072_v33 = vpop.xlane.xlu1 %1071 }
 0x1d4   : > { %v1082_v36 = vsub.f32 %v1049_v6, %v1072_v33  ;;  %v1326_v6 = vpack.c.bf16 %v5333_v0, %v5333_v0 }
 0x1d6   : > { %v5581_v37 = vpop.eup %5580  ;;  %v1096_v40 = vmul.f32 1.442695, %v1082_v36 }
 0x1d7   : > { %v1109_v41 = vsel %vm1051_vm3, %v5581_v37, 0.0 }
 0x1d8   : > { %5582 = vpow2.f32 %v1096_v40  ;;  %1110 = vadd.xlane.f32.xlu2 %v1109_v41  ;;  %v5347_v40 = vld [vmem:[%s7302_s1 + $0xb0] sm:$0xff]  ;;  %v5348_v41 = vld [vmem:[%s7302_s1 + $0xb8] sm:$0xff] }
 0x1db   : > { %v1075_v43 = vpop.xlane.xlu1 %1074 }
 0x1dc   : > { %v1083_v44 = vsub.f32 %v1050_v13, %v1075_v43  ;;  %v1339_v13 = vunpack.c.l.b16 %v1326_v6  ;;  %v1587_v6 = vpack.c.bf16 %v5360_v3, %v5360_v3 }
 0x1de   : > { %v5583_v45 = vpop.eup %5582  ;;  %v1098_v2 = vmul.f32 1.442695, %v1083_v44  ;;  %v6089_v15 = vpack.c.b16 %v1339_v13, %v1338_v12  ;;  %v1457_v44 = vpack.c.bf16 %v5347_v40, %v5347_v40  ;;  %v5358_v12 = vld [vmem:[%s7302_s1 + $0x120] sm:$0xff]  ;;  %v5359_v13 = vld [vmem:[%s7302_s1 + $0x128] sm:$0xff] }
 0x1df   : > { %v1118_v46 = vsel %vm1051_vm3, %v5583_v45, 0.0 }
 0x1e0   : > { %5584 = vpow2.f32 %v1098_v2  ;;  %1119 = vadd.xlane.f32.xlu0 %v1118_v46  ;;  %1053 = vmax.xlane.f32.xlu2 %v1052_v47 }
 0x1e6   : > { %v6063_v50 = vpop.eup %5584 }
 0x1e7   : > { %v1121_v51 = vsel %vm1051_vm3, %v6063_v50, 0.0 }
 0x1e8   : > { %1122 = vadd.xlane.f32.xlu1 %v1121_v51  ;;  %1056 = vmax.xlane.f32.xlu0 %v1055_v52  ;;  %v5346_v51 = vld [vmem:[%s7302_s1 + $0xa8] sm:$0xff] }
 0x1e9   : > { %1068 = vmax.xlane.f32.xlu2 %v1067_v53  ;;  %v1470_v53 = vunpack.c.l.b16 %v1457_v44  ;;  %v1456_v58 = vpack.c.bf16 %v5346_v51, %v5346_v51 }
 0x1eb   : > { %v1469_v62 = vunpack.c.l.b16 %v1456_v58  ;;  %v6236_v58 = vld [vmem:[%s7303_s2 + $0x1] ss:$0 sm:$0xff] }
 0x1f0   : > { %1065 = vmax.xlane.f32.xlu1 %v1064_v55 }
 0x243   : > { %v1108_v59 = vpop.xlane.xlu2 %1107 }
 0x244   : > { %5586 = vrcp.f32 %v1108_v59 }
 0x24a   : > { %v5587_v7 = vpop.eup %5586 }
 0x24b   : > { %v1134_v8 = vmul.f32 %v5587_v7, %v5579_v30  ;;  %v1111_v10 = vpop.xlane.xlu2 %1110  ;;  %v1588_v7 = vpack.c.bf16 %v5361_v5, %v5361_v5 }
 0x24c   : > { %5588 = vrcp.f32 %v1111_v10 }
 0x24d   : > { %v1142_v14 = vpack.c.bf16 %v1134_v8, %v1134_v8  ;;  %v1600_v8 = vunpack.c.l.b16 %v1587_v6  ;;  %v1601_v10 = vunpack.c.l.b16 %v1588_v7 }
 0x24f   : > { %5326 = vmatmul.msk.bf16.vlgmr.msra.gmra.mxu2 %vm1156_vm4, %v1142_v14  ;;  %v6171_v14 = vpack.c.b16 %v1601_v10, %v1600_v8 }
 0x250   : > { %1378 = vmatpush.bf16.msra.mxu2 %v6085_v11 }
 0x252   : > { %v5589_v61 = vpop.eup %5588 }
 0x253   : > { %v1135_v16 = vmul.f32 %v5589_v61, %v5581_v37  ;;  %v1120_v17 = vpop.xlane.xlu0 %1119  ;;  %v1054_v18 = vpop.xlane.xlu2 %1053  ;;  %v1585_v61 = vpack.c.bf16 %v5358_v12, %v5358_v12 }
 0x254   : > { %5590 = vrcp.f32 %v1120_v17  ;;  %v1076_v19 = vsub.f32 %v1043_v42, %v1054_v18  ;;  %1379 = vmatpush.bf16.msra.mxu2 %v6089_v15 }
 0x255   : > { %v1143_v20 = vpack.c.bf16 %v1135_v16, %v1135_v16  ;;  %v1586_v16 = vpack.c.bf16 %v5359_v13, %v5359_v13 }
 0x256   : > { %v1084_v21 = vmul.f32 1.442695, %v1076_v19  ;;  %v1598_v19 = vunpack.c.l.b16 %v1585_v61 }
 0x257   : > { %5327 = vmatmul.msk.bf16.vlgmr.msra.gmra.mxu3 %vm1156_vm4, %v1143_v20  ;;  %v1599_v20 = vunpack.c.l.b16 %v1586_v16 }
 0x258   : > { %5592 = vpow2.f32 %v1084_v21  ;;  %1391 = vmatpush.bf16.msra.mxu3 %v6085_v11 }
 0x259   : > { %v6177_v21 = vpack.c.b16 %v1599_v20, %v1598_v19 }
 0x25a   : > { %v5591_v22 = vpop.eup %5590 }
 0x25b   : > { %v1138_v23 = vmul.f32 %v5591_v22, %v5583_v45  ;;  %v1123_v24 = vpop.xlane.xlu1 %1122  ;;  %v1057_v25 = vpop.xlane.xlu0 %1056  ;;  %v1458_v45 = vpack.c.bf16 %v5348_v41, %v5348_v41 }
 0x25c   : > { %5594 = vrcp.f32 %v1123_v24  ;;  %v1077_v28 = vsub.f32 %v1044_v49, %v1057_v25  ;;  %v1069_v4 = vpop.xlane.xlu2 %1068  ;;  %1392 = vmatpush.bf16.msra.mxu3 %v6089_v15 }
 0x25d   : > { %v1146_v29 = vpack.c.bf16 %v1138_v23, %v1138_v23  ;;  %v1081_v30 = vsub.f32 %v1048_v9, %v1069_v4  ;;  %v5345_v9 = vld [vmem:[%s7302_s1 + $0xa0] sm:$0xff] }
 0x25e   : > { %v6095_v31 = vpop.eup %5592  ;;  %v1086_v32 = vmul.f32 1.442695, %v1077_v28  ;;  %v1455_v57 = vpack.c.bf16 %v5345_v9, %v5345_v9 }
 0x25f   : > { %v1094_v33 = vmul.f32 1.442695, %v1081_v30  ;;  %5330 = vmatmul.msk.bf16.vlgmr.msrb.gmra.mxu2 %vm1156_vm4, %v1146_v29  ;;  %v1100_v36 = vsel %vm1051_vm3, %v6095_v31, 0.0 }
 0x260   : > { %5596 = vpow2.f32 %v1086_v32  ;;  %1101 = vadd.xlane.f32.xlu0 %v1100_v36  ;;  %1430 = vmatpush.bf16.msrb.mxu2 %v6085_v11  ;;  %v1468_v60 = vunpack.c.l.b16 %v1455_v57 }
 0x261   : > { %5598 = vpow2.f32 %v1094_v33 }
 0x262   : > { %v5595_v37 = vpop.eup %5594  ;;  %v6136_v1 = vpack.c.b16 %v1469_v62, %v1468_v60 }
 0x263   : > { %v1139_v42 = vmul.f32 %v5595_v37, %v6063_v50  ;;  %v1066_v43 = vpop.xlane.xlu1 %1065 }
 0x264   : > { %v1080_v2 = vsub.f32 %v6069_v54, %v1066_v43  ;;  %1431 = vmatpush.bf16.msrb.mxu2 %v6089_v15  ;;  %v1471_v54 = vunpack.c.l.b16 %v1458_v45 }
 0x265   : > { %v1147_v46 = vpack.c.bf16 %v1139_v42, %v1139_v42 }
 0x266   : > { %v6110_v47 = vpop.eup %5596  ;;  %v1092_v49 = vmul.f32 1.442695, %v1080_v2  ;;  %v6127_v59 = vpack.c.b16 %v1471_v54, %v1470_v53 }
 0x267   : > { %v6118_v50 = vpop.eup %5598  ;;  %5331 = vmatmul.msk.bf16.vlgmr.msrb.gmra.mxu3 %vm1156_vm4, %v1147_v46  ;;  %v1103_v52 = vsel %vm1051_vm3, %v6110_v47, 0.0 }
 0x268   : > { %5600 = vpow2.f32 %v1092_v49  ;;  %v1115_v55 = vsel %vm1051_vm3, %v6118_v50, 0.0  ;;  %1104 = vadd.xlane.f32.xlu1 %v1103_v52  ;;  %1443 = vmatpush.bf16.msrb.mxu3 %v6085_v11 }
 0x269   : > { %1116 = vadd.xlane.f32.xlu0 %v1115_v55 }
 0x26c   : > { %1444 = vmatpush.bf16.msrb.mxu3 %v6089_v15 }
 0x26e   : > { %v6129_v63 = vpop.eup %5600 }
 0x26f   : > { %5339 = vmatmul.msk.bf16.vlgmr.msra.gmra.mxu2 %vm485_vm0, %v5887_v26  ;;  %v1112_v0 = vsel %vm1051_vm3, %v6129_v63, 0.0 }
 0x270   : > { %1113 = vadd.xlane.f32.xlu2 %v1112_v0  ;;  %1508 = vmatpush.bf16.msra.mxu2 %v6127_v59 }
 0x274   : > { %1509 = vmatpush.bf16.msra.mxu2 %v6136_v1 }
 0x277   : > { %5340 = vmatmul.msk.bf16.vlgmr.msra.gmra.mxu3 %vm485_vm0, %v5889_v27 }
 0x278   : > { %1521 = vmatpush.bf16.msra.mxu3 %v6127_v59 }
 0x27c   : > { %1522 = vmatpush.bf16.msra.mxu3 %v6136_v1 }
 0x27f   : > { %5343 = vmatmul.msk.bf16.vlgmr.msrb.gmra.mxu2 %vm485_vm0, %v5905_v34 }
 0x280   : > { %1560 = vmatpush.bf16.msrb.mxu2 %v6127_v59 }
 0x284   : > { %1561 = vmatpush.bf16.msrb.mxu2 %v6136_v1 }
 0x287   : > { %5344 = vmatmul.msk.bf16.vlgmr.msrb.gmra.mxu3 %vm485_vm0, %v5907_v35 }
 0x288   : > { %1573 = vmatpush.bf16.msrb.mxu3 %v6127_v59 }
 0x28c   : > { %1574 = vmatpush.bf16.msrb.mxu3 %v6136_v1 }
 0x28f   : > { %5352 = vmatmul.msk.bf16.vlgmr.msra.gmra.mxu2 %vm485_vm0, %v5887_v26 }
 0x290   : > { %1638 = vmatpush.bf16.msra.mxu2 %v6171_v14 }
 0x294   : > { %1639 = vmatpush.bf16.msra.mxu2 %v6177_v21 }
 0x297   : > { %5353 = vmatmul.msk.bf16.vlgmr.msra.gmra.mxu3 %vm485_vm0, %v5889_v27 }
 0x298   : > { %1651 = vmatpush.bf16.msra.mxu3 %v6171_v14 }
 0x29c   : > { %1652 = vmatpush.bf16.msra.mxu3 %v6177_v21 }
 0x29f   : > { %5356 = vmatmul.msk.bf16.vlgmr.msrb.gmra.mxu2 %vm485_vm0, %v5905_v34 }
 0x2a0   : > { %1690 = vmatpush.bf16.msrb.mxu2 %v6171_v14 }
 0x2a4   : > { %1691 = vmatpush.bf16.msrb.mxu2 %v6177_v21 }
 0x2a7   : > { %5357 = vmatmul.msk.bf16.vlgmr.msrb.gmra.mxu3 %vm485_vm0, %v5907_v35 }
 0x2a8   : > { %1703 = vmatpush.bf16.msrb.mxu3 %v6171_v14 }
 0x2ac   : > { %1704 = vmatpush.bf16.msrb.mxu3 %v6177_v21 }
 0x2af   : > { %5365 = vmatmul.msk.bf16.vlgmr.msra.gmra.mxu2 %vm485_vm0, %v5887_v26 }
 0x2b7   : > { %5366 = vmatmul.msk.bf16.vlgmr.msra.gmra.mxu3 %vm485_vm0, %v5889_v27 }
 0x2bf   : > { %5369 = vmatmul.msk.bf16.vlgmr.msrb.gmra.mxu2 %vm485_vm0, %v5905_v34 }
 0x2c7   : > { %5370 = vmatmul.msk.bf16.vlgmr.msrb.gmra.mxu3 %vm485_vm0, %v5907_v35 }
 0x2d2   : > { %v6173_v17 = vpop.f32.mrf.mxu2 }
 0x2d3   : > { %v1102_v18 = vpop.xlane.xlu0 %1101 }
 0x2d4   : > { %5602 = vrcp.f32 %v1102_v18 }
 0x2da   : > { %v5603_v22 = vpop.eup %5602  ;;  %v1213_v23 = vpop.f32.mrf.mxu2 }
 0x2db   : > { %v6183_v24 = vpop.f32.mrf.mxu3  ;;  %v1132_v25 = vmul.f32 %v5603_v22, %v6095_v31  ;;  %v1105_v28 = vpop.xlane.xlu1 %1104 }
 0x2dc   : > { %5604 = vrcp.f32 %v1105_v28  ;;  %v1117_v31 = vpop.xlane.xlu0 %1116 }
 0x2dd   : > { %v1140_v4 = vpack.c.bf16 %v1132_v25, %v1132_v25 }
 0x2df   : > { %5324 = vmatmul.msk.bf16.vlgmr.msra.gmra.mxu0 %vm1156_vm4, %v1140_v4 }
 0x2e0   : > { %1352 = vmatpush.bf16.msra.mxu0 %v6085_v11 }
 0x2e2   : > { %v5605_v29 = vpop.eup %5604  ;;  %v6194_v32 = vpop.f32.mrf.mxu2 }
 0x2e3   : > { %v1232_v30 = vpop.f32.mrf.mxu3  ;;  %v1133_v33 = vmul.f32 %v5605_v29, %v6110_v47  ;;  %v1114_v36 = vpop.xlane.xlu2 %1113 }
 0x2e4   : > { %5606 = vrcp.f32 %v1114_v36  ;;  %1353 = vmatpush.bf16.msra.mxu0 %v6089_v15 }
 0x2e5   : > { %v1141_v37 = vpack.c.bf16 %v1133_v33, %v1133_v33  ;;  %5608 = vrcp.f32 %v1117_v31 }
 0x2e7   : > { %5325 = vmatmul.msk.bf16.vlgmr.msra.gmra.mxu1 %vm1156_vm4, %v1141_v37 }
 0x2e8   : > { %1365 = vmatpush.bf16.msra.mxu1 %v6085_v11 }
 0x2ea   : > { %v5607_v40 = vpop.eup %5606  ;;  %v1289_v41 = vpop.f32.mrf.mxu2 }
 0x2eb   : > { %v6200_v42 = vpop.f32.mrf.mxu3  ;;  %v1136_v43 = vmul.f32 %v5607_v40, %v6129_v63  ;;  %v5609_v45 = vpop.eup %5608 }
 0x2ec   : > { %1366 = vmatpush.bf16.msra.mxu1 %v6089_v15  ;;  %v1137_v2 = vmul.f32 %v5609_v45, %v6118_v50 }
 0x2ed   : > { %v1144_v44 = vpack.c.bf16 %v1136_v43, %v1136_v43 }
 0x2ee   : > { %v1145_v49 = vpack.c.bf16 %v1137_v2, %v1137_v2 }
 0x2ef   : > { %5328 = vmatmul.msk.bf16.vlgmr.msrb.gmra.mxu0 %vm1156_vm4, %v1144_v44 }
 0x2f0   : > { %1404 = vmatpush.bf16.msrb.mxu0 %v6085_v11 }
 0x2f2   : > { %v1381_v47 = vpop.f32.mrf.mxu2 }
 0x2f3   : > { %v1308_v46 = vpop.f32.mrf.mxu3  ;;  %v1382_v63 = vadd.f32 %v6236_v58, %v1381_v47 }
 0x2f4   : > { %1405 = vmatpush.bf16.msrb.mxu0 %v6089_v15 }
 0x2f5   : > { %v1712_v6 = vpack.c.bf16 %v1382_v63, %v1382_v63 }
 0x2f7   : > { %5329 = vmatmul.msk.bf16.vlgmr.msrb.gmra.mxu1 %vm1156_vm4, %v1145_v49 }
 0x2f8   : > { %1417 = vmatpush.bf16.msrb.mxu1 %v6085_v11 }
 0x2fa   : > { %v1383_v9 = vpop.f32.mrf.mxu2 }
 0x2fb   : > { %v1394_v51 = vpop.f32.mrf.mxu3 }
 0x2fc   : > { %1418 = vmatpush.bf16.msrb.mxu1 %v6089_v15  ;;  %v6228_v15 = vld [vmem:[%s7303_s2 + $0x5] ss:$0 sm:$0xff] }
 0x2ff   : > { %5337 = vmatmul.msk.bf16.vlgmr.msra.gmra.mxu0 %vm485_vm0, %v5917_v38 }
 0x300   : > { %1482 = vmatpush.bf16.msra.mxu0 %v6127_v59 }
 0x302   : > { %v1433_v50 = vpop.f32.mrf.mxu2 }
 0x303   : > { %v1396_v52 = vpop.f32.mrf.mxu3  ;;  %v1434_v18 = vadd.f32 %v6236_v58, %v1433_v50 }
 0x304   : > { %1483 = vmatpush.bf16.msra.mxu0 %v6136_v1 }
 0x305   : > { %v1716_v23 = vpack.c.bf16 %v1434_v18, %v1434_v18 }
 0x307   : > { %5338 = vmatmul.msk.bf16.vlgmr.msra.gmra.mxu1 %vm485_vm0, %v5919_v39 }
 0x308   : > { %1495 = vmatpush.bf16.msra.mxu1 %v6127_v59 }
 0x30a   : > { %v1435_v53 = vpop.f32.mrf.mxu2 }
 0x30b   : > { %v1446_v11 = vpop.f32.mrf.mxu3 }
 0x30c   : > { %1496 = vmatpush.bf16.msra.mxu1 %v6136_v1  ;;  %v1447_v4 = vadd.f32 %v6236_v58, %v1446_v11 }
 0x30e   : > { %v1717_v30 = vpack.c.bf16 %v1447_v4, %v1447_v4 }
 0x30f   : > { %5341 = vmatmul.msk.bf16.vlgmr.msrb.gmra.mxu0 %vm485_vm0, %v5938_v48 }
 0x310   : > { %1534 = vmatpush.bf16.msrb.mxu0 %v6127_v59 }
 0x312   : > { %v1511_v55 = vpop.f32.mrf.mxu2 }
 0x313   : > { %v1448_v54 = vpop.f32.mrf.mxu3  ;;  %v1512_v57 = vadd.f32 %v6228_v15, %v1511_v55 }
 0x314   : > { %1535 = vmatpush.bf16.msrb.mxu0 %v6136_v1 }
 0x315   : > { %v1720_v60 = vpack.c.bf16 %v1512_v57, %v1512_v57 }
 0x317   : > { %v1768_v62 = vsel %vm890_vm1, %v1720_v60, 0  ;;  %5342 = vmatmul.msk.bf16.vlgmr.msrb.gmra.mxu1 %vm485_vm0, %v5963_v56 }
 0x318   : > { %1777 = vmatpush.bf16.xpose.msra.mxu2 %v1768_v62  ;;  %1547 = vmatpush.bf16.msrb.mxu1 %v6127_v59  ;;  %v1395_v59 = vadd.f32 %v6236_v58, %v1394_v51 }
 0x31a   : > { %v1513_v0 = vpop.f32.mrf.mxu2 }
 0x31b   : > { %v1524_v3 = vpop.f32.mrf.mxu3 }
 0x31c   : > { %v1525_v5 = vadd.f32 %v6228_v15, %v1524_v3  ;;  %1548 = vmatpush.bf16.msrb.mxu1 %v6136_v1  ;;  %v1713_v1 = vpack.c.bf16 %v1395_v59, %v1395_v59 }
 0x31e   : > { %v1721_v7 = vpack.c.bf16 %v1525_v5, %v1525_v5 }
 0x31f   : > { %5350 = vmatmul.msk.bf16.vlgmr.msra.gmra.mxu0 %vm485_vm0, %v5917_v38  ;;  %5373 = vmatmul.msk.bf16.vlgmr.msra.gmra.mxu2 %vm890_vm1, %v1712_v6 }
 0x320   : > { %v1787_v8 = vsel %vm890_vm1, %v1721_v7, 0  ;;  %1612 = vmatpush.bf16.msra.mxu0 %v6171_v14 }
 0x321   : > { %1796 = vmatpush.bf16.xpose.msra.mxu3 %v1787_v8 }
 0x322   : > { %v1563_v12 = vpop.f32.mrf.mxu2 }
 0x323   : > { %v1526_v10 = vpop.f32.mrf.mxu3  ;;  %v1564_v13 = vadd.f32 %v6228_v15, %v1563_v12 }
 0x324   : > { %1613 = vmatpush.bf16.msra.mxu0 %v6177_v21 }
 0x325   : > { %v1724_v61 = vpack.c.bf16 %v1564_v13, %v1564_v13 }
 0x327   : > { %v1844_v16 = vsel %vm890_vm1, %v1724_v61, 0  ;;  %5351 = vmatmul.msk.bf16.vlgmr.msra.gmra.mxu1 %vm485_vm0, %v5919_v39 }
 0x328   : > { %5374 = vmatmul.msk.bf16.vlgmr.msra.gmra.mxu3 %vm890_vm1, %v1713_v1  ;;  %1853 = vmatpush.bf16.xpose.msrb.mxu2 %v1844_v16 }
 0x329   : > { %1625 = vmatpush.bf16.msra.mxu1 %v6171_v14 }
 0x32a   : > { %v1565_v19 = vpop.f32.mrf.mxu2 }
 0x32b   : > { %v1576_v20 = vpop.f32.mrf.mxu3 }
 0x32c   : > { %v1577_v22 = vadd.f32 %v6228_v15, %v1576_v20 }
 0x32d   : > { %1626 = vmatpush.bf16.msra.mxu1 %v6177_v21 }
 0x32e   : > { %v1725_v25 = vpack.c.bf16 %v1577_v22, %v1577_v22 }
 0x32f   : > { %5354 = vmatmul.msk.bf16.vlgmr.msrb.gmra.mxu0 %vm485_vm0, %v5938_v48  ;;  %5377 = vmatmul.msk.bf16.vlgmr.msrb.gmra.mxu2 %vm890_vm1, %v1716_v23 }
 0x330   : > { %v1863_v28 = vsel %vm890_vm1, %v1725_v25, 0  ;;  %1664 = vmatpush.bf16.msrb.mxu0 %v6171_v14 }
 0x331   : > { %1872 = vmatpush.bf16.xpose.msrb.mxu3 %v1863_v28 }
 0x332   : > { %v1641_v36 = vpop.f32.mrf.mxu2 }
 0x333   : > { %v1578_v29 = vpop.f32.mrf.mxu3 }
 0x334   : > { %1665 = vmatpush.bf16.msrb.mxu0 %v6177_v21 }
 0x337   : > { %5355 = vmatmul.msk.bf16.vlgmr.msrb.gmra.mxu1 %vm485_vm0, %v5963_v56 }
 0x338   : > { %5378 = vmatmul.msk.bf16.vlgmr.msrb.gmra.mxu3 %vm890_vm1, %v1717_v30  ;;  %1677 = vmatpush.bf16.msrb.mxu1 %v6171_v14  ;;  %v6286_v14 = vld [vmem:[%s7303_s2 + $0x9] ss:$0 sm:$0xff] }
 0x33a   : > { %v1643_v43 = vpop.f32.mrf.mxu2 }
 0x33b   : > { %v1654_v44 = vpop.f32.mrf.mxu3 }
 0x33c   : > { %1678 = vmatpush.bf16.msrb.mxu1 %v6177_v21  ;;  %v1642_v21 = vadd.f32 %v6286_v14, %v1641_v36  ;;  %v1655_v45 = vadd.f32 %v6286_v14, %v1654_v44 }
 0x33e   : > { %v1984_v31 = vpack.c.bf16 %v1642_v21, %v1642_v21  ;;  %v1985_v2 = vpack.c.bf16 %v1655_v45, %v1655_v45 }
 0x33f   : > { %5363 = vmatmul.msk.bf16.vlgmr.msra.gmra.mxu0 %vm485_vm0, %v5917_v38 }
 0x340   : > { %v2032_v41 = vsel %vm1160_vm2, %v1984_v31, 0  ;;  %v2051_v46 = vsel %vm1160_vm2, %v1985_v2, 0 }
 0x341   : > { %2041 = vmatpush.bf16.msra.mxu2 %v2032_v41  ;;  %2060 = vmatpush.bf16.msra.mxu3 %v2051_v46 }
 0x342   : > { %v1693_v51 = vpop.f32.mrf.mxu2 }
 0x343   : > { %v1656_v9 = vpop.f32.mrf.mxu3  ;;  %v1694_v52 = vadd.f32 %v6286_v14, %v1693_v51 }
 0x345   : > { %v1988_v50 = vpack.c.bf16 %v1694_v52, %v1694_v52 }
 0x347   : > { %5364 = vmatmul.msk.bf16.vlgmr.msra.gmra.mxu1 %vm485_vm0, %v5919_v39  ;;  %v2108_v53 = vsel %vm1160_vm2, %v1988_v50, 0 }
 0x348   : > { %2117 = vmatpush.bf16.msrb.mxu2 %v2108_v53 }
 0x34a   : > { %v1695_v55 = vpop.f32.mrf.mxu2 }
 0x34b   : > { %v1706_v57 = vpop.f32.mrf.mxu3 }
 0x34c   : > { %v1707_v60 = vadd.f32 %v6286_v14, %v1706_v57 }
 0x34e   : > { %v1989_v62 = vpack.c.bf16 %v1707_v60, %v1707_v60 }
 0x34f   : > { %5367 = vmatmul.msk.bf16.vlgmr.msrb.gmra.mxu0 %vm485_vm0, %v5938_v48 }
 0x350   : > { %v2127_v63 = vsel %vm1160_vm2, %v1989_v62, 0 }
 0x351   : > { %2136 = vmatpush.bf16.msrb.mxu3 %v2127_v63 }
 0x353   : > { %v1708_v5 = vpop.f32.mrf.mxu3 }
 0x357   : > { %5368 = vmatmul.msk.bf16.vlgmr.msrb.gmra.mxu1 %vm485_vm0, %v5963_v56 }
 0x35c   : > { %v6281_v33 = vpop.f32.mrf.mxu0 }
 0x364   : > { %v1175_v37 = vpop.f32.mrf.mxu0  ;;  %v6289_v40 = vpop.f32.mrf.mxu1 }
 0x36c   : > { %v1194_v47 = vpop.f32.mrf.mxu1  ;;  %v6294_v49 = vpop.f32.mrf.mxu0 }
 0x374   : > { %v1251_v11 = vpop.f32.mrf.mxu0  ;;  %v6298_v54 = vpop.f32.mrf.mxu1 }
 0x37c   : > { %v1270_v0 = vpop.f32.mrf.mxu1  ;;  %v1355_v3 = vpop.f32.mrf.mxu0 }
 0x37d   : > { %v1356_v20 = vadd.f32 %v6236_v58, %v1355_v3 }
 0x37f   : > { %v1710_v29 = vpack.c.bf16 %v1356_v20, %v1356_v20 }
 0x384   : > { %v1357_v6 = vpop.f32.mrf.mxu0  ;;  %v1368_v7 = vpop.f32.mrf.mxu1 }
 0x385   : > { %v1369_v37 = vadd.f32 %v6236_v58, %v1368_v7 }
 0x387   : > { %v1711_v46 = vpack.c.bf16 %v1369_v37, %v1369_v37 }
 0x38c   : > { %v1370_v8 = vpop.f32.mrf.mxu1  ;;  %v1407_v59 = vpop.f32.mrf.mxu0 }
 0x38d   : > { %v1408_v50 = vadd.f32 %v6236_v58, %v1407_v59 }
 0x38f   : > { %v1714_v62 = vpack.c.bf16 %v1408_v50, %v1408_v50 }
 0x394   : > { %v1409_v10 = vpop.f32.mrf.mxu0  ;;  %v1420_v12 = vpop.f32.mrf.mxu1 }
 0x395   : > { %v1421_v6 = vadd.f32 %v6236_v58, %v1420_v12 }
 0x39c   : > { %v1422_v13 = vpop.f32.mrf.mxu1  ;;  %v1485_v1 = vpop.f32.mrf.mxu0 }
 0x39d   : > { %v1486_v61 = vadd.f32 %v6228_v15, %v1485_v1  ;;  %v1715_v13 = vpack.c.bf16 %v1421_v6, %v1421_v6 }
 0x39f   : > { %v1718_v16 = vpack.c.bf16 %v1486_v61, %v1486_v61 }
 0x3a1   : > { %v1730_v18 = vsel %vm890_vm1, %v1718_v16, 0 }
 0x3a2   : > { %1739 = vmatpush.bf16.xpose.msra.mxu0 %v1730_v18  ;;  %v1779_v19 = vpop.f32.mrf.mxu2 }
 0x3a3   : > { %v6305_v22 = vmul.f32 0.35355338, %v1779_v19 }
 0x3a4   : > { %v1487_v23 = vpop.f32.mrf.mxu0  ;;  %v1498_v25 = vpop.f32.mrf.mxu1 }
 0x3a5   : > { %v1499_v28 = vadd.f32 %v6228_v15, %v1498_v25  ;;  %v1892_v4 = vsel %vm1051_vm3, %v6305_v22, -inf }
 0x3a6   : > { %1893 = vmax.xlane.f32.xlu1 %v1892_v4 }
 0x3a7   : > { %v1719_v30 = vpack.c.bf16 %v1499_v28, %v1499_v28 }
 0x3a9   : > { %v1749_v36 = vsel %vm890_vm1, %v1719_v30, 0  ;;  %5371 = vmatmul.msk.bf16.vlgmr.msra.gmra.mxu0 %vm890_vm1, %v1710_v29 }
 0x3aa   : > { %1758 = vmatpush.bf16.xpose.msra.mxu1 %v1749_v36  ;;  %v1781_v21 = vpop.f32.mrf.mxu2 }
 0x3ab   : > { %v1798_v31 = vpop.f32.mrf.mxu3 }
 0x3ac   : > { %v6313_v41 = vmul.f32 0.35355338, %v1798_v31  ;;  %v1500_v43 = vpop.f32.mrf.mxu1  ;;  %v1537_v44 = vpop.f32.mrf.mxu0 }
 0x3ad   : > { %v1538_v45 = vadd.f32 %v6228_v15, %v1537_v44 }
 0x3ae   : > { %v1895_v2 = vsel %vm1051_vm3, %v6313_v41, -inf }
 0x3af   : > { %1896 = vmax.xlane.f32.xlu2 %v1895_v2  ;;  %v1722_v47 = vpack.c.bf16 %v1538_v45, %v1538_v45 }
 0x3b1   : > { %v1806_v9 = vsel %vm890_vm1, %v1722_v47, 0  ;;  %5372 = vmatmul.msk.bf16.vlgmr.msra.gmra.mxu1 %vm890_vm1, %v1711_v46 }
 0x3b2   : > { %1815 = vmatpush.bf16.xpose.msrb.mxu0 %v1806_v9  ;;  %v1855_v52 = vpop.f32.mrf.mxu2 }
 0x3b3   : > { %v1800_v51 = vpop.f32.mrf.mxu3  ;;  %v6321_v53 = vmul.f32 0.35355338, %v1855_v52 }
 0x3b4   : > { %v1539_v11 = vpop.f32.mrf.mxu0  ;;  %v1550_v55 = vpop.f32.mrf.mxu1 }
 0x3b5   : > { %v1551_v57 = vadd.f32 %v6228_v15, %v1550_v55  ;;  %v1904_v60 = vsel %vm1051_vm3, %v6321_v53, -inf }
 0x3b6   : > { %1905 = vmax.xlane.f32.xlu0 %v1904_v60 }
 0x3b7   : > { %v1723_v63 = vpack.c.bf16 %v1551_v57, %v1551_v57 }
 0x3b9   : > { %v1825_v0 = vsel %vm890_vm1, %v1723_v63, 0  ;;  %5375 = vmatmul.msk.bf16.vlgmr.msrb.gmra.mxu0 %vm890_vm1, %v1714_v62 }
 0x3ba   : > { %1834 = vmatpush.bf16.xpose.msrb.mxu1 %v1825_v0  ;;  %v1857_v3 = vpop.f32.mrf.mxu2 }
 0x3bb   : > { %v1874_v5 = vpop.f32.mrf.mxu3 }
 0x3bc   : > { %v1885_v7 = vmul.f32 0.35355338, %v1874_v5  ;;  %v1552_v8 = vpop.f32.mrf.mxu1  ;;  %v1615_v59 = vpop.f32.mrf.mxu0 }
 0x3bd   : > { %v1616_v10 = vadd.f32 %v6286_v14, %v1615_v59 }
 0x3be   : > { %v1907_v15 = vsel %vm1051_vm3, %v1885_v7, -inf }
 0x3bf   : > { %1908 = vmax.xlane.f32.xlu1 %v1907_v15  ;;  %v1982_v1 = vpack.c.bf16 %v1616_v10, %v1616_v10 }
 0x3c1   : > { %5376 = vmatmul.msk.bf16.vlgmr.msrb.gmra.mxu1 %vm890_vm1, %v1715_v13  ;;  %v1994_v61 = vsel %vm1160_vm2, %v1982_v1, 0 }
 0x3c2   : > { %2003 = vmatpush.bf16.msra.mxu0 %v1994_v61 }
 0x3c3   : > { %v1876_v16 = vpop.f32.mrf.mxu3 }
 0x3c4   : > { %v1617_v18 = vpop.f32.mrf.mxu0  ;;  %v1628_v19 = vpop.f32.mrf.mxu1 }
 0x3c5   : > { %v1629_v58 = vadd.f32 %v6286_v14, %v1628_v19 }
 0x3c7   : > { %v1983_v12 = vpack.c.bf16 %v1629_v58, %v1629_v58 }
 0x3c9   : > { %v2013_v20 = vsel %vm1160_vm2, %v1983_v12, 0 }
 0x3ca   : > { %2022 = vmatpush.bf16.msra.mxu1 %v2013_v20 }
 0x3cc   : > { %v1630_v23 = vpop.f32.mrf.mxu1  ;;  %v1667_v25 = vpop.f32.mrf.mxu0 }
 0x3cd   : > { %v1668_v28 = vadd.f32 %v6286_v14, %v1667_v25 }
 0x3cf   : > { %v1986_v4 = vpack.c.bf16 %v1668_v28, %v1668_v28 }
 0x3d1   : > { %v2070_v29 = vsel %vm1160_vm2, %v1986_v4, 0 }
 0x3d2   : > { %2079 = vmatpush.bf16.msrb.mxu0 %v2070_v29 }
 0x3d4   : > { %v1669_v30 = vpop.f32.mrf.mxu0  ;;  %v1680_v36 = vpop.f32.mrf.mxu1 }
 0x3d5   : > { %v1681_v21 = vadd.f32 %v6286_v14, %v1680_v36 }
 0x3d7   : > { %v1987_v31 = vpack.c.bf16 %v1681_v21, %v1681_v21 }
 0x3d9   : > { %v2089_v37 = vsel %vm1160_vm2, %v1987_v31, 0 }
 0x3da   : > { %2098 = vmatpush.bf16.msrb.mxu1 %v2089_v37 }
 0x3dc   : > { %v1682_v43 = vpop.f32.mrf.mxu1 }
 0x419   : > { %v1894_v44 = vpop.xlane.xlu1 %1893 }
 0x41a   : > { %v1912_v45 = vsub.f32 %v6305_v22, %v1894_v44 }
 0x41c   : > { %v1922_v2 = vmul.f32 1.442695, %v1912_v45 }
 0x41e   : > { %5610 = vpow2.f32 %v1922_v2 }
 0x422   : > { %v1897_v46 = vpop.xlane.xlu2 %1896 }
 0x423   : > { %v1913_v47 = vsub.f32 %v6313_v41, %v1897_v46 }
 0x424   : > { %v5611_v9 = vpop.eup %5610 }
 0x425   : > { %v1924_v51 = vmul.f32 1.442695, %v1913_v47  ;;  %v1940_v52 = vsel %vm1051_vm3, %v5611_v9, 0.0 }
 0x426   : > { %1941 = vadd.xlane.f32.xlu2 %v1940_v52  ;;  %v1741_v14 = vpop.f32.mrf.mxu0 }
 0x427   : > { %5612 = vpow2.f32 %v1924_v51  ;;  %v1878_v50 = vmul.f32 0.35355338, %v1741_v14 }
 0x429   : > { %v1906_v11 = vpop.xlane.xlu0 %1905  ;;  %v1886_v55 = vsel %vm1051_vm3, %v1878_v50, -inf }
 0x42a   : > { %v1916_v57 = vsub.f32 %v6321_v53, %v1906_v11  ;;  %1887 = vmax.xlane.f32.xlu1 %v1886_v55 }
 0x42c   : > { %v1930_v60 = vmul.f32 1.442695, %v1916_v57 }
 0x42d   : > { %v5613_v22 = vpop.eup %5612 }
 0x42e   : > { %v1943_v62 = vsel %vm1051_vm3, %v5613_v22, 0.0  ;;  %5614 = vpow2.f32 %v1930_v60  ;;  %v1743_v41 = vpop.f32.mrf.mxu0  ;;  %v1760_v63 = vpop.f32.mrf.mxu1 }
 0x42f   : > { %1944 = vadd.xlane.f32.xlu0 %v1943_v62  ;;  %v1879_v0 = vmul.f32 0.35355338, %v1760_v63 }
 0x431   : > { %v1889_v5 = vsel %vm1051_vm3, %v1879_v0, -inf }
 0x432   : > { %v1909_v3 = vpop.xlane.xlu1 %1908  ;;  %1890 = vmax.xlane.f32.xlu2 %v1889_v5 }
 0x433   : > { %v1917_v6 = vsub.f32 %v1885_v7, %v1909_v3 }
 0x434   : > { %v5615_v8 = vpop.eup %5614 }
 0x435   : > { %v1932_v59 = vmul.f32 1.442695, %v1917_v6  ;;  %v1952_v15 = vsel %vm1051_vm3, %v5615_v8, 0.0 }
 0x436   : > { %v1762_v53 = vpop.f32.mrf.mxu1  ;;  %v1817_v10 = vpop.f32.mrf.mxu0 }
 0x437   : > { %5616 = vpow2.f32 %v1932_v59  ;;  %1953 = vadd.xlane.f32.xlu0 %v1952_v15  ;;  %v1882_v13 = vmul.f32 0.35355338, %v1817_v10  ;;  %v5387_v15 = vld [vmem:[%s7304_s3 + $0x8] sm:$0xff] }
 0x438   : > { %v2144_v53 = vpack.c.bf16 %v5387_v15, %v5387_v15 }
 0x439   : > { %v1898_v1 = vsel %vm1051_vm3, %v1882_v13, -inf }
 0x43a   : > { %1899 = vmax.xlane.f32.xlu2 %v1898_v1  ;;  %v2158_v10 = vsel %vm2156_vm5, %v2144_v53, 0  ;;  %v1315_v53 = vpack.c.bf16 %v6183_v24, %v6183_v24  ;;  %v5420_v24 = vld [vmem:[%s7302_s1 + $0xd8] sm:$0xff] }
 0x43d   : > { %v5617_v61 = vpop.eup %5616 }
 0x43e   : > { %v1955_v16 = vsel %vm1051_vm3, %v5617_v61, 0.0  ;;  %v1836_v18 = vpop.f32.mrf.mxu1  ;;  %v1819_v19 = vpop.f32.mrf.mxu0 }
 0x43f   : > { %1956 = vadd.xlane.f32.xlu1 %v1955_v16  ;;  %v1883_v7 = vmul.f32 0.35355338, %v1836_v18 }
 0x441   : > { %v1901_v58 = vsel %vm1051_vm3, %v1883_v7, -inf }
 0x442   : > { %1902 = vmax.xlane.f32.xlu0 %v1901_v58 }
 0x446   : > { %v1838_v12 = vpop.f32.mrf.mxu1 }
 0x499   : > { %v1942_v20 = vpop.xlane.xlu2 %1941 }
 0x49a   : > { %5618 = vrcp.f32 %v1942_v20 }
 0x49d   : > { %v1888_v23 = vpop.xlane.xlu1 %1887 }
 0x49e   : > { %v1910_v25 = vsub.f32 %v1878_v50, %v1888_v23 }
 0x4a0   : > { %v5619_v28 = vpop.eup %5618  ;;  %v1918_v4 = vmul.f32 1.442695, %v1910_v25 }
 0x4a1   : > { %v1968_v29 = vmul.f32 %v5619_v28, %v5611_v9 }
 0x4a2   : > { %v1945_v30 = vpop.xlane.xlu0 %1944  ;;  %5620 = vpow2.f32 %v1918_v4 }
 0x4a3   : > { %v1976_v36 = vpack.c.bf16 %v1968_v29, %v1968_v29  ;;  %5622 = vrcp.f32 %v1945_v30 }
 0x4a5   : > { %5381 = vmatmul.msk.bf16.vlgmr.msra.gmra.mxu2 %vm1156_vm4, %v1976_v36  ;;  %v1891_v21 = vpop.xlane.xlu2 %1890 }
 0x4a6   : > { %v1911_v31 = vsub.f32 %v1879_v0, %v1891_v21  ;;  %2199 = vmatpush.bf16.msra.mxu2 %v2158_v10 }
 0x4a8   : > { %v5621_v37 = vpop.eup %5620  ;;  %v1920_v43 = vmul.f32 1.442695, %v1911_v31 }
 0x4a9   : > { %v5623_v44 = vpop.eup %5622  ;;  %v1934_v2 = vsel %vm1051_vm3, %v5621_v37, 0.0 }
 0x4aa   : > { %v1954_v45 = vpop.xlane.xlu0 %1953  ;;  %v1969_v46 = vmul.f32 %v5623_v44, %v5613_v22  ;;  %5624 = vpow2.f32 %v1920_v43  ;;  %1935 = vadd.xlane.f32.xlu1 %v1934_v2 }
 0x4ab   : > { %5626 = vrcp.f32 %v1954_v45 }
 0x4ac   : > { %v1977_v47 = vpack.c.bf16 %v1969_v46, %v1969_v46 }
 0x4ad   : > { %v1900_v9 = vpop.xlane.xlu2 %1899 }
 0x4ae   : > { %5382 = vmatmul.msk.bf16.vlgmr.msra.gmra.mxu3 %vm1156_vm4, %v1977_v47  ;;  %v1914_v51 = vsub.f32 %v1882_v13, %v1900_v9  ;;  %v5406_v9 = vld [vmem:[%s7302_s1 + $0x50] sm:$0xff] }
 0x4af   : > { %2215 = vmatpush.bf16.msra.mxu3 %v2158_v10 }
 0x4b0   : > { %v5625_v52 = vpop.eup %5624  ;;  %v1926_v14 = vmul.f32 1.442695, %v1914_v51  ;;  %v5407_v51 = vld [vmem:[%s7302_s1 + $0x58] sm:$0xff] }
 0x4b1   : > { %v5627_v50 = vpop.eup %5626  ;;  %v1937_v55 = vsel %vm1051_vm3, %v5625_v52, 0.0 }
 0x4b2   : > { %v1957_v11 = vpop.xlane.xlu1 %1956  ;;  %v1972_v57 = vmul.f32 %v5627_v50, %v5615_v8  ;;  %5628 = vpow2.f32 %v1926_v14  ;;  %1938 = vadd.xlane.f32.xlu2 %v1937_v55  ;;  %v2424_v55 = vpack.c.bf16 %v5407_v51, %v5407_v51 }
 0x4b3   : > { %5630 = vrcp.f32 %v1957_v11  ;;  %v2423_v11 = vpack.c.bf16 %v5406_v9, %v5406_v9 }
 0x4b4   : > { %v1980_v60 = vpack.c.bf16 %v1972_v57, %v1972_v57 }
 0x4b5   : > { %v1903_v22 = vpop.xlane.xlu0 %1902 }
 0x4b6   : > { %v1915_v62 = vsub.f32 %v1883_v7, %v1903_v22  ;;  %5385 = vmatmul.msk.bf16.vlgmr.msrb.gmra.mxu2 %vm1156_vm4, %v1980_v60  ;;  %v5404_v60 = vld [vmem:[%s7302_s1 + $0x40] sm:$0xff]  ;;  %v5405_v22 = vld [vmem:[%s7302_s1 + $0x48] sm:$0xff] }
 0x4b7   : > { %2263 = vmatpush.bf16.msrb.mxu2 %v2158_v10 }
 0x4b8   : > { %v5629_v41 = vpop.eup %5628  ;;  %v1928_v63 = vmul.f32 1.442695, %v1915_v62  ;;  %v2436_v62 = vunpack.c.l.b16 %v2423_v11 }
 0x4b9   : > { %v5631_v0 = vpop.eup %5630  ;;  %v1946_v3 = vsel %vm1051_vm3, %v5629_v41, 0.0 }
 0x4ba   : > { %v1973_v5 = vmul.f32 %v5631_v0, %v5617_v61  ;;  %5632 = vpow2.f32 %v1928_v63  ;;  %1947 = vadd.xlane.f32.xlu0 %v1946_v3  ;;  %v1310_v61 = vld [vmem:[%s7304_s3] sm:$0xff]  ;;  %v2421_v63 = vpack.c.bf16 %v5404_v60, %v5404_v60  ;;  %v2422_v0 = vpack.c.bf16 %v5405_v22, %v5405_v22 }
 0x4bb   : > { %v1311_v19 = vpack.c.bf16 %v1310_v61, %v1310_v61  ;;  %v1319_v61 = vpack.c.bf16 %v6200_v42, %v6200_v42 }
 0x4bc   : > { %v1981_v6 = vpack.c.bf16 %v1973_v5, %v1973_v5 }
 0x4bd   : > { %v6367_v20 = vsel %vm2156_vm5, %v1311_v19, 0 }
 0x4be   : > { %5386 = vmatmul.msk.bf16.vlgmr.msrb.gmra.mxu3 %vm1156_vm4, %v1981_v6  ;;  %v2434_v6 = vunpack.c.l.b16 %v2421_v63 }
 0x4bf   : > { %2279 = vmatpush.bf16.msrb.mxu3 %v2158_v10 }
 0x4c0   : > { %v5633_v8 = vpop.eup %5632 }
 0x4c1   : > { %v1949_v59 = vsel %vm1051_vm3, %v5633_v8, 0.0 }
 0x4c2   : > { %1950 = vadd.xlane.f32.xlu1 %v1949_v59  ;;  %v1314_v59 = vpack.c.bf16 %v6173_v17, %v6173_v17  ;;  %v1318_v17 = vpack.c.bf16 %v6194_v32, %v6194_v32  ;;  %v5417_v32 = vld [vmem:[%s7302_s1 + $0xc0] sm:$0xff] }
 0x51d   : > { %v1936_v13 = vpop.xlane.xlu1 %1935 }
 0x51e   : > { %5634 = vrcp.f32 %v1936_v13 }
 0x524   : > { %v5635_v1 = vpop.eup %5634 }
 0x525   : > { %v1966_v16 = vmul.f32 %v5635_v1, %v5621_v37  ;;  %v1939_v18 = vpop.xlane.xlu2 %1938  ;;  %v2554_v1 = vpack.c.bf16 %v5420_v24, %v5420_v24 }
 0x526   : > { %5636 = vrcp.f32 %v1939_v18 }
 0x527   : > { %v1974_v7 = vpack.c.bf16 %v1966_v16, %v1966_v16  ;;  %v5418_v16 = vld [vmem:[%s7302_s1 + $0xc8] sm:$0xff]  ;;  %v2567_v19 = vunpack.c.l.b16 %v2554_v1 }
 0x528   : > { %v2043_v58 = vpop.f32.mrf.mxu2 }
 0x529   : > { %v2147_v12 = vpack.c.bf16 %v2043_v58, %v2043_v58  ;;  %5379 = vmatmul.msk.bf16.vlgmr.msra.gmra.mxu0 %vm1156_vm4, %v1974_v7  ;;  %v2551_v7 = vpack.c.bf16 %v5417_v32, %v5417_v32  ;;  %v2552_v58 = vpack.c.bf16 %v5418_v16, %v5418_v16 }
 0x52a   : > { %2167 = vmatpush.bf16.msra.mxu0 %v2158_v10 }
 0x52b   : > { %5390 = vmatmul.msk.bf16.vlgmr.msra.gmra.mxu2 %vm890_vm1, %v2147_v12  ;;  %v2564_v42 = vunpack.c.l.b16 %v2551_v7 }
 0x52c   : > { %v5637_v23 = vpop.eup %5636  ;;  %2330 = vmatpush.bf16.msra.mxu2 %v6367_v20 }
 0x52d   : > { %v1967_v25 = vmul.f32 %v5637_v23, %v5625_v52  ;;  %v1948_v28 = vpop.xlane.xlu0 %1947  ;;  %v2565_v23 = vunpack.c.l.b16 %v2552_v58 }
 0x52e   : > { %5638 = vrcp.f32 %v1948_v28 }
 0x52f   : > { %v1975_v4 = vpack.c.bf16 %v1967_v25, %v1967_v25  ;;  %v6433_v25 = vpack.c.b16 %v2565_v23, %v2564_v42 }
 0x530   : > { %v2045_v29 = vpop.f32.mrf.mxu2 }
 0x531   : > { %v2062_v30 = vpop.f32.mrf.mxu3  ;;  %5380 = vmatmul.msk.bf16.vlgmr.msra.gmra.mxu1 %vm1156_vm4, %v1975_v4 }
 0x532   : > { %v2148_v36 = vpack.c.bf16 %v2062_v30, %v2062_v30  ;;  %2183 = vmatpush.bf16.msra.mxu1 %v2158_v10 }
 0x534   : > { %v5639_v21 = vpop.eup %5638  ;;  %5391 = vmatmul.msk.bf16.vlgmr.msra.gmra.mxu3 %vm890_vm1, %v2148_v36 }
 0x535   : > { %v1970_v31 = vmul.f32 %v5639_v21, %v5629_v41  ;;  %v1951_v37 = vpop.xlane.xlu1 %1950  ;;  %2346 = vmatpush.bf16.msra.mxu3 %v6367_v20  ;;  %v2437_v41 = vunpack.c.l.b16 %v2424_v55  ;;  %v5432_v55 = vld [vmem:[%s7302_s1 + $0x150] sm:$0xff] }
 0x536   : > { %5640 = vrcp.f32 %v1951_v37  ;;  %v2683_v60 = vpack.c.bf16 %v5432_v55, %v5432_v55 }
 0x537   : > { %v1978_v43 = vpack.c.bf16 %v1970_v31, %v1970_v31  ;;  %v6392_v5 = vpack.c.b16 %v2437_v41, %v2436_v62  ;;  %v5431_v41 = vld [vmem:[%s7302_s1 + $0x148] sm:$0xff] }
 0x539   : > { %v2064_v44 = vpop.f32.mrf.mxu3  ;;  %v2119_v45 = vpop.f32.mrf.mxu2  ;;  %5383 = vmatmul.msk.bf16.vlgmr.msrb.gmra.mxu0 %vm1156_vm4, %v1978_v43 }
 0x53a   : > { %v2151_v2 = vpack.c.bf16 %v2119_v45, %v2119_v45  ;;  %2231 = vmatpush.bf16.msrb.mxu0 %v2158_v10 }
 0x53c   : > { %v5641_v46 = vpop.eup %5640  ;;  %5394 = vmatmul.msk.bf16.vlgmr.msrb.gmra.mxu2 %vm890_vm1, %v2151_v2 }
 0x53d   : > { %v1971_v47 = vmul.f32 %v5641_v46, %v5633_v8  ;;  %2394 = vmatpush.bf16.msrb.mxu2 %v6367_v20  ;;  %v2435_v8 = vunpack.c.l.b16 %v2422_v0 }
 0x53f   : > { %v1979_v52 = vpack.c.bf16 %v1971_v47, %v1971_v47  ;;  %v6398_v15 = vpack.c.b16 %v2435_v8, %v2434_v6  ;;  %v1313_v6 = vpack.c.bf16 %v6289_v40, %v6289_v40  ;;  %v1316_v40 = vpack.c.bf16 %v6294_v49, %v6294_v49 }
 0x540   : > { %v1317_v49 = vpack.c.bf16 %v6298_v54, %v6298_v54 }
 0x541   : > { %v2121_v14 = vpop.f32.mrf.mxu2  ;;  %v2138_v50 = vpop.f32.mrf.mxu3  ;;  %5384 = vmatmul.msk.bf16.vlgmr.msrb.gmra.mxu1 %vm1156_vm4, %v1979_v52 }
 0x542   : > { %v2152_v57 = vpack.c.bf16 %v2138_v50, %v2138_v50  ;;  %2247 = vmatpush.bf16.msrb.mxu1 %v2158_v10  ;;  %v5419_v10 = vld [vmem:[%s7302_s1 + $0xd0] sm:$0xff]  ;;  %v1312_v14 = vpack.c.bf16 %v6281_v33, %v6281_v33  ;;  %v5430_v33 = vld [vmem:[%s7302_s1 + $0x140] sm:$0xff] }
 0x543   : > { %v2553_v13 = vpack.c.bf16 %v5419_v10, %v5419_v10  ;;  %v2681_v0 = vpack.c.bf16 %v5430_v33, %v5430_v33 }
 0x544   : > { %5395 = vmatmul.msk.bf16.vlgmr.msrb.gmra.mxu3 %vm890_vm1, %v2152_v57  ;;  %v5433_v57 = vld [vmem:[%s7302_s1 + $0x158] sm:$0xff] }
 0x545   : > { %2410 = vmatpush.bf16.msrb.mxu3 %v6367_v20  ;;  %v2566_v18 = vunpack.c.l.b16 %v2553_v13  ;;  %v2684_v22 = vpack.c.bf16 %v5433_v57, %v5433_v57 }
 0x547   : > { %v6428_v12 = vpack.c.b16 %v2567_v19, %v2566_v18  ;;  %v2697_v62 = vunpack.c.l.b16 %v2684_v22 }
 0x549   : > { %v2140_v3 = vpop.f32.mrf.mxu3 }
 0x54a   : > { %v2682_v3 = vpack.c.bf16 %v5431_v41, %v5431_v41 }
 0x54c   : > { %5398 = vmatmul.msk.bf16.vlgmr.msra.gmra.mxu2 %vm890_vm1, %v1314_v59 }
 0x54d   : > { %2474 = vmatpush.bf16.msra.mxu2 %v6392_v5 }
 0x551   : > { %2475 = vmatpush.bf16.msra.mxu2 %v6398_v15 }
 0x554   : > { %5399 = vmatmul.msk.bf16.vlgmr.msra.gmra.mxu3 %vm890_vm1, %v1315_v53  ;;  %v2694_v53 = vunpack.c.l.b16 %v2681_v0 }
 0x555   : > { %2487 = vmatpush.bf16.msra.mxu3 %v6392_v5 }
 0x559   : > { %2488 = vmatpush.bf16.msra.mxu3 %v6398_v15 }
 0x55c   : > { %5402 = vmatmul.msk.bf16.vlgmr.msrb.gmra.mxu2 %vm890_vm1, %v1318_v17  ;;  %v2695_v17 = vunpack.c.l.b16 %v2682_v3 }
 0x55d   : > { %2526 = vmatpush.bf16.msrb.mxu2 %v6392_v5 }
 0x55e   : > { %v6490_v24 = vpack.c.b16 %v2695_v17, %v2694_v53 }
 0x561   : > { %2527 = vmatpush.bf16.msrb.mxu2 %v6398_v15 }
 0x564   : > { %5403 = vmatmul.msk.bf16.vlgmr.msrb.gmra.mxu3 %vm890_vm1, %v1319_v61 }
 0x565   : > { %2539 = vmatpush.bf16.msrb.mxu3 %v6392_v5 }
 0x569   : > { %2540 = vmatpush.bf16.msrb.mxu3 %v6398_v15 }
 0x56c   : > { %5411 = vmatmul.msk.bf16.vlgmr.msra.gmra.mxu2 %vm485_vm0, %v5887_v26 }
 0x56d   : > { %2604 = vmatpush.bf16.msra.mxu2 %v6428_v12 }
 0x571   : > { %2605 = vmatpush.bf16.msra.mxu2 %v6433_v25 }
 0x574   : > { %5412 = vmatmul.msk.bf16.vlgmr.msra.gmra.mxu3 %vm485_vm0, %v5889_v27 }
 0x575   : > { %2617 = vmatpush.bf16.msra.mxu3 %v6428_v12 }
 0x579   : > { %2618 = vmatpush.bf16.msra.mxu3 %v6433_v25 }
 0x57c   : > { %5415 = vmatmul.msk.bf16.vlgmr.msrb.gmra.mxu2 %vm485_vm0, %v5905_v34 }
 0x57d   : > { %2656 = vmatpush.bf16.msrb.mxu2 %v6428_v12 }
 0x581   : > { %2657 = vmatpush.bf16.msrb.mxu2 %v6433_v25 }
 0x584   : > { %5416 = vmatmul.msk.bf16.vlgmr.msrb.gmra.mxu3 %vm485_vm0, %v5907_v35 }
 0x585   : > { %2669 = vmatpush.bf16.msrb.mxu3 %v6428_v12 }
 0x589   : > { %2670 = vmatpush.bf16.msrb.mxu3 %v6433_v25 }
 0x58c   : > { %5424 = vmatmul.msk.bf16.vlgmr.msra.gmra.mxu2 %vm485_vm0, %v5887_v26 }
 0x594   : > { %5425 = vmatmul.msk.bf16.vlgmr.msra.gmra.mxu3 %vm485_vm0, %v5889_v27 }
 0x59c   : > { %5428 = vmatmul.msk.bf16.vlgmr.msrb.gmra.mxu2 %vm485_vm0, %v5905_v34 }
 0x5a4   : > { %5429 = vmatmul.msk.bf16.vlgmr.msrb.gmra.mxu3 %vm485_vm0, %v5907_v35 }
 0x5a6   : > { %v2005_v28 = vpop.f32.mrf.mxu0 }
 0x5a7   : > { %v2145_v4 = vpack.c.bf16 %v2005_v28, %v2005_v28 }
 0x5a9   : > { %5388 = vmatmul.msk.bf16.vlgmr.msra.gmra.mxu0 %vm890_vm1, %v2145_v4 }
 0x5aa   : > { %2298 = vmatpush.bf16.msra.mxu0 %v6367_v20 }
 0x5ae   : > { %v2007_v29 = vpop.f32.mrf.mxu0  ;;  %v2024_v30 = vpop.f32.mrf.mxu1 }
 0x5af   : > { %v2146_v36 = vpack.c.bf16 %v2024_v30, %v2024_v30  ;;  %v2201_v21 = vpop.f32.mrf.mxu2  ;;  %v6546_v30 = vld [vmem:[%s7303_s2 + $0x6] ss:$0 sm:$0xff] }
 0x5b1   : > { %5389 = vmatmul.msk.bf16.vlgmr.msra.gmra.mxu1 %vm890_vm1, %v2146_v36 }
 0x5b2   : > { %2314 = vmatpush.bf16.msra.mxu1 %v6367_v20 }
 0x5b6   : > { %v2026_v31 = vpop.f32.mrf.mxu1  ;;  %v2081_v37 = vpop.f32.mrf.mxu0 }
 0x5b7   : > { %v2149_v43 = vpack.c.bf16 %v2081_v37, %v2081_v37  ;;  %v2203_v44 = vpop.f32.mrf.mxu2  ;;  %v2217_v45 = vpop.f32.mrf.mxu3 }
 0x5b9   : > { %5392 = vmatmul.msk.bf16.vlgmr.msrb.gmra.mxu0 %vm890_vm1, %v2149_v43 }
 0x5ba   : > { %2362 = vmatpush.bf16.msrb.mxu0 %v6367_v20 }
 0x5be   : > { %v2083_v2 = vpop.f32.mrf.mxu0  ;;  %v2100_v46 = vpop.f32.mrf.mxu1 }
 0x5bf   : > { %v2150_v47 = vpack.c.bf16 %v2100_v46, %v2100_v46  ;;  %v2219_v9 = vpop.f32.mrf.mxu3  ;;  %v2265_v51 = vpop.f32.mrf.mxu2 }
 0x5c1   : > { %5393 = vmatmul.msk.bf16.vlgmr.msrb.gmra.mxu1 %vm890_vm1, %v2150_v47 }
 0x5c2   : > { %2378 = vmatpush.bf16.msrb.mxu1 %v6367_v20  ;;  %v2696_v20 = vunpack.c.l.b16 %v2683_v60 }
 0x5c4   : > { %v6480_v63 = vpack.c.b16 %v2697_v62, %v2696_v20 }
 0x5c6   : > { %v2102_v52 = vpop.f32.mrf.mxu1  ;;  %2734 = vmatpush.bf16.msra.mxu2 %v6480_v63  ;;  %2747 = vmatpush.bf16.msra.mxu3 %v6480_v63 }
 0x5c7   : > { %v2267_v50 = vpop.f32.mrf.mxu2  ;;  %v2281_v11 = vpop.f32.mrf.mxu3 }
 0x5c9   : > { %5396 = vmatmul.msk.bf16.vlgmr.msra.gmra.mxu0 %vm890_vm1, %v1312_v14 }
 0x5ca   : > { %2448 = vmatpush.bf16.msra.mxu0 %v6392_v5  ;;  %2735 = vmatpush.bf16.msra.mxu2 %v6490_v24 }
 0x5cb   : > { %2748 = vmatpush.bf16.msra.mxu3 %v6490_v24 }
 0x5cd   : > { %5437 = vmatmul.msk.bf16.vlgmr.msra.gmra.mxu2 %vm485_vm0, %v5887_v26 }
 0x5ce   : > { %2449 = vmatpush.bf16.msra.mxu0 %v6398_v15  ;;  %2786 = vmatpush.bf16.msrb.mxu2 %v6480_v63 }
 0x5cf   : > { %v2283_v8 = vpop.f32.mrf.mxu3  ;;  %v2332_v59 = vpop.f32.mrf.mxu2  ;;  %2799 = vmatpush.bf16.msrb.mxu3 %v6480_v63 }
 0x5d0   : > { %v6487_v10 = vadd.f32 %v2332_v59, %v2201_v21  ;;  %5438 = vmatmul.msk.bf16.vlgmr.msra.gmra.mxu3 %vm485_vm0, %v5889_v27 }
 0x5d1   : > { %5397 = vmatmul.msk.bf16.vlgmr.msra.gmra.mxu1 %vm890_vm1, %v1313_v6 }
 0x5d2   : > { %2461 = vmatpush.bf16.msra.mxu1 %v6392_v5  ;;  %2787 = vmatpush.bf16.msrb.mxu2 %v6490_v24 }
 0x5d3   : > { %2800 = vmatpush.bf16.msrb.mxu3 %v6490_v24 }
 0x5d6   : > { %2462 = vmatpush.bf16.msra.mxu1 %v6398_v15 }
 0x5d7   : > { %v2334_v13 = vpop.f32.mrf.mxu2  ;;  %v2348_v1 = vpop.f32.mrf.mxu3 }
 0x5d8   : > { %v6504_v61 = vadd.f32 %v2348_v1, %v2217_v45 }
 0x5d9   : > { %5400 = vmatmul.msk.bf16.vlgmr.msrb.gmra.mxu0 %vm890_vm1, %v1316_v40 }
 0x5da   : > { %2500 = vmatpush.bf16.msrb.mxu0 %v6392_v5 }
 0x5dd   : > { %5441 = vmatmul.msk.bf16.vlgmr.msrb.gmra.mxu2 %vm485_vm0, %v5905_v34 }
 0x5de   : > { %2501 = vmatpush.bf16.msrb.mxu0 %v6398_v15 }
 0x5df   : > { %v2350_v32 = vpop.f32.mrf.mxu3  ;;  %v2396_v16 = vpop.f32.mrf.mxu2 }
 0x5e0   : > { %v6513_v18 = vadd.f32 %v2396_v16, %v2265_v51  ;;  %5442 = vmatmul.msk.bf16.vlgmr.msrb.gmra.mxu3 %vm485_vm0, %v5907_v35 }
 0x5e1   : > { %5401 = vmatmul.msk.bf16.vlgmr.msrb.gmra.mxu1 %vm890_vm1, %v1317_v49 }
 0x5e2   : > { %2513 = vmatpush.bf16.msrb.mxu1 %v6392_v5 }
 0x5e6   : > { %2514 = vmatpush.bf16.msrb.mxu1 %v6398_v15 }
 0x5e7   : > { %v2398_v19 = vpop.f32.mrf.mxu2  ;;  %v2412_v7 = vpop.f32.mrf.mxu3 }
 0x5e8   : > { %v6522_v58 = vadd.f32 %v2412_v7, %v2281_v11 }
 0x5e9   : > { %5409 = vmatmul.msk.bf16.vlgmr.msra.gmra.mxu0 %vm485_vm0, %v5917_v38 }
 0x5ea   : > { %2578 = vmatpush.bf16.msra.mxu0 %v6428_v12 }
 0x5ee   : > { %2579 = vmatpush.bf16.msra.mxu0 %v6433_v25 }
 0x5ef   : > { %v2414_v54 = vpop.f32.mrf.mxu3  ;;  %v2477_v5 = vpop.f32.mrf.mxu2 }
 0x5f1   : > { %5410 = vmatmul.msk.bf16.vlgmr.msra.gmra.mxu1 %vm485_vm0, %v5919_v39 }
 0x5f2   : > { %2591 = vmatpush.bf16.msra.mxu1 %v6428_v12 }
 0x5f6   : > { %2592 = vmatpush.bf16.msra.mxu1 %v6433_v25 }
 0x5f7   : > { %v2479_v15 = vpop.f32.mrf.mxu2  ;;  %v2490_v42 = vpop.f32.mrf.mxu3 }
 0x5f9   : > { %5413 = vmatmul.msk.bf16.vlgmr.msrb.gmra.mxu0 %vm485_vm0, %v5938_v48 }
 0x5fa   : > { %2630 = vmatpush.bf16.msrb.mxu0 %v6428_v12 }
 0x5fe   : > { %2631 = vmatpush.bf16.msrb.mxu0 %v6433_v25 }
 0x5ff   : > { %v2492_v23 = vpop.f32.mrf.mxu3  ;;  %v2529_v28 = vpop.f32.mrf.mxu2 }
 0x601   : > { %5414 = vmatmul.msk.bf16.vlgmr.msrb.gmra.mxu1 %vm485_vm0, %v5963_v56 }
 0x602   : > { %2643 = vmatpush.bf16.msrb.mxu1 %v6428_v12 }
 0x606   : > { %2644 = vmatpush.bf16.msrb.mxu1 %v6433_v25  ;;  %v6555_v25 = vld [vmem:[%s7303_s2 + $0x2] ss:$0 sm:$0xff] }
 0x607   : > { %v2531_v4 = vpop.f32.mrf.mxu2  ;;  %v2542_v29 = vpop.f32.mrf.mxu3  ;;  %v2478_v43 = vadd.f32 %v6555_v25, %v2477_v5  ;;  %v2491_v9 = vadd.f32 %v6555_v25, %v2490_v42  ;;  %v2530_v60 = vadd.f32 %v6555_v25, %v2529_v28  ;;  %v6599_v42 = vld [vmem:[%s7303_s2 + $0xa] ss:$0 sm:$0xff] }
 0x609   : > { %5422 = vmatmul.msk.bf16.vlgmr.msra.gmra.mxu0 %vm485_vm0, %v5917_v38  ;;  %v2808_v46 = vpack.c.bf16 %v2478_v43, %v2478_v43  ;;  %v2809_v50 = vpack.c.bf16 %v2491_v9, %v2491_v9  ;;  %v2812_v41 = vpack.c.bf16 %v2530_v60, %v2530_v60 }
 0x60a   : > { %2708 = vmatpush.bf16.msra.mxu0 %v6480_v63 }
 0x60e   : > { %2709 = vmatpush.bf16.msra.mxu0 %v6490_v24 }
 0x60f   : > { %v2544_v36 = vpop.f32.mrf.mxu3  ;;  %v2607_v21 = vpop.f32.mrf.mxu2 }
 0x610   : > { %v2608_v12 = vadd.f32 %v6546_v30, %v2607_v21 }
 0x611   : > { %5423 = vmatmul.msk.bf16.vlgmr.msra.gmra.mxu1 %vm485_vm0, %v5919_v39 }
 0x612   : > { %v2816_v31 = vpack.c.bf16 %v2608_v12, %v2608_v12  ;;  %2721 = vmatpush.bf16.msra.mxu1 %v6480_v63 }
 0x614   : > { %v2864_v37 = vsel %vm890_vm1, %v2816_v31, 0 }
 0x615   : > { %2873 = vmatpush.bf16.xpose.msra.mxu2 %v2864_v37 }
 0x616   : > { %2722 = vmatpush.bf16.msra.mxu1 %v6490_v24 }
 0x617   : > { %v2609_v44 = vpop.f32.mrf.mxu2  ;;  %v2620_v45 = vpop.f32.mrf.mxu3 }
 0x618   : > { %v2621_v2 = vadd.f32 %v6546_v30, %v2620_v45 }
 0x619   : > { %5426 = vmatmul.msk.bf16.vlgmr.msrb.gmra.mxu0 %vm485_vm0, %v5938_v48 }
 0x61a   : > { %v2817_v47 = vpack.c.bf16 %v2621_v2, %v2621_v2  ;;  %2760 = vmatpush.bf16.msrb.mxu0 %v6480_v63 }
 0x61c   : > { %v2883_v51 = vsel %vm890_vm1, %v2817_v47, 0  ;;  %5445 = vmatmul.msk.bf16.vlgmr.msra.gmra.mxu2 %vm890_vm1, %v2808_v46 }
 0x61d   : > { %2892 = vmatpush.bf16.xpose.msra.mxu3 %v2883_v51 }
 0x61e   : > { %2761 = vmatpush.bf16.msrb.mxu0 %v6490_v24 }
 0x61f   : > { %v2622_v52 = vpop.f32.mrf.mxu3  ;;  %v2659_v14 = vpop.f32.mrf.mxu2 }
 0x620   : > { %v2660_v11 = vadd.f32 %v6546_v30, %v2659_v14 }
 0x621   : > { %5427 = vmatmul.msk.bf16.vlgmr.msrb.gmra.mxu1 %vm485_vm0, %v5963_v56 }
 0x622   : > { %v2820_v55 = vpack.c.bf16 %v2660_v11, %v2660_v11  ;;  %2773 = vmatpush.bf16.msrb.mxu1 %v6480_v63  ;;  %v2543_v63 = vadd.f32 %v6555_v25, %v2542_v29 }
 0x624   : > { %v2940_v57 = vsel %vm890_vm1, %v2820_v55, 0  ;;  %5446 = vmatmul.msk.bf16.vlgmr.msra.gmra.mxu3 %vm890_vm1, %v2809_v50  ;;  %v2813_v53 = vpack.c.bf16 %v2543_v63, %v2543_v63 }
 0x625   : > { %2949 = vmatpush.bf16.xpose.msrb.mxu2 %v2940_v57 }
 0x626   : > { %v2169_v22 = vpop.f32.mrf.mxu0  ;;  %2774 = vmatpush.bf16.msrb.mxu1 %v6490_v24 }
 0x627   : > { %v2672_v20 = vpop.f32.mrf.mxu3  ;;  %v2661_v62 = vpop.f32.mrf.mxu2 }
 0x628   : > { %v2673_v33 = vadd.f32 %v6546_v30, %v2672_v20 }
 0x629   : > { %5435 = vmatmul.msk.bf16.vlgmr.msra.gmra.mxu0 %vm485_vm0, %v5917_v38 }
 0x62a   : > { %v2821_v0 = vpack.c.bf16 %v2673_v33, %v2673_v33 }
 0x62c   : > { %v2959_v3 = vsel %vm890_vm1, %v2821_v0, 0  ;;  %5449 = vmatmul.msk.bf16.vlgmr.msrb.gmra.mxu2 %vm890_vm1, %v2812_v41 }
 0x62d   : > { %2968 = vmatpush.bf16.xpose.msrb.mxu3 %v2959_v3 }
 0x62e   : > { %v2171_v6 = vpop.f32.mrf.mxu0  ;;  %v2185_v8 = vpop.f32.mrf.mxu1 }
 0x62f   : > { %v2674_v59 = vpop.f32.mrf.mxu3 }
 0x631   : > { %5436 = vmatmul.msk.bf16.vlgmr.msra.gmra.mxu1 %vm485_vm0, %v5919_v39 }
 0x634   : > { %5450 = vmatmul.msk.bf16.vlgmr.msrb.gmra.mxu3 %vm890_vm1, %v2813_v53 }
 0x636   : > { %v2187_v17 = vpop.f32.mrf.mxu1  ;;  %v2233_v24 = vpop.f32.mrf.mxu0 }
 0x639   : > { %5439 = vmatmul.msk.bf16.vlgmr.msrb.gmra.mxu0 %vm485_vm0, %v5938_v48 }
 0x63e   : > { %v2235_v40 = vpop.f32.mrf.mxu0  ;;  %v2249_v13 = vpop.f32.mrf.mxu1 }
 0x641   : > { %5440 = vmatmul.msk.bf16.vlgmr.msrb.gmra.mxu1 %vm485_vm0, %v5963_v56 }
 0x646   : > { %v2251_v1 = vpop.f32.mrf.mxu1  ;;  %v2300_v49 = vpop.f32.mrf.mxu0 }
 0x647   : > { %v6590_v32 = vadd.f32 %v2300_v49, %v2169_v22 }
 0x64e   : > { %v2302_v16 = vpop.f32.mrf.mxu0  ;;  %v2316_v19 = vpop.f32.mrf.mxu1 }
 0x64f   : > { %v6592_v7 = vadd.f32 %v2316_v19, %v2185_v8 }
 0x650   : > { %v2737_v23 = vpop.f32.mrf.mxu2 }
 0x651   : > { %v2738_v28 = vadd.f32 %v6599_v42, %v2737_v23 }
 0x653   : > { %v3080_v4 = vpack.c.bf16 %v2738_v28, %v2738_v28  ;;  %v2750_v44 = vpop.f32.mrf.mxu3 }
 0x654   : > { %v2751_v2 = vadd.f32 %v6599_v42, %v2750_v44 }
 0x655   : > { %v3128_v12 = vsel %vm1160_vm2, %v3080_v4, 0 }
 0x656   : > { %v2318_v54 = vpop.f32.mrf.mxu1  ;;  %v2364_v5 = vpop.f32.mrf.mxu0  ;;  %3137 = vmatpush.bf16.msra.mxu2 %v3128_v12  ;;  %v3081_v47 = vpack.c.bf16 %v2751_v2, %v2751_v2 }
 0x657   : > { %v6594_v15 = vadd.f32 %v2364_v5, %v2233_v24 }
 0x658   : > { %v2739_v31 = vpop.f32.mrf.mxu2  ;;  %v3147_v14 = vsel %vm1160_vm2, %v3081_v47, 0 }
 0x659   : > { %3156 = vmatpush.bf16.msra.mxu3 %v3147_v14 }
 0x65b   : > { %v2752_v11 = vpop.f32.mrf.mxu3 }
 0x65e   : > { %v2366_v29 = vpop.f32.mrf.mxu0  ;;  %v2380_v36 = vpop.f32.mrf.mxu1 }
 0x65f   : > { %v6602_v21 = vadd.f32 %v2380_v36, %v2249_v13 }
 0x660   : > { %v2789_v45 = vpop.f32.mrf.mxu2 }
 0x661   : > { %v2790_v46 = vadd.f32 %v6599_v42, %v2789_v45 }
 0x663   : > { %v3084_v9 = vpack.c.bf16 %v2790_v46, %v2790_v46  ;;  %v2802_v22 = vpop.f32.mrf.mxu3 }
 0x664   : > { %v2803_v20 = vadd.f32 %v6599_v42, %v2802_v22 }
 0x665   : > { %v3204_v50 = vsel %vm1160_vm2, %v3084_v9, 0 }
 0x666   : > { %v2382_v37 = vpop.f32.mrf.mxu1  ;;  %v2451_v43 = vpop.f32.mrf.mxu0  ;;  %3213 = vmatpush.bf16.msrb.mxu2 %v3204_v50  ;;  %v3085_v62 = vpack.c.bf16 %v2803_v20, %v2803_v20 }
 0x667   : > { %v2452_v17 = vadd.f32 %v6555_v25, %v2451_v43 }
 0x668   : > { %v2791_v55 = vpop.f32.mrf.mxu2  ;;  %v3223_v0 = vsel %vm1160_vm2, %v3085_v62, 0 }
 0x669   : > { %3232 = vmatpush.bf16.msrb.mxu3 %v3223_v0  ;;  %v2806_v1 = vpack.c.bf16 %v2452_v17, %v2452_v17 }
 0x66b   : > { %v2804_v63 = vpop.f32.mrf.mxu3 }
 0x66e   : > { %v2453_v51 = vpop.f32.mrf.mxu0  ;;  %v2464_v52 = vpop.f32.mrf.mxu1 }
 0x66f   : > { %v2465_v19 = vadd.f32 %v6555_v25, %v2464_v52 }
 0x671   : > { %v2807_v28 = vpack.c.bf16 %v2465_v19, %v2465_v19 }
 0x676   : > { %v2466_v57 = vpop.f32.mrf.mxu1  ;;  %v2503_v60 = vpop.f32.mrf.mxu0 }
 0x677   : > { %v2504_v36 = vadd.f32 %v6555_v25, %v2503_v60 }
 0x679   : > { %v2810_v45 = vpack.c.bf16 %v2504_v36, %v2504_v36 }
 0x67e   : > { %v2505_v33 = vpop.f32.mrf.mxu0  ;;  %v2516_v41 = vpop.f32.mrf.mxu1 }
 0x67f   : > { %v2517_v9 = vadd.f32 %v6555_v25, %v2516_v41 }
 0x681   : > { %v2811_v55 = vpack.c.bf16 %v2517_v9, %v2517_v9 }
 0x686   : > { %v2518_v3 = vpop.f32.mrf.mxu1  ;;  %v2581_v6 = vpop.f32.mrf.mxu0 }
 0x687   : > { %v2582_v8 = vadd.f32 %v6546_v30, %v2581_v6 }
 0x689   : > { %v2814_v59 = vpack.c.bf16 %v2582_v8, %v2582_v8 }
 0x68b   : > { %v2826_v53 = vsel %vm890_vm1, %v2814_v59, 0 }
 0x68c   : > { %2835 = vmatpush.bf16.xpose.msra.mxu0 %v2826_v53 }
 0x68e   : > { %v2583_v24 = vpop.f32.mrf.mxu0  ;;  %v2594_v40 = vpop.f32.mrf.mxu1 }
 0x68f   : > { %v2595_v13 = vadd.f32 %v6546_v30, %v2594_v40 }
 0x691   : > { %v2815_v49 = vpack.c.bf16 %v2595_v13, %v2595_v13 }
 0x693   : > { %v2845_v16 = vsel %vm890_vm1, %v2815_v49, 0  ;;  %5443 = vmatmul.msk.bf16.vlgmr.msra.gmra.mxu0 %vm890_vm1, %v2806_v1 }
 0x694   : > { %2854 = vmatpush.bf16.xpose.msra.mxu1 %v2845_v16 }
 0x696   : > { %v2596_v54 = vpop.f32.mrf.mxu1  ;;  %v2633_v5 = vpop.f32.mrf.mxu0 }
 0x697   : > { %v2634_v23 = vadd.f32 %v6546_v30, %v2633_v5 }
 0x699   : > { %v2818_v4 = vpack.c.bf16 %v2634_v23, %v2634_v23 }
 0x69b   : > { %v2902_v29 = vsel %vm890_vm1, %v2818_v4, 0  ;;  %5444 = vmatmul.msk.bf16.vlgmr.msra.gmra.mxu1 %vm890_vm1, %v2807_v28 }
 0x69c   : > { %2911 = vmatpush.bf16.xpose.msrb.mxu0 %v2902_v29 }
 0x69e   : > { %v2635_v12 = vpop.f32.mrf.mxu0  ;;  %v2646_v31 = vpop.f32.mrf.mxu1 }
 0x69f   : > { %v2647_v37 = vadd.f32 %v6546_v30, %v2646_v31  ;;  %v2875_v43 = vpop.f32.mrf.mxu2 }
 0x6a0   : > { %v2976_v44 = vmul.f32 0.35355338, %v2875_v43 }
 0x6a1   : > { %v2819_v2 = vpack.c.bf16 %v2647_v37, %v2647_v37 }
 0x6a2   : > { %v2988_v46 = vsel %vm1051_vm3, %v2976_v44, -inf }
 0x6a3   : > { %v2921_v47 = vsel %vm890_vm1, %v2819_v2, 0  ;;  %2989 = vmax.xlane.f32.xlu2 %v2988_v46  ;;  %5447 = vmatmul.msk.bf16.vlgmr.msrb.gmra.mxu0 %vm890_vm1, %v2810_v45 }
 0x6a4   : > { %2930 = vmatpush.bf16.xpose.msrb.mxu1 %v2921_v47 }
 0x6a6   : > { %v2648_v51 = vpop.f32.mrf.mxu1  ;;  %v2711_v52 = vpop.f32.mrf.mxu0 }
 0x6a7   : > { %v2877_v14 = vpop.f32.mrf.mxu2  ;;  %v2894_v50 = vpop.f32.mrf.mxu3  ;;  %v2712_v30 = vadd.f32 %v6599_v42, %v2711_v52 }
 0x6a8   : > { %v2977_v11 = vmul.f32 0.35355338, %v2894_v50 }
 0x6a9   : > { %v3078_v57 = vpack.c.bf16 %v2712_v30, %v2712_v30 }
 0x6aa   : > { %v2991_v60 = vsel %vm1051_vm3, %v2977_v11, -inf }
 0x6ab   : > { %2992 = vmax.xlane.f32.xlu0 %v2991_v60  ;;  %5448 = vmatmul.msk.bf16.vlgmr.msrb.gmra.mxu1 %vm890_vm1, %v2811_v55  ;;  %v3090_v22 = vsel %vm1160_vm2, %v3078_v57, 0 }
 0x6ac   : > { %3099 = vmatpush.bf16.msra.mxu0 %v3090_v22 }
 0x6ae   : > { %v2713_v20 = vpop.f32.mrf.mxu0  ;;  %v2724_v62 = vpop.f32.mrf.mxu1 }
 0x6af   : > { %v2896_v25 = vpop.f32.mrf.mxu3  ;;  %v2951_v33 = vpop.f32.mrf.mxu2  ;;  %v2725_v41 = vadd.f32 %v6599_v42, %v2724_v62 }
 0x6b0   : > { %v2980_v0 = vmul.f32 0.35355338, %v2951_v33 }
 0x6b1   : > { %v3079_v63 = vpack.c.bf16 %v2725_v41, %v2725_v41 }
 0x6b2   : > { %v3000_v3 = vsel %vm1051_vm3, %v2980_v0, -inf }
 0x6b3   : > { %3001 = vmax.xlane.f32.xlu1 %v3000_v3  ;;  %v3109_v6 = vsel %vm1160_vm2, %v3079_v63, 0 }
 0x6b4   : > { %3118 = vmatpush.bf16.msra.mxu1 %v3109_v6 }
 0x6b6   : > { %v2726_v8 = vpop.f32.mrf.mxu1  ;;  %v2763_v59 = vpop.f32.mrf.mxu0 }
 0x6b7   : > { %v2953_v53 = vpop.f32.mrf.mxu2  ;;  %v2970_v17 = vpop.f32.mrf.mxu3  ;;  %v2764_v24 = vadd.f32 %v6599_v42, %v2763_v59 }
 0x6b8   : > { %v2981_v40 = vmul.f32 0.35355338, %v2970_v17 }
 0x6b9   : > { %v3082_v13 = vpack.c.bf16 %v2764_v24, %v2764_v24 }
 0x6ba   : > { %v3003_v1 = vsel %vm1051_vm3, %v2981_v40, -inf }
 0x6bb   : > { %3004 = vmax.xlane.f32.xlu2 %v3003_v1  ;;  %v3166_v49 = vsel %vm1160_vm2, %v3082_v13, 0 }
 0x6bc   : > { %3175 = vmatpush.bf16.msrb.mxu0 %v3166_v49 }
 0x6be   : > { %v2765_v16 = vpop.f32.mrf.mxu0  ;;  %v2776_v19 = vpop.f32.mrf.mxu1 }
 0x6bf   : > { %v2972_v54 = vpop.f32.mrf.mxu3  ;;  %v2777_v5 = vadd.f32 %v6599_v42, %v2776_v19 }
 0x6c1   : > { %v3083_v23 = vpack.c.bf16 %v2777_v5, %v2777_v5 }
 0x6c3   : > { %v3185_v28 = vsel %vm1160_vm2, %v3083_v23, 0 }
 0x6c4   : > { %3194 = vmatpush.bf16.msrb.mxu1 %v3185_v28 }
 0x6c6   : > { %v2778_v4 = vpop.f32.mrf.mxu1 }
 0x710   : > { %v2837_v29 = vpop.f32.mrf.mxu0 }
 0x711   : > { %v2974_v36 = vmul.f32 0.35355338, %v2837_v29 }
 0x713   : > { %v2982_v12 = vsel %vm1051_vm3, %v2974_v36, -inf }
 0x714   : > { %2983 = vmax.xlane.f32.xlu0 %v2982_v12 }
 0x716   : > { %v2990_v31 = vpop.xlane.xlu2 %2989 }
 0x717   : > { %v3008_v37 = vsub.f32 %v2976_v44, %v2990_v31 }
 0x718   : > { %v2839_v43 = vpop.f32.mrf.mxu0  ;;  %v2856_v45 = vpop.f32.mrf.mxu1 }
 0x719   : > { %v3018_v2 = vmul.f32 1.442695, %v3008_v37  ;;  %v2975_v46 = vmul.f32 0.35355338, %v2856_v45 }
 0x71b   : > { %5642 = vpow2.f32 %v3018_v2  ;;  %v2985_v47 = vsel %vm1051_vm3, %v2975_v46, -inf }
 0x71c   : > { %2986 = vmax.xlane.f32.xlu1 %v2985_v47 }
 0x71e   : > { %v2993_v42 = vpop.xlane.xlu0 %2992 }
 0x71f   : > { %v3009_v9 = vsub.f32 %v2977_v11, %v2993_v42 }
 0x720   : > { %v2858_v51 = vpop.f32.mrf.mxu1  ;;  %v2913_v52 = vpop.f32.mrf.mxu0 }
 0x721   : > { %v5643_v14 = vpop.eup %5642  ;;  %v3020_v50 = vmul.f32 1.442695, %v3009_v9  ;;  %v2978_v30 = vmul.f32 0.35355338, %v2913_v52 }
 0x722   : > { %v3036_v55 = vsel %vm1051_vm3, %v5643_v14, 0.0 }
 0x723   : > { %5644 = vpow2.f32 %v3020_v50  ;;  %3037 = vadd.xlane.f32.xlu2 %v3036_v55  ;;  %v2994_v44 = vsel %vm1051_vm3, %v2978_v30, -inf }
 0x724   : > { %2995 = vmax.xlane.f32.xlu1 %v2994_v44 }
 0x726   : > { %v3002_v57 = vpop.xlane.xlu1 %3001 }
 0x727   : > { %v3012_v60 = vsub.f32 %v2980_v0, %v3002_v57 }
 0x728   : > { %v2915_v22 = vpop.f32.mrf.mxu0  ;;  %v2932_v20 = vpop.f32.mrf.mxu1 }
 0x729   : > { %v5645_v62 = vpop.eup %5644  ;;  %v3026_v25 = vmul.f32 1.442695, %v3012_v60  ;;  %v2979_v33 = vmul.f32 0.35355338, %v2932_v20 }
 0x72a   : > { %v3039_v11 = vsel %vm1051_vm3, %v5645_v62, 0.0 }
 0x72b   : > { %5646 = vpow2.f32 %v3026_v25  ;;  %3040 = vadd.xlane.f32.xlu0 %v3039_v11  ;;  %v2997_v41 = vsel %vm1051_vm3, %v2979_v33, -inf }
 0x72c   : > { %2998 = vmax.xlane.f32.xlu2 %v2997_v41 }
 0x72e   : > { %v3005_v63 = vpop.xlane.xlu2 %3004 }
 0x72f   : > { %v3013_v3 = vsub.f32 %v2981_v40, %v3005_v63 }
 0x730   : > { %v2934_v6 = vpop.f32.mrf.mxu1 }
 0x731   : > { %v5647_v8 = vpop.eup %5646  ;;  %v3028_v59 = vmul.f32 1.442695, %v3013_v3 }
 0x732   : > { %v3048_v53 = vsel %vm1051_vm3, %v5647_v8, 0.0 }
 0x733   : > { %5648 = vpow2.f32 %v3028_v59  ;;  %3049 = vadd.xlane.f32.xlu0 %v3048_v53 }
 0x739   : > { %v5649_v0 = vpop.eup %5648 }
 0x73a   : > { %v3051_v17 = vsel %vm1051_vm3, %v5649_v0, 0.0 }
 0x73b   : > { %3052 = vadd.xlane.f32.xlu1 %v3051_v17 }
 0x787   : > { %v2984_v24 = vpop.xlane.xlu0 %2983 }
 0x788   : > { %v3006_v13 = vsub.f32 %v2974_v36, %v2984_v24  ;;  %v5470_v24 = vld [vmem:[%s7302_s1 + $0x70] sm:$0xff] }
 0x78a   : > { %v3014_v1 = vmul.f32 1.442695, %v3006_v13  ;;  %v5471_v13 = vld [vmem:[%s7302_s1 + $0x78] sm:$0xff] }
 0x78c   : > { %5650 = vpow2.f32 %v3014_v1  ;;  %v3395_v1 = vpack.c.bf16 %v5470_v24, %v5470_v24 }
 0x78f   : > { %v2987_v49 = vpop.xlane.xlu1 %2986 }
 0x790   : > { %v3007_v16 = vsub.f32 %v2975_v46, %v2987_v49  ;;  %v3396_v49 = vpack.c.bf16 %v5471_v13, %v5471_v13 }
 0x792   : > { %v5651_v19 = vpop.eup %5650  ;;  %v3016_v54 = vmul.f32 1.442695, %v3007_v16 }
 0x793   : > { %v3030_v40 = vsel %vm1051_vm3, %v5651_v19, 0.0 }
 0x794   : > { %5652 = vpow2.f32 %v3016_v54  ;;  %3031 = vadd.xlane.f32.xlu2 %v3030_v40  ;;  %v5469_v54 = vld [vmem:[%s7302_s1 + $0x68] sm:$0xff] }
 0x796   : > { %v3038_v5 = vpop.xlane.xlu2 %3037 }
 0x797   : > { %5654 = vrcp.f32 %v3038_v5  ;;  %v2996_v23 = vpop.xlane.xlu1 %2995 }
 0x798   : > { %v3010_v28 = vsub.f32 %v2978_v30, %v2996_v23  ;;  %v3408_v23 = vunpack.c.l.b16 %v3395_v1 }
 0x79a   : > { %v5653_v4 = vpop.eup %5652  ;;  %v3022_v29 = vmul.f32 1.442695, %v3010_v28 }
 0x79b   : > { %v3033_v12 = vsel %vm1051_vm3, %v5653_v4, 0.0 }
 0x79c   : > { %5656 = vpow2.f32 %v3022_v29  ;;  %3034 = vadd.xlane.f32.xlu0 %v3033_v12  ;;  %v3394_v12 = vpack.c.bf16 %v5469_v54, %v5469_v54 }
 0x79d   : > { %v5655_v36 = vpop.eup %5654 }
 0x79e   : > { %v3064_v31 = vmul.f32 %v5655_v36, %v5643_v14  ;;  %v3041_v37 = vpop.xlane.xlu0 %3040 }
 0x79f   : > { %5658 = vrcp.f32 %v3041_v37  ;;  %v2999_v43 = vpop.xlane.xlu2 %2998 }
 0x7a0   : > { %v3072_v45 = vpack.c.bf16 %v3064_v31, %v3064_v31  ;;  %v3011_v2 = vsub.f32 %v2979_v33, %v2999_v43  ;;  %v3407_v43 = vunpack.c.l.b16 %v3394_v12 }
 0x7a2   : > { %v5657_v46 = vpop.eup %5656  ;;  %v3024_v47 = vmul.f32 1.442695, %v3011_v2  ;;  %5453 = vmatmul.msk.bf16.vlgmr.msra.gmra.mxu2 %vm1156_vm4, %v3072_v45 }
 0x7a3   : > { %v3042_v42 = vsel %vm1051_vm3, %v5657_v46, 0.0 }
 0x7a4   : > { %5660 = vpow2.f32 %v3024_v47  ;;  %3043 = vadd.xlane.f32.xlu1 %v3042_v42 }
 0x7a5   : > { %v5659_v9 = vpop.eup %5658 }
 0x7a6   : > { %v3065_v51 = vmul.f32 %v5659_v9, %v5645_v62  ;;  %v3050_v52 = vpop.xlane.xlu0 %3049  ;;  %v5459_v62 = vld [vmem:[%s7304_s3 + $0x10] sm:$0xff] }
 0x7a7   : > { %5662 = vrcp.f32 %v3050_v52  ;;  %v3240_v33 = vpack.c.bf16 %v5459_v62, %v5459_v62  ;;  %v5481_v62 = vld [vmem:[%s7302_s1 + $0xe0] sm:$0xff] }
 0x7a8   : > { %v3073_v50 = vpack.c.bf16 %v3065_v51, %v3065_v51 }
 0x7a9   : > { %v3253_v11 = vsel %vm2156_vm5, %v3240_v33, 0  ;;  %v5482_v33 = vld [vmem:[%s7302_s1 + $0xe8] sm:$0xff] }
 0x7aa   : > { %v5661_v30 = vpop.eup %5660  ;;  %5454 = vmatmul.msk.bf16.vlgmr.msra.gmra.mxu3 %vm1156_vm4, %v3073_v50  ;;  %3294 = vmatpush.bf16.msra.mxu2 %v3253_v11 }
 0x7ab   : > { %v3045_v14 = vsel %vm1051_vm3, %v5661_v30, 0.0  ;;  %3310 = vmatpush.bf16.msra.mxu3 %v3253_v11 }
 0x7ac   : > { %3046 = vadd.xlane.f32.xlu2 %v3045_v14 }
 0x7ad   : > { %v5663_v55 = vpop.eup %5662 }
 0x7ae   : > { %v3068_v44 = vmul.f32 %v5663_v55, %v5647_v8  ;;  %v3053_v57 = vpop.xlane.xlu1 %3052  ;;  %v5483_v55 = vld [vmem:[%s7302_s1 + $0xf0] sm:$0xff] }
 0x7af   : > { %5664 = vrcp.f32 %v3053_v57 }
 0x7b0   : > { %v3076_v60 = vpack.c.bf16 %v3068_v44, %v3068_v44  ;;  %v5484_v44 = vld [vmem:[%s7302_s1 + $0xf8] sm:$0xff] }
 0x7b2   : > { %5457 = vmatmul.msk.bf16.vlgmr.msrb.gmra.mxu2 %vm1156_vm4, %v3076_v60 }
 0x7b3   : > { %3358 = vmatpush.bf16.msrb.mxu2 %v3253_v11 }
 0x7b5   : > { %v5665_v22 = vpop.eup %5664 }
 0x7b6   : > { %v3069_v20 = vmul.f32 %v5665_v22, %v5649_v0  ;;  %v3525_v22 = vpack.c.bf16 %v5483_v55, %v5483_v55 }
 0x7b8   : > { %v3077_v25 = vpack.c.bf16 %v3069_v20, %v3069_v20  ;;  %v3526_v20 = vpack.c.bf16 %v5484_v44, %v5484_v44 }
 0x7ba   : > { %5458 = vmatmul.msk.bf16.vlgmr.msrb.gmra.mxu3 %vm1156_vm4, %v3077_v25 }
 0x7bb   : > { %3374 = vmatpush.bf16.msrb.mxu3 %v3253_v11 }
 0x807   : > { %v3032_v41 = vpop.xlane.xlu2 %3031 }
 0x808   : > { %5666 = vrcp.f32 %v3032_v41  ;;  %v3539_v41 = vunpack.c.l.b16 %v3526_v20 }
 0x80e   : > { %v5667_v63 = vpop.eup %5666 }
 0x80f   : > { %v3062_v3 = vmul.f32 %v5667_v63, %v5651_v19  ;;  %v3035_v6 = vpop.xlane.xlu0 %3034  ;;  %v5468_v19 = vld [vmem:[%s7302_s1 + $0x60] sm:$0xff]  ;;  %v3523_v63 = vpack.c.bf16 %v5481_v62, %v5481_v62 }
 0x810   : > { %5668 = vrcp.f32 %v3035_v6  ;;  %v3393_v29 = vpack.c.bf16 %v5468_v19, %v5468_v19  ;;  %v6809_v62 = vld [vmem:[%s7303_s2 + $0x7] ss:$0 sm:$0xff] }
 0x811   : > { %v3070_v8 = vpack.c.bf16 %v3062_v3, %v3062_v3  ;;  %v3524_v3 = vpack.c.bf16 %v5482_v33, %v5482_v33 }
 0x812   : > { %v3406_v37 = vunpack.c.l.b16 %v3393_v29 }
 0x813   : > { %5451 = vmatmul.msk.bf16.vlgmr.msra.gmra.mxu0 %vm1156_vm4, %v3070_v8 }
 0x814   : > { %3262 = vmatpush.bf16.msra.mxu0 %v3253_v11  ;;  %v6678_v42 = vpack.c.b16 %v3407_v43, %v3406_v37 }
 0x816   : > { %v5669_v59 = vpop.eup %5668 }
 0x817   : > { %v3063_v53 = vmul.f32 %v5669_v59, %v5653_v4  ;;  %v3044_v0 = vpop.xlane.xlu1 %3043  ;;  %v3409_v4 = vunpack.c.l.b16 %v3396_v49  ;;  %v3536_v59 = vunpack.c.l.b16 %v3523_v63 }
 0x818   : > { %5670 = vrcp.f32 %v3044_v0 }
 0x819   : > { %v3071_v17 = vpack.c.bf16 %v3063_v53, %v3063_v53  ;;  %v6674_v31 = vpack.c.b16 %v3409_v4, %v3408_v23  ;;  %v3537_v53 = vunpack.c.l.b16 %v3524_v3  ;;  %v5497_v4 = vld [vmem:[%s7302_s1 + $0x178] sm:$0xff] }
 0x81b   : > { %5452 = vmatmul.msk.bf16.vlgmr.msra.gmra.mxu1 %vm1156_vm4, %v3071_v17  ;;  %v6708_v0 = vpack.c.b16 %v3537_v53, %v3536_v59 }
 0x81c   : > { %3278 = vmatpush.bf16.msra.mxu1 %v3253_v11 }
 0x81e   : > { %v5671_v16 = vpop.eup %5670 }
 0x81f   : > { %v3066_v40 = vmul.f32 %v5671_v16, %v5657_v46  ;;  %v3047_v5 = vpop.xlane.xlu2 %3046 }
 0x820   : > { %5672 = vrcp.f32 %v3047_v5 }
 0x821   : > { %v3074_v28 = vpack.c.bf16 %v3066_v40, %v3066_v40 }
 0x823   : > { %5455 = vmatmul.msk.bf16.vlgmr.msrb.gmra.mxu0 %vm1156_vm4, %v3074_v28  ;;  %v5496_v28 = vld [vmem:[%s7302_s1 + $0x170] sm:$0xff] }
 0x824   : > { %3326 = vmatpush.bf16.msrb.mxu0 %v3253_v11  ;;  %v3655_v12 = vpack.c.bf16 %v5496_v28, %v5496_v28 }
 0x825   : > { %v3139_v36 = vpop.f32.mrf.mxu2 }
 0x826   : > { %v5673_v45 = vpop.eup %5672  ;;  %v3243_v2 = vpack.c.bf16 %v3139_v36, %v3139_v36  ;;  %v3656_v36 = vpack.c.bf16 %v5497_v4, %v5497_v4  ;;  %v3668_v43 = vunpack.c.l.b16 %v3655_v12 }
 0x827   : > { %v3067_v47 = vmul.f32 %v5673_v45, %v5661_v30 }
 0x828   : > { %5462 = vmatmul.msk.bf16.vlgmr.msra.gmra.mxu2 %vm890_vm1, %v3243_v2  ;;  %v3669_v45 = vunpack.c.l.b16 %v3656_v36  ;;  %v5494_v2 = vld [vmem:[%s7302_s1 + $0x160] sm:$0xff] }
 0x829   : > { %v3075_v46 = vpack.c.bf16 %v3067_v47, %v3067_v47  ;;  %3446 = vmatpush.bf16.msra.mxu2 %v6674_v31  ;;  %v5495_v47 = vld [vmem:[%s7302_s1 + $0x168] sm:$0xff] }
 0x82b   : > { %5456 = vmatmul.msk.bf16.vlgmr.msrb.gmra.mxu1 %vm1156_vm4, %v3075_v46  ;;  %v6757_v46 = vpack.c.b16 %v3669_v45, %v3668_v43 }
 0x82c   : > { %3342 = vmatpush.bf16.msrb.mxu1 %v3253_v11  ;;  %v3538_v11 = vunpack.c.l.b16 %v3525_v22 }
 0x82d   : > { %v3141_v9 = vpop.f32.mrf.mxu2  ;;  %v3158_v51 = vpop.f32.mrf.mxu3  ;;  %3447 = vmatpush.bf16.msra.mxu2 %v6678_v42 }
 0x82e   : > { %v3244_v52 = vpack.c.bf16 %v3158_v51, %v3158_v51  ;;  %v6703_v8 = vpack.c.b16 %v3539_v41, %v3538_v11  ;;  %v3653_v9 = vpack.c.bf16 %v5494_v2, %v5494_v2  ;;  %v3654_v51 = vpack.c.bf16 %v5495_v47, %v5495_v47  ;;  %v6816_v41 = vld [vmem:[%s7303_s2 + $0x3] ss:$0 sm:$0xff] }
 0x830   : > { %5463 = vmatmul.msk.bf16.vlgmr.msra.gmra.mxu3 %vm890_vm1, %v3244_v52 }
 0x831   : > { %3459 = vmatpush.bf16.msra.mxu3 %v6674_v31 }
 0x835   : > { %v3160_v50 = vpop.f32.mrf.mxu3  ;;  %v3215_v30 = vpop.f32.mrf.mxu2  ;;  %3460 = vmatpush.bf16.msra.mxu3 %v6678_v42 }
 0x836   : > { %v3247_v14 = vpack.c.bf16 %v3215_v30, %v3215_v30 }
 0x838   : > { %5466 = vmatmul.msk.bf16.vlgmr.msrb.gmra.mxu2 %vm890_vm1, %v3247_v14 }
 0x839   : > { %3498 = vmatpush.bf16.msrb.mxu2 %v6674_v31 }
 0x83d   : > { %v3217_v57 = vpop.f32.mrf.mxu2  ;;  %v3234_v60 = vpop.f32.mrf.mxu3  ;;  %3499 = vmatpush.bf16.msrb.mxu2 %v6678_v42 }
 0x83e   : > { %v3248_v25 = vpack.c.bf16 %v3234_v60, %v3234_v60 }
 0x840   : > { %5467 = vmatmul.msk.bf16.vlgmr.msrb.gmra.mxu3 %vm890_vm1, %v3248_v25 }
 0x841   : > { %3511 = vmatpush.bf16.msrb.mxu3 %v6674_v31 }
 0x845   : > { %v3236_v6 = vpop.f32.mrf.mxu3  ;;  %3512 = vmatpush.bf16.msrb.mxu3 %v6678_v42 }
 0x848   : > { %5475 = vmatmul.msk.bf16.vlgmr.msra.gmra.mxu2 %vm485_vm0, %v5887_v26 }
 0x849   : > { %3576 = vmatpush.bf16.msra.mxu2 %v6703_v8 }
 0x84d   : > { %3577 = vmatpush.bf16.msra.mxu2 %v6708_v0 }
 0x850   : > { %5476 = vmatmul.msk.bf16.vlgmr.msra.gmra.mxu3 %vm485_vm0, %v5889_v27 }
 0x851   : > { %3589 = vmatpush.bf16.msra.mxu3 %v6703_v8 }
 0x855   : > { %3590 = vmatpush.bf16.msra.mxu3 %v6708_v0 }
 0x858   : > { %5479 = vmatmul.msk.bf16.vlgmr.msrb.gmra.mxu2 %vm485_vm0, %v5905_v34 }
 0x859   : > { %3628 = vmatpush.bf16.msrb.mxu2 %v6703_v8 }
 0x85d   : > { %3629 = vmatpush.bf16.msrb.mxu2 %v6708_v0 }
 0x860   : > { %5480 = vmatmul.msk.bf16.vlgmr.msrb.gmra.mxu3 %vm485_vm0, %v5907_v35 }
 0x861   : > { %3641 = vmatpush.bf16.msrb.mxu3 %v6703_v8 }
 0x865   : > { %3642 = vmatpush.bf16.msrb.mxu3 %v6708_v0 }
 0x868   : > { %5488 = vmatmul.msk.bf16.vlgmr.msra.gmra.mxu2 %vm485_vm0, %v5887_v26 }
 0x869   : > { %3706 = vmatpush.bf16.msra.mxu2 %v6757_v46 }
 0x870   : > { %5489 = vmatmul.msk.bf16.vlgmr.msra.gmra.mxu3 %vm485_vm0, %v5889_v27 }
 0x871   : > { %3719 = vmatpush.bf16.msra.mxu3 %v6757_v46 }
 0x878   : > { %5492 = vmatmul.msk.bf16.vlgmr.msrb.gmra.mxu2 %vm485_vm0, %v5905_v34 }
 0x880   : > { %5493 = vmatmul.msk.bf16.vlgmr.msrb.gmra.mxu3 %vm485_vm0, %v5907_v35 }
 0x890   : > { %v3101_v17 = vpop.f32.mrf.mxu0 }
 0x891   : > { %v3241_v24 = vpack.c.bf16 %v3101_v17, %v3101_v17 }
 0x893   : > { %5460 = vmatmul.msk.bf16.vlgmr.msra.gmra.mxu0 %vm890_vm1, %v3241_v24 }
 0x894   : > { %3420 = vmatpush.bf16.msra.mxu0 %v6674_v31 }
 0x898   : > { %v3103_v13 = vpop.f32.mrf.mxu0  ;;  %v3120_v1 = vpop.f32.mrf.mxu1  ;;  %3421 = vmatpush.bf16.msra.mxu0 %v6678_v42 }
 0x899   : > { %v3242_v49 = vpack.c.bf16 %v3120_v1, %v3120_v1 }
 0x89b   : > { %5461 = vmatmul.msk.bf16.vlgmr.msra.gmra.mxu1 %vm890_vm1, %v3242_v49 }
 0x89c   : > { %3433 = vmatpush.bf16.msra.mxu1 %v6674_v31 }
 0x8a0   : > { %v3122_v16 = vpop.f32.mrf.mxu1  ;;  %v3177_v19 = vpop.f32.mrf.mxu0  ;;  %3434 = vmatpush.bf16.msra.mxu1 %v6678_v42 }
 0x8a1   : > { %v3245_v54 = vpack.c.bf16 %v3177_v19, %v3177_v19 }
 0x8a3   : > { %5464 = vmatmul.msk.bf16.vlgmr.msrb.gmra.mxu0 %vm890_vm1, %v3245_v54 }
 0x8a4   : > { %3472 = vmatpush.bf16.msrb.mxu0 %v6674_v31 }
 0x8a8   : > { %v3179_v40 = vpop.f32.mrf.mxu0  ;;  %v3196_v5 = vpop.f32.mrf.mxu1  ;;  %3473 = vmatpush.bf16.msrb.mxu0 %v6678_v42 }
 0x8a9   : > { %v3246_v23 = vpack.c.bf16 %v3196_v5, %v3196_v5 }
 0x8ab   : > { %v3296_v29 = vpop.f32.mrf.mxu2  ;;  %5465 = vmatmul.msk.bf16.vlgmr.msrb.gmra.mxu1 %vm890_vm1, %v3246_v23 }
 0x8ac   : > { %v6748_v37 = vadd.f32 %v3296_v29, %v6487_v10  ;;  %3485 = vmatpush.bf16.msrb.mxu1 %v6674_v31  ;;  %v3666_v10 = vunpack.c.l.b16 %v3653_v9  ;;  %v3667_v31 = vunpack.c.l.b16 %v3654_v51 }
 0x8ae   : > { %v3670_v14 = vpack.c.b16 %v3667_v31, %v3666_v10 }
 0x8b0   : > { %v3198_v52 = vpop.f32.mrf.mxu1  ;;  %3486 = vmatpush.bf16.msrb.mxu1 %v6678_v42  ;;  %3707 = vmatpush.bf16.msra.mxu2 %v3670_v14 }
 0x8b1   : > { %3720 = vmatpush.bf16.msra.mxu3 %v3670_v14 }
 0x8b3   : > { %v3298_v50 = vpop.f32.mrf.mxu2  ;;  %v3312_v30 = vpop.f32.mrf.mxu3  ;;  %5473 = vmatmul.msk.bf16.vlgmr.msra.gmra.mxu0 %vm485_vm0, %v5917_v38  ;;  %5501 = vmatmul.msk.bf16.vlgmr.msra.gmra.mxu2 %vm485_vm0, %v5887_v26 }
 0x8b4   : > { %v6765_v55 = vadd.f32 %v3312_v30, %v6504_v61  ;;  %3550 = vmatpush.bf16.msra.mxu0 %v6703_v8  ;;  %3758 = vmatpush.bf16.msrb.mxu2 %v6757_v46 }
 0x8b5   : > { %3771 = vmatpush.bf16.msrb.mxu3 %v6757_v46 }
 0x8b6   : > { %5502 = vmatmul.msk.bf16.vlgmr.msra.gmra.mxu3 %vm485_vm0, %v5889_v27 }
 0x8b8   : > { %3551 = vmatpush.bf16.msra.mxu0 %v6708_v0  ;;  %3759 = vmatpush.bf16.msrb.mxu2 %v3670_v14 }
 0x8b9   : > { %3772 = vmatpush.bf16.msrb.mxu3 %v3670_v14 }
 0x8bb   : > { %v3314_v61 = vpop.f32.mrf.mxu3  ;;  %v3360_v42 = vpop.f32.mrf.mxu2  ;;  %5474 = vmatmul.msk.bf16.vlgmr.msra.gmra.mxu1 %vm485_vm0, %v5919_v39 }
 0x8bc   : > { %v6778_v44 = vadd.f32 %v3360_v42, %v6513_v18  ;;  %3563 = vmatpush.bf16.msra.mxu1 %v6703_v8 }
 0x8c0   : > { %3564 = vmatpush.bf16.msra.mxu1 %v6708_v0 }
 0x8c3   : > { %v3362_v57 = vpop.f32.mrf.mxu2  ;;  %v3376_v60 = vpop.f32.mrf.mxu3  ;;  %5477 = vmatmul.msk.bf16.vlgmr.msrb.gmra.mxu0 %vm485_vm0, %v5938_v48  ;;  %5505 = vmatmul.msk.bf16.vlgmr.msrb.gmra.mxu2 %vm485_vm0, %v5905_v34 }
 0x8c4   : > { %v6785_v26 = vadd.f32 %v3376_v60, %v6522_v58  ;;  %3602 = vmatpush.bf16.msrb.mxu0 %v6703_v8 }
 0x8c6   : > { %5506 = vmatmul.msk.bf16.vlgmr.msrb.gmra.mxu3 %vm485_vm0, %v5907_v35 }
 0x8c8   : > { %3603 = vmatpush.bf16.msrb.mxu0 %v6708_v0 }
 0x8cb   : > { %v3378_v27 = vpop.f32.mrf.mxu3  ;;  %v3449_v18 = vpop.f32.mrf.mxu2  ;;  %5478 = vmatmul.msk.bf16.vlgmr.msrb.gmra.mxu1 %vm485_vm0, %v5963_v56 }
 0x8cc   : > { %3615 = vmatpush.bf16.msrb.mxu1 %v6703_v8  ;;  %v3450_v6 = vadd.f32 %v6816_v41, %v3449_v18 }
 0x8d0   : > { %3616 = vmatpush.bf16.msrb.mxu1 %v6708_v0  ;;  %v3780_v0 = vpack.c.bf16 %v3450_v6, %v3450_v6 }
 0x8d3   : > { %v3451_v58 = vpop.f32.mrf.mxu2  ;;  %v3462_v22 = vpop.f32.mrf.mxu3  ;;  %5486 = vmatmul.msk.bf16.vlgmr.msra.gmra.mxu0 %vm485_vm0, %v5917_v38 }
 0x8d4   : > { %3680 = vmatpush.bf16.msra.mxu0 %v6757_v46  ;;  %v3463_v13 = vadd.f32 %v6816_v41, %v3462_v22 }
 0x8d6   : > { %v3781_v19 = vpack.c.bf16 %v3463_v13, %v3463_v13 }
 0x8d8   : > { %3681 = vmatpush.bf16.msra.mxu0 %v3670_v14 }
 0x8db   : > { %v3464_v34 = vpop.f32.mrf.mxu3  ;;  %v3501_v20 = vpop.f32.mrf.mxu2  ;;  %5487 = vmatmul.msk.bf16.vlgmr.msra.gmra.mxu1 %vm485_vm0, %v5919_v39 }
 0x8dc   : > { %3693 = vmatpush.bf16.msra.mxu1 %v6757_v46  ;;  %v3502_v40 = vadd.f32 %v6816_v41, %v3501_v20 }
 0x8de   : > { %v3784_v4 = vpack.c.bf16 %v3502_v40, %v3502_v40 }
 0x8e0   : > { %3694 = vmatpush.bf16.msra.mxu1 %v3670_v14 }
 0x8e3   : > { %v3503_v35 = vpop.f32.mrf.mxu2  ;;  %v3514_v25 = vpop.f32.mrf.mxu3  ;;  %5490 = vmatmul.msk.bf16.vlgmr.msrb.gmra.mxu0 %vm485_vm0, %v5938_v48 }
 0x8e4   : > { %3732 = vmatpush.bf16.msrb.mxu0 %v6757_v46  ;;  %v3515_v12 = vadd.f32 %v6816_v41, %v3514_v25 }
 0x8e6   : > { %v3785_v45 = vpack.c.bf16 %v3515_v12, %v3515_v12 }
 0x8e8   : > { %3733 = vmatpush.bf16.msrb.mxu0 %v3670_v14 }
 0x8eb   : > { %v3516_v33 = vpop.f32.mrf.mxu3  ;;  %v3579_v11 = vpop.f32.mrf.mxu2  ;;  %5491 = vmatmul.msk.bf16.vlgmr.msrb.gmra.mxu1 %vm485_vm0, %v5963_v56 }
 0x8ec   : > { %v3580_v63 = vadd.f32 %v6809_v62, %v3579_v11  ;;  %3745 = vmatpush.bf16.msrb.mxu1 %v6757_v46 }
 0x8ee   : > { %v3788_v3 = vpack.c.bf16 %v3580_v63, %v3580_v63 }
 0x8f0   : > { %v3836_v8 = vsel %vm890_vm1, %v3788_v3, 0  ;;  %3746 = vmatpush.bf16.msrb.mxu1 %v3670_v14 }
 0x8f1   : > { %3845 = vmatpush.bf16.xpose.msra.mxu2 %v3836_v8 }
 0x8f3   : > { %v3581_v59 = vpop.f32.mrf.mxu2  ;;  %v3592_v53 = vpop.f32.mrf.mxu3  ;;  %5499 = vmatmul.msk.bf16.vlgmr.msra.gmra.mxu0 %vm485_vm0, %v5917_v38 }
 0x8f4   : > { %v3593_v17 = vadd.f32 %v6809_v62, %v3592_v53 }
 0x8f6   : > { %v3789_v24 = vpack.c.bf16 %v3593_v17, %v3593_v17 }
 0x8f8   : > { %v3855_v1 = vsel %vm890_vm1, %v3789_v24, 0  ;;  %5509 = vmatmul.msk.bf16.vlgmr.msra.gmra.mxu2 %vm890_vm1, %v3780_v0 }
 0x8f9   : > { %3864 = vmatpush.bf16.xpose.msra.mxu3 %v3855_v1 }
 0x8fb   : > { %v3594_v49 = vpop.f32.mrf.mxu3  ;;  %v3631_v16 = vpop.f32.mrf.mxu2  ;;  %5500 = vmatmul.msk.bf16.vlgmr.msra.gmra.mxu1 %vm485_vm0, %v5919_v39 }
 0x8fc   : > { %v3632_v54 = vadd.f32 %v6809_v62, %v3631_v16 }
 0x8fe   : > { %v3792_v38 = vpack.c.bf16 %v3632_v54, %v3632_v54 }
 0x900   : > { %v3912_v5 = vsel %vm890_vm1, %v3792_v38, 0  ;;  %5510 = vmatmul.msk.bf16.vlgmr.msra.gmra.mxu3 %vm890_vm1, %v3781_v19 }
 0x901   : > { %3921 = vmatpush.bf16.xpose.msrb.mxu2 %v3912_v5 }
 0x903   : > { %v3644_v23 = vpop.f32.mrf.mxu3  ;;  %v3633_v28 = vpop.f32.mrf.mxu2  ;;  %5503 = vmatmul.msk.bf16.vlgmr.msrb.gmra.mxu0 %vm485_vm0, %v5938_v48 }
 0x904   : > { %v3645_v29 = vadd.f32 %v6809_v62, %v3644_v23 }
 0x906   : > { %v3793_v39 = vpack.c.bf16 %v3645_v29, %v3645_v29 }
 0x908   : > { %v3931_v36 = vsel %vm890_vm1, %v3793_v39, 0  ;;  %5513 = vmatmul.msk.bf16.vlgmr.msrb.gmra.mxu2 %vm890_vm1, %v3784_v4 }
 0x909   : > { %3940 = vmatpush.bf16.xpose.msrb.mxu3 %v3931_v36 }
 0x90b   : > { %v3646_v43 = vpop.f32.mrf.mxu3  ;;  %5504 = vmatmul.msk.bf16.vlgmr.msrb.gmra.mxu1 %vm485_vm0, %v5963_v56 }
 0x910   : > { %5514 = vmatmul.msk.bf16.vlgmr.msrb.gmra.mxu3 %vm890_vm1, %v3785_v45  ;;  %v3264_v2 = vpop.f32.mrf.mxu0 }
 0x911   : > { %v6844_v48 = vadd.f32 %v3264_v2, %v6590_v32 }
 0x918   : > { %v3266_v47 = vpop.f32.mrf.mxu0  ;;  %v3280_v46 = vpop.f32.mrf.mxu1 }
 0x919   : > { %v6847_v9 = vadd.f32 %v3280_v46, %v6592_v7  ;;  %v6858_v7 = vld [vmem:[%s7303_s2 + $0xb] ss:$0 sm:$0xff] }
 0x920   : > { %v3282_v51 = vpop.f32.mrf.mxu1  ;;  %v3328_v52 = vpop.f32.mrf.mxu0 }
 0x921   : > { %v6850_v10 = vadd.f32 %v3328_v52, %v6594_v15 }
 0x928   : > { %v3330_v31 = vpop.f32.mrf.mxu0  ;;  %v3344_v50 = vpop.f32.mrf.mxu1 }
 0x929   : > { %v6853_v56 = vadd.f32 %v3344_v50, %v6602_v21 }
 0x930   : > { %v3346_v30 = vpop.f32.mrf.mxu1  ;;  %v3423_v14 = vpop.f32.mrf.mxu0 }
 0x931   : > { %v3424_v16 = vadd.f32 %v6816_v41, %v3423_v14 }
 0x933   : > { %v3778_v5 = vpack.c.bf16 %v3424_v16, %v3424_v16 }
 0x936   : > { %v3709_v42 = vpop.f32.mrf.mxu2 }
 0x937   : > { %v3710_v57 = vadd.f32 %v6858_v7, %v3709_v42 }
 0x938   : > { %v3425_v61 = vpop.f32.mrf.mxu0  ;;  %v3436_v32 = vpop.f32.mrf.mxu1 }
 0x939   : > { %v4052_v27 = vpack.c.bf16 %v3710_v57, %v3710_v57  ;;  %v3722_v21 = vpop.f32.mrf.mxu3  ;;  %v3437_v29 = vadd.f32 %v6816_v41, %v3436_v32 }
 0x93a   : > { %v3723_v22 = vadd.f32 %v6858_v7, %v3722_v21 }
 0x93b   : > { %v4100_v18 = vsel %vm1160_vm2, %v4052_v27, 0  ;;  %v3779_v43 = vpack.c.bf16 %v3437_v29, %v3437_v29 }
 0x93c   : > { %4109 = vmatpush.bf16.msra.mxu2 %v4100_v18  ;;  %v4053_v34 = vpack.c.bf16 %v3723_v22, %v3723_v22 }
 0x93e   : > { %v3711_v58 = vpop.f32.mrf.mxu2  ;;  %v4119_v25 = vsel %vm1160_vm2, %v4053_v34, 0 }
 0x93f   : > { %4128 = vmatpush.bf16.msra.mxu3 %v4119_v25 }
 0x940   : > { %v3438_v60 = vpop.f32.mrf.mxu1  ;;  %v3475_v15 = vpop.f32.mrf.mxu0 }
 0x941   : > { %v3724_v33 = vpop.f32.mrf.mxu3  ;;  %v3476_v47 = vadd.f32 %v6816_v41, %v3475_v15 }
 0x943   : > { %v3782_v31 = vpack.c.bf16 %v3476_v47, %v3476_v47 }
 0x946   : > { %v3761_v11 = vpop.f32.mrf.mxu2 }
 0x947   : > { %v3762_v63 = vadd.f32 %v6858_v7, %v3761_v11 }
 0x948   : > { %v3477_v20 = vpop.f32.mrf.mxu0  ;;  %v3488_v35 = vpop.f32.mrf.mxu1 }
 0x949   : > { %v4056_v3 = vpack.c.bf16 %v3762_v63, %v3762_v63  ;;  %v3774_v24 = vpop.f32.mrf.mxu3  ;;  %v3489_v14 = vadd.f32 %v6816_v41, %v3488_v35 }
 0x94a   : > { %v3775_v13 = vadd.f32 %v6858_v7, %v3774_v24 }
 0x94b   : > { %v4176_v53 = vsel %vm1160_vm2, %v4056_v3, 0  ;;  %v3783_v32 = vpack.c.bf16 %v3489_v14, %v3489_v14 }
 0x94c   : > { %4185 = vmatpush.bf16.msrb.mxu2 %v4176_v53  ;;  %v4057_v49 = vpack.c.bf16 %v3775_v13, %v3775_v13 }
 0x94e   : > { %v3763_v17 = vpop.f32.mrf.mxu2  ;;  %v4195_v38 = vsel %vm1160_vm2, %v4057_v49, 0 }
 0x94f   : > { %4204 = vmatpush.bf16.msrb.mxu3 %v4195_v38 }
 0x950   : > { %v3490_v6 = vpop.f32.mrf.mxu1  ;;  %v3553_v8 = vpop.f32.mrf.mxu0 }
 0x951   : > { %v3554_v59 = vadd.f32 %v6809_v62, %v3553_v8  ;;  %v3776_v28 = vpop.f32.mrf.mxu3 }
 0x953   : > { %v3786_v0 = vpack.c.bf16 %v3554_v59, %v3554_v59 }
 0x955   : > { %v3798_v1 = vsel %vm890_vm1, %v3786_v0, 0 }
 0x956   : > { %3807 = vmatpush.bf16.xpose.msra.mxu0 %v3798_v1 }
 0x958   : > { %v3555_v19 = vpop.f32.mrf.mxu0  ;;  %v3566_v54 = vpop.f32.mrf.mxu1 }
 0x959   : > { %v3567_v40 = vadd.f32 %v6809_v62, %v3566_v54 }
 0x95b   : > { %v3787_v23 = vpack.c.bf16 %v3567_v40, %v3567_v40 }
 0x95d   : > { %v3817_v4 = vsel %vm890_vm1, %v3787_v23, 0  ;;  %5507 = vmatmul.msk.bf16.vlgmr.msra.gmra.mxu0 %vm890_vm1, %v3778_v5 }
 0x95e   : > { %3826 = vmatpush.bf16.xpose.msra.mxu1 %v3817_v4 }
 0x960   : > { %v3568_v39 = vpop.f32.mrf.mxu1  ;;  %v3605_v12 = vpop.f32.mrf.mxu0 }
 0x961   : > { %v3606_v36 = vadd.f32 %v6809_v62, %v3605_v12 }
 0x963   : > { %v3790_v45 = vpack.c.bf16 %v3606_v36, %v3606_v36 }
 0x965   : > { %v3874_v2 = vsel %vm890_vm1, %v3790_v45, 0  ;;  %5508 = vmatmul.msk.bf16.vlgmr.msra.gmra.mxu1 %vm890_vm1, %v3779_v43 }
 0x966   : > { %3883 = vmatpush.bf16.xpose.msrb.mxu0 %v3874_v2 }
 0x968   : > { %v3607_v46 = vpop.f32.mrf.mxu0  ;;  %v3618_v51 = vpop.f32.mrf.mxu1 }
 0x969   : > { %v3619_v52 = vadd.f32 %v6809_v62, %v3618_v51 }
 0x96b   : > { %v3791_v50 = vpack.c.bf16 %v3619_v52, %v3619_v52 }
 0x96d   : > { %v3893_v30 = vsel %vm890_vm1, %v3791_v50, 0  ;;  %5511 = vmatmul.msk.bf16.vlgmr.msrb.gmra.mxu0 %vm890_vm1, %v3782_v31 }
 0x96e   : > { %3902 = vmatpush.bf16.xpose.msrb.mxu1 %v3893_v30 }
 0x970   : > { %v3620_v61 = vpop.f32.mrf.mxu1  ;;  %v3683_v57 = vpop.f32.mrf.mxu0 }
 0x971   : > { %v3684_v15 = vadd.f32 %v6858_v7, %v3683_v57 }
 0x973   : > { %v4050_v58 = vpack.c.bf16 %v3684_v15, %v3684_v15 }
 0x975   : > { %5512 = vmatmul.msk.bf16.vlgmr.msrb.gmra.mxu1 %vm890_vm1, %v3783_v32  ;;  %v4062_v22 = vsel %vm1160_vm2, %v4050_v58, 0 }
 0x976   : > { %4071 = vmatpush.bf16.msra.mxu0 %v4062_v22 }
 0x978   : > { %v3696_v27 = vpop.f32.mrf.mxu1  ;;  %v3685_v25 = vpop.f32.mrf.mxu0 }
 0x979   : > { %v3697_v62 = vadd.f32 %v6858_v7, %v3696_v27 }
 0x97b   : > { %v3847_v42 = vpop.f32.mrf.mxu2  ;;  %v4051_v21 = vpack.c.bf16 %v3697_v62, %v3697_v62 }
 0x97c   : > { %v3948_v60 = vmul.f32 0.35355338, %v3847_v42 }
 0x97d   : > { %v4081_v41 = vsel %vm1160_vm2, %v4051_v21, 0 }
 0x97e   : > { %v3960_v18 = vsel %vm1051_vm3, %v3948_v60, -inf  ;;  %4090 = vmatpush.bf16.msra.mxu1 %v4081_v41 }
 0x97f   : > { %3961 = vmax.xlane.f32.xlu0 %v3960_v18 }
 0x980   : > { %v3698_v33 = vpop.f32.mrf.mxu1  ;;  %v3735_v8 = vpop.f32.mrf.mxu0 }
 0x981   : > { %v3736_v53 = vadd.f32 %v6858_v7, %v3735_v8 }
 0x983   : > { %v3849_v34 = vpop.f32.mrf.mxu2  ;;  %v3866_v20 = vpop.f32.mrf.mxu3  ;;  %v4054_v24 = vpack.c.bf16 %v3736_v53, %v3736_v53 }
 0x984   : > { %v3949_v35 = vmul.f32 0.35355338, %v3866_v20 }
 0x985   : > { %v4138_v1 = vsel %vm1160_vm2, %v4054_v24, 0 }
 0x986   : > { %v3963_v11 = vsel %vm1051_vm3, %v3949_v35, -inf  ;;  %4147 = vmatpush.bf16.msrb.mxu0 %v4138_v1 }
 0x987   : > { %3964 = vmax.xlane.f32.xlu1 %v3963_v11 }
 0x988   : > { %v3748_v59 = vpop.f32.mrf.mxu1  ;;  %v3737_v38 = vpop.f32.mrf.mxu0 }
 0x989   : > { %v3749_v0 = vadd.f32 %v6858_v7, %v3748_v59 }
 0x98b   : > { %v3868_v63 = vpop.f32.mrf.mxu3  ;;  %v3923_v3 = vpop.f32.mrf.mxu2  ;;  %v4055_v13 = vpack.c.bf16 %v3749_v0, %v3749_v0 }
 0x98c   : > { %v3952_v6 = vmul.f32 0.35355338, %v3923_v3 }
 0x98d   : > { %v4157_v49 = vsel %vm1160_vm2, %v4055_v13, 0 }
 0x98e   : > { %v3972_v17 = vsel %vm1051_vm3, %v3952_v6, -inf  ;;  %4166 = vmatpush.bf16.msrb.mxu1 %v4157_v49 }
 0x98f   : > { %3973 = vmax.xlane.f32.xlu2 %v3972_v17 }
 0x990   : > { %v3750_v40 = vpop.f32.mrf.mxu1 }
 0x993   : > { %v3942_v16 = vpop.f32.mrf.mxu3  ;;  %v3925_v19 = vpop.f32.mrf.mxu2 }
 0x994   : > { %v3953_v54 = vmul.f32 0.35355338, %v3942_v16 }
 0x996   : > { %v3975_v5 = vsel %vm1051_vm3, %v3953_v54, -inf }
 0x997   : > { %3976 = vmax.xlane.f32.xlu0 %v3975_v5 }
 0x99b   : > { %v3944_v7 = vpop.f32.mrf.mxu3 }
 0x9da   : > { %v3809_v23 = vpop.f32.mrf.mxu0 }
 0x9db   : > { %v3946_v28 = vmul.f32 0.35355338, %v3809_v23 }
 0x9dd   : > { %v3954_v4 = vsel %vm1051_vm3, %v3946_v28, -inf }
 0x9de   : > { %3955 = vmax.xlane.f32.xlu1 %v3954_v4 }
 0x9e2   : > { %v3811_v29 = vpop.f32.mrf.mxu0  ;;  %v3828_v39 = vpop.f32.mrf.mxu1 }
 0x9e3   : > { %v3947_v12 = vmul.f32 0.35355338, %v3828_v39 }
 0x9e5   : > { %v3957_v36 = vsel %vm1051_vm3, %v3947_v12, -inf }
 0x9e6   : > { %3958 = vmax.xlane.f32.xlu2 %v3957_v36 }
 0x9ea   : > { %v3830_v43 = vpop.f32.mrf.mxu1  ;;  %v3885_v45 = vpop.f32.mrf.mxu0 }
 0x9eb   : > { %v3950_v2 = vmul.f32 0.35355338, %v3885_v45 }
 0x9ed   : > { %v3966_v47 = vsel %vm1051_vm3, %v3950_v2, -inf }
 0x9ee   : > { %3967 = vmax.xlane.f32.xlu0 %v3966_v47 }
 0x9f2   : > { %v3962_v46 = vpop.xlane.xlu0 %3961  ;;  %v3887_v51 = vpop.f32.mrf.mxu0 }
 0x9f3   : > { %v3980_v52 = vsub.f32 %v3948_v60, %v3962_v46  ;;  %v3904_v31 = vpop.f32.mrf.mxu1 }
 0x9f4   : > { %v3951_v50 = vmul.f32 0.35355338, %v3904_v31 }
 0x9f5   : > { %v3990_v30 = vmul.f32 1.442695, %v3980_v52 }
 0x9f6   : > { %v3969_v14 = vsel %vm1051_vm3, %v3951_v50, -inf }
 0x9f7   : > { %5674 = vpow2.f32 %v3990_v30  ;;  %3970 = vmax.xlane.f32.xlu1 %v3969_v14 }
 0x9fa   : > { %v3965_v61 = vpop.xlane.xlu1 %3964 }
 0x9fb   : > { %v3981_v32 = vsub.f32 %v3949_v35, %v3965_v61  ;;  %v3906_v42 = vpop.f32.mrf.mxu1 }
 0x9fd   : > { %v5675_v57 = vpop.eup %5674  ;;  %v3992_v15 = vmul.f32 1.442695, %v3981_v32 }
 0x9fe   : > { %v4008_v27 = vsel %vm1051_vm3, %v5675_v57, 0.0 }
 0x9ff   : > { %5676 = vpow2.f32 %v3992_v15  ;;  %4009 = vadd.xlane.f32.xlu2 %v4008_v27 }
 0xa02   : > { %v3974_v62 = vpop.xlane.xlu2 %3973 }
 0xa03   : > { %v3984_v18 = vsub.f32 %v3952_v6, %v3974_v62 }
 0xa05   : > { %v5677_v58 = vpop.eup %5676  ;;  %v3998_v60 = vmul.f32 1.442695, %v3984_v18 }
 0xa06   : > { %v4011_v21 = vsel %vm1051_vm3, %v5677_v58, 0.0 }
 0xa07   : > { %5678 = vpow2.f32 %v3998_v60  ;;  %4012 = vadd.xlane.f32.xlu0 %v4011_v21 }
 0xa0a   : > { %v3977_v22 = vpop.xlane.xlu0 %3976 }
 0xa0b   : > { %v3985_v41 = vsub.f32 %v3953_v54, %v3977_v22 }
 0xa0d   : > { %v5679_v34 = vpop.eup %5678  ;;  %v4000_v20 = vmul.f32 1.442695, %v3985_v41 }
 0xa0e   : > { %v4020_v35 = vsel %vm1051_vm3, %v5679_v34, 0.0 }
 0xa0f   : > { %5680 = vpow2.f32 %v4000_v20  ;;  %4021 = vadd.xlane.f32.xlu1 %v4020_v35 }
 0xa15   : > { %v5681_v25 = vpop.eup %5680 }
 0xa16   : > { %v4023_v33 = vsel %vm1051_vm3, %v5681_v25, 0.0 }
 0xa17   : > { %4024 = vadd.xlane.f32.xlu2 %v4023_v33 }
 0xa51   : > { %v3956_v11 = vpop.xlane.xlu1 %3955 }
 0xa52   : > { %v3978_v63 = vsub.f32 %v3946_v28, %v3956_v11 }
 0xa54   : > { %v3986_v3 = vmul.f32 1.442695, %v3978_v63 }
 0xa56   : > { %5682 = vpow2.f32 %v3986_v3 }
 0xa59   : > { %v3959_v6 = vpop.xlane.xlu2 %3958 }
 0xa5a   : > { %v3979_v8 = vsub.f32 %v3947_v12, %v3959_v6 }
 0xa5c   : > { %v5683_v59 = vpop.eup %5682  ;;  %v3988_v53 = vmul.f32 1.442695, %v3979_v8 }
 0xa5d   : > { %v4002_v0 = vsel %vm1051_vm3, %v5683_v59, 0.0 }
 0xa5e   : > { %5684 = vpow2.f32 %v3988_v53  ;;  %4003 = vadd.xlane.f32.xlu0 %v4002_v0 }
 0xa61   : > { %v3968_v17 = vpop.xlane.xlu0 %3967 }
 0xa62   : > { %v3982_v24 = vsub.f32 %v3950_v2, %v3968_v17 }
 0xa64   : > { %v5685_v13 = vpop.eup %5684  ;;  %v3994_v1 = vmul.f32 1.442695, %v3982_v24 }
 0xa65   : > { %v4005_v49 = vsel %vm1051_vm3, %v5685_v13, 0.0 }
 0xa66   : > { %5686 = vpow2.f32 %v3994_v1  ;;  %4006 = vadd.xlane.f32.xlu1 %v4005_v49 }
 0xa6a   : > { %v3971_v16 = vpop.xlane.xlu1 %3970 }
 0xa6b   : > { %v3983_v19 = vsub.f32 %v3951_v50, %v3971_v16 }
 0xa6c   : > { %v5687_v54 = vpop.eup %5686 }
 0xa6d   : > { %v3996_v38 = vmul.f32 1.442695, %v3983_v19  ;;  %v4014_v40 = vsel %vm1051_vm3, %v5687_v54, 0.0 }
 0xa6e   : > { %4015 = vadd.xlane.f32.xlu2 %v4014_v40 }
 0xa6f   : > { %5688 = vpow2.f32 %v3996_v38 }
 0xa72   : > { %v4010_v5 = vpop.xlane.xlu2 %4009 }
 0xa73   : > { %5690 = vrcp.f32 %v4010_v5 }
 0xa75   : > { %v5689_v7 = vpop.eup %5688 }
 0xa76   : > { %v4017_v23 = vsel %vm1051_vm3, %v5689_v7, 0.0 }
 0xa77   : > { %4018 = vadd.xlane.f32.xlu0 %v4017_v23 }
 0xa79   : > { %v5691_v28 = vpop.eup %5690 }
 0xa7a   : > { %v4036_v4 = vmul.f32 %v5691_v28, %v5675_v57  ;;  %v4013_v29 = vpop.xlane.xlu0 %4012  ;;  %v5523_v57 = vld [vmem:[%s7304_s3 + $0x18] sm:$0xff] }
 0xa7b   : > { %5692 = vrcp.f32 %v4013_v29  ;;  %v4212_v15 = vpack.c.bf16 %v5523_v57, %v5523_v57  ;;  %v6931_v29 = vld [vmem:[%s7305_s4] ss:$0 sm:$0xff] }
 0xa7c   : > { %v4044_v39 = vpack.c.bf16 %v4036_v4, %v4036_v4 }
 0xa7d   : > { %v4225_v62 = vsel %vm2156_vm5, %v4212_v15, 0 }
 0xa7e   : > { %5517 = vmatmul.msk.bf16.vlgmr.msra.gmra.mxu2 %vm1156_vm4, %v4044_v39 }
 0xa7f   : > { %4266 = vmatpush.bf16.msra.mxu2 %v4225_v62 }
 0xa81   : > { %v5693_v12 = vpop.eup %5692 }
 0xa82   : > { %v4037_v36 = vmul.f32 %v5693_v12, %v5677_v58  ;;  %v4022_v43 = vpop.xlane.xlu1 %4021 }
 0xa83   : > { %5694 = vrcp.f32 %v4022_v43  ;;  %v5756_v43 = vld [vmem:[%s5883_s14 + $0x8] sm:$0xf] }
 0xa84   : > { %v4045_v45 = vpack.c.bf16 %v4037_v36, %v4037_v36 }
 0xa86   : > { %5518 = vmatmul.msk.bf16.vlgmr.msra.gmra.mxu3 %vm1156_vm4, %v4045_v45 }
 0xa87   : > { %4282 = vmatpush.bf16.msra.mxu3 %v4225_v62 }
 0xa89   : > { %v5695_v2 = vpop.eup %5694 }
 0xa8a   : > { %v4040_v47 = vmul.f32 %v5695_v2, %v5679_v34  ;;  %v4025_v46 = vpop.xlane.xlu2 %4024 }
 0xa8b   : > { %5696 = vrcp.f32 %v4025_v46 }
 0xa8c   : > { %v4048_v51 = vpack.c.bf16 %v4040_v47, %v4040_v47 }
 0xa8e   : > { %5521 = vmatmul.msk.bf16.vlgmr.msrb.gmra.mxu2 %vm1156_vm4, %v4048_v51 }
 0xa8f   : > { %4330 = vmatpush.bf16.msrb.mxu2 %v4225_v62 }
 0xa91   : > { %v5697_v52 = vpop.eup %5696 }
 0xa92   : > { %v4041_v31 = vmul.f32 %v5697_v52, %v5681_v25 }
 0xa94   : > { %v4049_v50 = vpack.c.bf16 %v4041_v31, %v4041_v31  ;;  %v5757_v31 = vld [vmem:[%s5883_s14 + $0xc] sm:$0xf] }
 0xa96   : > { %5522 = vmatmul.msk.bf16.vlgmr.msrb.gmra.mxu3 %vm1156_vm4, %v4049_v50 }
 0xa97   : > { %4346 = vmatpush.bf16.msrb.mxu3 %v4225_v62 }
 0xad1   : > { %v4004_v30 = vpop.xlane.xlu0 %4003 }
 0xad2   : > { %5698 = vrcp.f32 %v4004_v30 }
 0xad8   : > { %v5699_v14 = vpop.eup %5698 }
 0xad9   : > { %v4034_v61 = vmul.f32 %v5699_v14, %v5683_v59  ;;  %v4007_v32 = vpop.xlane.xlu1 %4006 }
 0xada   : > { %5700 = vrcp.f32 %v4007_v32 }
 0xadb   : > { %v4042_v42 = vpack.c.bf16 %v4034_v61, %v4034_v61 }
 0xadd   : > { %5515 = vmatmul.msk.bf16.vlgmr.msra.gmra.mxu0 %vm1156_vm4, %v4042_v42  ;;  %v5758_v42 = vld [vmem:[%s5883_s14 + $0x18] sm:$0xf] }
 0xade   : > { %4234 = vmatpush.bf16.msra.mxu0 %v4225_v62 }
 0xae0   : > { %v5701_v27 = vpop.eup %5700 }
 0xae1   : > { %v4035_v18 = vmul.f32 %v5701_v27, %v5685_v13  ;;  %v4016_v58 = vpop.xlane.xlu2 %4015 }
 0xae2   : > { %5702 = vrcp.f32 %v4016_v58 }
 0xae3   : > { %v4043_v60 = vpack.c.bf16 %v4035_v18, %v4035_v18 }
 0xae5   : > { %5516 = vmatmul.msk.bf16.vlgmr.msra.gmra.mxu1 %vm1156_vm4, %v4043_v60 }
 0xae6   : > { %4250 = vmatpush.bf16.msra.mxu1 %v4225_v62 }
 0xae8   : > { %v5703_v21 = vpop.eup %5702 }
 0xae9   : > { %v4038_v22 = vmul.f32 %v5703_v21, %v5687_v54  ;;  %v5759_v21 = vld [vmem:[%s5883_s14] sm:$0xf] }
 0xaea   : > { %v4019_v41 = vpop.xlane.xlu0 %4018 }
 0xaeb   : > { %v4046_v34 = vpack.c.bf16 %v4038_v22, %v4038_v22  ;;  %5704 = vrcp.f32 %v4019_v41 }
 0xaed   : > { %5519 = vmatmul.msk.bf16.vlgmr.msrb.gmra.mxu0 %vm1156_vm4, %v4046_v34 }
 0xaee   : > { %4298 = vmatpush.bf16.msrb.mxu0 %v4225_v62 }
 0xaf1   : > { %v5705_v20 = vpop.eup %5704 }
 0xaf2   : > { %v4039_v35 = vmul.f32 %v5705_v20, %v5689_v7 }
 0xaf4   : > { %v4047_v25 = vpack.c.bf16 %v4039_v35, %v4039_v35 }
 0xaf6   : > { %5520 = vmatmul.msk.bf16.vlgmr.msrb.gmra.mxu1 %vm1156_vm4, %v4047_v25 }
 0xaf7   : > { %4314 = vmatpush.bf16.msrb.mxu1 %v4225_v62 }
 0xb01   : > { %v4111_v33 = vpop.f32.mrf.mxu2 }
 0xb02   : > { %v4215_v11 = vpack.c.bf16 %v4111_v33, %v4111_v33  ;;  %v5760_v33 = vld [vmem:[%s5883_s14 + $0x1c] sm:$0xf] }
 0xb04   : > { %5526 = vmatmul.msk.bf16.vlgmr.msra.gmra.mxu2 %vm890_vm1, %v4215_v11 }
 0xb09   : > { %v4113_v63 = vpop.f32.mrf.mxu2  ;;  %v4130_v3 = vpop.f32.mrf.mxu3 }
 0xb0a   : > { %v4216_v6 = vpack.c.bf16 %v4130_v3, %v4130_v3  ;;  %v5761_v63 = vld [vmem:[%s5883_s14 + $0x4] sm:$0xf]  ;;  %v5772_v3 = vmov 32.0  }
 0xb0b   : > { %5706 = vrcp.f32 %v5772_v3 }
 0xb0c   : > { %5527 = vmatmul.msk.bf16.vlgmr.msra.gmra.mxu3 %vm890_vm1, %v4216_v6 }
 0xb11   : > { %v4132_v8 = vpop.f32.mrf.mxu3  ;;  %v4187_v59 = vpop.f32.mrf.mxu2 }
 0xb12   : > { %v4219_v53 = vpack.c.bf16 %v4187_v59, %v4187_v59 }
 0xb14   : > { %5530 = vmatmul.msk.bf16.vlgmr.msrb.gmra.mxu2 %vm890_vm1, %v4219_v53 }
 0xb19   : > { %v4189_v0 = vpop.f32.mrf.mxu2  ;;  %v4206_v17 = vpop.f32.mrf.mxu3 }
 0xb1a   : > { %v4220_v24 = vpack.c.bf16 %v4206_v17, %v4206_v17  ;;  %v5707_v0 = vpop.eup %5706 }
 0xb1b   : > { %vm4412_vm7 = vweird.f32 %v5707_v0 }
 0xb1c   : > { %5531 = vmatmul.msk.bf16.vlgmr.msrb.gmra.mxu3 %vm890_vm1, %v4220_v24  ;;  %v5762_v24 = vld [vmem:[%s5883_s14 + $0x10] sm:$0xf] }
 0xb21   : > { %v4208_v13 = vpop.f32.mrf.mxu3 }
 0xb5a   : > { %v4073_v1 = vpop.f32.mrf.mxu0 }
 0xb5b   : > { %v4213_v49 = vpack.c.bf16 %v4073_v1, %v4073_v1  ;;  %v4408_v1 = vmul.f32 32.0, %v5707_v0 }
 0xb5d   : > { %5524 = vmatmul.msk.bf16.vlgmr.msra.gmra.mxu0 %vm890_vm1, %v4213_v49 }
 0xb62   : > { %v4075_v16 = vpop.f32.mrf.mxu0  ;;  %v4092_v19 = vpop.f32.mrf.mxu1 }
 0xb63   : > { %v4214_v54 = vpack.c.bf16 %v4092_v19, %v4092_v19 }
 0xb65   : > { %5525 = vmatmul.msk.bf16.vlgmr.msra.gmra.mxu1 %vm890_vm1, %v4214_v54 }
 0xb6a   : > { %v4094_v38 = vpop.f32.mrf.mxu1  ;;  %v4149_v40 = vpop.f32.mrf.mxu0 }
 0xb6b   : > { %v4217_v5 = vpack.c.bf16 %v4149_v40, %v4149_v40  ;;  %v4409_v38 = vsub.f32 1.0, %v4408_v1 }
 0xb6d   : > { %5528 = vmatmul.msk.bf16.vlgmr.msrb.gmra.mxu0 %vm890_vm1, %v4217_v5  ;;  %v5763_v5 = vld [vmem:[%s5883_s14 + $0x14] sm:$0xf] }
 0xb72   : > { %v4151_v7 = vpop.f32.mrf.mxu0 }
 0xb73   : > { %v4168_v23 = vpop.f32.mrf.mxu1 }
 0xb74   : > { %v4218_v28 = vpack.c.bf16 %v4168_v23, %v4168_v23  ;;  %v4410_v23 = vmul.f32 %v5707_v0, %v4409_v38 }
 0xb76   : > { %5529 = vmatmul.msk.bf16.vlgmr.msrb.gmra.mxu1 %vm890_vm1, %v4218_v28 }
 0xb7b   : > { %v4170_v4 = vpop.f32.mrf.mxu1 }
 0xb7c   : > { %v4411_v4 = vadd.f32 %v5707_v0, %v4410_v23 }
 0xb87   : > { %v4268_v39 = vpop.f32.mrf.mxu2 }
 0xb88   : > { %v4354_v12 = vadd.f32 %v4268_v39, %v6748_v37  ;;  %v6974_v39 = vsel %vm4412_vm7, %v5707_v0, %v4411_v4 }
 0xb8a   : > { %v4366_v36 = vadd.f32 %v6931_v29, %v4354_v12 }
 0xb8c   : > { %v6936_v45 = vadd.f32 %v5756_v43, %v4366_v36 }
 0xb8e   : > { %v4389_v2 = vsel %vm4382_vm6, %v6936_v45, 0.0 }
 0xb8f   : > { %4390 = vadd.xlane.f32.xlu1 %v4389_v2  ;;  %v4270_v47 = vpop.f32.mrf.mxu2  ;;  %v4284_v46 = vpop.f32.mrf.mxu3 }
 0xb90   : > { %v4355_v51 = vadd.f32 %v4284_v46, %v6765_v55 }
 0xb92   : > { %v4367_v52 = vadd.f32 %v6931_v29, %v4355_v51 }
 0xb94   : > { %v6943_v50 = vadd.f32 %v5757_v31, %v4367_v52 }
 0xb96   : > { %v4392_v37 = vsel %vm4382_vm6, %v6943_v50, 0.0 }
 0xb97   : > { %v4332_v30 = vpop.f32.mrf.mxu2  ;;  %4393 = vadd.xlane.f32.xlu2 %v4392_v37  ;;  %v4286_v14 = vpop.f32.mrf.mxu3 }
 0xb98   : > { %v4358_v61 = vadd.f32 %v4332_v30, %v6778_v44 }
 0xb9a   : > { %v4370_v32 = vadd.f32 %v6931_v29, %v4358_v61 }
 0xb9c   : > { %v6950_v57 = vadd.f32 %v5758_v42, %v4370_v32 }
 0xb9e   : > { %v4401_v55 = vsel %vm4382_vm6, %v6950_v57, 0.0 }
 0xb9f   : > { %v4334_v15 = vpop.f32.mrf.mxu2  ;;  %4402 = vadd.xlane.f32.xlu2 %v4401_v55  ;;  %v4348_v27 = vpop.f32.mrf.mxu3 }
 0xba0   : > { %v4359_v62 = vadd.f32 %v4348_v27, %v6785_v26 }
 0xba2   : > { %v4371_v41 = vadd.f32 %v6931_v29, %v4359_v62 }
 0xba4   : > { %v4379_v11 = vadd.f32 %v5760_v33, %v4371_v41  ;;  %v4590_v33 = vld [vmem:[%s7308_s7 + $0x10] sm:$0xff] }
 0xba6   : > { %v4404_v8 = vsel %vm4382_vm6, %v4379_v11, 0.0 }
 0xba7   : > { %v4350_v18 = vpop.f32.mrf.mxu3 }
 0xbda   : > { %v4236_v58 = vpop.f32.mrf.mxu0 }
 0xbdb   : > { %v4352_v60 = vadd.f32 %v4236_v58, %v6844_v48 }
 0xbdd   : > { %v4364_v44 = vadd.f32 %v6931_v29, %v4352_v60 }
 0xbdf   : > { %v4372_v22 = vadd.f32 %v5759_v21, %v4364_v44 }
 0xbe1   : > { %v4383_v34 = vsel %vm4382_vm6, %v4372_v22, 0.0 }
 0xbe2   : > { %v4238_v20 = vpop.f32.mrf.mxu0  ;;  %v4252_v35 = vpop.f32.mrf.mxu1  ;;  %4384 = vadd.xlane.f32.xlu0 %v4383_v34 }
 0xbe3   : > { %v4353_v25 = vadd.f32 %v4252_v35, %v6847_v9 }
 0xbe5   : > { %v4365_v26 = vadd.f32 %v6931_v29, %v4353_v25 }
 0xbe7   : > { %v4373_v48 = vadd.f32 %v5761_v63, %v4365_v26 }
 0xbe9   : > { %v4386_v6 = vsel %vm4382_vm6, %v4373_v48, 0.0 }
 0xbea   : > { %4387 = vadd.xlane.f32.xlu1 %v4386_v6  ;;  %v4254_v59 = vpop.f32.mrf.mxu1  ;;  %v4300_v53 = vpop.f32.mrf.mxu0  ;;  %4405 = vadd.xlane.f32.xlu0 %v4404_v8 }
 0xbeb   : > { %v4356_v9 = vadd.f32 %v4300_v53, %v6850_v10  ;;  %v4588_v53 = vld [vmem:[%s7308_s7] sm:$0xff] }
 0xbed   : > { %v4368_v17 = vadd.f32 %v6931_v29, %v4356_v9  ;;  %v4589_v9 = vld [vmem:[%s7308_s7 + $0x8] sm:$0xff] }
 0xbef   : > { %v4376_v13 = vadd.f32 %v5762_v24, %v4368_v17  ;;  %v4592_v24 = vpack.c.bf16 %v4588_v53, %v4588_v53 }
 0xbf1   : > { %v4395_v49 = vsel %vm4382_vm6, %v4376_v13, 0.0 }
 0xbf2   : > { %v4302_v16 = vpop.f32.mrf.mxu0  ;;  %4396 = vadd.xlane.f32.xlu1 %v4395_v49  ;;  %v4612_v49 = vunpack.c.l.b16 %v4592_v24 }
 0xbf3   : > { %v4316_v19 = vpop.f32.mrf.mxu1 }
 0xbf4   : > { %v4357_v54 = vadd.f32 %v4316_v19, %v6853_v56 }
 0xbf6   : > { %v4369_v40 = vadd.f32 %v6931_v29, %v4357_v54 }
 0xbf8   : > { %v4377_v7 = vadd.f32 %v5763_v5, %v4369_v40 }
 0xbfa   : > { %v4398_v10 = vsel %vm4382_vm6, %v4377_v7, 0.0 }
 0xbfb   : > { %4399 = vadd.xlane.f32.xlu2 %v4398_v10  ;;  %v4318_v28 = vpop.f32.mrf.mxu1 }
 0xc02   : > { %v4391_v12 = vpop.xlane.xlu1 %4390 }
 0xc03   : > { %v4416_v36 = vmul.f32 %v6974_v39, %v4391_v12 }
 0xc05   : > { %v6978_v43 = vsub.f32 %v6936_v45, %v4416_v36 }
 0xc07   : > { %v4432_v56 = vmul.f32 %v6978_v43, %v6978_v43 }
 0xc09   : > { %v4444_v29 = vsel %vm4382_vm6, %v4432_v56, 0.0 }
 0xc0a   : > { %v4394_v2 = vpop.xlane.xlu2 %4393  ;;  %4445 = vadd.xlane.f32.xlu0 %v4444_v29 }
 0xc0b   : > { %v4417_v47 = vmul.f32 %v6974_v39, %v4394_v2 }
 0xc0d   : > { %v6985_v46 = vsub.f32 %v6943_v50, %v4417_v47 }
 0xc0f   : > { %v4433_v51 = vmul.f32 %v6985_v46, %v6985_v46 }
 0xc11   : > { %v4447_v52 = vsel %vm4382_vm6, %v4433_v51, 0.0 }
 0xc12   : > { %v4403_v31 = vpop.xlane.xlu2 %4402  ;;  %4448 = vadd.xlane.f32.xlu1 %v4447_v52 }
 0xc13   : > { %v4420_v45 = vmul.f32 %v6974_v39, %v4403_v31  ;;  %v7045_v31 = vld [vmem:[%s7306_s5] ss:$0 sm:$0xff] }
 0xc15   : > { %v6992_v37 = vsub.f32 %v6950_v57, %v4420_v45 }
 0xc17   : > { %v4436_v30 = vmul.f32 %v6992_v37, %v6992_v37 }
 0xc19   : > { %v4456_v14 = vsel %vm4382_vm6, %v4436_v30, 0.0 }
 0xc1a   : > { %4457 = vadd.xlane.f32.xlu1 %v4456_v14  ;;  %v7050_v14 = vld [vmem:[%s7307_s6] ss:$0 sm:$0xff] }
 0xc55   : > { %v4385_v50 = vpop.xlane.xlu0 %4384 }
 0xc56   : > { %v4414_v61 = vmul.f32 %v6974_v39, %v4385_v50 }
 0xc58   : > { %v6998_v32 = vsub.f32 %v4372_v22, %v4414_v61 }
 0xc5a   : > { %v4430_v42 = vmul.f32 %v6998_v32, %v6998_v32 }
 0xc5c   : > { %v4438_v55 = vsel %vm4382_vm6, %v4430_v42, 0.0 }
 0xc5d   : > { %v4388_v15 = vpop.xlane.xlu1 %4387  ;;  %4439 = vadd.xlane.f32.xlu2 %v4438_v55  ;;  %v4406_v57 = vpop.xlane.xlu0 %4405 }
 0xc5e   : > { %v4415_v27 = vmul.f32 %v6974_v39, %v4388_v15  ;;  %v4421_v62 = vmul.f32 %v6974_v39, %v4406_v57 }
 0xc60   : > { %v7005_v18 = vsub.f32 %v4373_v48, %v4415_v27  ;;  %v7007_v58 = vsub.f32 %v4379_v11, %v4421_v62  ;;  %v4591_v11 = vld [vmem:[%s7308_s7 + $0x18] sm:$0xff]  ;;  %v4594_v48 = vpack.c.bf16 %v4590_v33, %v4590_v33 }
 0xc61   : > { %v4595_v3 = vpack.c.bf16 %v4591_v11, %v4591_v11 }
 0xc62   : > { %v4431_v60 = vmul.f32 %v7005_v18, %v7005_v18  ;;  %v4437_v44 = vmul.f32 %v7007_v58, %v7007_v58  ;;  %v4614_v8 = vunpack.c.l.b16 %v4594_v48 }
 0xc63   : > { %v4615_v59 = vunpack.c.l.b16 %v4595_v3 }
 0xc64   : > { %v4441_v21 = vsel %vm4382_vm6, %v4431_v60, 0.0  ;;  %v4459_v22 = vsel %vm4382_vm6, %v4437_v44, 0.0 }
 0xc65   : > { %v4397_v41 = vpop.xlane.xlu1 %4396  ;;  %4442 = vadd.xlane.f32.xlu0 %v4441_v21  ;;  %4460 = vadd.xlane.f32.xlu2 %v4459_v22  ;;  %v4617_v17 = vpack.c.b16 %v4615_v59, %v4614_v8 }
 0xc66   : > { %v4418_v34 = vmul.f32 %v6974_v39, %v4397_v41 }
 0xc67   : > { %4661 = vmatpush.bf16.msra.mxu2 %v4617_v17  ;;  %4677 = vmatpush.bf16.msra.mxu3 %v4617_v17 }
 0xc68   : > { %v7016_v20 = vsub.f32 %v4376_v13, %v4418_v34  ;;  %v4593_v13 = vpack.c.bf16 %v4589_v9, %v4589_v9  ;;  %4629 = vmatpush.bf16.msra.mxu0 %v4617_v17  ;;  %4645 = vmatpush.bf16.msra.mxu1 %v4617_v17 }
 0xc6a   : > { %v4434_v35 = vmul.f32 %v7016_v20, %v7016_v20  ;;  %v4613_v16 = vunpack.c.l.b16 %v4593_v13 }
 0xc6c   : > { %v4450_v25 = vsel %vm4382_vm6, %v4434_v35, 0.0  ;;  %v4616_v19 = vpack.c.b16 %v4613_v16, %v4612_v49 }
 0xc6d   : > { %4451 = vadd.xlane.f32.xlu0 %v4450_v25 }
 0xc6e   : > { %v4400_v26 = vpop.xlane.xlu2 %4399  ;;  %4662 = vmatpush.bf16.msra.mxu2 %v4616_v19  ;;  %4678 = vmatpush.bf16.msra.mxu3 %v4616_v19 }
 0xc6f   : > { %v4419_v63 = vmul.f32 %v6974_v39, %v4400_v26  ;;  %4630 = vmatpush.bf16.msra.mxu0 %v4616_v19  ;;  %4646 = vmatpush.bf16.msra.mxu1 %v4616_v19 }
 0xc71   : > { %v7028_v6 = vsub.f32 %v4377_v7, %v4419_v63 }
 0xc72   : > { %4725 = vmatpush.bf16.msrb.mxu2 %v4617_v17  ;;  %4741 = vmatpush.bf16.msrb.mxu3 %v4617_v17 }
 0xc73   : > { %v4435_v0 = vmul.f32 %v7028_v6, %v7028_v6  ;;  %4693 = vmatpush.bf16.msrb.mxu0 %v4617_v17  ;;  %4709 = vmatpush.bf16.msrb.mxu1 %v4617_v17 }
 0xc75   : > { %v4453_v1 = vsel %vm4382_vm6, %v4435_v0, 0.0 }
 0xc76   : > { %4454 = vadd.xlane.f32.xlu1 %v4453_v1  ;;  %4726 = vmatpush.bf16.msrb.mxu2 %v4616_v19 }
 0xc77   : > { %4742 = vmatpush.bf16.msrb.mxu3 %v4616_v19  ;;  %4694 = vmatpush.bf16.msrb.mxu0 %v4616_v19 }
 0xc78   : > { %4710 = vmatpush.bf16.msrb.mxu1 %v4616_v19 }
 0xc7d   : > { %v4446_v54 = vpop.xlane.xlu0 %4445 }
 0xc7e   : > { %v4464_v38 = vmul.f32 %v4446_v54, %v6974_v39 }
 0xc80   : > { %v4472_v40 = vadd.f32 1e-05, %v4464_v38 }
 0xc82   : > { %5708 = vrsqrt.f32 %v4472_v40  ;;  %vm4504_vm9 = vweird.f32 %v4472_v40 }
 0xc85   : > { %v4449_v5 = vpop.xlane.xlu1 %4448 }
 0xc86   : > { %v4465_v7 = vmul.f32 %v4449_v5, %v6974_v39 }
 0xc88   : > { %v5709_v23 = vpop.eup %5708  ;;  %v4473_v10 = vadd.f32 1e-05, %v4465_v7 }
 0xc89   : > { %v4499_v28 = vmul.f32 %v5709_v23, %v4472_v40  ;;  %vm4505_vm8 = vweird.f32 %v5709_v23 }
 0xc8a   : > { %5710 = vrsqrt.f32 %v4473_v10  ;;  %vm4506_vm10 = vmor %vm4504_vm9, %vm4505_vm8  ;;  %vm4514_vm12 = vweird.f32 %v4473_v10 }
 0xc8b   : > { %v4500_v4 = vmul.f32 %v5709_v23, %v4499_v28 }
 0xc8d   : > { %v4501_v12 = vmul.f32 0.5, %v4500_v4  ;;  %v4458_v36 = vpop.xlane.xlu1 %4457 }
 0xc8e   : > { %v4468_v56 = vmul.f32 %v4458_v36, %v6974_v39 }
 0xc8f   : > { %v4502_v29 = vsub.f32 1.5, %v4501_v12 }
 0xc90   : > { %v5711_v2 = vpop.eup %5710  ;;  %v4476_v47 = vadd.f32 1e-05, %v4468_v56 }
 0xc91   : > { %v4503_v51 = vmul.f32 %v5709_v23, %v4502_v29  ;;  %v4509_v52 = vmul.f32 %v5711_v2, %v4473_v10  ;;  %vm4515_vm11 = vweird.f32 %v5711_v2 }
 0xc92   : > { %5712 = vrsqrt.f32 %v4476_v47  ;;  %vm4516_vm13 = vmor %vm4514_vm12, %vm4515_vm11  ;;  %vm4544_vm15 = vweird.f32 %v4476_v47 }
 0xc93   : > { %v4507_v45 = vsel %vm4506_vm10, %v5709_v23, %v4503_v51  ;;  %v4510_v30 = vmul.f32 %v5711_v2, %v4509_v52 }
 0xc94   : > { %v4560_v50 = vmul.f32 %v4507_v45, %v6978_v43 }
 0xc95   : > { %v4511_v61 = vmul.f32 0.5, %v4510_v30 }
 0xc96   : > { %v4571_v42 = vmul.f32 %v7045_v31, %v4560_v50 }
 0xc97   : > { %v4512_v55 = vsub.f32 1.5, %v4511_v61 }
 0xc98   : > { %v5713_v15 = vpop.eup %5712  ;;  %v7055_v57 = vadd.f32 %v7050_v14, %v4571_v42 }
 0xc99   : > { %v4513_v27 = vmul.f32 %v5711_v2, %v4512_v55  ;;  %v4539_v62 = vmul.f32 %v5713_v15, %v4476_v47  ;;  %vm4545_vm14 = vweird.f32 %v5713_v15 }
 0xc9a   : > { %v4598_v60 = vpack.c.bf16 %v7055_v57, %v7055_v57  ;;  %vm4546_vm1 = vmor %vm4544_vm15, %vm4545_vm14 }
 0xc9b   : > { %v4517_v44 = vsel %vm4516_vm13, %v5711_v2, %v4513_v27  ;;  %v4540_v21 = vmul.f32 %v5713_v15, %v4539_v62 }
 0xc9c   : > { %v4561_v43 = vmul.f32 %v4517_v44, %v6985_v46  ;;  %5534 = vmatmul.msk.bf16.vlgmr.msra.gmra.mxu2 %vm485_vm0, %v4598_v60 }
 0xc9d   : > { %v4541_v22 = vmul.f32 0.5, %v4540_v21 }
 0xc9e   : > { %v4572_v41 = vmul.f32 %v7045_v31, %v4561_v43 }
 0xc9f   : > { %v4542_v34 = vsub.f32 1.5, %v4541_v22 }
 0xca0   : > { %v7063_v35 = vadd.f32 %v7050_v14, %v4572_v41 }
 0xca1   : > { %v4543_v25 = vmul.f32 %v5713_v15, %v4542_v34 }
 0xca2   : > { %v4599_v26 = vpack.c.bf16 %v7063_v35, %v7063_v35 }
 0xca3   : > { %v4547_v33 = vsel %vm4546_vm1, %v5713_v15, %v4543_v25 }
 0xca4   : > { %v4564_v11 = vmul.f32 %v4547_v33, %v6992_v37  ;;  %5535 = vmatmul.msk.bf16.vlgmr.msra.gmra.mxu3 %vm485_vm0, %v4599_v26 }
 0xca6   : > { %v4575_v46 = vmul.f32 %v7045_v31, %v4564_v11 }
 0xca8   : > { %v7071_v63 = vadd.f32 %v7050_v14, %v4575_v46 }
 0xcaa   : > { %v4602_v48 = vpack.c.bf16 %v7071_v63, %v7071_v63 }
 0xcac   : > { %5538 = vmatmul.msk.bf16.vlgmr.msrb.gmra.mxu2 %vm485_vm0, %v4602_v48 }
 0xcd0   : > { %v4440_v3 = vpop.xlane.xlu2 %4439 }
 0xcd1   : > { %v4462_v8 = vmul.f32 %v4440_v3, %v6974_v39 }
 0xcd3   : > { %v4470_v59 = vadd.f32 1e-05, %v4462_v8 }
 0xcd5   : > { %5714 = vrsqrt.f32 %v4470_v59  ;;  %vm4484_vm3 = vweird.f32 %v4470_v59 }
 0xcd8   : > { %v4461_v53 = vpop.xlane.xlu2 %4460  ;;  %v4443_v9 = vpop.xlane.xlu0 %4442 }
 0xcd9   : > { %v4469_v37 = vmul.f32 %v4461_v53, %v6974_v39  ;;  %v4463_v0 = vmul.f32 %v4443_v9, %v6974_v39 }
 0xcdb   : > { %v5715_v17 = vpop.eup %5714  ;;  %v4477_v24 = vadd.f32 1e-05, %v4469_v37  ;;  %v4471_v13 = vadd.f32 1e-05, %v4463_v0 }
 0xcdc   : > { %v4479_v1 = vmul.f32 %v5715_v17, %v4470_v59  ;;  %vm4485_vm2 = vweird.f32 %v5715_v17 }
 0xcdd   : > { %5716 = vrsqrt.f32 %v4477_v24  ;;  %vm4486_vm4 = vmor %vm4484_vm3, %vm4485_vm2  ;;  %vm4554_vm8 = vweird.f32 %v4477_v24  ;;  %vm4494_vm10 = vweird.f32 %v4471_v13 }
 0xcde   : > { %v4480_v49 = vmul.f32 %v5715_v17, %v4479_v1  ;;  %5718 = vrsqrt.f32 %v4471_v13 }
 0xce0   : > { %v4481_v16 = vmul.f32 0.5, %v4480_v49  ;;  %v4452_v19 = vpop.xlane.xlu0 %4451  ;;  %v4826_v49 = vld [vmem:[%s7310_s9 + $0x30] sm:$0xff] }
 0xce1   : > { %v4466_v54 = vmul.f32 %v4452_v19, %v6974_v39 }
 0xce2   : > { %v4482_v38 = vsub.f32 1.5, %v4481_v16  ;;  %v4827_v16 = vld [vmem:[%s7310_s9 + $0x38] sm:$0xff] }
 0xce3   : > { %v5717_v40 = vpop.eup %5716  ;;  %v4474_v5 = vadd.f32 1e-05, %v4466_v54  ;;  %v4834_v54 = vpack.c.bf16 %v4826_v49, %v4826_v49 }
 0xce4   : > { %v5719_v7 = vpop.eup %5718  ;;  %v4483_v23 = vmul.f32 %v5715_v17, %v4482_v38  ;;  %v4549_v10 = vmul.f32 %v5717_v40, %v4477_v24  ;;  %vm4555_vm5 = vweird.f32 %v5717_v40  ;;  %v4835_v38 = vpack.c.bf16 %v4827_v16, %v4827_v16 }
 0xce5   : > { %v4489_v28 = vmul.f32 %v5719_v7, %v4471_v13  ;;  %5720 = vrsqrt.f32 %v4474_v5  ;;  %vm4495_vm7 = vweird.f32 %v5719_v7  ;;  %vm4556_vm9 = vmor %vm4554_vm8, %vm4555_vm5  ;;  %vm4524_vm13 = vweird.f32 %v4474_v5 }
 0xce6   : > { %v4487_v4 = vsel %vm4486_vm4, %v5715_v17, %v4483_v23  ;;  %v4550_v12 = vmul.f32 %v5717_v40, %v4549_v10  ;;  %vm4496_vm11 = vmor %vm4494_vm10, %vm4495_vm7 }
 0xce7   : > { %v4558_v36 = vmul.f32 %v4487_v4, %v6998_v32  ;;  %v4490_v56 = vmul.f32 %v5719_v7, %v4489_v28 }
 0xce8   : > { %v4551_v29 = vmul.f32 0.5, %v4550_v12  ;;  %v4822_v12 = vld [vmem:[%s7310_s9 + $0x10] sm:$0xff] }
 0xce9   : > { %v4569_v2 = vmul.f32 %v7045_v31, %v4558_v36  ;;  %v4491_v47 = vmul.f32 0.5, %v4490_v56  ;;  %v4455_v51 = vpop.xlane.xlu1 %4454  ;;  %v4823_v36 = vld [vmem:[%s7310_s9 + $0x18] sm:$0xff] }
 0xcea   : > { %v4552_v52 = vsub.f32 1.5, %v4551_v29  ;;  %v4467_v45 = vmul.f32 %v4455_v51, %v6974_v39  ;;  %v4830_v29 = vpack.c.bf16 %v4822_v12, %v4822_v12 }
 0xceb   : > { %v5721_v30 = vpop.eup %5720  ;;  %v7084_v50 = vadd.f32 %v7050_v14, %v4569_v2  ;;  %v4492_v61 = vsub.f32 1.5, %v4491_v47  ;;  %v4831_v2 = vpack.c.bf16 %v4823_v36, %v4823_v36 }
 0xcec   : > { %v4553_v42 = vmul.f32 %v5717_v40, %v4552_v52  ;;  %v4519_v55 = vmul.f32 %v5721_v30, %v4474_v5  ;;  %v4475_v32 = vadd.f32 1e-05, %v4467_v45  ;;  %vm4525_vm12 = vweird.f32 %v5721_v30  ;;  %v4820_v52 = vld [vmem:[%s7310_s9] sm:$0xff]  ;;  %v4821_v45 = vld [vmem:[%s7310_s9 + $0x8] sm:$0xff] }
 0xced   : > { %v4596_v15 = vpack.c.bf16 %v7084_v50, %v7084_v50  ;;  %v4493_v27 = vmul.f32 %v5719_v7, %v4492_v61  ;;  %vm4526_vm14 = vmor %vm4524_vm13, %vm4525_vm12  ;;  %v4862_v5 = vunpack.c.l.b16 %v4834_v54  ;;  %v4858_v47 = vunpack.c.l.b16 %v4830_v29 }
 0xcee   : > { %v4557_v62 = vsel %vm4556_vm9, %v5717_v40, %v4553_v42  ;;  %v4520_v60 = vmul.f32 %v5721_v30, %v4519_v55  ;;  %5722 = vrsqrt.f32 %v4475_v32  ;;  %vm4534_vm1 = vweird.f32 %v4475_v32 }
 0xcef   : > { %v4565_v44 = vmul.f32 %v4557_v62, %v7007_v58  ;;  %v4497_v21 = vsel %vm4496_vm11, %v5719_v7, %v4493_v27  ;;  %5532 = vmatmul.msk.bf16.vlgmr.msra.gmra.mxu0 %vm485_vm0, %v4596_v15  ;;  %v4825_v7 = vld [vmem:[%s7310_s9 + $0x28] sm:$0xff]  ;;  %v4859_v51 = vunpack.c.l.b16 %v4831_v2  ;;  %v4828_v61 = vpack.c.bf16 %v4820_v52, %v4820_v52  ;;  %v7148_v27 = vld [vmem:[%s7309_s8] ss:$0 sm:$0xff] }
 0xcf0   : > { %v4559_v43 = vmul.f32 %v4497_v21, %v7005_v18  ;;  %v4521_v22 = vmul.f32 0.5, %v4520_v60  ;;  %v4833_v10 = vpack.c.bf16 %v4825_v7, %v4825_v7  ;;  %v4829_v42 = vpack.c.bf16 %v4821_v45, %v4821_v45 }
 0xcf1   : > { %v4576_v41 = vmul.f32 %v7045_v31, %v4565_v44  ;;  %v4856_v55 = vunpack.c.l.b16 %v4828_v61 }
 0xcf2   : > { %v4570_v34 = vmul.f32 %v7045_v31, %v4559_v43  ;;  %v4522_v25 = vsub.f32 1.5, %v4521_v22  ;;  %v4861_v4 = vunpack.c.l.b16 %v4833_v10 }
 0xcf3   : > { %v7094_v26 = vadd.f32 %v7050_v14, %v4576_v41 }
 0xcf4   : > { %v5723_v33 = vpop.eup %5722  ;;  %v7097_v11 = vadd.f32 %v7050_v14, %v4570_v34  ;;  %v4523_v58 = vmul.f32 %v5721_v30, %v4522_v25 }
 0xcf5   : > { %v4603_v46 = vpack.c.bf16 %v7094_v26, %v7094_v26  ;;  %v4529_v18 = vmul.f32 %v5723_v33, %v4475_v32  ;;  %vm4535_vm15 = vweird.f32 %v5723_v33  ;;  %v4857_v32 = vunpack.c.l.b16 %v4829_v42 }
 0xcf6   : > { %v4597_v48 = vpack.c.bf16 %v7097_v11, %v7097_v11  ;;  %v4527_v3 = vsel %vm4526_vm14, %v5721_v30, %v4523_v58  ;;  %vm4536_vm2 = vmor %vm4534_vm1, %vm4535_vm15  ;;  %v4865_v30 = vpack.c.b16 %v4859_v51, %v4858_v47 }
 0xcf7   : > { %v4562_v8 = vmul.f32 %v4527_v3, %v7016_v20  ;;  %v4530_v59 = vmul.f32 %v5723_v33, %v4529_v18  ;;  %5539 = vmatmul.msk.bf16.vlgmr.msrb.gmra.mxu3 %vm485_vm0, %v4603_v46  ;;  %v4864_v15 = vpack.c.b16 %v4857_v32, %v4856_v55 }
 0xcf8   : > { %5533 = vmatmul.msk.bf16.vlgmr.msra.gmra.mxu1 %vm485_vm0, %v4597_v48 }
 0xcf9   : > { %v4573_v53 = vmul.f32 %v7045_v31, %v4562_v8  ;;  %v4531_v9 = vmul.f32 0.5, %v4530_v59 }
 0xcfb   : > { %v7108_v37 = vadd.f32 %v7050_v14, %v4573_v53  ;;  %v4532_v0 = vsub.f32 1.5, %v4531_v9 }
 0xcfd   : > { %v4600_v17 = vpack.c.bf16 %v7108_v37, %v7108_v37  ;;  %v4533_v24 = vmul.f32 %v5723_v33, %v4532_v0 }
 0xcff   : > { %v4537_v20 = vsel %vm4536_vm2, %v5723_v33, %v4533_v24  ;;  %5536 = vmatmul.msk.bf16.vlgmr.msrb.gmra.mxu0 %vm485_vm0, %v4600_v17 }
 0xd00   : > { %v4563_v13 = vmul.f32 %v4537_v20, %v7028_v6  ;;  %v4863_v6 = vunpack.c.l.b16 %v4835_v38 }
 0xd02   : > { %v4574_v1 = vmul.f32 %v7045_v31, %v4563_v13  ;;  %v4824_v31 = vld [vmem:[%s7310_s9 + $0x20] sm:$0xff]  ;;  %v4867_v23 = vpack.c.b16 %v4863_v6, %v4862_v5 }
 0xd04   : > { %v7122_v19 = vadd.f32 %v7050_v14, %v4574_v1  ;;  %v4832_v14 = vpack.c.bf16 %v4824_v31, %v4824_v31  ;;  %4912 = vmatpush.bf16.msra.mxu2 %v4867_v23  ;;  %4928 = vmatpush.bf16.msra.mxu3 %v4867_v23 }
 0xd05   : > { %4880 = vmatpush.bf16.msra.mxu0 %v4867_v23  ;;  %4896 = vmatpush.bf16.msra.mxu1 %v4867_v23 }
 0xd06   : > { %v4601_v40 = vpack.c.bf16 %v7122_v19, %v7122_v19  ;;  %v4860_v28 = vunpack.c.l.b16 %v4832_v14 }
 0xd08   : > { %5537 = vmatmul.msk.bf16.vlgmr.msrb.gmra.mxu1 %vm485_vm0, %v4601_v40  ;;  %v4866_v56 = vpack.c.b16 %v4861_v4, %v4860_v28  ;;  %vm4872_vm0 = vcmask 523264  }
 0xd0a   : > { %4913 = vmatpush.bf16.msra.mxu2 %v4866_v56  ;;  %4929 = vmatpush.bf16.msra.mxu3 %v4866_v56 }
 0xd0b   : > { %4881 = vmatpush.bf16.msra.mxu0 %v4866_v56  ;;  %4897 = vmatpush.bf16.msra.mxu1 %v4866_v56 }
 0xd0e   : > { %4914 = vmatpush.bf16.msra.mxu2 %v4865_v30  ;;  %4930 = vmatpush.bf16.msra.mxu3 %v4865_v30 }
 0xd0f   : > { %4882 = vmatpush.bf16.msra.mxu0 %v4865_v30  ;;  %4898 = vmatpush.bf16.msra.mxu1 %v4865_v30 }
 0xd12   : > { %4915 = vmatpush.bf16.msra.mxu2 %v4864_v15  ;;  %4931 = vmatpush.bf16.msra.mxu3 %v4864_v15 }
 0xd13   : > { %4883 = vmatpush.bf16.msra.mxu0 %v4864_v15  ;;  %4899 = vmatpush.bf16.msra.mxu1 %v4864_v15 }
 0xd16   : > { %4976 = vmatpush.bf16.msrb.mxu2 %v4867_v23  ;;  %4992 = vmatpush.bf16.msrb.mxu3 %v4867_v23 }
 0xd17   : > { %4944 = vmatpush.bf16.msrb.mxu0 %v4867_v23  ;;  %4960 = vmatpush.bf16.msrb.mxu1 %v4867_v23 }
 0xd1a   : > { %4977 = vmatpush.bf16.msrb.mxu2 %v4866_v56  ;;  %4993 = vmatpush.bf16.msrb.mxu3 %v4866_v56 }
 0xd1b   : > { %4945 = vmatpush.bf16.msrb.mxu0 %v4866_v56  ;;  %4961 = vmatpush.bf16.msrb.mxu1 %v4866_v56 }
 0xd1e   : > { %4978 = vmatpush.bf16.msrb.mxu2 %v4865_v30  ;;  %4994 = vmatpush.bf16.msrb.mxu3 %v4865_v30 }
 0xd1f   : > { %v4664_v62 = vpop.f32.mrf.mxu2  ;;  %4946 = vmatpush.bf16.msrb.mxu0 %v4865_v30  ;;  %4962 = vmatpush.bf16.msrb.mxu1 %v4865_v30 }
 0xd20   : > { %v4665_v60 = vadd.f32 %v7148_v27, %v4664_v62 }
 0xd22   : > { %v4758_v44 = vmul.f32 0.044715, %v4665_v60  ;;  %4979 = vmatpush.bf16.msrb.mxu2 %v4864_v15  ;;  %4995 = vmatpush.bf16.msrb.mxu3 %v4864_v15  ;;  %v4750_v17 = vmul.f32 0.5, %v4665_v60 }
 0xd23   : > { %4947 = vmatpush.bf16.msrb.mxu0 %v4864_v15  ;;  %4963 = vmatpush.bf16.msrb.mxu1 %v4864_v15 }
 0xd24   : > { %v4766_v21 = vmul.f32 %v4758_v44, %v4665_v60 }
 0xd26   : > { %v4774_v43 = vmul.f32 %v4766_v21, %v4665_v60 }
 0xd27   : > { %v4666_v22 = vpop.f32.mrf.mxu2  ;;  %v4680_v41 = vpop.f32.mrf.mxu3 }
 0xd28   : > { %v4782_v34 = vadd.f32 %v4774_v43, %v4665_v60  ;;  %v4681_v25 = vadd.f32 %v7148_v27, %v4680_v41 }
 0xd2a   : > { %v4790_v33 = vmul.f32 0.7978846, %v4782_v34  ;;  %v4759_v58 = vmul.f32 0.044715, %v4681_v25  ;;  %v4751_v5 = vmul.f32 0.5, %v4681_v25 }
 0xd2c   : > { %5724 = vtanh.f32 %v4790_v33  ;;  %v4767_v46 = vmul.f32 %v4759_v58, %v4681_v25 }
 0xd2e   : > { %v4775_v18 = vmul.f32 %v4767_v46, %v4681_v25 }
 0xd2f   : > { %v4682_v48 = vpop.f32.mrf.mxu3  ;;  %v4728_v3 = vpop.f32.mrf.mxu2 }
 0xd30   : > { %v4783_v8 = vadd.f32 %v4775_v18, %v4681_v25  ;;  %v4729_v59 = vadd.f32 %v7148_v27, %v4728_v3 }
 0xd32   : > { %v5725_v53 = vpop.eup %5724  ;;  %v4791_v9 = vmul.f32 0.7978846, %v4783_v8  ;;  %v4762_v0 = vmul.f32 0.044715, %v4729_v59  ;;  %v4754_v14 = vmul.f32 0.5, %v4729_v59 }
 0xd33   : > { %v4806_v24 = vadd.f32 1.0, %v5725_v53 }
 0xd34   : > { %5726 = vtanh.f32 %v4791_v9  ;;  %v4770_v20 = vmul.f32 %v4762_v0, %v4729_v59 }
 0xd35   : > { %v4814_v13 = vmul.f32 %v4806_v24, %v4750_v17 }
 0xd36   : > { %v4778_v1 = vmul.f32 %v4770_v20, %v4729_v59 }
 0xd37   : > { %v4838_v49 = vpack.c.bf16 %v4814_v13, %v4814_v13  ;;  %v4730_v16 = vpop.f32.mrf.mxu2 }
 0xd38   : > { %v4786_v54 = vadd.f32 %v4778_v1, %v4729_v59 }
 0xd39   : > { %5542 = vmatmul.msk.bf16.vlgmr.msra.gmra.mxu2 %vm4872_vm0, %v4838_v49 }
 0xd3a   : > { %v5727_v38 = vpop.eup %5726  ;;  %v4794_v40 = vmul.f32 0.7978846, %v4786_v54 }
 0xd3b   : > { %v4807_v6 = vadd.f32 1.0, %v5727_v38 }
 0xd3c   : > { %5728 = vtanh.f32 %v4794_v40 }
 0xd3d   : > { %v4815_v31 = vmul.f32 %v4807_v6, %v4751_v5 }
 0xd3f   : > { %v4839_v7 = vpack.c.bf16 %v4815_v31, %v4815_v31 }
 0xd41   : > { %5543 = vmatmul.msk.bf16.vlgmr.msra.gmra.mxu3 %vm4872_vm0, %v4839_v7 }
 0xd42   : > { %v5729_v23 = vpop.eup %5728 }
 0xd43   : > { %v4810_v10 = vadd.f32 1.0, %v5729_v23 }
 0xd45   : > { %v4818_v28 = vmul.f32 %v4810_v10, %v4754_v14 }
 0xd47   : > { %v4842_v4 = vpack.c.bf16 %v4818_v28, %v4818_v28 }
 0xd49   : > { %5546 = vmatmul.msk.bf16.vlgmr.msrb.gmra.mxu2 %vm4872_vm0, %v4842_v4 }
 0xd6c   : > { %v4632_v12 = vpop.f32.mrf.mxu0 }
 0xd6d   : > { %v4633_v36 = vadd.f32 %v7148_v27, %v4632_v12 }
 0xd6f   : > { %v4756_v56 = vmul.f32 0.044715, %v4633_v36  ;;  %v4748_v25 = vmul.f32 0.5, %v4633_v36 }
 0xd71   : > { %v4764_v29 = vmul.f32 %v4756_v56, %v4633_v36 }
 0xd73   : > { %v4772_v2 = vmul.f32 %v4764_v29, %v4633_v36 }
 0xd74   : > { %v4634_v47 = vpop.f32.mrf.mxu0 }
 0xd75   : > { %v4780_v51 = vadd.f32 %v4772_v2, %v4633_v36  ;;  %v4648_v52 = vpop.f32.mrf.mxu1 }
 0xd76   : > { %v4649_v45 = vadd.f32 %v7148_v27, %v4648_v52 }
 0xd77   : > { %v4788_v30 = vmul.f32 0.7978846, %v4780_v51 }
 0xd78   : > { %v4757_v61 = vmul.f32 0.044715, %v4649_v45  ;;  %v4749_v16 = vmul.f32 0.5, %v4649_v45 }
 0xd79   : > { %5730 = vtanh.f32 %v4788_v30 }
 0xd7a   : > { %v4765_v42 = vmul.f32 %v4757_v61, %v4649_v45  ;;  %v4744_v55 = vpop.f32.mrf.mxu3  ;;  %v5575_v61 = vld [vmem:[%s7311_s10] ss:$0 sm:$0xff] }
 0xd7b   : > { %v4745_v32 = vadd.f32 %v7148_v27, %v4744_v55 }
 0xd7c   : > { %v4773_v15 = vmul.f32 %v4765_v42, %v4649_v45  ;;  %v4696_v62 = vpop.f32.mrf.mxu0 }
 0xd7d   : > { %v4763_v60 = vmul.f32 0.044715, %v4745_v32  ;;  %v4650_v44 = vpop.f32.mrf.mxu1  ;;  %v4697_v21 = vadd.f32 %v7148_v27, %v4696_v62  ;;  %v4755_v23 = vmul.f32 0.5, %v4745_v32 }
 0xd7e   : > { %v4781_v43 = vadd.f32 %v4773_v15, %v4649_v45 }
 0xd7f   : > { %v5731_v22 = vpop.eup %5730  ;;  %v4771_v41 = vmul.f32 %v4763_v60, %v4745_v32  ;;  %v4760_v34 = vmul.f32 0.044715, %v4697_v21  ;;  %v4752_v4 = vmul.f32 0.5, %v4697_v21 }
 0xd80   : > { %v4804_v33 = vadd.f32 1.0, %v5731_v22  ;;  %v4789_v58 = vmul.f32 0.7978846, %v4781_v43 }
 0xd81   : > { %v4779_v46 = vmul.f32 %v4771_v41, %v4745_v32  ;;  %v4768_v18 = vmul.f32 %v4760_v34, %v4697_v21 }
 0xd82   : > { %v4812_v48 = vmul.f32 %v4804_v33, %v4748_v25  ;;  %5732 = vtanh.f32 %v4789_v58  ;;  %v4746_v3 = vpop.f32.mrf.mxu3 }
 0xd83   : > { %v4787_v8 = vadd.f32 %v4779_v46, %v4745_v32  ;;  %v4776_v59 = vmul.f32 %v4768_v18, %v4697_v21 }
 0xd84   : > { %v4836_v53 = vpack.c.bf16 %v4812_v48, %v4812_v48  ;;  %v4698_v9 = vpop.f32.mrf.mxu0 }
 0xd85   : > { %v4795_v0 = vmul.f32 0.7978846, %v4787_v8  ;;  %v4784_v17 = vadd.f32 %v4776_v59, %v4697_v21  ;;  %v4712_v24 = vpop.f32.mrf.mxu1 }
 0xd86   : > { %v4713_v20 = vadd.f32 %v7148_v27, %v4712_v24  ;;  %5540 = vmatmul.msk.bf16.vlgmr.msra.gmra.mxu0 %vm4872_vm0, %v4836_v53 }
 0xd87   : > { %5734 = vtanh.f32 %v4795_v0  ;;  %v4792_v13 = vmul.f32 0.7978846, %v4784_v17 }
 0xd88   : > { %v5733_v1 = vpop.eup %5732  ;;  %v4761_v49 = vmul.f32 0.044715, %v4713_v20  ;;  %v4753_v51 = vmul.f32 0.5, %v4713_v20 }
 0xd89   : > { %v4805_v54 = vadd.f32 1.0, %v5733_v1  ;;  %5736 = vtanh.f32 %v4792_v13 }
 0xd8a   : > { %v4769_v38 = vmul.f32 %v4761_v49, %v4713_v20 }
 0xd8b   : > { %v4813_v40 = vmul.f32 %v4805_v54, %v4749_v16 }
 0xd8c   : > { %v4777_v5 = vmul.f32 %v4769_v38, %v4713_v20 }
 0xd8d   : > { %v5735_v6 = vpop.eup %5734  ;;  %v4837_v31 = vpack.c.bf16 %v4813_v40, %v4813_v40  ;;  %v4714_v7 = vpop.f32.mrf.mxu1 }
 0xd8e   : > { %v4811_v14 = vadd.f32 1.0, %v5735_v6  ;;  %v4785_v10 = vadd.f32 %v4777_v5, %v4713_v20 }
 0xd8f   : > { %v5737_v28 = vpop.eup %5736  ;;  %5541 = vmatmul.msk.bf16.vlgmr.msra.gmra.mxu1 %vm4872_vm0, %v4837_v31 }
 0xd90   : > { %v4819_v27 = vmul.f32 %v4811_v14, %v4755_v23  ;;  %v4808_v12 = vadd.f32 1.0, %v5737_v28  ;;  %v4793_v36 = vmul.f32 0.7978846, %v4785_v10 }
 0xd92   : > { %v4843_v56 = vpack.c.bf16 %v4819_v27, %v4819_v27  ;;  %v4816_v29 = vmul.f32 %v4808_v12, %v4752_v4  ;;  %5738 = vtanh.f32 %v4793_v36 }
 0xd94   : > { %v4840_v2 = vpack.c.bf16 %v4816_v29, %v4816_v29  ;;  %5547 = vmatmul.msk.bf16.vlgmr.msrb.gmra.mxu3 %vm4872_vm0, %v4843_v56 }
 0xd96   : > { %5544 = vmatmul.msk.bf16.vlgmr.msrb.gmra.mxu0 %vm4872_vm0, %v4840_v2 }
 0xd98   : > { %v5739_v47 = vpop.eup %5738 }
 0xd99   : > { %v4809_v52 = vadd.f32 1.0, %v5739_v47 }
 0xd9b   : > { %v4817_v45 = vmul.f32 %v4809_v52, %v4753_v51 }
 0xd9d   : > { %v4841_v30 = vpack.c.bf16 %v4817_v45, %v4817_v45 }
 0xd9f   : > { %5545 = vmatmul.msk.bf16.vlgmr.msrb.gmra.mxu1 %vm4872_vm0, %v4841_v30 }
 0xdbc   : > { %v4917_v42 = vpop.f32.mrf.mxu2 }
 0xdbd   : > { %v4918_v55 = vadd.f32 %v5575_v61, %v4917_v42 }
 0xdbf   : > { %v5003_v32 = vadd.f32 %v4918_v55, %v7055_v57 }
 0xdc1   : > { %v5017_v15 = vsel %vm4382_vm6, %v5003_v32, 0.0 }
 0xdc2   : > { %5018 = vadd.xlane.f32.xlu1 %v5017_v15 }
 0xdc4   : > { %v4919_v62 = vpop.f32.mrf.mxu2  ;;  %v4933_v60 = vpop.f32.mrf.mxu3 }
 0xdc5   : > { %v4934_v25 = vadd.f32 %v5575_v61, %v4933_v60 }
 0xdc7   : > { %v5004_v57 = vadd.f32 %v4934_v25, %v7063_v35 }
 0xdc9   : > { %v5020_v8 = vsel %vm4382_vm6, %v5004_v57, 0.0 }
 0xdcc   : > { %v4935_v44 = vpop.f32.mrf.mxu3  ;;  %v4981_v21 = vpop.f32.mrf.mxu2 }
 0xdcd   : > { %v4982_v3 = vadd.f32 %v5575_v61, %v4981_v21 }
 0xdcf   : > { %v5007_v0 = vadd.f32 %v4982_v3, %v7071_v63 }
 0xdd1   : > { %v5029_v35 = vsel %vm4382_vm6, %v5007_v0, 0.0 }
 0xdd4   : > { %v4983_v43 = vpop.f32.mrf.mxu2 }
 0xe03   : > { %v4885_v22 = vpop.f32.mrf.mxu0 }
 0xe04   : > { %v4886_v41 = vadd.f32 %v5575_v61, %v4885_v22 }
 0xe06   : > { %v5001_v34 = vadd.f32 %v4886_v41, %v7084_v50 }
 0xe08   : > { %v5011_v33 = vsel %vm4382_vm6, %v5001_v34, 0.0 }
 0xe09   : > { %5012 = vadd.xlane.f32.xlu2 %v5011_v33 }
 0xe0b   : > { %v4887_v58 = vpop.f32.mrf.mxu0 }
 0xe0c   : > { %v4901_v46 = vpop.f32.mrf.mxu1 }
 0xe0d   : > { %v4902_v18 = vadd.f32 %v5575_v61, %v4901_v46 }
 0xe0f   : > { %v5002_v48 = vadd.f32 %v4902_v18, %v7097_v11 }
 0xe11   : > { %v5014_v59 = vsel %vm4382_vm6, %v5002_v48, 0.0  ;;  %5021 = vadd.xlane.f32.xlu2 %v5020_v8 }
 0xe12   : > { %5015 = vadd.xlane.f32.xlu0 %v5014_v59 }
 0xe13   : > { %v4949_v53 = vpop.f32.mrf.mxu0 }
 0xe14   : > { %v4903_v50 = vpop.f32.mrf.mxu1  ;;  %v4950_v9 = vadd.f32 %v5575_v61, %v4949_v53 }
 0xe16   : > { %v5005_v17 = vadd.f32 %v4950_v9, %v7108_v37 }
 0xe17   : > { %v4997_v24 = vpop.f32.mrf.mxu3 }
 0xe18   : > { %v5023_v20 = vsel %vm4382_vm6, %v5005_v17, 0.0  ;;  %v4998_v11 = vadd.f32 %v5575_v61, %v4997_v24 }
 0xe19   : > { %5030 = vadd.xlane.f32.xlu2 %v5029_v35  ;;  %v7238_v35 = vld [vmem:[%s7313_s12] ss:$0 sm:$0xff] }
 0xe1a   : > { %5024 = vadd.xlane.f32.xlu0 %v5023_v20  ;;  %v5008_v16 = vadd.f32 %v4998_v11, %v7094_v26 }
 0xe1b   : > { %v4951_v13 = vpop.f32.mrf.mxu0 }
 0xe1c   : > { %v4965_v1 = vpop.f32.mrf.mxu1  ;;  %v5032_v37 = vsel %vm4382_vm6, %v5008_v16, 0.0 }
 0xe1d   : > { %v4966_v49 = vadd.f32 %v5575_v61, %v4965_v1 }
 0xe1f   : > { %v4999_v54 = vpop.f32.mrf.mxu3  ;;  %v5006_v38 = vadd.f32 %v4966_v49, %v7122_v19 }
 0xe21   : > { %v5026_v63 = vsel %vm4382_vm6, %v5006_v38, 0.0 }
 0xe22   : > { %5027 = vadd.xlane.f32.xlu1 %v5026_v63  ;;  %5033 = vadd.xlane.f32.xlu0 %v5032_v37 }
 0xe24   : > { %v4967_v40 = vpop.f32.mrf.mxu1 }
 0xe35   : > { %v5019_v5 = vpop.xlane.xlu1 %5018 }
 0xe36   : > { %v5037_v6 = vmul.f32 %v5019_v5, %v6974_v39 }
 0xe38   : > { %v5045_v31 = vsub.f32 %v5003_v32, %v5037_v6 }
 0xe3a   : > { %v5053_v7 = vmul.f32 %v5045_v31, %v5045_v31 }
 0xe3c   : > { %v5065_v23 = vsel %vm4382_vm6, %v5053_v7, 0.0 }
 0xe3d   : > { %5066 = vadd.xlane.f32.xlu0 %v5065_v23 }
 0xe7c   : > { %v5013_v14 = vpop.xlane.xlu2 %5012 }
 0xe7d   : > { %v5035_v26 = vmul.f32 %v5013_v14, %v6974_v39 }
 0xe7f   : > { %v7188_v10 = vsub.f32 %v5001_v34, %v5035_v26 }
 0xe81   : > { %v5051_v19 = vmul.f32 %v7188_v10, %v7188_v10 }
 0xe83   : > { %v5059_v28 = vsel %vm4382_vm6, %v5051_v19, 0.0 }
 0xe84   : > { %5060 = vadd.xlane.f32.xlu1 %v5059_v28  ;;  %v5022_v27 = vpop.xlane.xlu2 %5021 }
 0xe85   : > { %v5038_v4 = vmul.f32 %v5022_v27, %v6974_v39  ;;  %v5016_v12 = vpop.xlane.xlu0 %5015 }
 0xe86   : > { %v5036_v36 = vmul.f32 %v5016_v12, %v6974_v39 }
 0xe87   : > { %v7195_v56 = vsub.f32 %v5004_v57, %v5038_v4 }
 0xe88   : > { %v7197_v29 = vsub.f32 %v5002_v48, %v5036_v36 }
 0xe89   : > { %v5054_v2 = vmul.f32 %v7195_v56, %v7195_v56 }
 0xe8a   : > { %v5052_v47 = vmul.f32 %v7197_v29, %v7197_v29 }
 0xe8b   : > { %v5068_v51 = vsel %vm4382_vm6, %v5054_v2, 0.0 }
 0xe8c   : > { %5069 = vadd.xlane.f32.xlu1 %v5068_v51  ;;  %v5031_v52 = vpop.xlane.xlu2 %5030  ;;  %v5062_v45 = vsel %vm4382_vm6, %v5052_v47, 0.0 }
 0xe8d   : > { %v5041_v30 = vmul.f32 %v5031_v52, %v6974_v39  ;;  %5063 = vadd.xlane.f32.xlu2 %v5062_v45  ;;  %v5025_v61 = vpop.xlane.xlu0 %5024 }
 0xe8e   : > { %v5039_v42 = vmul.f32 %v5025_v61, %v6974_v39 }
 0xe8f   : > { %v7207_v55 = vsub.f32 %v5007_v0, %v5041_v30 }
 0xe90   : > { %v7209_v32 = vsub.f32 %v5005_v17, %v5039_v42  ;;  %v7233_v17 = vld [vmem:[%s7312_s11] ss:$0 sm:$0xff] }
 0xe91   : > { %v5057_v15 = vmul.f32 %v7207_v55, %v7207_v55 }
 0xe92   : > { %v5055_v62 = vmul.f32 %v7209_v32, %v7209_v32 }
 0xe93   : > { %v5077_v60 = vsel %vm4382_vm6, %v5057_v15, 0.0 }
 0xe94   : > { %5078 = vadd.xlane.f32.xlu1 %v5077_v60  ;;  %v5071_v44 = vsel %vm4382_vm6, %v5055_v62, 0.0 }
 0xe95   : > { %v5028_v21 = vpop.xlane.xlu1 %5027  ;;  %5072 = vadd.xlane.f32.xlu2 %v5071_v44  ;;  %v5034_v43 = vpop.xlane.xlu0 %5033 }
 0xe96   : > { %v5040_v22 = vmul.f32 %v5028_v21, %v6974_v39  ;;  %v5042_v41 = vmul.f32 %v5034_v43, %v6974_v39 }
 0xe98   : > { %v7219_v34 = vsub.f32 %v5006_v38, %v5040_v22  ;;  %v7221_v25 = vsub.f32 %v5008_v16, %v5042_v41 }
 0xe9a   : > { %v5056_v33 = vmul.f32 %v7219_v34, %v7219_v34  ;;  %v5058_v58 = vmul.f32 %v7221_v25, %v7221_v25 }
 0xe9c   : > { %v5074_v46 = vsel %vm4382_vm6, %v5056_v33, 0.0  ;;  %v5080_v57 = vsel %vm4382_vm6, %v5058_v58, 0.0 }
 0xe9d   : > { %5075 = vadd.xlane.f32.xlu0 %v5074_v46  ;;  %5081 = vadd.xlane.f32.xlu2 %v5080_v57 }
 0xeb0   : > { %v5067_v18 = vpop.xlane.xlu0 %5066 }
 0xeb1   : > { %v5085_v48 = vmul.f32 %v5067_v18, %v6974_v39 }
 0xeb3   : > { %v5093_v3 = vadd.f32 1e-05, %v5085_v48 }
 0xeb5   : > { %5740 = vrsqrt.f32 %v5093_v3  ;;  %vm5125_vm4 = vweird.f32 %v5093_v3 }
 0xebb   : > { %v5741_v8 = vpop.eup %5740 }
 0xebc   : > { %v5120_v59 = vmul.f32 %v5741_v8, %v5093_v3  ;;  %vm5126_vm3 = vweird.f32 %v5741_v8 }
 0xebd   : > { %vm5127_vm5 = vmor %vm5125_vm4, %vm5126_vm3 }
 0xebe   : > { %v5121_v53 = vmul.f32 %v5741_v8, %v5120_v59 }
 0xec0   : > { %v5122_v50 = vmul.f32 0.5, %v5121_v53 }
 0xec2   : > { %v5123_v9 = vsub.f32 1.5, %v5122_v50 }
 0xec4   : > { %v5124_v0 = vmul.f32 %v5741_v8, %v5123_v9 }
 0xec6   : > { %v5128_v24 = vsel %vm5127_vm5, %v5741_v8, %v5124_v0 }
 0xec7   : > { %v5181_v20 = vmul.f32 %v5128_v24, %v5045_v31 }
 0xec9   : > { %v5192_v11 = vmul.f32 %v7233_v17, %v5181_v20 }
 0xecb   : > { %v5203_v13 = vadd.f32 %v7238_v35, %v5192_v11 }
 0xecd   : > { %5211 = vst.msk [vmem:[%s7246_s22 + $0x8] sm:$0xf] %vm4382_vm6, %v5203_v13 }
 0xef7   : > { %v5061_v1 = vpop.xlane.xlu1 %5060 }
 0xef8   : > { %v5083_v49 = vmul.f32 %v5061_v1, %v6974_v39 }
 0xefa   : > { %v5091_v16 = vadd.f32 1e-05, %v5083_v49 }
 0xefc   : > { %5742 = vrsqrt.f32 %v5091_v16  ;;  %vm5105_vm8 = vweird.f32 %v5091_v16 }
 0xeff   : > { %v5070_v54 = vpop.xlane.xlu1 %5069 }
 0xf00   : > { %v5086_v38 = vmul.f32 %v5070_v54, %v6974_v39  ;;  %v5064_v63 = vpop.xlane.xlu2 %5063 }
 0xf01   : > { %v5084_v37 = vmul.f32 %v5064_v63, %v6974_v39 }
 0xf02   : > { %v5743_v40 = vpop.eup %5742  ;;  %v5094_v5 = vadd.f32 1e-05, %v5086_v38 }
 0xf03   : > { %v5100_v6 = vmul.f32 %v5743_v40, %v5091_v16  ;;  %v5092_v31 = vadd.f32 1e-05, %v5084_v37  ;;  %vm5106_vm7 = vweird.f32 %v5743_v40 }
 0xf04   : > { %5744 = vrsqrt.f32 %v5094_v5  ;;  %vm5107_vm9 = vmor %vm5105_vm8, %vm5106_vm7  ;;  %vm5135_vm12 = vweird.f32 %v5094_v5 }
 0xf05   : > { %v5101_v7 = vmul.f32 %v5743_v40, %v5100_v6  ;;  %5746 = vrsqrt.f32 %v5092_v31  ;;  %vm5115_vm14 = vweird.f32 %v5092_v31 }
 0xf07   : > { %v5102_v23 = vmul.f32 0.5, %v5101_v7  ;;  %v5079_v14 = vpop.xlane.xlu1 %5078 }
 0xf08   : > { %v5089_v26 = vmul.f32 %v5079_v14, %v6974_v39  ;;  %v5073_v19 = vpop.xlane.xlu2 %5072 }
 0xf09   : > { %v5103_v28 = vsub.f32 1.5, %v5102_v23  ;;  %v5087_v27 = vmul.f32 %v5073_v19, %v6974_v39 }
 0xf0a   : > { %v5745_v4 = vpop.eup %5744  ;;  %v5097_v12 = vadd.f32 1e-05, %v5089_v26 }
 0xf0b   : > { %v5747_v36 = vpop.eup %5746  ;;  %v5104_v2 = vmul.f32 %v5743_v40, %v5103_v28  ;;  %v5130_v47 = vmul.f32 %v5745_v4, %v5094_v5  ;;  %v7256_v51 = vadd.f32 1e-05, %v5087_v27  ;;  %vm5136_vm10 = vweird.f32 %v5745_v4 }
 0xf0c   : > { %v5110_v52 = vmul.f32 %v5747_v36, %v5092_v31  ;;  %5748 = vrsqrt.f32 %v5097_v12  ;;  %vm5116_vm11 = vweird.f32 %v5747_v36  ;;  %vm5137_vm13 = vmor %vm5135_vm12, %vm5136_vm10  ;;  %vm5165_vm0 = vweird.f32 %v5097_v12 }
 0xf0d   : > { %v5108_v45 = vsel %vm5107_vm9, %v5743_v40, %v5104_v2  ;;  %v5131_v30 = vmul.f32 %v5745_v4, %v5130_v47  ;;  %5750 = vrsqrt.f32 %v7256_v51  ;;  %vm5117_vm15 = vmor %vm5115_vm14, %vm5116_vm11  ;;  %vm5145_vm4 = vweird.f32 %v7256_v51 }
 0xf0e   : > { %v5179_v61 = vmul.f32 %v5108_v45, %v7188_v10  ;;  %v5111_v42 = vmul.f32 %v5747_v36, %v5110_v52 }
 0xf0f   : > { %v5132_v15 = vmul.f32 0.5, %v5131_v30 }
 0xf10   : > { %v5190_v62 = vmul.f32 %v7233_v17, %v5179_v61  ;;  %v5112_v60 = vmul.f32 0.5, %v5111_v42  ;;  %v5082_v44 = vpop.xlane.xlu2 %5081  ;;  %v5076_v21 = vpop.xlane.xlu0 %5075 }
 0xf11   : > { %v5133_v43 = vsub.f32 1.5, %v5132_v15  ;;  %v5090_v22 = vmul.f32 %v5082_v44, %v6974_v39  ;;  %v5088_v41 = vmul.f32 %v5076_v21, %v6974_v39 }
 0xf12   : > { %v5749_v33 = vpop.eup %5748  ;;  %v5201_v58 = vadd.f32 %v7238_v35, %v5190_v62  ;;  %v5113_v46 = vsub.f32 1.5, %v5112_v60 }
 0xf13   : > { %v5751_v10 = vpop.eup %5750  ;;  %v5134_v57 = vmul.f32 %v5745_v4, %v5133_v43  ;;  %v5160_v18 = vmul.f32 %v5749_v33, %v5097_v12  ;;  %v5098_v48 = vadd.f32 1e-05, %v5090_v22  ;;  %v5096_v59 = vadd.f32 1e-05, %v5088_v41 }
 0xf14   : > { %5209 = vst.msk [vmem:[%s7246_s22] sm:$0xf] %vm4382_vm6, %v5201_v58  ;;  %v5114_v3 = vmul.f32 %v5747_v36, %v5113_v46  ;;  %v5140_v8 = vmul.f32 %v5751_v10, %v7256_v51  ;;  %vm5166_vm1 = vweird.f32 %v5749_v33  ;;  %vm5146_vm2 = vweird.f32 %v5751_v10 }
 0xf15   : > { %v5138_v53 = vsel %vm5137_vm13, %v5745_v4, %v5134_v57  ;;  %v5161_v39 = vmul.f32 %v5749_v33, %v5160_v18  ;;  %5752 = vrsqrt.f32 %v5098_v48  ;;  %vm5167_vm3 = vmor %vm5165_vm0, %vm5166_vm1  ;;  %vm5175_vm9 = vweird.f32 %v5098_v48 }
 0xf16   : > { %v5182_v50 = vmul.f32 %v5138_v53, %v7195_v56  ;;  %v5118_v9 = vsel %vm5117_vm15, %v5747_v36, %v5114_v3  ;;  %v5141_v0 = vmul.f32 %v5751_v10, %v5140_v8  ;;  %5754 = vrsqrt.f32 %v5096_v59  ;;  %vm5147_vm5 = vmor %vm5145_vm4, %vm5146_vm2 }
 0xf17   : > { %v5180_v24 = vmul.f32 %v5118_v9, %v7197_v29  ;;  %v5162_v20 = vmul.f32 0.5, %v5161_v39  ;;  %vm5155_vm11 = vweird.f32 %v5096_v59 }
 0xf18   : > { %v5193_v11 = vmul.f32 %v7233_v17, %v5182_v50  ;;  %v5142_v13 = vmul.f32 0.5, %v5141_v0 }
 0xf19   : > { %v5191_v1 = vmul.f32 %v7233_v17, %v5180_v24  ;;  %v5163_v49 = vsub.f32 1.5, %v5162_v20 }
 0xf1a   : > { %v5204_v16 = vadd.f32 %v7238_v35, %v5193_v11  ;;  %v5143_v54 = vsub.f32 1.5, %v5142_v13 }
 0xf1b   : > { %v5753_v56 = vpop.eup %5752  ;;  %v5202_v38 = vadd.f32 %v7238_v35, %v5191_v1  ;;  %v5164_v63 = vmul.f32 %v5749_v33, %v5163_v49 }
 0xf1c   : > { %v5755_v37 = vpop.eup %5754  ;;  %5212 = vst.msk [vmem:[%s7246_s22 + $0xc] sm:$0xf] %vm4382_vm6, %v5204_v16  ;;  %v5144_v29 = vmul.f32 %v5751_v10, %v5143_v54  ;;  %v5170_v40 = vmul.f32 %v5753_v56, %v5098_v48  ;;  %vm5176_vm7 = vweird.f32 %v5753_v56 }
 0xf1d   : > { %5210 = vst.msk [vmem:[%s7246_s22 + $0x4] sm:$0xf] %vm4382_vm6, %v5202_v38  ;;  %v5168_v5 = vsel %vm5167_vm3, %v5749_v33, %v5164_v63  ;;  %v5150_v6 = vmul.f32 %v5755_v37, %v5096_v59  ;;  %vm5156_vm8 = vweird.f32 %v5755_v37  ;;  %vm5177_vm10 = vmor %vm5175_vm9, %vm5176_vm7 }
 0xf1e   : > { %v5185_v31 = vmul.f32 %v5168_v5, %v7207_v55  ;;  %v5148_v7 = vsel %vm5147_vm5, %v5751_v10, %v5144_v29  ;;  %v5171_v23 = vmul.f32 %v5753_v56, %v5170_v40  ;;  %vm5157_vm12 = vmor %vm5155_vm11, %vm5156_vm8 }
 0xf1f   : > { %v5183_v14 = vmul.f32 %v5148_v7, %v7209_v32  ;;  %v5151_v26 = vmul.f32 %v5755_v37, %v5150_v6 }
 0xf20   : > { %v5196_v19 = vmul.f32 %v7233_v17, %v5185_v31  ;;  %v5172_v28 = vmul.f32 0.5, %v5171_v23 }
 0xf21   : > { %v5194_v27 = vmul.f32 %v7233_v17, %v5183_v14  ;;  %v5152_v4 = vmul.f32 0.5, %v5151_v26 }
 0xf22   : > { %v5207_v12 = vadd.f32 %v7238_v35, %v5196_v19  ;;  %v5173_v36 = vsub.f32 1.5, %v5172_v28 }
 0xf23   : > { %v5205_v2 = vadd.f32 %v7238_v35, %v5194_v27  ;;  %v5153_v47 = vsub.f32 1.5, %v5152_v4 }
 0xf24   : > { %5215 = vst.msk [vmem:[%s7246_s22 + $0x18] sm:$0xf] %vm4382_vm6, %v5207_v12  ;;  %v5174_v55 = vmul.f32 %v5753_v56, %v5173_v36 }
 0xf25   : > { %5213 = vst.msk [vmem:[%s7246_s22 + $0x10] sm:$0xf] %vm4382_vm6, %v5205_v2  ;;  %v5154_v32 = vmul.f32 %v5755_v37, %v5153_v47 }
 0xf26   : > { %v5178_v51 = vsel %vm5177_vm10, %v5753_v56, %v5174_v55 }
 0xf27   : > { %v5186_v52 = vmul.f32 %v5178_v51, %v7221_v25  ;;  %v5158_v45 = vsel %vm5157_vm12, %v5755_v37, %v5154_v32 }
 0xf28   : > { %v5184_v30 = vmul.f32 %v5158_v45, %v7219_v34 }
 0xf29   : > { %v5197_v61 = vmul.f32 %v7233_v17, %v5186_v52 }
 0xf2a   : > { %v5195_v42 = vmul.f32 %v7233_v17, %v5184_v30 }
 0xf2b   : > { %v5208_v15 = vadd.f32 %v7238_v35, %v5197_v61 }
 0xf2c   : > { %v5206_v62 = vadd.f32 %v7238_v35, %v5195_v42 }
 0xf2d   : > { %5216 = vst.msk [vmem:[%s7246_s22 + $0x1c] sm:$0xf] %vm4382_vm6, %v5208_v15 }
 0xf2e   : > { %5214 = vst.msk [vmem:[%s7246_s22 + $0x14] sm:$0xf] %vm4382_vm6, %v5206_v62 }
 0xf2f PF: > { %s23_s25 = sadd.s32 1, %s5770_s25  }
 0xf30   : > { %p20_p4 = scmp.ge.s32.totalorder %s23_s25, 4  }
 0xf32   :  { %22 = sbr.rel (!%p20_p4) target bundleno = 1 (0x1), region = 127 }

</bundles_post_ra>
